<compile_context>
chip_gen: v7x
topology: tpu7x:2x2x1
jax: 0.10.0
libtpu: 0.0.40
codegen_flags: <defaults>
</compile_context>

<pallas_src>
import jax
import jax.numpy as jnp
from jax.experimental import pallas as pl
from jax.experimental.pallas import tpu as pltpu


# ----------------------------- static geometry ------------------------------
_H = _W = 32                    # input spatial
_HW = _H * _W                   # 1024 flattened pixels per image
_CIN = 3
_C1, _C2 = 6, 16                # conv channel counts
_K = 5                          # conv kernel size
_CK1 = _K * _CIN                # 15: conv1 lanes after kw-widening
_CK2 = _K * _C1                 # 30: conv2 lanes after kw-widening
_PW1 = 14                       # pooled-1 storage width (14x14 spatial)
_M1 = 2 * 13 * _W + 2 * 13 + 1  # 859: rows of the pool-1 max buffer
_A1 = 896                       # conv-1 accumulator rows (>= _M1+_W+1=892, /8 aligned)
_M2 = 2 * 4 * _PW1 + 2 * 4 + 1  # 121: rows of the pool-2 max buffer
_A2 = _M2 + _PW1 + 1            # 136: rows of conv-2 accumulator
_PWROWS = _A2 + (_K - 1) * _PW1  # 192: rows of the widened pooled-1 buffer
_NPOOL1 = 14 * 14               # 196 pooled-1 positions
_NPOOL2 = 5 * 5                 # 25  pooled-2 positions
_F1, _F2, _F3 = 120, 84, 10
_NOUT_PAD = 128                 # lane-dense padded logits


# ------------------------------- the kernel ---------------------------------
def _netb_kernel(x_ref, w1_ref, b1_ref, w2_ref, b2_ref, s1_ref, s2_ref,
                 wf1_ref, bf1_ref, wf2_ref, bf2_ref, wf3_ref, bf3_ref,
                 out_ref, acc1_ref, pw_ref):
    f32, bf16 = jnp.float32, jnp.bfloat16

    # ---- conv1 (5x5, 3->6): kw folded into lanes -> 5 aligned matmuls -------
    xv = x_ref[...]                                        # (1024, 15) bf16
    acc1_ref[...] = jnp.dot(xv[0:_A1, :], w1_ref[0],
                            preferred_element_type=f32)
    for di in range(1, _K):
        off = di * _W                                      # 32, 64, 96, 128 (aligned)
        acc1_ref[...] += jnp.dot(xv[off:off + _A1, :], w1_ref[di],
                                 preferred_element_type=f32)

    # ---- bias + ReLU + 2x2/2 maxpool (max of 4 shifts + selection matmul) ---
    # relu(max(x)+b) == maxpool(relu(x+b)) since relu is monotone & b per-channel
    a1 = acc1_ref[...]                                     # (896, 6) f32
    m1 = jnp.maximum(jnp.maximum(a1[0:_M1], a1[1:_M1 + 1]),
                     jnp.maximum(a1[_W:_W + _M1], a1[_W + 1:_W + 1 + _M1]))
    pooled1 = jnp.maximum(
        jnp.dot(s1_ref[...], m1.astype(bf16), preferred_element_type=f32)
        + b1_ref[...], 0.0)                                # (196, 6) f32

    # widen pooled-1 for conv2: pw[p, 6*t + c] = pooled1[p + t, c]
    for t in range(_K):
        pw_ref[:, _C1 * t:_C1 * (t + 1)] = pooled1[t:t + _PWROWS, :]

    # ---- conv2 (5x5, 6->16): 5 matmuls, value accumulator -------------------
    acc2 = jnp.dot(pw_ref[0:_A2, :].astype(bf16), w2_ref[0],
                   preferred_element_type=f32)             # (136, 16) f32
    for di in range(1, _K):
        off = di * _PW1
        acc2 = acc2 + jnp.dot(pw_ref[off:off + _A2, :].astype(bf16),
                              w2_ref[di], preferred_element_type=f32)

    m2 = jnp.maximum(jnp.maximum(acc2[0:_M2], acc2[1:_M2 + 1]),
                     jnp.maximum(acc2[_PW1:_PW1 + _M2],
                                 acc2[_PW1 + 1:_PW1 + 1 + _M2]))
    p2 = jnp.maximum(
        jnp.dot(s2_ref[...], m2.astype(bf16), preferred_element_type=f32)
        + b2_ref[...], 0.0)                                # (25, 16) f32

    # ---- fc1: torch's view(-1, 400) uses (c*25 + s) ordering; wrapper
    # pre-permutes the weight to [spatial, cin, cout], so contract per spatial
    # position (no in-kernel transpose/reshape).
    p2b = p2.astype(bf16)
    h1 = jnp.zeros((1, _F1), f32)
    for s in range(_NPOOL2):
        h1 = h1 + jnp.dot(p2b[s:s + 1, :], wf1_ref[s],
                          preferred_element_type=f32)
    h1 = jnp.maximum(h1 + bf1_ref[...], 0.0)               # (1, 120)

    h2 = jnp.maximum(jnp.dot(h1.astype(bf16), wf2_ref[...],
                             preferred_element_type=f32) + bf2_ref[...], 0.0)
    logits = jnp.dot(h2.astype(bf16), wf3_ref[...],
                     preferred_element_type=f32) + bf3_ref[...]   # (1, 128)
    out_ref[0] = logits                                    # lane-dense store


# ------------------------------ wrapper / glue -------------------------------
def _pool_select(n_out, width, n_rows, dtype):
    """(n_out^2, n_rows) 0/1 matrix: row p=pi*n_out+pj selects flat 2pi*width+2pj."""
    p = jnp.arange(n_out * n_out)
    r0 = 2 * (p // n_out) * width + 2 * (p % n_out)
    cols = jnp.arange(n_rows)
    return (cols[None, :] == r0[:, None]).astype(dtype)


def netb_forward(params, x_nchw):
    B = x_nchw.shape[0]
    f32, bf16 = jnp.float32, jnp.bfloat16

    # NCHW -> NHWC -> flatten spatial row-major per image: (B*H*W, Cin),
    # then fold the 5 horizontal (kw) taps into lanes: (B*H*W, 15) bf16.
    x_flat = jnp.transpose(x_nchw, (0, 2, 3, 1)).astype(f32).reshape(B * _HW, _CIN)
    x_pad = jnp.pad(x_flat, ((0, _K - 1), (0, 0)))
    x5 = jnp.concatenate([x_pad[t:t + B * _HW, :] for t in range(_K)],
                         axis=1).astype(bf16)              # (B*HW, 15)

    # conv weights: (out, in, kh, kw) -> (kh, kw*in, out), bf16 for the MXU
    w1 = jnp.transpose(params["conv1_w"], (2, 3, 1, 0)).reshape(_K, _CK1, _C1).astype(bf16)
    b1 = params["conv1_b"].reshape(1, _C1).astype(f32)
    w2 = jnp.transpose(params["conv2_w"], (2, 3, 1, 0)).reshape(_K, _CK2, _C2).astype(bf16)
    b2 = params["conv2_b"].reshape(1, _C2).astype(f32)

    # maxpool compaction (selection) matrices
    s1 = _pool_select(14, _W, _M1, bf16)        # (196, 859)
    s2 = _pool_select(5, _PW1, _M2, bf16)       # (25, 121)

    # fc1: torch flat index = c*25 + s  ->  kernel weight [s, c, o]
    wf1 = jnp.transpose(params["fc1_w"].reshape(_F1, _C2, _NPOOL2), (2, 1, 0)).astype(bf16)
    bf1 = params["fc1_b"].reshape(1, _F1).astype(f32)
    wf2 = params["fc2_w"].T.astype(bf16)                               # (120, 84)
    bf2 = params["fc2_b"].reshape(1, _F2).astype(f32)
    wf3 = jnp.pad(params["fc3_w"].T, ((0, 0), (0, _NOUT_PAD - _F3))).astype(bf16)  # (84, 128)
    bf3 = jnp.pad(params["fc3_b"], (0, _NOUT_PAD - _F3)).reshape(1, _NOUT_PAD).astype(f32)

    flops_per_img = 2 * (_A1 * _K * _CK1 * _C1 + _NPOOL1 * _M1 * _C1
                         + _A2 * _K * _CK2 * _C2 + _NPOOL2 * _M2 * _C2
                         + _C2 * _NPOOL2 * _F1 + _F1 * _F2 + _F2 * _F3)
    weight_bytes = sum(int(a.size) * a.dtype.itemsize
                       for a in (w1, b1, w2, b2, s1, s2, wf1, bf1, wf2, bf2, wf3, bf3))
    cost = pl.CostEstimate(flops=B * flops_per_img, transcendentals=0,
                           bytes_accessed=int(x5.size) * 2 + weight_bytes
                                          + B * _NOUT_PAD * 4)

    out = pl.pallas_call(
        _netb_kernel,
        out_shape=jax.ShapeDtypeStruct((B, 1, _NOUT_PAD), f32),
        grid_spec=pltpu.PrefetchScalarGridSpec(
            num_scalar_prefetch=0,
            grid=(B,),
            in_specs=[
                pl.BlockSpec((_HW, _CK1), lambda b: (b, 0)),            # x (per image, widened)
                pl.BlockSpec((_K, _CK1, _C1), lambda b: (0, 0, 0)),     # w1
                pl.BlockSpec((1, _C1), lambda b: (0, 0)),               # b1
                pl.BlockSpec((_K, _CK2, _C2), lambda b: (0, 0, 0)),     # w2
                pl.BlockSpec((1, _C2), lambda b: (0, 0)),               # b2
                pl.BlockSpec((_NPOOL1, _M1), lambda b: (0, 0)),         # S1
                pl.BlockSpec((_NPOOL2, _M2), lambda b: (0, 0)),         # S2
                pl.BlockSpec((_NPOOL2, _C2, _F1), lambda b: (0, 0, 0)),  # fc1 w
                pl.BlockSpec((1, _F1), lambda b: (0, 0)),               # fc1 b
                pl.BlockSpec((_F1, _F2), lambda b: (0, 0)),             # fc2 w
                pl.BlockSpec((1, _F2), lambda b: (0, 0)),               # fc2 b
                pl.BlockSpec((_F2, _NOUT_PAD), lambda b: (0, 0)),       # fc3 w (padded)
                pl.BlockSpec((1, _NOUT_PAD), lambda b: (0, 0)),         # fc3 b (padded)
            ],
            out_specs=pl.BlockSpec((1, 1, _NOUT_PAD), lambda b: (b, 0, 0)),
            scratch_shapes=[pltpu.VMEM((_A1, _C1), f32),                # conv1 accumulator
                            pltpu.VMEM((_PWROWS, _CK2), f32)],          # widened pooled-1
        ),
        compiler_params=pltpu.CompilerParams(
            dimension_semantics=("parallel",),
            vmem_limit_bytes=32 * 1024 * 1024,
        ),
        cost_estimate=cost,
    )(x5, w1, b1, w2, b2, s1, s2, wf1, bf1, wf2, bf2, wf3, bf3)

    return out.reshape(B, _NOUT_PAD)[:, :_F3]


# ------------------------------ parameter init -------------------------------
def init_params(key):
    """Torch-layout parameters with nn.Linear/Conv2d-style uniform init."""
    def uniform(k, shape, fan_in):
        bound = 1.0 / jnp.sqrt(jnp.float32(fan_in))
        return jax.random.uniform(k, shape, jnp.float32, -bound, bound)

    ks = jax.random.split(key, 10)
    return {
        "conv1_w": uniform(ks[0], (_C1, _CIN, _K, _K), _CIN * _K * _K),
        "conv1_b": uniform(ks[1], (_C1,), _CIN * _K * _K),
        "conv2_w": uniform(ks[2], (_C2, _C1, _K, _K), _C1 * _K * _K),
        "conv2_b": uniform(ks[3], (_C2,), _C1 * _K * _K),
        "fc1_w": uniform(ks[4], (_F1, _C2 * _NPOOL2), _C2 * _NPOOL2),
        "fc1_b": uniform(ks[5], (_F1,), _C2 * _NPOOL2),
        "fc2_w": uniform(ks[6], (_F2, _F1), _F1),
        "fc2_b": uniform(ks[7], (_F2,), _F1),
        "fc3_w": uniform(ks[8], (_F3, _F2), _F2),
        "fc3_b": uniform(ks[9], (_F3,), _F2),
    }


if __name__ == "__main__":
    key = jax.random.PRNGKey(0)
    kp, kx = jax.random.split(key)
    params = init_params(kp)
    # 32x32 spatial is required by the module (16*5*5 flatten after two 5x5
    # valid convs and two 2x2 pools).
    x = jax.random.normal(kx, (2, 3, 32, 32), dtype=jnp.float32)

    fwd = jax.jit(netb_forward)
    out = jax.block_until_ready(fwd(params, x))
    assert out.shape == (2, 10) and out.dtype == jnp.float32
    print("KERNEL_OK")
</pallas_src>

<mosaic_0001>
module attributes {stable_mosaic.version = 11 : i64} {
  func.func @_netb_kernel(%arg0: i32, %arg1: memref<1024x15xbf16, #tpu.memory_space<vmem>>, %arg2: memref<5x15x6xbf16, #tpu.memory_space<vmem>>, %arg3: memref<1x6xf32, #tpu.memory_space<vmem>>, %arg4: memref<5x30x16xbf16, #tpu.memory_space<vmem>>, %arg5: memref<1x16xf32, #tpu.memory_space<vmem>>, %arg6: memref<196x859xbf16, #tpu.memory_space<vmem>>, %arg7: memref<25x121xbf16, #tpu.memory_space<vmem>>, %arg8: memref<25x16x120xbf16, #tpu.memory_space<vmem>>, %arg9: memref<1x120xf32, #tpu.memory_space<vmem>>, %arg10: memref<120x84xbf16, #tpu.memory_space<vmem>>, %arg11: memref<1x84xf32, #tpu.memory_space<vmem>>, %arg12: memref<84x128xbf16, #tpu.memory_space<vmem>>, %arg13: memref<1x128xf32, #tpu.memory_space<vmem>>, %arg14: memref<1x1x128xf32, #tpu.memory_space<vmem>>, %arg15: memref<896x6xf32, #tpu.memory_space<vmem>>, %arg16: memref<192x30xf32, #tpu.memory_space<vmem>>) attributes {dimension_semantics = [#tpu.dimension_semantics<parallel>], iteration_bounds = array<i64: 2>, scalar_prefetch = 0 : i64, scratch_operands = 2 : i64, tpu.core_type = #tpu.core_type<tc>, window_params = [{transform_indices = @transform_0, window_bounds = array<i64: 1024, 15>}, {pipeline_mode = #tpu.pipeline_mode<synchronous>, transform_indices = @transform_1, window_bounds = array<i64: 5, 15, 6>}, {pipeline_mode = #tpu.pipeline_mode<synchronous>, transform_indices = @transform_2, window_bounds = array<i64: 1, 6>}, {pipeline_mode = #tpu.pipeline_mode<synchronous>, transform_indices = @transform_3, window_bounds = array<i64: 5, 30, 16>}, {pipeline_mode = #tpu.pipeline_mode<synchronous>, transform_indices = @transform_4, window_bounds = array<i64: 1, 16>}, {pipeline_mode = #tpu.pipeline_mode<synchronous>, transform_indices = @transform_5, window_bounds = array<i64: 196, 859>}, {pipeline_mode = #tpu.pipeline_mode<synchronous>, transform_indices = @transform_6, window_bounds = array<i64: 25, 121>}, {pipeline_mode = #tpu.pipeline_mode<synchronous>, transform_indices = @transform_7, window_bounds = array<i64: 25, 16, 120>}, {pipeline_mode = #tpu.pipeline_mode<synchronous>, transform_indices = @transform_8, window_bounds = array<i64: 1, 120>}, {pipeline_mode = #tpu.pipeline_mode<synchronous>, transform_indices = @transform_9, window_bounds = array<i64: 120, 84>}, {pipeline_mode = #tpu.pipeline_mode<synchronous>, transform_indices = @transform_10, window_bounds = array<i64: 1, 84>}, {pipeline_mode = #tpu.pipeline_mode<synchronous>, transform_indices = @transform_11, window_bounds = array<i64: 84, 128>}, {pipeline_mode = #tpu.pipeline_mode<synchronous>, transform_indices = @transform_12, window_bounds = array<i64: 1, 128>}, {transform_indices = @transform_13, window_bounds = array<i64: 1, 1, 128>}]} {
    %c0 = arith.constant 0 : index
    %c0_0 = arith.constant 0 : index
    %0 = vector.load %arg1[%c0, %c0_0] : memref<1024x15xbf16, #tpu.memory_space<vmem>>, vector<1024x15xbf16>
    %1 = vector.extract_strided_slice %0 {offsets = [0, 0], sizes = [896, 15], strides = [1, 1]} : vector<1024x15xbf16> to vector<896x15xbf16>
    %c0_1 = arith.constant 0 : index
    %c0_2 = arith.constant 0 : index
    %c0_3 = arith.constant 0 : index
    %2 = vector.load %arg2[%c0_1, %c0_2, %c0_3] : memref<5x15x6xbf16, #tpu.memory_space<vmem>>, vector<1x15x6xbf16>
    %3 = vector.shape_cast %2 : vector<1x15x6xbf16> to vector<15x6xbf16>
    %cst = arith.constant dense<0.000000e+00> : vector<896x6xf32>
    %4 = tpu.matmul %1, %3, %cst {dimension_numbers = #tpu.dot_dimension_numbers<[1], [0], [0], [1], [0, 0, 1, 1], [], []>} : vector<896x15xbf16>, vector<15x6xbf16>, vector<896x6xf32> -> vector<896x6xf32>
    %c0_4 = arith.constant 0 : index
    %c0_5 = arith.constant 0 : index
    %5 = vector.load %arg15[%c0_4, %c0_5] : memref<896x6xf32, #tpu.memory_space<vmem>>, vector<896x6xf32>
    tpu.vector_store %arg15[%c0_4, %c0_5], %4 {strides = array<i32>} : memref<896x6xf32, #tpu.memory_space<vmem>>, vector<896x6xf32>,
    %c0_6 = arith.constant 0 : index
    %c0_7 = arith.constant 0 : index
    %6 = vector.load %arg15[%c0_6, %c0_7] : memref<896x6xf32, #tpu.memory_space<vmem>>, vector<896x6xf32>
    %7 = vector.extract_strided_slice %0 {offsets = [32, 0], sizes = [896, 15], strides = [1, 1]} : vector<1024x15xbf16> to vector<896x15xbf16>
    %c1 = arith.constant 1 : index
    %c0_8 = arith.constant 0 : index
    %c0_9 = arith.constant 0 : index
    %8 = vector.load %arg2[%c1, %c0_8, %c0_9] : memref<5x15x6xbf16, #tpu.memory_space<vmem>>, vector<1x15x6xbf16>
    %9 = vector.shape_cast %8 : vector<1x15x6xbf16> to vector<15x6xbf16>
    %cst_10 = arith.constant dense<0.000000e+00> : vector<896x6xf32>
    %10 = tpu.matmul %7, %9, %cst_10 {dimension_numbers = #tpu.dot_dimension_numbers<[1], [0], [0], [1], [0, 0, 1, 1], [], []>} : vector<896x15xbf16>, vector<15x6xbf16>, vector<896x6xf32> -> vector<896x6xf32>
    %11 = arith.addf %6, %10 : vector<896x6xf32>
    %c0_11 = arith.constant 0 : index
    %c0_12 = arith.constant 0 : index
    %12 = vector.load %arg15[%c0_11, %c0_12] : memref<896x6xf32, #tpu.memory_space<vmem>>, vector<896x6xf32>
    tpu.vector_store %arg15[%c0_11, %c0_12], %11 {strides = array<i32>} : memref<896x6xf32, #tpu.memory_space<vmem>>, vector<896x6xf32>,
    %c0_13 = arith.constant 0 : index
    %c0_14 = arith.constant 0 : index
    %13 = vector.load %arg15[%c0_13, %c0_14] : memref<896x6xf32, #tpu.memory_space<vmem>>, vector<896x6xf32>
    %14 = vector.extract_strided_slice %0 {offsets = [64, 0], sizes = [896, 15], strides = [1, 1]} : vector<1024x15xbf16> to vector<896x15xbf16>
    %c2 = arith.constant 2 : index
    %c0_15 = arith.constant 0 : index
    %c0_16 = arith.constant 0 : index
    %15 = vector.load %arg2[%c2, %c0_15, %c0_16] : memref<5x15x6xbf16, #tpu.memory_space<vmem>>, vector<1x15x6xbf16>
    %16 = vector.shape_cast %15 : vector<1x15x6xbf16> to vector<15x6xbf16>
    %cst_17 = arith.constant dense<0.000000e+00> : vector<896x6xf32>
    %17 = tpu.matmul %14, %16, %cst_17 {dimension_numbers = #tpu.dot_dimension_numbers<[1], [0], [0], [1], [0, 0, 1, 1], [], []>} : vector<896x15xbf16>, vector<15x6xbf16>, vector<896x6xf32> -> vector<896x6xf32>
    %18 = arith.addf %13, %17 : vector<896x6xf32>
    %c0_18 = arith.constant 0 : index
    %c0_19 = arith.constant 0 : index
    %19 = vector.load %arg15[%c0_18, %c0_19] : memref<896x6xf32, #tpu.memory_space<vmem>>, vector<896x6xf32>
    tpu.vector_store %arg15[%c0_18, %c0_19], %18 {strides = array<i32>} : memref<896x6xf32, #tpu.memory_space<vmem>>, vector<896x6xf32>,
    %c0_20 = arith.constant 0 : index
    %c0_21 = arith.constant 0 : index
    %20 = vector.load %arg15[%c0_20, %c0_21] : memref<896x6xf32, #tpu.memory_space<vmem>>, vector<896x6xf32>
    %21 = vector.extract_strided_slice %0 {offsets = [96, 0], sizes = [896, 15], strides = [1, 1]} : vector<1024x15xbf16> to vector<896x15xbf16>
    %c3 = arith.constant 3 : index
    %c0_22 = arith.constant 0 : index
    %c0_23 = arith.constant 0 : index
    %22 = vector.load %arg2[%c3, %c0_22, %c0_23] : memref<5x15x6xbf16, #tpu.memory_space<vmem>>, vector<1x15x6xbf16>
    %23 = vector.shape_cast %22 : vector<1x15x6xbf16> to vector<15x6xbf16>
    %cst_24 = arith.constant dense<0.000000e+00> : vector<896x6xf32>
    %24 = tpu.matmul %21, %23, %cst_24 {dimension_numbers = #tpu.dot_dimension_numbers<[1], [0], [0], [1], [0, 0, 1, 1], [], []>} : vector<896x15xbf16>, vector<15x6xbf16>, vector<896x6xf32> -> vector<896x6xf32>
    %25 = arith.addf %20, %24 : vector<896x6xf32>
    %c0_25 = arith.constant 0 : index
    %c0_26 = arith.constant 0 : index
    %26 = vector.load %arg15[%c0_25, %c0_26] : memref<896x6xf32, #tpu.memory_space<vmem>>, vector<896x6xf32>
    tpu.vector_store %arg15[%c0_25, %c0_26], %25 {strides = array<i32>} : memref<896x6xf32, #tpu.memory_space<vmem>>, vector<896x6xf32>,
    %c0_27 = arith.constant 0 : index
    %c0_28 = arith.constant 0 : index
    %27 = vector.load %arg15[%c0_27, %c0_28] : memref<896x6xf32, #tpu.memory_space<vmem>>, vector<896x6xf32>
    %28 = vector.extract_strided_slice %0 {offsets = [128, 0], sizes = [896, 15], strides = [1, 1]} : vector<1024x15xbf16> to vector<896x15xbf16>
    %c4 = arith.constant 4 : index
    %c0_29 = arith.constant 0 : index
    %c0_30 = arith.constant 0 : index
    %29 = vector.load %arg2[%c4, %c0_29, %c0_30] : memref<5x15x6xbf16, #tpu.memory_space<vmem>>, vector<1x15x6xbf16>
    %30 = vector.shape_cast %29 : vector<1x15x6xbf16> to vector<15x6xbf16>
    %cst_31 = arith.constant dense<0.000000e+00> : vector<896x6xf32>
    %31 = tpu.matmul %28, %30, %cst_31 {dimension_numbers = #tpu.dot_dimension_numbers<[1], [0], [0], [1], [0, 0, 1, 1], [], []>} : vector<896x15xbf16>, vector<15x6xbf16>, vector<896x6xf32> -> vector<896x6xf32>
    %32 = arith.addf %27, %31 : vector<896x6xf32>
    %c0_32 = arith.constant 0 : index
    %c0_33 = arith.constant 0 : index
    %33 = vector.load %arg15[%c0_32, %c0_33] : memref<896x6xf32, #tpu.memory_space<vmem>>, vector<896x6xf32>
    tpu.vector_store %arg15[%c0_32, %c0_33], %32 {strides = array<i32>} : memref<896x6xf32, #tpu.memory_space<vmem>>, vector<896x6xf32>,
    %c0_34 = arith.constant 0 : index
    %c0_35 = arith.constant 0 : index
    %34 = vector.load %arg15[%c0_34, %c0_35] : memref<896x6xf32, #tpu.memory_space<vmem>>, vector<896x6xf32>
    %35 = vector.extract_strided_slice %34 {offsets = [0, 0], sizes = [859, 6], strides = [1, 1]} : vector<896x6xf32> to vector<859x6xf32>
    %36 = vector.extract_strided_slice %34 {offsets = [1, 0], sizes = [859, 6], strides = [1, 1]} : vector<896x6xf32> to vector<859x6xf32>
    %37 = arith.maximumf %35, %36 : vector<859x6xf32>
    %38 = vector.extract_strided_slice %34 {offsets = [32, 0], sizes = [859, 6], strides = [1, 1]} : vector<896x6xf32> to vector<859x6xf32>
    %39 = vector.extract_strided_slice %34 {offsets = [33, 0], sizes = [859, 6], strides = [1, 1]} : vector<896x6xf32> to vector<859x6xf32>
    %40 = arith.maximumf %38, %39 : vector<859x6xf32>
    %41 = arith.maximumf %37, %40 : vector<859x6xf32>
    %c0_36 = arith.constant 0 : index
    %c0_37 = arith.constant 0 : index
    %42 = vector.load %arg6[%c0_36, %c0_37] : memref<196x859xbf16, #tpu.memory_space<vmem>>, vector<196x859xbf16>
    %43 = arith.truncf %41 : vector<859x6xf32> to vector<859x6xbf16>
    %cst_38 = arith.constant dense<0.000000e+00> : vector<196x6xf32>
    %44 = tpu.matmul %42, %43, %cst_38 {dimension_numbers = #tpu.dot_dimension_numbers<[1], [0], [0], [1], [0, 0, 1, 1], [], []>} : vector<196x859xbf16>, vector<859x6xbf16>, vector<196x6xf32> -> vector<196x6xf32>
    %c0_39 = arith.constant 0 : index
    %c0_40 = arith.constant 0 : index
    %45 = vector.load %arg3[%c0_39, %c0_40] : memref<1x6xf32, #tpu.memory_space<vmem>>, vector<1x6xf32>
    %46 = vector.broadcast %45 : vector<1x6xf32> to vector<196x6xf32>
    %47 = arith.addf %44, %46 : vector<196x6xf32>
    %cst_41 = arith.constant 0.000000e+00 : f32
    %48 = vector.broadcast %cst_41 : f32 to vector<196x6xf32>
    %49 = arith.maximumf %47, %48 : vector<196x6xf32>
    %50 = vector.extract_strided_slice %49 {offsets = [0, 0], sizes = [192, 6], strides = [1, 1]} : vector<196x6xf32> to vector<192x6xf32>
    %c0_42 = arith.constant 0 : index
    %c0_43 = arith.constant 0 : index
    %51 = vector.load %arg16[%c0_42, %c0_43] : memref<192x30xf32, #tpu.memory_space<vmem>>, vector<192x6xf32>
    tpu.vector_store %arg16[%c0_42, %c0_43], %50 {strides = array<i32>} : memref<192x30xf32, #tpu.memory_space<vmem>>, vector<192x6xf32>,
    %52 = vector.extract_strided_slice %49 {offsets = [1, 0], sizes = [192, 6], strides = [1, 1]} : vector<196x6xf32> to vector<192x6xf32>
    %c0_44 = arith.constant 0 : index
    %c6 = arith.constant 6 : index
    %53 = vector.load %arg16[%c0_44, %c6] : memref<192x30xf32, #tpu.memory_space<vmem>>, vector<192x6xf32>
    tpu.vector_store %arg16[%c0_44, %c6], %52 {strides = array<i32>} : memref<192x30xf32, #tpu.memory_space<vmem>>, vector<192x6xf32>,
    %54 = vector.extract_strided_slice %49 {offsets = [2, 0], sizes = [192, 6], strides = [1, 1]} : vector<196x6xf32> to vector<192x6xf32>
    %c0_45 = arith.constant 0 : index
    %c12 = arith.constant 12 : index
    %55 = vector.load %arg16[%c0_45, %c12] : memref<192x30xf32, #tpu.memory_space<vmem>>, vector<192x6xf32>
    tpu.vector_store %arg16[%c0_45, %c12], %54 {strides = array<i32>} : memref<192x30xf32, #tpu.memory_space<vmem>>, vector<192x6xf32>,
    %56 = vector.extract_strided_slice %49 {offsets = [3, 0], sizes = [192, 6], strides = [1, 1]} : vector<196x6xf32> to vector<192x6xf32>
    %c0_46 = arith.constant 0 : index
    %c18 = arith.constant 18 : index
    %57 = vector.load %arg16[%c0_46, %c18] : memref<192x30xf32, #tpu.memory_space<vmem>>, vector<192x6xf32>
    tpu.vector_store %arg16[%c0_46, %c18], %56 {strides = array<i32>} : memref<192x30xf32, #tpu.memory_space<vmem>>, vector<192x6xf32>,
    %58 = vector.extract_strided_slice %49 {offsets = [4, 0], sizes = [192, 6], strides = [1, 1]} : vector<196x6xf32> to vector<192x6xf32>
    %c0_47 = arith.constant 0 : index
    %c24 = arith.constant 24 : index
    %59 = vector.load %arg16[%c0_47, %c24] : memref<192x30xf32, #tpu.memory_space<vmem>>, vector<192x6xf32>
    tpu.vector_store %arg16[%c0_47, %c24], %58 {strides = array<i32>} : memref<192x30xf32, #tpu.memory_space<vmem>>, vector<192x6xf32>,
    %c0_48 = arith.constant 0 : index
    %c0_49 = arith.constant 0 : index
    %60 = vector.load %arg16[%c0_48, %c0_49] : memref<192x30xf32, #tpu.memory_space<vmem>>, vector<136x30xf32>
    %61 = arith.truncf %60 : vector<136x30xf32> to vector<136x30xbf16>
    %c0_50 = arith.constant 0 : index
    %c0_51 = arith.constant 0 : index
    %c0_52 = arith.constant 0 : index
    %62 = vector.load %arg4[%c0_50, %c0_51, %c0_52] : memref<5x30x16xbf16, #tpu.memory_space<vmem>>, vector<1x30x16xbf16>
    %63 = vector.shape_cast %62 : vector<1x30x16xbf16> to vector<30x16xbf16>
    %cst_53 = arith.constant dense<0.000000e+00> : vector<136x16xf32>
    %64 = tpu.matmul %61, %63, %cst_53 {dimension_numbers = #tpu.dot_dimension_numbers<[1], [0], [0], [1], [0, 0, 1, 1], [], []>} : vector<136x30xbf16>, vector<30x16xbf16>, vector<136x16xf32> -> vector<136x16xf32>
    %c14 = arith.constant 14 : index
    %c0_54 = arith.constant 0 : index
    %65 = vector.load %arg16[%c14, %c0_54] : memref<192x30xf32, #tpu.memory_space<vmem>>, vector<136x30xf32>
    %66 = arith.truncf %65 : vector<136x30xf32> to vector<136x30xbf16>
    %c1_55 = arith.constant 1 : index
    %c0_56 = arith.constant 0 : index
    %c0_57 = arith.constant 0 : index
    %67 = vector.load %arg4[%c1_55, %c0_56, %c0_57] : memref<5x30x16xbf16, #tpu.memory_space<vmem>>, vector<1x30x16xbf16>
    %68 = vector.shape_cast %67 : vector<1x30x16xbf16> to vector<30x16xbf16>
    %cst_58 = arith.constant dense<0.000000e+00> : vector<136x16xf32>
    %69 = tpu.matmul %66, %68, %cst_58 {dimension_numbers = #tpu.dot_dimension_numbers<[1], [0], [0], [1], [0, 0, 1, 1], [], []>} : vector<136x30xbf16>, vector<30x16xbf16>, vector<136x16xf32> -> vector<136x16xf32>
    %70 = arith.addf %64, %69 : vector<136x16xf32>
    %c28 = arith.constant 28 : index
    %c0_59 = arith.constant 0 : index
    %71 = vector.load %arg16[%c28, %c0_59] : memref<192x30xf32, #tpu.memory_space<vmem>>, vector<136x30xf32>
    %72 = arith.truncf %71 : vector<136x30xf32> to vector<136x30xbf16>
    %c2_60 = arith.constant 2 : index
    %c0_61 = arith.constant 0 : index
    %c0_62 = arith.constant 0 : index
    %73 = vector.load %arg4[%c2_60, %c0_61, %c0_62] : memref<5x30x16xbf16, #tpu.memory_space<vmem>>, vector<1x30x16xbf16>
    %74 = vector.shape_cast %73 : vector<1x30x16xbf16> to vector<30x16xbf16>
    %cst_63 = arith.constant dense<0.000000e+00> : vector<136x16xf32>
    %75 = tpu.matmul %72, %74, %cst_63 {dimension_numbers = #tpu.dot_dimension_numbers<[1], [0], [0], [1], [0, 0, 1, 1], [], []>} : vector<136x30xbf16>, vector<30x16xbf16>, vector<136x16xf32> -> vector<136x16xf32>
    %76 = arith.addf %70, %75 : vector<136x16xf32>
    %c42 = arith.constant 42 : index
    %c0_64 = arith.constant 0 : index
    %77 = vector.load %arg16[%c42, %c0_64] : memref<192x30xf32, #tpu.memory_space<vmem>>, vector<136x30xf32>
    %78 = arith.truncf %77 : vector<136x30xf32> to vector<136x30xbf16>
    %c3_65 = arith.constant 3 : index
    %c0_66 = arith.constant 0 : index
    %c0_67 = arith.constant 0 : index
    %79 = vector.load %arg4[%c3_65, %c0_66, %c0_67] : memref<5x30x16xbf16, #tpu.memory_space<vmem>>, vector<1x30x16xbf16>
    %80 = vector.shape_cast %79 : vector<1x30x16xbf16> to vector<30x16xbf16>
    %cst_68 = arith.constant dense<0.000000e+00> : vector<136x16xf32>
    %81 = tpu.matmul %78, %80, %cst_68 {dimension_numbers = #tpu.dot_dimension_numbers<[1], [0], [0], [1], [0, 0, 1, 1], [], []>} : vector<136x30xbf16>, vector<30x16xbf16>, vector<136x16xf32> -> vector<136x16xf32>
    %82 = arith.addf %76, %81 : vector<136x16xf32>
    %c56 = arith.constant 56 : index
    %c0_69 = arith.constant 0 : index
    %83 = vector.load %arg16[%c56, %c0_69] : memref<192x30xf32, #tpu.memory_space<vmem>>, vector<136x30xf32>
    %84 = arith.truncf %83 : vector<136x30xf32> to vector<136x30xbf16>
    %c4_70 = arith.constant 4 : index
    %c0_71 = arith.constant 0 : index
    %c0_72 = arith.constant 0 : index
    %85 = vector.load %arg4[%c4_70, %c0_71, %c0_72] : memref<5x30x16xbf16, #tpu.memory_space<vmem>>, vector<1x30x16xbf16>
    %86 = vector.shape_cast %85 : vector<1x30x16xbf16> to vector<30x16xbf16>
    %cst_73 = arith.constant dense<0.000000e+00> : vector<136x16xf32>
    %87 = tpu.matmul %84, %86, %cst_73 {dimension_numbers = #tpu.dot_dimension_numbers<[1], [0], [0], [1], [0, 0, 1, 1], [], []>} : vector<136x30xbf16>, vector<30x16xbf16>, vector<136x16xf32> -> vector<136x16xf32>
    %88 = arith.addf %82, %87 : vector<136x16xf32>
    %89 = vector.extract_strided_slice %88 {offsets = [0, 0], sizes = [121, 16], strides = [1, 1]} : vector<136x16xf32> to vector<121x16xf32>
    %90 = vector.extract_strided_slice %88 {offsets = [1, 0], sizes = [121, 16], strides = [1, 1]} : vector<136x16xf32> to vector<121x16xf32>
    %91 = arith.maximumf %89, %90 : vector<121x16xf32>
    %92 = vector.extract_strided_slice %88 {offsets = [14, 0], sizes = [121, 16], strides = [1, 1]} : vector<136x16xf32> to vector<121x16xf32>
    %93 = vector.extract_strided_slice %88 {offsets = [15, 0], sizes = [121, 16], strides = [1, 1]} : vector<136x16xf32> to vector<121x16xf32>
    %94 = arith.maximumf %92, %93 : vector<121x16xf32>
    %95 = arith.maximumf %91, %94 : vector<121x16xf32>
    %c0_74 = arith.constant 0 : index
    %c0_75 = arith.constant 0 : index
    %96 = vector.load %arg7[%c0_74, %c0_75] : memref<25x121xbf16, #tpu.memory_space<vmem>>, vector<25x121xbf16>
    %97 = arith.truncf %95 : vector<121x16xf32> to vector<121x16xbf16>
    %cst_76 = arith.constant dense<0.000000e+00> : vector<25x16xf32>
    %98 = tpu.matmul %96, %97, %cst_76 {dimension_numbers = #tpu.dot_dimension_numbers<[1], [0], [0], [1], [0, 0, 1, 1], [], []>} : vector<25x121xbf16>, vector<121x16xbf16>, vector<25x16xf32> -> vector<25x16xf32>
    %c0_77 = arith.constant 0 : index
    %c0_78 = arith.constant 0 : index
    %99 = vector.load %arg5[%c0_77, %c0_78] : memref<1x16xf32, #tpu.memory_space<vmem>>, vector<1x16xf32>
    %100 = vector.broadcast %99 : vector<1x16xf32> to vector<25x16xf32>
    %101 = arith.addf %98, %100 : vector<25x16xf32>
    %cst_79 = arith.constant 0.000000e+00 : f32
    %102 = vector.broadcast %cst_79 : f32 to vector<25x16xf32>
    %103 = arith.maximumf %101, %102 : vector<25x16xf32>
    %104 = arith.truncf %103 : vector<25x16xf32> to vector<25x16xbf16>
    %cst_80 = arith.constant 0.000000e+00 : f32
    %105 = vector.broadcast %cst_80 : f32 to vector<1x120xf32>
    %106 = vector.extract_strided_slice %104 {offsets = [0, 0], sizes = [1, 16], strides = [1, 1]} : vector<25x16xbf16> to vector<1x16xbf16>
    %c0_81 = arith.constant 0 : index
    %c0_82 = arith.constant 0 : index
    %c0_83 = arith.constant 0 : index
    %107 = vector.load %arg8[%c0_81, %c0_82, %c0_83] : memref<25x16x120xbf16, #tpu.memory_space<vmem>>, vector<1x16x120xbf16>
    %108 = vector.shape_cast %107 : vector<1x16x120xbf16> to vector<16x120xbf16>
    %cst_84 = arith.constant dense<0.000000e+00> : vector<1x120xf32>
    %109 = tpu.matmul %106, %108, %cst_84 {dimension_numbers = #tpu.dot_dimension_numbers<[1], [0], [0], [1], [0, 0, 1, 1], [], []>} : vector<1x16xbf16>, vector<16x120xbf16>, vector<1x120xf32> -> vector<1x120xf32>
    %110 = arith.addf %105, %109 : vector<1x120xf32>
    %111 = vector.extract_strided_slice %104 {offsets = [1, 0], sizes = [1, 16], strides = [1, 1]} : vector<25x16xbf16> to vector<1x16xbf16>
    %c1_85 = arith.constant 1 : index
    %c0_86 = arith.constant 0 : index
    %c0_87 = arith.constant 0 : index
    %112 = vector.load %arg8[%c1_85, %c0_86, %c0_87] : memref<25x16x120xbf16, #tpu.memory_space<vmem>>, vector<1x16x120xbf16>
    %113 = vector.shape_cast %112 : vector<1x16x120xbf16> to vector<16x120xbf16>
    %cst_88 = arith.constant dense<0.000000e+00> : vector<1x120xf32>
    %114 = tpu.matmul %111, %113, %cst_88 {dimension_numbers = #tpu.dot_dimension_numbers<[1], [0], [0], [1], [0, 0, 1, 1], [], []>} : vector<1x16xbf16>, vector<16x120xbf16>, vector<1x120xf32> -> vector<1x120xf32>
    %115 = arith.addf %110, %114 : vector<1x120xf32>
    %116 = vector.extract_strided_slice %104 {offsets = [2, 0], sizes = [1, 16], strides = [1, 1]} : vector<25x16xbf16> to vector<1x16xbf16>
    %c2_89 = arith.constant 2 : index
    %c0_90 = arith.constant 0 : index
    %c0_91 = arith.constant 0 : index
    %117 = vector.load %arg8[%c2_89, %c0_90, %c0_91] : memref<25x16x120xbf16, #tpu.memory_space<vmem>>, vector<1x16x120xbf16>
    %118 = vector.shape_cast %117 : vector<1x16x120xbf16> to vector<16x120xbf16>
    %cst_92 = arith.constant dense<0.000000e+00> : vector<1x120xf32>
    %119 = tpu.matmul %116, %118, %cst_92 {dimension_numbers = #tpu.dot_dimension_numbers<[1], [0], [0], [1], [0, 0, 1, 1], [], []>} : vector<1x16xbf16>, vector<16x120xbf16>, vector<1x120xf32> -> vector<1x120xf32>
    %120 = arith.addf %115, %119 : vector<1x120xf32>
    %121 = vector.extract_strided_slice %104 {offsets = [3, 0], sizes = [1, 16], strides = [1, 1]} : vector<25x16xbf16> to vector<1x16xbf16>
    %c3_93 = arith.constant 3 : index
    %c0_94 = arith.constant 0 : index
    %c0_95 = arith.constant 0 : index
    %122 = vector.load %arg8[%c3_93, %c0_94, %c0_95] : memref<25x16x120xbf16, #tpu.memory_space<vmem>>, vector<1x16x120xbf16>
    %123 = vector.shape_cast %122 : vector<1x16x120xbf16> to vector<16x120xbf16>
    %cst_96 = arith.constant dense<0.000000e+00> : vector<1x120xf32>
    %124 = tpu.matmul %121, %123, %cst_96 {dimension_numbers = #tpu.dot_dimension_numbers<[1], [0], [0], [1], [0, 0, 1, 1], [], []>} : vector<1x16xbf16>, vector<16x120xbf16>, vector<1x120xf32> -> vector<1x120xf32>
    %125 = arith.addf %120, %124 : vector<1x120xf32>
    %126 = vector.extract_strided_slice %104 {offsets = [4, 0], sizes = [1, 16], strides = [1, 1]} : vector<25x16xbf16> to vector<1x16xbf16>
    %c4_97 = arith.constant 4 : index
    %c0_98 = arith.constant 0 : index
    %c0_99 = arith.constant 0 : index
    %127 = vector.load %arg8[%c4_97, %c0_98, %c0_99] : memref<25x16x120xbf16, #tpu.memory_space<vmem>>, vector<1x16x120xbf16>
    %128 = vector.shape_cast %127 : vector<1x16x120xbf16> to vector<16x120xbf16>
    %cst_100 = arith.constant dense<0.000000e+00> : vector<1x120xf32>
    %129 = tpu.matmul %126, %128, %cst_100 {dimension_numbers = #tpu.dot_dimension_numbers<[1], [0], [0], [1], [0, 0, 1, 1], [], []>} : vector<1x16xbf16>, vector<16x120xbf16>, vector<1x120xf32> -> vector<1x120xf32>
    %130 = arith.addf %125, %129 : vector<1x120xf32>
    %131 = vector.extract_strided_slice %104 {offsets = [5, 0], sizes = [1, 16], strides = [1, 1]} : vector<25x16xbf16> to vector<1x16xbf16>
    %c5 = arith.constant 5 : index
    %c0_101 = arith.constant 0 : index
    %c0_102 = arith.constant 0 : index
    %132 = vector.load %arg8[%c5, %c0_101, %c0_102] : memref<25x16x120xbf16, #tpu.memory_space<vmem>>, vector<1x16x120xbf16>
    %133 = vector.shape_cast %132 : vector<1x16x120xbf16> to vector<16x120xbf16>
    %cst_103 = arith.constant dense<0.000000e+00> : vector<1x120xf32>
    %134 = tpu.matmul %131, %133, %cst_103 {dimension_numbers = #tpu.dot_dimension_numbers<[1], [0], [0], [1], [0, 0, 1, 1], [], []>} : vector<1x16xbf16>, vector<16x120xbf16>, vector<1x120xf32> -> vector<1x120xf32>
    %135 = arith.addf %130, %134 : vector<1x120xf32>
    %136 = vector.extract_strided_slice %104 {offsets = [6, 0], sizes = [1, 16], strides = [1, 1]} : vector<25x16xbf16> to vector<1x16xbf16>
    %c6_104 = arith.constant 6 : index
    %c0_105 = arith.constant 0 : index
    %c0_106 = arith.constant 0 : index
    %137 = vector.load %arg8[%c6_104, %c0_105, %c0_106] : memref<25x16x120xbf16, #tpu.memory_space<vmem>>, vector<1x16x120xbf16>
    %138 = vector.shape_cast %137 : vector<1x16x120xbf16> to vector<16x120xbf16>
    %cst_107 = arith.constant dense<0.000000e+00> : vector<1x120xf32>
    %139 = tpu.matmul %136, %138, %cst_107 {dimension_numbers = #tpu.dot_dimension_numbers<[1], [0], [0], [1], [0, 0, 1, 1], [], []>} : vector<1x16xbf16>, vector<16x120xbf16>, vector<1x120xf32> -> vector<1x120xf32>
    %140 = arith.addf %135, %139 : vector<1x120xf32>
    %141 = vector.extract_strided_slice %104 {offsets = [7, 0], sizes = [1, 16], strides = [1, 1]} : vector<25x16xbf16> to vector<1x16xbf16>
    %c7 = arith.constant 7 : index
    %c0_108 = arith.constant 0 : index
    %c0_109 = arith.constant 0 : index
    %142 = vector.load %arg8[%c7, %c0_108, %c0_109] : memref<25x16x120xbf16, #tpu.memory_space<vmem>>, vector<1x16x120xbf16>
    %143 = vector.shape_cast %142 : vector<1x16x120xbf16> to vector<16x120xbf16>
    %cst_110 = arith.constant dense<0.000000e+00> : vector<1x120xf32>
    %144 = tpu.matmul %141, %143, %cst_110 {dimension_numbers = #tpu.dot_dimension_numbers<[1], [0], [0], [1], [0, 0, 1, 1], [], []>} : vector<1x16xbf16>, vector<16x120xbf16>, vector<1x120xf32> -> vector<1x120xf32>
    %145 = arith.addf %140, %144 : vector<1x120xf32>
    %146 = vector.extract_strided_slice %104 {offsets = [8, 0], sizes = [1, 16], strides = [1, 1]} : vector<25x16xbf16> to vector<1x16xbf16>
    %c8 = arith.constant 8 : index
    %c0_111 = arith.constant 0 : index
    %c0_112 = arith.constant 0 : index
    %147 = vector.load %arg8[%c8, %c0_111, %c0_112] : memref<25x16x120xbf16, #tpu.memory_space<vmem>>, vector<1x16x120xbf16>
    %148 = vector.shape_cast %147 : vector<1x16x120xbf16> to vector<16x120xbf16>
    %cst_113 = arith.constant dense<0.000000e+00> : vector<1x120xf32>
    %149 = tpu.matmul %146, %148, %cst_113 {dimension_numbers = #tpu.dot_dimension_numbers<[1], [0], [0], [1], [0, 0, 1, 1], [], []>} : vector<1x16xbf16>, vector<16x120xbf16>, vector<1x120xf32> -> vector<1x120xf32>
    %150 = arith.addf %145, %149 : vector<1x120xf32>
    %151 = vector.extract_strided_slice %104 {offsets = [9, 0], sizes = [1, 16], strides = [1, 1]} : vector<25x16xbf16> to vector<1x16xbf16>
    %c9 = arith.constant 9 : index
    %c0_114 = arith.constant 0 : index
    %c0_115 = arith.constant 0 : index
    %152 = vector.load %arg8[%c9, %c0_114, %c0_115] : memref<25x16x120xbf16, #tpu.memory_space<vmem>>, vector<1x16x120xbf16>
    %153 = vector.shape_cast %152 : vector<1x16x120xbf16> to vector<16x120xbf16>
    %cst_116 = arith.constant dense<0.000000e+00> : vector<1x120xf32>
    %154 = tpu.matmul %151, %153, %cst_116 {dimension_numbers = #tpu.dot_dimension_numbers<[1], [0], [0], [1], [0, 0, 1, 1], [], []>} : vector<1x16xbf16>, vector<16x120xbf16>, vector<1x120xf32> -> vector<1x120xf32>
    %155 = arith.addf %150, %154 : vector<1x120xf32>
    %156 = vector.extract_strided_slice %104 {offsets = [10, 0], sizes = [1, 16], strides = [1, 1]} : vector<25x16xbf16> to vector<1x16xbf16>
    %c10 = arith.constant 10 : index
    %c0_117 = arith.constant 0 : index
    %c0_118 = arith.constant 0 : index
    %157 = vector.load %arg8[%c10, %c0_117, %c0_118] : memref<25x16x120xbf16, #tpu.memory_space<vmem>>, vector<1x16x120xbf16>
    %158 = vector.shape_cast %157 : vector<1x16x120xbf16> to vector<16x120xbf16>
    %cst_119 = arith.constant dense<0.000000e+00> : vector<1x120xf32>
    %159 = tpu.matmul %156, %158, %cst_119 {dimension_numbers = #tpu.dot_dimension_numbers<[1], [0], [0], [1], [0, 0, 1, 1], [], []>} : vector<1x16xbf16>, vector<16x120xbf16>, vector<1x120xf32> -> vector<1x120xf32>
    %160 = arith.addf %155, %159 : vector<1x120xf32>
    %161 = vector.extract_strided_slice %104 {offsets = [11, 0], sizes = [1, 16], strides = [1, 1]} : vector<25x16xbf16> to vector<1x16xbf16>
    %c11 = arith.constant 11 : index
    %c0_120 = arith.constant 0 : index
    %c0_121 = arith.constant 0 : index
    %162 = vector.load %arg8[%c11, %c0_120, %c0_121] : memref<25x16x120xbf16, #tpu.memory_space<vmem>>, vector<1x16x120xbf16>
    %163 = vector.shape_cast %162 : vector<1x16x120xbf16> to vector<16x120xbf16>
    %cst_122 = arith.constant dense<0.000000e+00> : vector<1x120xf32>
    %164 = tpu.matmul %161, %163, %cst_122 {dimension_numbers = #tpu.dot_dimension_numbers<[1], [0], [0], [1], [0, 0, 1, 1], [], []>} : vector<1x16xbf16>, vector<16x120xbf16>, vector<1x120xf32> -> vector<1x120xf32>
    %165 = arith.addf %160, %164 : vector<1x120xf32>
    %166 = vector.extract_strided_slice %104 {offsets = [12, 0], sizes = [1, 16], strides = [1, 1]} : vector<25x16xbf16> to vector<1x16xbf16>
    %c12_123 = arith.constant 12 : index
    %c0_124 = arith.constant 0 : index
    %c0_125 = arith.constant 0 : index
    %167 = vector.load %arg8[%c12_123, %c0_124, %c0_125] : memref<25x16x120xbf16, #tpu.memory_space<vmem>>, vector<1x16x120xbf16>
    %168 = vector.shape_cast %167 : vector<1x16x120xbf16> to vector<16x120xbf16>
    %cst_126 = arith.constant dense<0.000000e+00> : vector<1x120xf32>
    %169 = tpu.matmul %166, %168, %cst_126 {dimension_numbers = #tpu.dot_dimension_numbers<[1], [0], [0], [1], [0, 0, 1, 1], [], []>} : vector<1x16xbf16>, vector<16x120xbf16>, vector<1x120xf32> -> vector<1x120xf32>
    %170 = arith.addf %165, %169 : vector<1x120xf32>
    %171 = vector.extract_strided_slice %104 {offsets = [13, 0], sizes = [1, 16], strides = [1, 1]} : vector<25x16xbf16> to vector<1x16xbf16>
    %c13 = arith.constant 13 : index
    %c0_127 = arith.constant 0 : index
    %c0_128 = arith.constant 0 : index
    %172 = vector.load %arg8[%c13, %c0_127, %c0_128] : memref<25x16x120xbf16, #tpu.memory_space<vmem>>, vector<1x16x120xbf16>
    %173 = vector.shape_cast %172 : vector<1x16x120xbf16> to vector<16x120xbf16>
    %cst_129 = arith.constant dense<0.000000e+00> : vector<1x120xf32>
    %174 = tpu.matmul %171, %173, %cst_129 {dimension_numbers = #tpu.dot_dimension_numbers<[1], [0], [0], [1], [0, 0, 1, 1], [], []>} : vector<1x16xbf16>, vector<16x120xbf16>, vector<1x120xf32> -> vector<1x120xf32>
    %175 = arith.addf %170, %174 : vector<1x120xf32>
    %176 = vector.extract_strided_slice %104 {offsets = [14, 0], sizes = [1, 16], strides = [1, 1]} : vector<25x16xbf16> to vector<1x16xbf16>
    %c14_130 = arith.constant 14 : index
    %c0_131 = arith.constant 0 : index
    %c0_132 = arith.constant 0 : index
    %177 = vector.load %arg8[%c14_130, %c0_131, %c0_132] : memref<25x16x120xbf16, #tpu.memory_space<vmem>>, vector<1x16x120xbf16>
    %178 = vector.shape_cast %177 : vector<1x16x120xbf16> to vector<16x120xbf16>
    %cst_133 = arith.constant dense<0.000000e+00> : vector<1x120xf32>
    %179 = tpu.matmul %176, %178, %cst_133 {dimension_numbers = #tpu.dot_dimension_numbers<[1], [0], [0], [1], [0, 0, 1, 1], [], []>} : vector<1x16xbf16>, vector<16x120xbf16>, vector<1x120xf32> -> vector<1x120xf32>
    %180 = arith.addf %175, %179 : vector<1x120xf32>
    %181 = vector.extract_strided_slice %104 {offsets = [15, 0], sizes = [1, 16], strides = [1, 1]} : vector<25x16xbf16> to vector<1x16xbf16>
    %c15 = arith.constant 15 : index
    %c0_134 = arith.constant 0 : index
    %c0_135 = arith.constant 0 : index
    %182 = vector.load %arg8[%c15, %c0_134, %c0_135] : memref<25x16x120xbf16, #tpu.memory_space<vmem>>, vector<1x16x120xbf16>
    %183 = vector.shape_cast %182 : vector<1x16x120xbf16> to vector<16x120xbf16>
    %cst_136 = arith.constant dense<0.000000e+00> : vector<1x120xf32>
    %184 = tpu.matmul %181, %183, %cst_136 {dimension_numbers = #tpu.dot_dimension_numbers<[1], [0], [0], [1], [0, 0, 1, 1], [], []>} : vector<1x16xbf16>, vector<16x120xbf16>, vector<1x120xf32> -> vector<1x120xf32>
    %185 = arith.addf %180, %184 : vector<1x120xf32>
    %186 = vector.extract_strided_slice %104 {offsets = [16, 0], sizes = [1, 16], strides = [1, 1]} : vector<25x16xbf16> to vector<1x16xbf16>
    %c16 = arith.constant 16 : index
    %c0_137 = arith.constant 0 : index
    %c0_138 = arith.constant 0 : index
    %187 = vector.load %arg8[%c16, %c0_137, %c0_138] : memref<25x16x120xbf16, #tpu.memory_space<vmem>>, vector<1x16x120xbf16>
    %188 = vector.shape_cast %187 : vector<1x16x120xbf16> to vector<16x120xbf16>
    %cst_139 = arith.constant dense<0.000000e+00> : vector<1x120xf32>
    %189 = tpu.matmul %186, %188, %cst_139 {dimension_numbers = #tpu.dot_dimension_numbers<[1], [0], [0], [1], [0, 0, 1, 1], [], []>} : vector<1x16xbf16>, vector<16x120xbf16>, vector<1x120xf32> -> vector<1x120xf32>
    %190 = arith.addf %185, %189 : vector<1x120xf32>
    %191 = vector.extract_strided_slice %104 {offsets = [17, 0], sizes = [1, 16], strides = [1, 1]} : vector<25x16xbf16> to vector<1x16xbf16>
    %c17 = arith.constant 17 : index
    %c0_140 = arith.constant 0 : index
    %c0_141 = arith.constant 0 : index
    %192 = vector.load %arg8[%c17, %c0_140, %c0_141] : memref<25x16x120xbf16, #tpu.memory_space<vmem>>, vector<1x16x120xbf16>
    %193 = vector.shape_cast %192 : vector<1x16x120xbf16> to vector<16x120xbf16>
    %cst_142 = arith.constant dense<0.000000e+00> : vector<1x120xf32>
    %194 = tpu.matmul %191, %193, %cst_142 {dimension_numbers = #tpu.dot_dimension_numbers<[1], [0], [0], [1], [0, 0, 1, 1], [], []>} : vector<1x16xbf16>, vector<16x120xbf16>, vector<1x120xf32> -> vector<1x120xf32>
    %195 = arith.addf %190, %194 : vector<1x120xf32>
    %196 = vector.extract_strided_slice %104 {offsets = [18, 0], sizes = [1, 16], strides = [1, 1]} : vector<25x16xbf16> to vector<1x16xbf16>
    %c18_143 = arith.constant 18 : index
    %c0_144 = arith.constant 0 : index
    %c0_145 = arith.constant 0 : index
    %197 = vector.load %arg8[%c18_143, %c0_144, %c0_145] : memref<25x16x120xbf16, #tpu.memory_space<vmem>>, vector<1x16x120xbf16>
    %198 = vector.shape_cast %197 : vector<1x16x120xbf16> to vector<16x120xbf16>
    %cst_146 = arith.constant dense<0.000000e+00> : vector<1x120xf32>
    %199 = tpu.matmul %196, %198, %cst_146 {dimension_numbers = #tpu.dot_dimension_numbers<[1], [0], [0], [1], [0, 0, 1, 1], [], []>} : vector<1x16xbf16>, vector<16x120xbf16>, vector<1x120xf32> -> vector<1x120xf32>
    %200 = arith.addf %195, %199 : vector<1x120xf32>
    %201 = vector.extract_strided_slice %104 {offsets = [19, 0], sizes = [1, 16], strides = [1, 1]} : vector<25x16xbf16> to vector<1x16xbf16>
    %c19 = arith.constant 19 : index
    %c0_147 = arith.constant 0 : index
    %c0_148 = arith.constant 0 : index
    %202 = vector.load %arg8[%c19, %c0_147, %c0_148] : memref<25x16x120xbf16, #tpu.memory_space<vmem>>, vector<1x16x120xbf16>
    %203 = vector.shape_cast %202 : vector<1x16x120xbf16> to vector<16x120xbf16>
    %cst_149 = arith.constant dense<0.000000e+00> : vector<1x120xf32>
    %204 = tpu.matmul %201, %203, %cst_149 {dimension_numbers = #tpu.dot_dimension_numbers<[1], [0], [0], [1], [0, 0, 1, 1], [], []>} : vector<1x16xbf16>, vector<16x120xbf16>, vector<1x120xf32> -> vector<1x120xf32>
    %205 = arith.addf %200, %204 : vector<1x120xf32>
    %206 = vector.extract_strided_slice %104 {offsets = [20, 0], sizes = [1, 16], strides = [1, 1]} : vector<25x16xbf16> to vector<1x16xbf16>
    %c20 = arith.constant 20 : index
    %c0_150 = arith.constant 0 : index
    %c0_151 = arith.constant 0 : index
    %207 = vector.load %arg8[%c20, %c0_150, %c0_151] : memref<25x16x120xbf16, #tpu.memory_space<vmem>>, vector<1x16x120xbf16>
    %208 = vector.shape_cast %207 : vector<1x16x120xbf16> to vector<16x120xbf16>
    %cst_152 = arith.constant dense<0.000000e+00> : vector<1x120xf32>
    %209 = tpu.matmul %206, %208, %cst_152 {dimension_numbers = #tpu.dot_dimension_numbers<[1], [0], [0], [1], [0, 0, 1, 1], [], []>} : vector<1x16xbf16>, vector<16x120xbf16>, vector<1x120xf32> -> vector<1x120xf32>
    %210 = arith.addf %205, %209 : vector<1x120xf32>
    %211 = vector.extract_strided_slice %104 {offsets = [21, 0], sizes = [1, 16], strides = [1, 1]} : vector<25x16xbf16> to vector<1x16xbf16>
    %c21 = arith.constant 21 : index
    %c0_153 = arith.constant 0 : index
    %c0_154 = arith.constant 0 : index
    %212 = vector.load %arg8[%c21, %c0_153, %c0_154] : memref<25x16x120xbf16, #tpu.memory_space<vmem>>, vector<1x16x120xbf16>
    %213 = vector.shape_cast %212 : vector<1x16x120xbf16> to vector<16x120xbf16>
    %cst_155 = arith.constant dense<0.000000e+00> : vector<1x120xf32>
    %214 = tpu.matmul %211, %213, %cst_155 {dimension_numbers = #tpu.dot_dimension_numbers<[1], [0], [0], [1], [0, 0, 1, 1], [], []>} : vector<1x16xbf16>, vector<16x120xbf16>, vector<1x120xf32> -> vector<1x120xf32>
    %215 = arith.addf %210, %214 : vector<1x120xf32>
    %216 = vector.extract_strided_slice %104 {offsets = [22, 0], sizes = [1, 16], strides = [1, 1]} : vector<25x16xbf16> to vector<1x16xbf16>
    %c22 = arith.constant 22 : index
    %c0_156 = arith.constant 0 : index
    %c0_157 = arith.constant 0 : index
    %217 = vector.load %arg8[%c22, %c0_156, %c0_157] : memref<25x16x120xbf16, #tpu.memory_space<vmem>>, vector<1x16x120xbf16>
    %218 = vector.shape_cast %217 : vector<1x16x120xbf16> to vector<16x120xbf16>
    %cst_158 = arith.constant dense<0.000000e+00> : vector<1x120xf32>
    %219 = tpu.matmul %216, %218, %cst_158 {dimension_numbers = #tpu.dot_dimension_numbers<[1], [0], [0], [1], [0, 0, 1, 1], [], []>} : vector<1x16xbf16>, vector<16x120xbf16>, vector<1x120xf32> -> vector<1x120xf32>
    %220 = arith.addf %215, %219 : vector<1x120xf32>
    %221 = vector.extract_strided_slice %104 {offsets = [23, 0], sizes = [1, 16], strides = [1, 1]} : vector<25x16xbf16> to vector<1x16xbf16>
    %c23 = arith.constant 23 : index
    %c0_159 = arith.constant 0 : index
    %c0_160 = arith.constant 0 : index
    %222 = vector.load %arg8[%c23, %c0_159, %c0_160] : memref<25x16x120xbf16, #tpu.memory_space<vmem>>, vector<1x16x120xbf16>
    %223 = vector.shape_cast %222 : vector<1x16x120xbf16> to vector<16x120xbf16>
    %cst_161 = arith.constant dense<0.000000e+00> : vector<1x120xf32>
    %224 = tpu.matmul %221, %223, %cst_161 {dimension_numbers = #tpu.dot_dimension_numbers<[1], [0], [0], [1], [0, 0, 1, 1], [], []>} : vector<1x16xbf16>, vector<16x120xbf16>, vector<1x120xf32> -> vector<1x120xf32>
    %225 = arith.addf %220, %224 : vector<1x120xf32>
    %226 = vector.extract_strided_slice %104 {offsets = [24, 0], sizes = [1, 16], strides = [1, 1]} : vector<25x16xbf16> to vector<1x16xbf16>
    %c24_162 = arith.constant 24 : index
    %c0_163 = arith.constant 0 : index
    %c0_164 = arith.constant 0 : index
    %227 = vector.load %arg8[%c24_162, %c0_163, %c0_164] : memref<25x16x120xbf16, #tpu.memory_space<vmem>>, vector<1x16x120xbf16>
    %228 = vector.shape_cast %227 : vector<1x16x120xbf16> to vector<16x120xbf16>
    %cst_165 = arith.constant dense<0.000000e+00> : vector<1x120xf32>
    %229 = tpu.matmul %226, %228, %cst_165 {dimension_numbers = #tpu.dot_dimension_numbers<[1], [0], [0], [1], [0, 0, 1, 1], [], []>} : vector<1x16xbf16>, vector<16x120xbf16>, vector<1x120xf32> -> vector<1x120xf32>
    %230 = arith.addf %225, %229 : vector<1x120xf32>
    %c0_166 = arith.constant 0 : index
    %c0_167 = arith.constant 0 : index
    %231 = vector.load %arg9[%c0_166, %c0_167] : memref<1x120xf32, #tpu.memory_space<vmem>>, vector<1x120xf32>
    %232 = arith.addf %230, %231 : vector<1x120xf32>
    %cst_168 = arith.constant 0.000000e+00 : f32
    %233 = vector.broadcast %cst_168 : f32 to vector<1x120xf32>
    %234 = arith.maximumf %232, %233 : vector<1x120xf32>
    %235 = arith.truncf %234 : vector<1x120xf32> to vector<1x120xbf16>
    %c0_169 = arith.constant 0 : index
    %c0_170 = arith.constant 0 : index
    %236 = vector.load %arg10[%c0_169, %c0_170] : memref<120x84xbf16, #tpu.memory_space<vmem>>, vector<120x84xbf16>
    %cst_171 = arith.constant dense<0.000000e+00> : vector<1x84xf32>
    %237 = tpu.matmul %235, %236, %cst_171 {dimension_numbers = #tpu.dot_dimension_numbers<[1], [0], [0], [1], [0, 0, 1, 1], [], []>} : vector<1x120xbf16>, vector<120x84xbf16>, vector<1x84xf32> -> vector<1x84xf32>
    %c0_172 = arith.constant 0 : index
    %c0_173 = arith.constant 0 : index
    %238 = vector.load %arg11[%c0_172, %c0_173] : memref<1x84xf32, #tpu.memory_space<vmem>>, vector<1x84xf32>
    %239 = arith.addf %237, %238 : vector<1x84xf32>
    %cst_174 = arith.constant 0.000000e+00 : f32
    %240 = vector.broadcast %cst_174 : f32 to vector<1x84xf32>
    %241 = arith.maximumf %239, %240 : vector<1x84xf32>
    %242 = arith.truncf %241 : vector<1x84xf32> to vector<1x84xbf16>
    %c0_175 = arith.constant 0 : index
    %c0_176 = arith.constant 0 : index
    %243 = vector.load %arg12[%c0_175, %c0_176] : memref<84x128xbf16, #tpu.memory_space<vmem>>, vector<84x128xbf16>
    %cst_177 = arith.constant dense<0.000000e+00> : vector<1x128xf32>
    %244 = tpu.matmul %242, %243, %cst_177 {dimension_numbers = #tpu.dot_dimension_numbers<[1], [0], [0], [1], [0, 0, 1, 1], [], []>} : vector<1x84xbf16>, vector<84x128xbf16>, vector<1x128xf32> -> vector<1x128xf32>
    %c0_178 = arith.constant 0 : index
    %c0_179 = arith.constant 0 : index
    %245 = vector.load %arg13[%c0_178, %c0_179] : memref<1x128xf32, #tpu.memory_space<vmem>>, vector<1x128xf32>
    %246 = arith.addf %244, %245 : vector<1x128xf32>
    %c0_180 = arith.constant 0 : index
    %c0_181 = arith.constant 0 : index
    %c0_182 = arith.constant 0 : index
    %247 = vector.load %arg14[%c0_180, %c0_181, %c0_182] : memref<1x1x128xf32, #tpu.memory_space<vmem>>, vector<1x1x128xf32>
    %248 = vector.shape_cast %247 : vector<1x1x128xf32> to vector<1x128xf32>
    %249 = vector.shape_cast %246 : vector<1x128xf32> to vector<1x1x128xf32>
    tpu.vector_store %arg14[%c0_180, %c0_181, %c0_182], %249 {strides = array<i32>} : memref<1x1x128xf32, #tpu.memory_space<vmem>>, vector<1x1x128xf32>,
    return
  }
  func.func @transform_0(%arg0: i32) -> (i32, i32) {
    %c0_i32 = arith.constant 0 : i32
    %c0_i32_0 = arith.constant 0 : i32
    return %arg0, %c0_i32 : i32, i32
  }
  func.func @transform_1(%arg0: i32) -> (i32, i32, i32) {
    %c0_i32 = arith.constant 0 : i32
    %c0_i32_0 = arith.constant 0 : i32
    %c0_i32_1 = arith.constant 0 : i32
    %c0_i32_2 = arith.constant 0 : i32
    return %c0_i32, %c0_i32_0, %c0_i32_1 : i32, i32, i32
  }
  func.func @transform_2(%arg0: i32) -> (i32, i32) {
    %c0_i32 = arith.constant 0 : i32
    %c0_i32_0 = arith.constant 0 : i32
    %c0_i32_1 = arith.constant 0 : i32
    return %c0_i32, %c0_i32_0 : i32, i32
  }
  func.func @transform_3(%arg0: i32) -> (i32, i32, i32) {
    %c0_i32 = arith.constant 0 : i32
    %c0_i32_0 = arith.constant 0 : i32
    %c0_i32_1 = arith.constant 0 : i32
    %c0_i32_2 = arith.constant 0 : i32
    return %c0_i32, %c0_i32_0, %c0_i32_1 : i32, i32, i32
  }
  func.func @transform_4(%arg0: i32) -> (i32, i32) {
    %c0_i32 = arith.constant 0 : i32
    %c0_i32_0 = arith.constant 0 : i32
    %c0_i32_1 = arith.constant 0 : i32
    return %c0_i32, %c0_i32_0 : i32, i32
  }
  func.func @transform_5(%arg0: i32) -> (i32, i32) {
    %c0_i32 = arith.constant 0 : i32
    %c0_i32_0 = arith.constant 0 : i32
    %c0_i32_1 = arith.constant 0 : i32
    return %c0_i32, %c0_i32_0 : i32, i32
  }
  func.func @transform_6(%arg0: i32) -> (i32, i32) {
    %c0_i32 = arith.constant 0 : i32
    %c0_i32_0 = arith.constant 0 : i32
    %c0_i32_1 = arith.constant 0 : i32
    return %c0_i32, %c0_i32_0 : i32, i32
  }
  func.func @transform_7(%arg0: i32) -> (i32, i32, i32) {
    %c0_i32 = arith.constant 0 : i32
    %c0_i32_0 = arith.constant 0 : i32
    %c0_i32_1 = arith.constant 0 : i32
    %c0_i32_2 = arith.constant 0 : i32
    return %c0_i32, %c0_i32_0, %c0_i32_1 : i32, i32, i32
  }
  func.func @transform_8(%arg0: i32) -> (i32, i32) {
    %c0_i32 = arith.constant 0 : i32
    %c0_i32_0 = arith.constant 0 : i32
    %c0_i32_1 = arith.constant 0 : i32
    return %c0_i32, %c0_i32_0 : i32, i32
  }
  func.func @transform_9(%arg0: i32) -> (i32, i32) {
    %c0_i32 = arith.constant 0 : i32
    %c0_i32_0 = arith.constant 0 : i32
    %c0_i32_1 = arith.constant 0 : i32
    return %c0_i32, %c0_i32_0 : i32, i32
  }
  func.func @transform_10(%arg0: i32) -> (i32, i32) {
    %c0_i32 = arith.constant 0 : i32
    %c0_i32_0 = arith.constant 0 : i32
    %c0_i32_1 = arith.constant 0 : i32
    return %c0_i32, %c0_i32_0 : i32, i32
  }
  func.func @transform_11(%arg0: i32) -> (i32, i32) {
    %c0_i32 = arith.constant 0 : i32
    %c0_i32_0 = arith.constant 0 : i32
    %c0_i32_1 = arith.constant 0 : i32
    return %c0_i32, %c0_i32_0 : i32, i32
  }
  func.func @transform_12(%arg0: i32) -> (i32, i32) {
    %c0_i32 = arith.constant 0 : i32
    %c0_i32_0 = arith.constant 0 : i32
    %c0_i32_1 = arith.constant 0 : i32
    return %c0_i32, %c0_i32_0 : i32, i32
  }
  func.func @transform_13(%arg0: i32) -> (i32, i32, i32) {
    %c0_i32 = arith.constant 0 : i32
    %c0_i32_0 = arith.constant 0 : i32
    %c0_i32_1 = arith.constant 0 : i32
    return %arg0, %c0_i32, %c0_i32_0 : i32, i32, i32
  }
}

</mosaic_0001>

<bundles_post_ra>
// kernel: netb_forward.1
= control target key start
LH: loop header
LB: loop body
LE: loop exit
PB: predicated region body
PF: predicated region fallthrough
CT: control target
= control target key end

     0   :  { %s17777_s0 = inlined_call_operand.vmem [shape: bf16[2048,15], index: 0, kind: input, shape index: {}]   ;;  %s17778_s1 = inlined_call_operand.vmem [shape: bf16[5,15,6], index: 1, kind: input, shape index: {}]   ;;  %s17779_s2 = inlined_call_operand.vmem [shape: f32[1,6], index: 2, kind: input, shape index: {}]   ;;  %s17780_s3 = inlined_call_operand.vmem [shape: bf16[5,30,16], index: 3, kind: input, shape index: {}]   ;;  %s17781_s4 = inlined_call_operand.vmem [shape: f32[1,16], index: 4, kind: input, shape index: {}]   ;;  %s17782_s5 = inlined_call_operand.vmem [shape: bf16[196,859], index: 5, kind: input, shape index: {}]   ;;  %s17783_s6 = inlined_call_operand.vmem [shape: bf16[25,121], index: 6, kind: input, shape index: {}]   ;;  %s17784_s7 = inlined_call_operand.vmem [shape: bf16[25,16,120], index: 7, kind: input, shape index: {}]   ;;  %s17785_s8 = inlined_call_operand.vmem [shape: f32[1,120], index: 8, kind: input, shape index: {}]   ;;  %s17786_s9 = inlined_call_operand.vmem [shape: bf16[120,84], index: 9, kind: input, shape index: {}]   ;;  %s17787_s10 = inlined_call_operand.vmem [shape: f32[1,84], index: 10, kind: input, shape index: {}]   ;;  %s17788_s11 = inlined_call_operand.vmem [shape: bf16[84,128], index: 11, kind: input, shape index: {}]   ;;  %s17789_s12 = inlined_call_operand.vmem [shape: f32[1,128], index: 12, kind: input, shape index: {}]   ;;  %s17790_s13 = inlined_call_operand.hbm [shape: f32[2,1,128], index: 13, kind: output, shape index: {}]  }
   0x1   :  { %17791 = sst [smem:[#allocation7_spill]] %s17777_s0 }
   0x2   :  { %17792 = sst [smem:[#allocation8_spill]] %s17778_s1 }
   0x3   :  { %18 = vsyncpa [#allocation5], 0 }
   0x4   :  { %20 = vsyncpa [#allocation5 + $0x1], 0  ;;  %s13379_s25 = smov 0   ;;  %s13381_s26 = smov 0  }
   0x5   :  { %s13383_s27 = smov 0   ;;  %s13385_s28 = smov 0  }
   0x6 LB: > { %s13400_s29 = sadd.s32 4294967295, %s13299_s28   ;;  %s10284_s30 = sadd.s32 4294967294, %s13299_s28   ;;  %s13299_s28 = sphi %s13385_s28, %s17800_s28   ;;  %s13295_s27 = sphi %s13383_s27, %s17799_s27   ;;  %s13291_s26 = sphi %s13381_s26, %s17798_s26   ;;  %s13287_s25 = sphi %s13379_s25, %s17797_s25  }
   0x7   : > { %s13404_s14 = sadd.s32 1, %s13299_s28   ;;  %s311_s15 = sadd.s32 1, %s13295_s27 }
   0x8   : > { %s308_s16 = ssub.s32 %s13299_s28, %s13404_s14  ;;  %p321_p0 = scmp.ne.s32.totalorder %s13295_s27, %s13291_s26 }
   0x9   : > { %p309_p1 = scmp.eq.s32.totalorder %s308_s16, 0  ;;  %p322_p2 = scmp.eq.s32.totalorder %s13400_s29, 1 }
   0xa   : > { %p327_p3 = scmp.ne.s32.totalorder %s13291_s26, %s13287_s25  ;;  %p328_p4 = scmp.eq.s32.totalorder %s10284_s30, 1 }
   0xb   : > { %s13415_s17 = scalar_select %p309_p1, %s13295_s27, %s311_s15  }
   0xc   : > { %p13417_p5 = por %p322_p2, %p321_p0  ;;  %p13421_p6 = por %p328_p4, %p327_p3 }
   0xd   : > { %p10287_p7 = scmp.ge.s32.totalorder %s13299_s28, 1  ;;  %p391_p8 = scmp.lt.s32.totalorder %s13299_s28, 3 }
   0xf   : > { %p392_p9 = pnand %p10287_p7, %p391_p8 }
  0x10   : > { %s17795_s1 = sld [smem:[#allocation8_spill]] (!%p392_p9)  ;;  %vm1025_vm0 = vcmask (!%p392_p9), 1046528   ;;  %vm1026_vm1 = vcmask (!%p392_p9), 1047552   ;;  %s10288_s22 = sshll.u32 (!%p392_p9), %s13400_s29, 7  ;;  %v13301_v1 = vmov (!%p392_p9), 65535   ;;  %vm856_vm2 = vcmask (!%p392_p9), 121856  }
  0x11   : > { %395 = sbr.rel (%p392_p9) target bundleno = 3133 (0xc3d), region = 72  ;;  %v1027_v2 = vsel (!%p392_p9), %vm1025_vm0, 4294967295, %v13301_v1  ;;  %p435_p10 = scmp.lt.s32.totalorder (!%p392_p9), %s10288_s22, 255  ;;  %vm1513_vm3 = vcmask (!%p392_p9), 48128   ;;  %vm13303_vm4 = vmmov (!%p392_p9), 0   ;;  %vm6428_vm5 = vcmask (!%p392_p9), 1044480  }
  0x12   : > { %v13436_v4 = vsel (!%p392_p9), %vm1026_vm1, %v1027_v2, 0  ;;  %s17796_s0 = sld [smem:[#allocation7_spill]] (!%p392_p9)  ;;  %vm6429_vm6 = vcmask (!%p392_p9), 1045504   ;;  %vm6388_vm7 = vcmask (!%p392_p9), 744448   ;;  %s13304_s16 = smov (!%p392_p9), 12   ;;  %vm7128_vm8 = vcmask (!%p392_p9), 97329  }
  0x13   : > { %s13305_s21 = smov (!%p392_p9), 6   ;;  %vm7231_vm9 = vcmask (!%p392_p9), 146530   ;;  %vm7130_vm10 = vcmask (!%p392_p9), 97328   ;;  %vm7233_vm11 = vcmask (!%p392_p9), 146528   ;;  %vm7336_vm12 = vcmask (!%p392_p9), 195728   ;;  %s432_s23 = sand.u32 (!%p392_p9), 1, %s13291_s26  }
  0x14   : > { %vm7439_vm13 = vcmask (!%p392_p9), 244928   ;;  %vm7537_vm14 = vcmask (!%p392_p9), 244736   ;;  %vm7334_vm15 = vcmask (!%p392_p9), 195731   ;;  %vm7437_vm1 = vcmask (!%p392_p9), 244932   ;;  %s10942_s15 = sshll.u32 (!%p392_p9), %s13400_s29, 4  ;;  %s10217_s24 = scalar_lea.sflag (!%p392_p9), [#allocation5], %s432_s23 }
  0x16   : > { %v12894_v0 = vld [vmem:[%s17795_s1] sm:$0xff] (!%p392_p9)   ;;  %v12907_v3 = vld [vmem:[%s17795_s1 + $0x8] sm:$0xff] (!%p392_p9)   ;;  %v12954_v51 = vld [vmem:[%s17795_s1 + $0x10] sm:$0xff] (!%p392_p9)  }
  0x17   : > { %v1030_v5 = vand.u32 (!%p392_p9), %v12894_v0, %v13436_v4  ;;  %v1763_v6 = vand.u32 (!%p392_p9), %v12907_v3, %v13436_v4  ;;  %v13710_v53 = vand.u32 (!%p392_p9), %v12954_v51, %v13436_v4  ;;  %v12955_v56 = vld [vmem:[%s17795_s1 + $0x18] sm:$0xff] (!%p392_p9)  }
  0x18   : > { %s17802_s22 = smov (!%p435_p10, %s10288_s22), 255  ;;  %v3451_v57 = vand.u32 %v12955_v56, %v13436_v4 }
  0x19   : > { %11662 = vmatprep.subr.bf16.mxu0 %v1030_v5  ;;  %s10289_s30 = sshll.u32 %s17802_s22, 2  ;;  %12702 = vmatprep.subr.bf16.mxu1 %v1763_v6  ;;  %s13307_s22 = smov 24  }
  0x1a   : > { %11663 = vmatpush3.bf16.msra.mxu0 %v1030_v5  ;;  %s13443_s20 = scalar_lea.vmem %s17796_s0, %s10289_s30  ;;  %12703 = vmatpush3.bf16.msra.mxu1 %v1763_v6  ;;  %s17735_s0 = scalar_lea.hbm %s17790_s13, %s10942_s15 }
  0x1b   : > { %v12895_v7 = vld [vmem:[%s13443_s20] sm:$0xff]   ;;  %11776 = vmatprep.subr.bf16.mxu0 %v1763_v6  ;;  %v12896_v8 = vld [vmem:[%s13443_s20 + $0x8] sm:$0xff]   ;;  %v13449_v9 = vld [vmem:[%s13443_s20 + $0x10] sm:$0xff]   ;;  %12004 = vmatprep.subr.bf16.mxu1 %v3451_v57  ;;  %s13308_s30 = smov [#allocation4]  }
  0x1c   : > { %11664 = vmatprep.mubr.msk.bf16.mxu0 %vm856_vm2, %v12895_v7  ;;  %v13455_v10 = vld [vmem:[%s13443_s20 + $0x18] sm:$0xff]   ;;  %v13458_v11 = vld [vmem:[%s13443_s20 + $0x20] sm:$0xff]   ;;  %v13468_v13 = vld [vmem:[%s13443_s20 + $0x68] sm:$0xff]  }
  0x1d   : > { %11665 = vmatmul.mubr.msk.bf16.vlgmr.msra.gmra.mrb[0].mxu0 %vm856_vm2, %v12896_v8  ;;  %v13465_v12 = vld [vmem:[%s13443_s20 + $0x60] sm:$0xff]   ;;  %v13473_v14 = vld [vmem:[%s13443_s20 + $0x70] sm:$0xff]   ;;  %v13476_v15 = vld [vmem:[%s13443_s20 + $0x28] sm:$0xff]  }
  0x1e   : > { %11668 = vmatprep.mubr.msk.bf16.mxu0 %vm856_vm2, %v13449_v9  ;;  %11777 = vmatpush3.bf16.msra.mxu0 %v1763_v6  ;;  %v13481_v16 = vld [vmem:[%s13443_s20 + $0x30] sm:$0xff]   ;;  %v13488_v17 = vld [vmem:[%s13443_s20 + $0x78] sm:$0xff]   ;;  %v13493_v18 = vld [vmem:[%s13443_s20 + $0x80] sm:$0xff]  }
  0x1f   : > { %11798 = vmatprep.mubr.msk.bf16.mxu1 %vm856_vm2, %v13465_v12  ;;  %v13496_v19 = vld [vmem:[%s13443_s20 + $0x38] sm:$0xff]   ;;  %v13501_v20 = vld [vmem:[%s13443_s20 + $0x40] sm:$0xff]   ;;  %v13508_v21 = vld [vmem:[%s13443_s20 + $0x88] sm:$0xff]   ;;  %11890 = vmatprep.subr.bf16.mxu0 %v13710_v53 }
  0x20   : > { %11799 = vmatmul.mubr.msk.bf16.vlgmr.msra.gmra.mrb[0].mxu1 %vm856_vm2, %v13468_v13  ;;  %v13513_v22 = vld [vmem:[%s13443_s20 + $0x90] sm:$0xff]   ;;  %v13516_v23 = vld [vmem:[%s13443_s20 + $0x48] sm:$0xff]   ;;  %v13528_v25 = vld [vmem:[%s13443_s20 + $0x98] sm:$0xff]  }
  0x21   : > { %11802 = vmatprep.mubr.msk.bf16.mxu1 %vm856_vm2, %v13473_v14  ;;  %v13521_v24 = vld [vmem:[%s13443_s20 + $0x50] sm:$0xff]   ;;  %v13533_v26 = vld [vmem:[%s13443_s20 + $0xa0] sm:$0xff]   ;;  %v13536_v27 = vld [vmem:[%s13443_s20 + $0x58] sm:$0xff]   ;;  %12005 = vmatpush3.bf16.msra.mxu1 %v3451_v57 }
  0x22   : > { %v13545_v28 = vld [vmem:[%s13443_s20 + $0xa8] sm:$0xff]   ;;  %v13550_v29 = vld [vmem:[%s13443_s20 + $0xb0] sm:$0xff]   ;;  %v13559_v30 = vld [vmem:[%s13443_s20 + $0xb8] sm:$0xff]  }
  0x23   : > { %v13564_v31 = vld [vmem:[%s13443_s20 + $0xc0] sm:$0xff]   ;;  %v13573_v32 = vld [vmem:[%s13443_s20 + $0xc8] sm:$0xff]   ;;  %v13578_v33 = vld [vmem:[%s13443_s20 + $0xd0] sm:$0xff]  }
  0x24   : > { %v13587_v34 = vld [vmem:[%s13443_s20 + $0xd8] sm:$0xff]   ;;  %v13592_v35 = vld [vmem:[%s13443_s20 + $0xe0] sm:$0xff]   ;;  %v13601_v36 = vld [vmem:[%s13443_s20 + $0xe8] sm:$0xff]  }
  0x25   : > { %11669 = vmatmul.mubr.msk.bf16.gmra.mrb[4].mxu0 %vm856_vm2, %v13455_v10  ;;  %v13606_v37 = vld [vmem:[%s13443_s20 + $0xf0] sm:$0xff]   ;;  %v13613_v38 = vld [vmem:[%s13443_s20 + $0xf8] sm:$0xff]   ;;  %v13616_v39 = vld [vmem:[%s13443_s20 + $0x100] sm:$0xff]  }
  0x26   : > { %11672 = vmatprep.mubr.msk.bf16.mxu0 %vm856_vm2, %v13458_v11  ;;  %v13627_v40 = vld [vmem:[%s13443_s20 + $0x108] sm:$0xff]   ;;  %v13630_v41 = vld [vmem:[%s13443_s20 + $0x110] sm:$0xff]   ;;  %v13641_v42 = vld [vmem:[%s13443_s20 + $0x118] sm:$0xff]  }
  0x27   : > { %v13644_v43 = vld [vmem:[%s13443_s20 + $0x120] sm:$0xff]   ;;  %v13655_v44 = vld [vmem:[%s13443_s20 + $0x128] sm:$0xff]   ;;  %v13658_v45 = vld [vmem:[%s13443_s20 + $0x130] sm:$0xff]  }
  0x28   : > { %11803 = vmatmul.mubr.msk.bf16.gmra.mrb[4].mxu1 %vm856_vm2, %v13488_v17  ;;  %v13669_v46 = vld [vmem:[%s13443_s20 + $0x138] sm:$0xff]   ;;  %v13672_v47 = vld [vmem:[%s13443_s20 + $0x140] sm:$0xff]   ;;  %v13685_v48 = vld [vmem:[%s13443_s20 + $0x148] sm:$0xff]  }
  0x29   : > { %11806 = vmatprep.mubr.msk.bf16.mxu1 %vm856_vm2, %v13493_v18  ;;  %v13690_v49 = vld [vmem:[%s13443_s20 + $0x150] sm:$0xff]   ;;  %v13699_v50 = vld [vmem:[%s13443_s20 + $0x158] sm:$0xff]   ;;  %v13707_v52 = vld [vmem:[%s13443_s20 + $0x160] sm:$0xff]  }
  0x2a   : > { %v13720_v54 = vld [vmem:[%s13443_s20 + $0x168] sm:$0xff]   ;;  %v13725_v55 = vld [vmem:[%s13443_s20 + $0x170] sm:$0xff]   ;;  %v13738_v58 = vld [vmem:[%s13443_s20 + $0x178] sm:$0xff]  }
  0x2b   : > { %v13743_v59 = vld [vmem:[%s13443_s20 + $0x180] sm:$0xff]   ;;  %v13752_v60 = vld [vmem:[%s13443_s20 + $0x188] sm:$0xff]   ;;  %v13757_v61 = vld [vmem:[%s13443_s20 + $0x190] sm:$0xff]  }
  0x2c   : > { %v12947_v62 = vld [vmem:[%s13443_s20 + $0x198] sm:$0xff]   ;;  %v12948_v63 = vld [vmem:[%s13443_s20 + $0x1a0] sm:$0xff]   ;;  %v12949_v0 = vld [vmem:[%s13443_s20 + $0x1a8] sm:$0xff]  }
  0x2d   : > { %11673 = vmatmul.mubr.msk.bf16.gmra.mrb[8].mxu0 %vm856_vm2, %v13476_v15  ;;  %v12950_v2 = vld [vmem:[%s13443_s20 + $0x1b0] sm:$0xff]   ;;  %v12951_v3 = vld [vmem:[%s13443_s20 + $0x1b8] sm:$0xff]   ;;  %v12952_v5 = vld [vmem:[%s13443_s20 + $0x1c0] sm:$0xff]  }
  0x2e   : > { %11676 = vmatprep.mubr.msk.bf16.mxu0 %vm856_vm2, %v13481_v16  ;;  %v12953_v6 = vld [vmem:[%s13443_s20 + $0x1c8] sm:$0xff]  }
  0x30   : > { %11807 = vmatmul.mubr.msk.bf16.gmra.mrb[8].mxu1 %vm856_vm2, %v13508_v21 }
  0x31   : > { %11810 = vmatprep.mubr.msk.bf16.mxu1 %vm856_vm2, %v13513_v22 }
  0x35   : > { %11677 = vmatmul.mubr.msk.bf16.gmra.mrb[12].mxu0 %vm856_vm2, %v13496_v19 }
  0x36   : > { %11680 = vmatprep.mubr.msk.bf16.mxu0 %vm856_vm2, %v13501_v20 }
  0x38   : > { %11811 = vmatmul.mubr.msk.bf16.gmra.mrb[12].mxu1 %vm856_vm2, %v13528_v25 }
  0x39   : > { %11814 = vmatprep.mubr.msk.bf16.mxu1 %vm856_vm2, %v13533_v26 }
  0x3d   : > { %11681 = vmatmul.mubr.msk.bf16.gmra.mrb[16].mxu0 %vm856_vm2, %v13516_v23 }
  0x3e   : > { %11684 = vmatprep.mubr.msk.bf16.mxu0 %vm856_vm2, %v13521_v24 }
  0x40   : > { %11815 = vmatmul.mubr.msk.bf16.gmra.mrb[16].mxu1 %vm856_vm2, %v13545_v28 }
  0x41   : > { %11818 = vmatprep.mubr.msk.bf16.mxu1 %vm856_vm2, %v13550_v29 }
  0x45   : > { %11685 = vmatmul.mubr.msk.bf16.gmra.mrb[20].mxu0 %vm856_vm2, %v13536_v27 }
  0x46   : > { %11688 = vmatprep.mubr.msk.bf16.mxu0 %vm856_vm2, %v13465_v12 }
  0x48   : > { %11819 = vmatmul.mubr.msk.bf16.gmra.mrb[20].mxu1 %vm856_vm2, %v13559_v30 }
  0x49   : > { %11822 = vmatprep.mubr.msk.bf16.mxu1 %vm856_vm2, %v13564_v31 }
  0x4d   : > { %11689 = vmatmul.mubr.msk.bf16.gmra.mrb[24].mxu0 %vm856_vm2, %v13468_v13 }
  0x4e   : > { %11692 = vmatprep.mubr.msk.bf16.mxu0 %vm856_vm2, %v13473_v14 }
  0x50   : > { %11823 = vmatmul.mubr.msk.bf16.gmra.mrb[24].mxu1 %vm856_vm2, %v13573_v32 }
  0x51   : > { %11826 = vmatprep.mubr.msk.bf16.mxu1 %vm856_vm2, %v13578_v33 }
  0x55   : > { %11693 = vmatmul.mubr.msk.bf16.gmra.mrb[28].mxu0 %vm856_vm2, %v13488_v17 }
  0x56   : > { %11696 = vmatprep.mubr.msk.bf16.mxu0 %vm856_vm2, %v13493_v18 }
  0x58   : > { %11827 = vmatmul.mubr.msk.bf16.gmra.mrb[28].mxu1 %vm856_vm2, %v13587_v34 }
  0x59   : > { %11830 = vmatprep.mubr.msk.bf16.mxu1 %vm856_vm2, %v13592_v35 }
  0x5d   : > { %11697 = vmatmul.mubr.msk.bf16.gmra.mrb[32].mxu0 %vm856_vm2, %v13508_v21 }
  0x5e   : > { %11700 = vmatprep.mubr.msk.bf16.mxu0 %vm856_vm2, %v13513_v22 }
  0x60   : > { %11831 = vmatmul.mubr.msk.bf16.gmra.mrb[32].mxu1 %vm856_vm2, %v13601_v36 }
  0x61   : > { %11834 = vmatprep.mubr.msk.bf16.mxu1 %vm856_vm2, %v13606_v37 }
  0x65   : > { %11701 = vmatmul.mubr.msk.bf16.gmra.mrb[36].mxu0 %vm856_vm2, %v13528_v25 }
  0x66   : > { %11704 = vmatprep.mubr.msk.bf16.mxu0 %vm856_vm2, %v13533_v26 }
  0x68   : > { %11835 = vmatmul.mubr.msk.bf16.gmra.mrb[36].mxu1 %vm856_vm2, %v13613_v38 }
  0x69   : > { %11838 = vmatprep.mubr.msk.bf16.mxu1 %vm856_vm2, %v13616_v39 }
  0x6d   : > { %11705 = vmatmul.mubr.msk.bf16.gmra.mrb[40].mxu0 %vm856_vm2, %v13545_v28 }
  0x6e   : > { %11708 = vmatprep.mubr.msk.bf16.mxu0 %vm856_vm2, %v13550_v29 }
  0x70   : > { %11839 = vmatmul.mubr.msk.bf16.gmra.mrb[40].mxu1 %vm856_vm2, %v13627_v40 }
  0x71   : > { %11842 = vmatprep.mubr.msk.bf16.mxu1 %vm856_vm2, %v13630_v41 }
  0x75   : > { %11709 = vmatmul.mubr.msk.bf16.gmra.mrb[44].mxu0 %vm856_vm2, %v13559_v30 }
  0x76   : > { %11712 = vmatprep.mubr.msk.bf16.mxu0 %vm856_vm2, %v13564_v31 }
  0x78   : > { %11843 = vmatmul.mubr.msk.bf16.gmra.mrb[44].mxu1 %vm856_vm2, %v13641_v42 }
  0x79   : > { %11846 = vmatprep.mubr.msk.bf16.mxu1 %vm856_vm2, %v13644_v43 }
  0x7d   : > { %11713 = vmatmul.mubr.msk.bf16.gmra.mrb[48].mxu0 %vm856_vm2, %v13573_v32 }
  0x7e   : > { %11716 = vmatprep.mubr.msk.bf16.mxu0 %vm856_vm2, %v13578_v33 }
  0x80   : > { %11847 = vmatmul.mubr.msk.bf16.gmra.mrb[48].mxu1 %vm856_vm2, %v13655_v44 }
  0x81   : > { %11850 = vmatprep.mubr.msk.bf16.mxu1 %vm856_vm2, %v13658_v45 }
  0x85   : > { %11717 = vmatmul.mubr.msk.bf16.gmra.mrb[52].mxu0 %vm856_vm2, %v13587_v34 }
  0x86   : > { %11720 = vmatprep.mubr.msk.bf16.mxu0 %vm856_vm2, %v13592_v35 }
  0x88   : > { %11851 = vmatmul.mubr.msk.bf16.gmra.mrb[52].mxu1 %vm856_vm2, %v13669_v46 }
  0x89   : > { %11854 = vmatprep.mubr.msk.bf16.mxu1 %vm856_vm2, %v13672_v47 }
  0x8d   : > { %11721 = vmatmul.mubr.msk.bf16.gmra.mrb[56].mxu0 %vm856_vm2, %v13601_v36 }
  0x8e   : > { %11724 = vmatprep.mubr.msk.bf16.mxu0 %vm856_vm2, %v13606_v37 }
  0x90   : > { %11855 = vmatmul.mubr.msk.bf16.gmra.mrb[56].mxu1 %vm856_vm2, %v13685_v48 }
  0x91   : > { %11858 = vmatprep.mubr.msk.bf16.mxu1 %vm856_vm2, %v13690_v49 }
  0x95   : > { %11725 = vmatmul.mubr.msk.bf16.gmra.mrb[60].mxu0 %vm856_vm2, %v13613_v38 }
  0x96   : > { %11728 = vmatprep.mubr.msk.bf16.mxu0 %vm856_vm2, %v13616_v39 }
  0x98   : > { %11859 = vmatmul.mubr.msk.bf16.gmra.mrb[60].mxu1 %vm856_vm2, %v13699_v50 }
  0x99   : > { %11862 = vmatprep.mubr.msk.bf16.mxu1 %vm856_vm2, %v13707_v52 }
  0x9d   : > { %11729 = vmatmul.mubr.msk.bf16.gmra.mrb[64].mxu0 %vm856_vm2, %v13627_v40 }
  0x9e   : > { %11732 = vmatprep.mubr.msk.bf16.mxu0 %vm856_vm2, %v13630_v41 }
  0xa0   : > { %11863 = vmatmul.mubr.msk.bf16.gmra.mrb[64].mxu1 %vm856_vm2, %v13720_v54 }
  0xa1   : > { %11866 = vmatprep.mubr.msk.bf16.mxu1 %vm856_vm2, %v13725_v55 }
  0xa5   : > { %11733 = vmatmul.mubr.msk.bf16.gmra.mrb[68].mxu0 %vm856_vm2, %v13641_v42 }
  0xa6   : > { %11736 = vmatprep.mubr.msk.bf16.mxu0 %vm856_vm2, %v13644_v43 }
  0xa8   : > { %11867 = vmatmul.mubr.msk.bf16.gmra.mrb[68].mxu1 %vm856_vm2, %v13738_v58 }
  0xa9   : > { %11870 = vmatprep.mubr.msk.bf16.mxu1 %vm856_vm2, %v13743_v59 }
  0xad   : > { %11737 = vmatmul.mubr.msk.bf16.gmra.mrb[72].mxu0 %vm856_vm2, %v13655_v44 }
  0xae   : > { %11740 = vmatprep.mubr.msk.bf16.mxu0 %vm856_vm2, %v13658_v45 }
  0xb0   : > { %11871 = vmatmul.mubr.msk.bf16.gmra.mrb[72].mxu1 %vm856_vm2, %v13752_v60 }
  0xb1   : > { %11874 = vmatprep.mubr.msk.bf16.mxu1 %vm856_vm2, %v13757_v61 }
  0xb5   : > { %11741 = vmatmul.mubr.msk.bf16.gmra.mrb[76].mxu0 %vm856_vm2, %v13669_v46 }
  0xb6   : > { %11744 = vmatprep.mubr.msk.bf16.mxu0 %vm856_vm2, %v13672_v47 }
  0xb8   : > { %11875 = vmatmul.mubr.msk.bf16.gmra.mrb[76].mxu1 %vm856_vm2, %v12947_v62 }
  0xb9   : > { %11878 = vmatprep.mubr.msk.bf16.mxu1 %vm856_vm2, %v12948_v63 }
  0xbd   : > { %11745 = vmatmul.mubr.msk.bf16.gmra.mrb[80].mxu0 %vm856_vm2, %v13685_v48 }
  0xbe   : > { %11748 = vmatprep.mubr.msk.bf16.mxu0 %vm856_vm2, %v13690_v49 }
  0xc0   : > { %11879 = vmatmul.mubr.msk.bf16.gmra.mrb[80].mxu1 %vm856_vm2, %v12949_v0 }
  0xc1   : > { %11882 = vmatprep.mubr.msk.bf16.mxu1 %vm856_vm2, %v12950_v2 }
  0xc5   : > { %11749 = vmatmul.mubr.msk.bf16.gmra.mrb[84].mxu0 %vm856_vm2, %v13699_v50 }
  0xc6   : > { %11752 = vmatprep.mubr.msk.bf16.mxu0 %vm856_vm2, %v13707_v52 }
  0xc8   : > { %11883 = vmatmul.mubr.msk.bf16.gmra.mrb[84].mxu1 %vm856_vm2, %v12951_v3 }
  0xc9   : > { %11886 = vmatprep.mubr.msk.bf16.mxu1 %vm856_vm2, %v12952_v5 }
  0xcd   : > { %11753 = vmatmul.mubr.msk.bf16.gmra.mrb[88].mxu0 %vm856_vm2, %v13720_v54 }
  0xce   : > { %11756 = vmatprep.mubr.msk.bf16.mxu0 %vm856_vm2, %v13725_v55 }
  0xd0   : > { %11887 = vmatmul.mubr.msk.bf16.gmra.mrb[88].mxu1 %vm856_vm2, %v12953_v6 }
  0xd1   : > { %12006 = vmatprep.mubr.msk.bf16.mxu1 %vm856_vm2, %v13481_v16 }
  0xd5   : > { %11757 = vmatmul.mubr.msk.bf16.gmra.mrb[92].mxu0 %vm856_vm2, %v13738_v58 }
  0xd6   : > { %11760 = vmatprep.mubr.msk.bf16.mxu0 %vm856_vm2, %v13743_v59 }
  0xd8   : > { %12007 = vmatmul.mubr.msk.bf16.vlgmr.msra.gmra.mrb[92].mxu1 %vm856_vm2, %v13496_v19 }
  0xd9   : > { %12010 = vmatprep.mubr.msk.bf16.mxu1 %vm856_vm2, %v13501_v20 }
  0xdd   : > { %11761 = vmatmul.mubr.msk.bf16.gmra.mrb[96].mxu0 %vm856_vm2, %v13752_v60 }
  0xde   : > { %11764 = vmatprep.mubr.msk.bf16.mxu0 %vm856_vm2, %v13757_v61 }
  0xe0   : > { %12011 = vmatmul.mubr.msk.bf16.gmra.mrb[96].mxu1 %vm856_vm2, %v13516_v23 }
  0xe1   : > { %12014 = vmatprep.mubr.msk.bf16.mxu1 %vm856_vm2, %v13521_v24 }
  0xe5   : > { %11765 = vmatmul.mubr.msk.bf16.gmra.mrb[100].mxu0 %vm856_vm2, %v12947_v62 }
  0xe6   : > { %11768 = vmatprep.mubr.msk.bf16.mxu0 %vm856_vm2, %v12948_v63 }
  0xe8   : > { %12015 = vmatmul.mubr.msk.bf16.gmra.mrb[100].mxu1 %vm856_vm2, %v13536_v27 }
  0xe9   : > { %12018 = vmatprep.mubr.msk.bf16.mxu1 %vm856_vm2, %v13465_v12 }
  0xed   : > { %11769 = vmatmul.mubr.msk.bf16.gmra.mrb[104].mxu0 %vm856_vm2, %v12949_v0 }
  0xee   : > { %11772 = vmatprep.mubr.msk.bf16.mxu0 %vm856_vm2, %v12950_v2 }
  0xf0   : > { %v11666_v7 = vpop.f32.mrb[0].mxu0  ;;  %12019 = vmatmul.mubr.msk.bf16.gmra.mrb[104].mxu1 %vm856_vm2, %v13468_v13 }
  0xf1   : > { %1516 = vst.msk [vmem:[#allocation2 + $0x10] sm:$0xff] %vm1513_vm3, %v11666_v7  ;;  %v1066_v8 = vpop.f32.mrb[1].mxu0  ;;  %12022 = vmatprep.mubr.msk.bf16.mxu1 %vm856_vm2, %v13473_v14 }
  0xf2   : > { %1514 = vst.msk [vmem:[#allocation2] sm:$0xff] %vm1513_vm3, %v1066_v8  ;;  %v11667_v51 = vpop.f32.mrb[2].mxu0 }
  0xf3   : > { %1517 = vst.msk [vmem:[#allocation2 + $0x18] sm:$0xff] %vm1513_vm3, %v11667_v51  ;;  %v1069_v56 = vpop.f32.mrb[3].mxu0  ;;  %v13830_v0 = vpop.f32.mrb[0].mxu1 }
  0xf4   : > { %1515 = vst.msk [vmem:[#allocation2 + $0x8] sm:$0xff] %vm1513_vm3, %v1069_v56 }
  0xf5   : > { %11773 = vmatmul.mubr.msk.bf16.gmra.mrb[108].mxu0 %vm856_vm2, %v12951_v3 }
  0xf6   : > { %11778 = vmatprep.mubr.msk.bf16.mxu0 %vm856_vm2, %v13449_v9  ;;  %v13834_v9 = vpop.f32.mrb[1].mxu1 }
  0xf7   : > { %v13838_v13 = vpop.f32.mrb[2].mxu1 }
  0xf8   : > { %v11670_v57 = vpop.f32.mrb[4].mxu0  ;;  %v13841_v14 = vpop.f32.mrb[3].mxu1  ;;  %12023 = vmatmul.mubr.msk.bf16.gmra.mrb[108].mxu1 %vm856_vm2, %v13488_v17 }
  0xf9   : > { %1520 = vst.msk [vmem:[#allocation2 + $0x30] sm:$0xff] %vm1513_vm3, %v11670_v57  ;;  %v1082_v62 = vpop.f32.mrb[5].mxu0  ;;  %12026 = vmatprep.mubr.msk.bf16.mxu1 %vm856_vm2, %v13493_v18 }
  0xfa   : > { %1518 = vst.msk [vmem:[#allocation2 + $0x20] sm:$0xff] %vm1513_vm3, %v1082_v62  ;;  %v11671_v12 = vpop.f32.mrb[6].mxu0 }
  0xfb   : > { %1521 = vst.msk [vmem:[#allocation2 + $0x38] sm:$0xff] %vm1513_vm3, %v11671_v12  ;;  %v1085_v63 = vpop.f32.mrb[7].mxu0 }
  0xfc   : > { %1519 = vst.msk [vmem:[#allocation2 + $0x28] sm:$0xff] %vm1513_vm3, %v1085_v63 }
  0xfd   : > { %11779 = vmatmul.mubr.msk.bf16.vlgmr.msra.gmra.mrb[112].mxu0 %vm856_vm2, %v13455_v10 }
  0xfe   : > { %11782 = vmatprep.mubr.msk.bf16.mxu0 %vm856_vm2, %v13458_v11  ;;  %11891 = vmatpush3.bf16.msra.mxu0 %v13710_v53  ;;  %v13851_v53 = vpop.f32.mrb[4].mxu1 }
  0xff   : > { %v13855_v5 = vpop.f32.mrb[5].mxu1 }
 0x100   : > { %v11674_v2 = vpop.f32.mrb[8].mxu0  ;;  %v13859_v17 = vpop.f32.mrb[6].mxu1  ;;  %12027 = vmatmul.mubr.msk.bf16.gmra.mrb[112].mxu1 %vm856_vm2, %v13508_v21 }
 0x101   : > { %1524 = vst.msk [vmem:[#allocation2 + $0x50] sm:$0xff] %vm1513_vm3, %v11674_v2  ;;  %v1098_v3 = vpop.f32.mrb[9].mxu0  ;;  %v13861_v6 = vpop.f32.mrb[7].mxu1  ;;  %12030 = vmatprep.mubr.msk.bf16.mxu1 %vm856_vm2, %v13513_v22 }
 0x102   : > { %1522 = vst.msk [vmem:[#allocation2 + $0x40] sm:$0xff] %vm1513_vm3, %v1098_v3  ;;  %v11675_v10 = vpop.f32.mrb[10].mxu0 }
 0x103   : > { %1525 = vst.msk [vmem:[#allocation2 + $0x58] sm:$0xff] %vm1513_vm3, %v11675_v10  ;;  %v1101_v11 = vpop.f32.mrb[11].mxu0 }
 0x104   : > { %1523 = vst.msk [vmem:[#allocation2 + $0x48] sm:$0xff] %vm1513_vm3, %v1101_v11  ;;  %v13129_v11 = vld [vmem:[%s13443_s20 + $0x20] sm:$0xff]  }
 0x105   : > { %11783 = vmatmul.mubr.msk.bf16.gmra.mrb[116].mxu0 %vm856_vm2, %v13476_v15 }
 0x106   : > { %11786 = vmatprep.mubr.msk.bf16.mxu0 %vm856_vm2, %v13481_v16  ;;  %v13871_v16 = vpop.f32.mrb[8].mxu1 }
 0x107   : > { %v13875_v51 = vpop.f32.mrb[9].mxu1 }
 0x108   : > { %v11678_v18 = vpop.f32.mrb[12].mxu0  ;;  %v13879_v21 = vpop.f32.mrb[10].mxu1  ;;  %12031 = vmatmul.mubr.msk.bf16.gmra.mrb[116].mxu1 %vm856_vm2, %v13528_v25 }
 0x109   : > { %1528 = vst.msk [vmem:[#allocation2 + $0x70] sm:$0xff] %vm1513_vm3, %v11678_v18  ;;  %v1114_v7 = vpop.f32.mrb[13].mxu0  ;;  %v13881_v56 = vpop.f32.mrb[11].mxu1  ;;  %12034 = vmatprep.mubr.msk.bf16.mxu1 %vm856_vm2, %v13533_v26 }
 0x10a   : > { %1526 = vst.msk [vmem:[#allocation2 + $0x60] sm:$0xff] %vm1513_vm3, %v1114_v7  ;;  %v11679_v8 = vpop.f32.mrb[14].mxu0 }
 0x10b   : > { %1529 = vst.msk [vmem:[#allocation2 + $0x78] sm:$0xff] %vm1513_vm3, %v11679_v8  ;;  %v1117_v15 = vpop.f32.mrb[15].mxu0 }
 0x10c   : > { %1527 = vst.msk [vmem:[#allocation2 + $0x68] sm:$0xff] %vm1513_vm3, %v1117_v15 }
 0x10d   : > { %11787 = vmatmul.mubr.msk.bf16.gmra.mrb[120].mxu0 %vm856_vm2, %v13496_v19 }
 0x10e   : > { %11790 = vmatprep.mubr.msk.bf16.mxu0 %vm856_vm2, %v13501_v20  ;;  %v13891_v20 = vpop.f32.mrb[12].mxu1 }
 0x10f   : > { %v13895_v12 = vpop.f32.mrb[13].mxu1 }
 0x110   : > { %v11682_v22 = vpop.f32.mrb[16].mxu0  ;;  %v13899_v25 = vpop.f32.mrb[14].mxu1  ;;  %12035 = vmatmul.mubr.msk.bf16.gmra.mrb[120].mxu1 %vm856_vm2, %v13545_v28 }
 0x111   : > { %1532 = vst.msk [vmem:[#allocation2 + $0x90] sm:$0xff] %vm1513_vm3, %v11682_v22  ;;  %v1130_v57 = vpop.f32.mrb[17].mxu0  ;;  %v13901_v63 = vpop.f32.mrb[15].mxu1  ;;  %12038 = vmatprep.mubr.msk.bf16.mxu1 %vm856_vm2, %v13550_v29 }
 0x112   : > { %1530 = vst.msk [vmem:[#allocation2 + $0x80] sm:$0xff] %vm1513_vm3, %v1130_v57  ;;  %v11683_v62 = vpop.f32.mrb[18].mxu0 }
 0x113   : > { %1533 = vst.msk [vmem:[#allocation2 + $0x98] sm:$0xff] %vm1513_vm3, %v11683_v62  ;;  %v1133_v19 = vpop.f32.mrb[19].mxu0  ;;  %v13911_v3 = vpop.f32.mrb[16].mxu1 }
 0x114   : > { %1531 = vst.msk [vmem:[#allocation2 + $0x88] sm:$0xff] %vm1513_vm3, %v1133_v19  ;;  %v13915_v10 = vpop.f32.mrb[17].mxu1 }
 0x115   : > { %11791 = vmatmul.mubr.msk.bf16.gmra.mrb[124].mxu0 %vm856_vm2, %v13516_v23  ;;  %v13919_v28 = vpop.f32.mrb[18].mxu1 }
 0x116   : > { %11794 = vmatprep.mubr.msk.bf16.mxu0 %vm856_vm2, %v13521_v24  ;;  %v13921_v18 = vpop.f32.mrb[19].mxu1 }
 0x118   : > { %v11686_v26 = vpop.f32.mrb[20].mxu0  ;;  %12039 = vmatmul.mubr.msk.bf16.gmra.mrb[124].mxu1 %vm856_vm2, %v13559_v30 }
 0x119   : > { %1536 = vst.msk [vmem:[#allocation2 + $0xb0] sm:$0xff] %vm1513_vm3, %v11686_v26  ;;  %v1146_v2 = vpop.f32.mrb[21].mxu0  ;;  %12042 = vmatprep.mubr.msk.bf16.mxu1 %vm856_vm2, %v13564_v31 }
 0x11a   : > { %1534 = vst.msk [vmem:[#allocation2 + $0xa0] sm:$0xff] %vm1513_vm3, %v1146_v2  ;;  %v11687_v23 = vpop.f32.mrb[22].mxu0  ;;  %v13130_v2 = vld [vmem:[%s13443_s20 + $0x28] sm:$0xff]  }
 0x11b   : > { %1537 = vst.msk [vmem:[#allocation2 + $0xb8] sm:$0xff] %vm1513_vm3, %v11687_v23  ;;  %v1149_v24 = vpop.f32.mrb[23].mxu0 }
 0x11c   : > { %1535 = vst.msk [vmem:[#allocation2 + $0xa8] sm:$0xff] %vm1513_vm3, %v1149_v24 }
 0x11d   : > { %11795 = vmatmul.mubr.msk.bf16.gmra.mrb[128].mxu0 %vm856_vm2, %v13536_v27 }
 0x11e   : > { %11892 = vmatprep.mubr.msk.bf16.mxu0 %vm856_vm2, %v13129_v11 }
 0x120   : > { %v11690_v29 = vpop.f32.mrb[24].mxu0  ;;  %v1648_v7 = vld [vmem:[#allocation2 + $0xb0] sm:$0xff]  ;;  %12043 = vmatmul.mubr.msk.bf16.gmra.mrb[128].mxu1 %vm856_vm2, %v13573_v32 }
 0x121   : > { %1540 = vst.msk [vmem:[#allocation2 + $0xd0] sm:$0xff] %vm1513_vm3, %v11690_v29  ;;  %v2268_v8 = vadd.f32 %v13830_v0, %v1648_v7  ;;  %v1162_v15 = vpop.f32.mrb[25].mxu0  ;;  %v1646_v22 = vld [vmem:[#allocation2 + $0xa0] sm:$0xff]  ;;  %12046 = vmatprep.mubr.msk.bf16.mxu1 %vm856_vm2, %v13578_v33 }
 0x122   : > { %1538 = vst.msk [vmem:[#allocation2 + $0xc0] sm:$0xff] %vm1513_vm3, %v1162_v15  ;;  %v2266_v27 = vadd.f32 %v13834_v9, %v1646_v22  ;;  %v11691_v57 = vpop.f32.mrb[26].mxu0  ;;  %v1649_v62 = vld [vmem:[#allocation2 + $0xb8] sm:$0xff]  ;;  %v13937_v9 = vpop.f32.mrb[20].mxu1 }
 0x123   : > { %2380 = vst.msk [vmem:[#allocation2 + $0xb0] sm:$0xff] %vm1513_vm3, %v2268_v8  ;;  %1541 = vst.msk [vmem:[#allocation2 + $0xd8] sm:$0xff] %vm1513_vm3, %v11691_v57  ;;  %v2269_v0 = vadd.f32 %v13838_v13, %v1649_v62  ;;  %v1165_v19 = vpop.f32.mrb[27].mxu0  ;;  %v1647_v26 = vld [vmem:[#allocation2 + $0xa8] sm:$0xff]  ;;  %v13942_v31 = vpop.f32.mrb[21].mxu1  ;;  %v13131_v13 = vld [vmem:[%s13443_s20 + $0x30] sm:$0xff]  }
 0x124   : > { %2378 = vst.msk [vmem:[#allocation2 + $0xa0] sm:$0xff] %vm1513_vm3, %v2266_v27  ;;  %1539 = vst.msk [vmem:[#allocation2 + $0xc8] sm:$0xff] %vm1513_vm3, %v1165_v19  ;;  %v2267_v30 = vadd.f32 %v13841_v14, %v1647_v26  ;;  %v13947_v23 = vpop.f32.mrb[22].mxu1 }
 0x125   : > { %2381 = vst.msk [vmem:[#allocation2 + $0xb8] sm:$0xff] %vm1513_vm3, %v2269_v0  ;;  %11893 = vmatmul.mubr.msk.bf16.vlgmr.msra.gmra.mrb[132].mxu0 %vm856_vm2, %v13130_v2  ;;  %v13949_v24 = vpop.f32.mrb[23].mxu1  ;;  %v13132_v0 = vld [vmem:[%s13443_s20 + $0x38] sm:$0xff]  }
 0x126   : > { %2379 = vst.msk [vmem:[#allocation2 + $0xa8] sm:$0xff] %vm1513_vm3, %v2267_v30  ;;  %11896 = vmatprep.mubr.msk.bf16.mxu0 %vm856_vm2, %v13131_v13 }
 0x128   : > { %v11694_v11 = vpop.f32.mrb[28].mxu0  ;;  %v1652_v14 = vld [vmem:[#allocation2 + $0xd0] sm:$0xff]  ;;  %12047 = vmatmul.mubr.msk.bf16.gmra.mrb[132].mxu1 %vm856_vm2, %v13587_v34 }
 0x129   : > { %1544 = vst.msk [vmem:[#allocation2 + $0xf0] sm:$0xff] %vm1513_vm3, %v11694_v11  ;;  %v2272_v29 = vadd.f32 %v13851_v53, %v1652_v14  ;;  %v1178_v7 = vpop.f32.mrb[29].mxu0  ;;  %v1650_v8 = vld [vmem:[#allocation2 + $0xc0] sm:$0xff]  ;;  %12050 = vmatprep.mubr.msk.bf16.mxu1 %vm856_vm2, %v13592_v35 }
 0x12a   : > { %1542 = vst.msk [vmem:[#allocation2 + $0xe0] sm:$0xff] %vm1513_vm3, %v1178_v7  ;;  %v2270_v15 = vadd.f32 %v13855_v5, %v1650_v8  ;;  %v11695_v22 = vpop.f32.mrb[30].mxu0  ;;  %v1653_v27 = vld [vmem:[#allocation2 + $0xd8] sm:$0xff]  ;;  %v13965_v5 = vpop.f32.mrb[24].mxu1 }
 0x12b   : > { %2384 = vst.msk [vmem:[#allocation2 + $0xd0] sm:$0xff] %vm1513_vm3, %v2272_v29  ;;  %1545 = vst.msk [vmem:[#allocation2 + $0xf8] sm:$0xff] %vm1513_vm3, %v11695_v22  ;;  %v2273_v53 = vadd.f32 %v13859_v17, %v1653_v27  ;;  %v1181_v57 = vpop.f32.mrb[31].mxu0  ;;  %v1651_v62 = vld [vmem:[#allocation2 + $0xc8] sm:$0xff]  ;;  %v13970_v33 = vpop.f32.mrb[25].mxu1  ;;  %v13133_v17 = vld [vmem:[%s13443_s20 + $0x40] sm:$0xff]  }
 0x12c   : > { %2382 = vst.msk [vmem:[#allocation2 + $0xc0] sm:$0xff] %vm1513_vm3, %v2270_v15  ;;  %1543 = vst.msk [vmem:[#allocation2 + $0xe8] sm:$0xff] %vm1513_vm3, %v1181_v57  ;;  %v2271_v32 = vadd.f32 %v13861_v6, %v1651_v62  ;;  %v13975_v19 = vpop.f32.mrb[26].mxu1  ;;  %v13134_v22 = vld [vmem:[%s13443_s20 + $0x48] sm:$0xff]  }
 0x12d   : > { %2385 = vst.msk [vmem:[#allocation2 + $0xd8] sm:$0xff] %vm1513_vm3, %v2273_v53  ;;  %11897 = vmatmul.mubr.msk.bf16.gmra.mrb[136].mxu0 %vm856_vm2, %v13132_v0  ;;  %v13977_v26 = vpop.f32.mrb[27].mxu1 }
 0x12e   : > { %2383 = vst.msk [vmem:[#allocation2 + $0xc8] sm:$0xff] %vm1513_vm3, %v2271_v32  ;;  %11900 = vmatprep.mubr.msk.bf16.mxu0 %vm856_vm2, %v13133_v17 }
 0x130   : > { %v11698_v30 = vpop.f32.mrb[32].mxu0  ;;  %v1656_v6 = vld [vmem:[#allocation2 + $0xf0] sm:$0xff]  ;;  %12051 = vmatmul.mubr.msk.bf16.gmra.mrb[136].mxu1 %vm856_vm2, %v13601_v36 }
 0x131   : > { %1548 = vst.msk [vmem:[#allocation2 + $0x110] sm:$0xff] %vm1513_vm3, %v11698_v30  ;;  %v2276_v2 = vadd.f32 %v13871_v16, %v1656_v6  ;;  %v1194_v13 = vpop.f32.mrb[33].mxu0  ;;  %v1654_v11 = vld [vmem:[#allocation2 + $0xe0] sm:$0xff]  ;;  %12054 = vmatprep.mubr.msk.bf16.mxu1 %vm856_vm2, %v13606_v37 }
 0x132   : > { %1546 = vst.msk [vmem:[#allocation2 + $0x100] sm:$0xff] %vm1513_vm3, %v1194_v13  ;;  %v2274_v14 = vadd.f32 %v13875_v51, %v1654_v11  ;;  %v11699_v29 = vpop.f32.mrb[34].mxu0  ;;  %v1657_v7 = vld [vmem:[#allocation2 + $0xf8] sm:$0xff]  ;;  %v13993_v51 = vpop.f32.mrb[28].mxu1 }
 0x133   : > { %2388 = vst.msk [vmem:[#allocation2 + $0xf0] sm:$0xff] %vm1513_vm3, %v2276_v2  ;;  %1549 = vst.msk [vmem:[#allocation2 + $0x118] sm:$0xff] %vm1513_vm3, %v11699_v29  ;;  %v2277_v16 = vadd.f32 %v13879_v21, %v1657_v7  ;;  %v1197_v8 = vpop.f32.mrb[35].mxu0  ;;  %v1655_v15 = vld [vmem:[#allocation2 + $0xe8] sm:$0xff]  ;;  %v13998_v35 = vpop.f32.mrb[29].mxu1  ;;  %v13135_v21 = vld [vmem:[%s13443_s20 + $0x50] sm:$0xff]  }
 0x134   : > { %2386 = vst.msk [vmem:[#allocation2 + $0xe0] sm:$0xff] %vm1513_vm3, %v2274_v14  ;;  %1547 = vst.msk [vmem:[#allocation2 + $0x108] sm:$0xff] %vm1513_vm3, %v1197_v8  ;;  %v2275_v34 = vadd.f32 %v13881_v56, %v1655_v15  ;;  %v14003_v27 = vpop.f32.mrb[30].mxu1  ;;  %v13136_v11 = vld [vmem:[%s13443_s20 + $0x58] sm:$0xff]  }
 0x135   : > { %2389 = vst.msk [vmem:[#allocation2 + $0xf8] sm:$0xff] %vm1513_vm3, %v2277_v16  ;;  %11901 = vmatmul.mubr.msk.bf16.gmra.mrb[140].mxu0 %vm856_vm2, %v13134_v22  ;;  %v14005_v53 = vpop.f32.mrb[31].mxu1 }
 0x136   : > { %2387 = vst.msk [vmem:[#allocation2 + $0xe8] sm:$0xff] %vm1513_vm3, %v2275_v34  ;;  %11904 = vmatprep.mubr.msk.bf16.mxu0 %vm856_vm2, %v13135_v21 }
 0x138   : > { %v11702_v57 = vpop.f32.mrb[36].mxu0  ;;  %v1660_v56 = vld [vmem:[#allocation2 + $0x110] sm:$0xff]  ;;  %12055 = vmatmul.mubr.msk.bf16.gmra.mrb[140].mxu1 %vm856_vm2, %v13613_v38 }
 0x139   : > { %1552 = vst.msk [vmem:[#allocation2 + $0x130] sm:$0xff] %vm1513_vm3, %v11702_v57  ;;  %v2280_v62 = vadd.f32 %v13891_v20, %v1660_v56  ;;  %v1210_v32 = vpop.f32.mrb[37].mxu0  ;;  %v1658_v0 = vld [vmem:[#allocation2 + $0x100] sm:$0xff]  ;;  %12058 = vmatprep.mubr.msk.bf16.mxu1 %vm856_vm2, %v13616_v39 }
 0x13a   : > { %1550 = vst.msk [vmem:[#allocation2 + $0x120] sm:$0xff] %vm1513_vm3, %v1210_v32  ;;  %v2278_v17 = vadd.f32 %v13895_v12, %v1658_v0  ;;  %v11703_v30 = vpop.f32.mrb[38].mxu0  ;;  %v1661_v6 = vld [vmem:[#allocation2 + $0x118] sm:$0xff]  ;;  %v14021_v12 = vpop.f32.mrb[32].mxu1 }
 0x13b   : > { %2392 = vst.msk [vmem:[#allocation2 + $0x110] sm:$0xff] %vm1513_vm3, %v2280_v62  ;;  %1553 = vst.msk [vmem:[#allocation2 + $0x138] sm:$0xff] %vm1513_vm3, %v11703_v30  ;;  %v2281_v20 = vadd.f32 %v13899_v25, %v1661_v6  ;;  %v1213_v2 = vpop.f32.mrb[39].mxu0  ;;  %v1659_v13 = vld [vmem:[#allocation2 + $0x108] sm:$0xff]  ;;  %v14026_v37 = vpop.f32.mrb[33].mxu1  ;;  %v13137_v25 = vld [vmem:[%s13443_s20 + $0x60] sm:$0xff]  }
 0x13c   : > { %2390 = vst.msk [vmem:[#allocation2 + $0x100] sm:$0xff] %vm1513_vm3, %v2278_v17  ;;  %1551 = vst.msk [vmem:[#allocation2 + $0x128] sm:$0xff] %vm1513_vm3, %v1213_v2  ;;  %v2279_v36 = vadd.f32 %v13901_v63, %v1659_v13  ;;  %v14031_v14 = vpop.f32.mrb[34].mxu1  ;;  %v13138_v62 = vld [vmem:[%s13443_s20 + $0x68] sm:$0xff]  }
 0x13d   : > { %2393 = vst.msk [vmem:[#allocation2 + $0x118] sm:$0xff] %vm1513_vm3, %v2281_v20  ;;  %11905 = vmatmul.mubr.msk.bf16.gmra.mrb[144].mxu0 %vm856_vm2, %v13136_v11  ;;  %v14033_v29 = vpop.f32.mrb[35].mxu1 }
 0x13e   : > { %2391 = vst.msk [vmem:[#allocation2 + $0x108] sm:$0xff] %vm1513_vm3, %v2279_v36  ;;  %11908 = vmatprep.mubr.msk.bf16.mxu0 %vm856_vm2, %v13137_v25 }
 0x140   : > { %v11706_v7 = vpop.f32.mrb[40].mxu0  ;;  %v1664_v63 = vld [vmem:[#allocation2 + $0x130] sm:$0xff]  ;;  %12059 = vmatmul.mubr.msk.bf16.gmra.mrb[144].mxu1 %vm856_vm2, %v13627_v40 }
 0x141   : > { %1556 = vst.msk [vmem:[#allocation2 + $0x150] sm:$0xff] %vm1513_vm3, %v11706_v7  ;;  %v2284_v16 = vadd.f32 %v13911_v3, %v1664_v63  ;;  %v1226_v8 = vpop.f32.mrb[41].mxu0  ;;  %v1662_v15 = vld [vmem:[#allocation2 + $0x120] sm:$0xff]  ;;  %12062 = vmatprep.mubr.msk.bf16.mxu1 %vm856_vm2, %v13630_v41  ;;  %v13140_v7 = vld [vmem:[%s13443_s20 + $0x78] sm:$0xff]  }
 0x142   : > { %1554 = vst.msk [vmem:[#allocation2 + $0x140] sm:$0xff] %vm1513_vm3, %v1226_v8  ;;  %v2282_v34 = vadd.f32 %v13915_v10, %v1662_v15  ;;  %v11707_v22 = vpop.f32.mrb[42].mxu0  ;;  %v1665_v21 = vld [vmem:[#allocation2 + $0x138] sm:$0xff]  ;;  %v14049_v10 = vpop.f32.mrb[36].mxu1 }
 0x143   : > { %2396 = vst.msk [vmem:[#allocation2 + $0x130] sm:$0xff] %vm1513_vm3, %v2284_v16  ;;  %1557 = vst.msk [vmem:[#allocation2 + $0x158] sm:$0xff] %vm1513_vm3, %v11707_v22  ;;  %v2285_v3 = vadd.f32 %v13919_v28, %v1665_v21  ;;  %v1229_v57 = vpop.f32.mrb[43].mxu0  ;;  %v1663_v56 = vld [vmem:[#allocation2 + $0x128] sm:$0xff]  ;;  %v14054_v39 = vpop.f32.mrb[37].mxu1  ;;  %v13139_v28 = vld [vmem:[%s13443_s20 + $0x70] sm:$0xff]  }
 0x144   : > { %2394 = vst.msk [vmem:[#allocation2 + $0x120] sm:$0xff] %vm1513_vm3, %v2282_v34  ;;  %1555 = vst.msk [vmem:[#allocation2 + $0x148] sm:$0xff] %vm1513_vm3, %v1229_v57  ;;  %v2283_v38 = vadd.f32 %v13921_v18, %v1663_v56  ;;  %v14059_v32 = vpop.f32.mrb[38].mxu1 }
 0x145   : > { %2397 = vst.msk [vmem:[#allocation2 + $0x138] sm:$0xff] %vm1513_vm3, %v2285_v3  ;;  %11909 = vmatmul.mubr.msk.bf16.gmra.mrb[148].mxu0 %vm856_vm2, %v13138_v62  ;;  %v14061_v0 = vpop.f32.mrb[39].mxu1  ;;  %v13142_v62 = vld [vmem:[%s13443_s20 + $0x88] sm:$0xff]  }
 0x146   : > { %2395 = vst.msk [vmem:[#allocation2 + $0x128] sm:$0xff] %vm1513_vm3, %v2283_v38  ;;  %11912 = vmatprep.mubr.msk.bf16.mxu0 %vm856_vm2, %v13139_v28 }
 0x148   : > { %v11710_v17 = vpop.f32.mrb[44].mxu0  ;;  %v1668_v18 = vld [vmem:[#allocation2 + $0x150] sm:$0xff]  ;;  %12063 = vmatmul.mubr.msk.bf16.gmra.mrb[148].mxu1 %vm856_vm2, %v13641_v42 }
 0x149   : > { %1560 = vst.msk [vmem:[#allocation2 + $0x170] sm:$0xff] %vm1513_vm3, %v11710_v17  ;;  %v2288_v30 = vadd.f32 %v13937_v9, %v1668_v18  ;;  %v1242_v6 = vpop.f32.mrb[45].mxu0  ;;  %v1666_v20 = vld [vmem:[#allocation2 + $0x140] sm:$0xff]  ;;  %12066 = vmatprep.mubr.msk.bf16.mxu1 %vm856_vm2, %v13644_v43 }
 0x14a   : > { %1558 = vst.msk [vmem:[#allocation2 + $0x160] sm:$0xff] %vm1513_vm3, %v1242_v6  ;;  %v2286_v2 = vadd.f32 %v13942_v31, %v1666_v20  ;;  %v11711_v13 = vpop.f32.mrb[46].mxu0  ;;  %v1669_v36 = vld [vmem:[#allocation2 + $0x158] sm:$0xff]  ;;  %v14077_v31 = vpop.f32.mrb[40].mxu1 }
 0x14b   : > { %2400 = vst.msk [vmem:[#allocation2 + $0x150] sm:$0xff] %vm1513_vm3, %v2288_v30  ;;  %1561 = vst.msk [vmem:[#allocation2 + $0x178] sm:$0xff] %vm1513_vm3, %v11711_v13  ;;  %v2289_v9 = vadd.f32 %v13947_v23, %v1669_v36  ;;  %v1245_v11 = vpop.f32.mrb[47].mxu0  ;;  %v1667_v25 = vld [vmem:[#allocation2 + $0x148] sm:$0xff]  ;;  %v14082_v41 = vpop.f32.mrb[41].mxu1  ;;  %v13141_v23 = vld [vmem:[%s13443_s20 + $0x80] sm:$0xff]  }
 0x14c   : > { %2398 = vst.msk [vmem:[#allocation2 + $0x140] sm:$0xff] %vm1513_vm3, %v2286_v2  ;;  %1559 = vst.msk [vmem:[#allocation2 + $0x168] sm:$0xff] %vm1513_vm3, %v1245_v11  ;;  %v2287_v40 = vadd.f32 %v13949_v24, %v1667_v25  ;;  %v14087_v63 = vpop.f32.mrb[42].mxu1  ;;  %v13144_v25 = vld [vmem:[%s13443_s20 + $0x98] sm:$0xff]  }
 0x14d   : > { %2401 = vst.msk [vmem:[#allocation2 + $0x158] sm:$0xff] %vm1513_vm3, %v2289_v9  ;;  %11913 = vmatmul.mubr.msk.bf16.gmra.mrb[152].mxu0 %vm856_vm2, %v13140_v7  ;;  %v14089_v16 = vpop.f32.mrb[43].mxu1 }
 0x14e   : > { %2399 = vst.msk [vmem:[#allocation2 + $0x148] sm:$0xff] %vm1513_vm3, %v2287_v40  ;;  %11916 = vmatprep.mubr.msk.bf16.mxu0 %vm856_vm2, %v13141_v23 }
 0x150   : > { %v11714_v8 = vpop.f32.mrb[48].mxu0  ;;  %v1672_v24 = vld [vmem:[#allocation2 + $0x170] sm:$0xff]  ;;  %12067 = vmatmul.mubr.msk.bf16.gmra.mrb[152].mxu1 %vm856_vm2, %v13655_v44 }
 0x151   : > { %1564 = vst.msk [vmem:[#allocation2 + $0x190] sm:$0xff] %vm1513_vm3, %v11714_v8  ;;  %v2292_v15 = vadd.f32 %v13965_v5, %v1672_v24  ;;  %v1258_v34 = vpop.f32.mrb[49].mxu0  ;;  %v1670_v22 = vld [vmem:[#allocation2 + $0x160] sm:$0xff]  ;;  %12070 = vmatprep.mubr.msk.bf16.mxu1 %vm856_vm2, %v13658_v45 }
 0x152   : > { %1562 = vst.msk [vmem:[#allocation2 + $0x180] sm:$0xff] %vm1513_vm3, %v1258_v34  ;;  %v2290_v21 = vadd.f32 %v13970_v33, %v1670_v22  ;;  %v11715_v3 = vpop.f32.mrb[50].mxu0  ;;  %v1673_v57 = vld [vmem:[#allocation2 + $0x178] sm:$0xff]  ;;  %v14105_v33 = vpop.f32.mrb[44].mxu1 }
 0x153   : > { %2404 = vst.msk [vmem:[#allocation2 + $0x170] sm:$0xff] %vm1513_vm3, %v2292_v15  ;;  %1565 = vst.msk [vmem:[#allocation2 + $0x198] sm:$0xff] %vm1513_vm3, %v11715_v3  ;;  %v2293_v5 = vadd.f32 %v13975_v19, %v1673_v57  ;;  %v1261_v56 = vpop.f32.mrb[51].mxu0  ;;  %v1671_v38 = vld [vmem:[#allocation2 + $0x168] sm:$0xff]  ;;  %v14110_v43 = vpop.f32.mrb[45].mxu1  ;;  %v13143_v19 = vld [vmem:[%s13443_s20 + $0x90] sm:$0xff]  }
 0x154   : > { %2402 = vst.msk [vmem:[#allocation2 + $0x160] sm:$0xff] %vm1513_vm3, %v2290_v21  ;;  %1563 = vst.msk [vmem:[#allocation2 + $0x188] sm:$0xff] %vm1513_vm3, %v1261_v56  ;;  %v2291_v42 = vadd.f32 %v13977_v26, %v1671_v38  ;;  %v14115_v28 = vpop.f32.mrb[46].mxu1 }
 0x155   : > { %2405 = vst.msk [vmem:[#allocation2 + $0x178] sm:$0xff] %vm1513_vm3, %v2293_v5  ;;  %11917 = vmatmul.mubr.msk.bf16.gmra.mrb[156].mxu0 %vm856_vm2, %v13142_v62  ;;  %v14117_v17 = vpop.f32.mrb[47].mxu1  ;;  %v13146_v5 = vld [vmem:[%s13443_s20 + $0xa8] sm:$0xff]  }
 0x156   : > { %2403 = vst.msk [vmem:[#allocation2 + $0x168] sm:$0xff] %vm1513_vm3, %v2291_v42  ;;  %11920 = vmatprep.mubr.msk.bf16.mxu0 %vm856_vm2, %v13143_v19 }
 0x158   : > { %v11718_v18 = vpop.f32.mrb[52].mxu0  ;;  %v1676_v26 = vld [vmem:[#allocation2 + $0x190] sm:$0xff]  ;;  %12071 = vmatmul.mubr.msk.bf16.gmra.mrb[156].mxu1 %vm856_vm2, %v13669_v46 }
 0x159   : > { %1568 = vst.msk [vmem:[#allocation2 + $0x1b0] sm:$0xff] %vm1513_vm3, %v11718_v18  ;;  %v2296_v30 = vadd.f32 %v13993_v51, %v1676_v26  ;;  %v1274_v6 = vpop.f32.mrb[53].mxu0  ;;  %v1674_v20 = vld [vmem:[#allocation2 + $0x180] sm:$0xff]  ;;  %12074 = vmatprep.mubr.msk.bf16.mxu1 %vm856_vm2, %v13672_v47 }
 0x15a   : > { %1566 = vst.msk [vmem:[#allocation2 + $0x1a0] sm:$0xff] %vm1513_vm3, %v1274_v6  ;;  %v2294_v2 = vadd.f32 %v13998_v35, %v1674_v20  ;;  %v11719_v13 = vpop.f32.mrb[54].mxu0  ;;  %v1677_v36 = vld [vmem:[#allocation2 + $0x198] sm:$0xff]  ;;  %v14133_v35 = vpop.f32.mrb[48].mxu1 }
 0x15b   : > { %2408 = vst.msk [vmem:[#allocation2 + $0x190] sm:$0xff] %vm1513_vm3, %v2296_v30  ;;  %1569 = vst.msk [vmem:[#allocation2 + $0x1b8] sm:$0xff] %vm1513_vm3, %v11719_v13  ;;  %v2297_v51 = vadd.f32 %v14003_v27, %v1677_v36  ;;  %v1277_v9 = vpop.f32.mrb[55].mxu0  ;;  %v1675_v11 = vld [vmem:[#allocation2 + $0x188] sm:$0xff]  ;;  %v14138_v45 = vpop.f32.mrb[49].mxu1  ;;  %v13145_v27 = vld [vmem:[%s13443_s20 + $0xa0] sm:$0xff]  }
 0x15c   : > { %2406 = vst.msk [vmem:[#allocation2 + $0x180] sm:$0xff] %vm1513_vm3, %v2294_v2  ;;  %1567 = vst.msk [vmem:[#allocation2 + $0x1a8] sm:$0xff] %vm1513_vm3, %v1277_v9  ;;  %v2295_v44 = vadd.f32 %v14005_v53, %v1675_v11  ;;  %v14143_v40 = vpop.f32.mrb[50].mxu1 }
 0x15d   : > { %2409 = vst.msk [vmem:[#allocation2 + $0x198] sm:$0xff] %vm1513_vm3, %v2297_v51  ;;  %11921 = vmatmul.mubr.msk.bf16.gmra.mrb[160].mxu0 %vm856_vm2, %v13144_v25  ;;  %v14145_v7 = vpop.f32.mrb[51].mxu1 }
 0x15e   : > { %2407 = vst.msk [vmem:[#allocation2 + $0x188] sm:$0xff] %vm1513_vm3, %v2295_v44  ;;  %11924 = vmatprep.mubr.msk.bf16.mxu0 %vm856_vm2, %v13145_v27 }
 0x160   : > { %v11722_v23 = vpop.f32.mrb[56].mxu0  ;;  %v1680_v53 = vld [vmem:[#allocation2 + $0x1b0] sm:$0xff]  ;;  %12075 = vmatmul.mubr.msk.bf16.gmra.mrb[160].mxu1 %vm856_vm2, %v13685_v48 }
 0x161   : > { %1572 = vst.msk [vmem:[#allocation2 + $0x1d0] sm:$0xff] %vm1513_vm3, %v11722_v23  ;;  %v2300_v8 = vadd.f32 %v14021_v12, %v1680_v53  ;;  %v1290_v24 = vpop.f32.mrb[57].mxu0  ;;  %v1678_v15 = vld [vmem:[#allocation2 + $0x1a0] sm:$0xff]  ;;  %12078 = vmatprep.mubr.msk.bf16.mxu1 %vm856_vm2, %v13690_v49  ;;  %v13148_v49 = vld [vmem:[%s13443_s20 + $0xb8] sm:$0xff]  }
 0x162   : > { %1570 = vst.msk [vmem:[#allocation2 + $0x1c0] sm:$0xff] %vm1513_vm3, %v1290_v24  ;;  %v2298_v34 = vadd.f32 %v14026_v37, %v1678_v15  ;;  %v11723_v22 = vpop.f32.mrb[58].mxu0  ;;  %v1681_v21 = vld [vmem:[#allocation2 + $0x1b8] sm:$0xff]  ;;  %v14161_v37 = vpop.f32.mrb[52].mxu1 }
 0x163   : > { %2412 = vst.msk [vmem:[#allocation2 + $0x1b0] sm:$0xff] %vm1513_vm3, %v2300_v8  ;;  %1573 = vst.msk [vmem:[#allocation2 + $0x1d8] sm:$0xff] %vm1513_vm3, %v11723_v22  ;;  %v2301_v12 = vadd.f32 %v14031_v14, %v1681_v21  ;;  %v1293_v3 = vpop.f32.mrb[59].mxu0  ;;  %v1679_v57 = vld [vmem:[#allocation2 + $0x1a8] sm:$0xff]  ;;  %v14166_v47 = vpop.f32.mrb[53].mxu1  ;;  %v13147_v14 = vld [vmem:[%s13443_s20 + $0xb0] sm:$0xff]  }
 0x164   : > { %2410 = vst.msk [vmem:[#allocation2 + $0x1a0] sm:$0xff] %vm1513_vm3, %v2298_v34  ;;  %1571 = vst.msk [vmem:[#allocation2 + $0x1c8] sm:$0xff] %vm1513_vm3, %v1293_v3  ;;  %v2299_v46 = vadd.f32 %v14033_v29, %v1679_v57  ;;  %v14171_v56 = vpop.f32.mrb[54].mxu1  ;;  %v12956_v29 = vld [vmem:[%s17795_s1 + $0x20] sm:$0xff]   ;;  %v13150_v34 = vld [vmem:[%s13443_s20 + $0xc8] sm:$0xff]   ;;  %s13241_s1 = sshll.u32 %s13308_s30, 4  ;;  %s13242_s1 = int_to_ptr.vmem [resolvable:$false] %s13241_s1 }
 0x165   : > { %2413 = vst.msk [vmem:[#allocation2 + $0x1b8] sm:$0xff] %vm1513_vm3, %v2301_v12  ;;  %11925 = vmatmul.mubr.msk.bf16.gmra.mrb[164].mxu0 %vm856_vm2, %v13146_v5  ;;  %v14176_v38 = vpop.f32.mrb[55].mxu1  ;;  %v4295_v19 = vand.u32 %v12956_v29, %v13436_v4 }
 0x166   : > { %2411 = vst.msk [vmem:[#allocation2 + $0x1a8] sm:$0xff] %vm1513_vm3, %v2299_v46  ;;  %11928 = vmatprep.mubr.msk.bf16.mxu0 %vm856_vm2, %v13147_v14  ;;  %v14193_v13 = vpop.f32.mrb[56].mxu1 }
 0x167   : > { %12118 = vmatprep.subr.bf16.mxu0 %v4295_v19  ;;  %v14198_v36 = vpop.f32.mrb[57].mxu1 }
 0x168   : > { %v11726_v42 = vpop.f32.mrb[60].mxu0  ;;  %v1684_v62 = vld [vmem:[#allocation2 + $0x1d0] sm:$0xff]  ;;  %12119 = vmatpush3.bf16.msra.mxu0 %v4295_v19  ;;  %v14203_v51 = vpop.f32.mrb[58].mxu1  ;;  %12079 = vmatmul.mubr.msk.bf16.gmra.mrb[164].mxu1 %vm856_vm2, %v13699_v50  ;;  %v13152_v19 = vld [vmem:[%s13443_s20 + $0xd8] sm:$0xff]  }
 0x169   : > { %1576 = vst.msk [vmem:[#allocation2 + $0x1f0] sm:$0xff] %vm1513_vm3, %v11726_v42  ;;  %v2304_v18 = vadd.f32 %v14049_v10, %v1684_v62  ;;  %v1306_v26 = vpop.f32.mrb[61].mxu0  ;;  %v1682_v30 = vld [vmem:[#allocation2 + $0x1c0] sm:$0xff]  ;;  %v14205_v9 = vpop.f32.mrb[59].mxu1  ;;  %12082 = vmatprep.mubr.msk.bf16.mxu1 %vm856_vm2, %v13707_v52 }
 0x16a   : > { %1574 = vst.msk [vmem:[#allocation2 + $0x1e0] sm:$0xff] %vm1513_vm3, %v1306_v26  ;;  %v2302_v6 = vadd.f32 %v14054_v39, %v1682_v30  ;;  %v11727_v20 = vpop.f32.mrb[62].mxu0  ;;  %v1685_v2 = vld [vmem:[#allocation2 + $0x1d8] sm:$0xff] }
 0x16b   : > { %2416 = vst.msk [vmem:[#allocation2 + $0x1d0] sm:$0xff] %vm1513_vm3, %v2304_v18  ;;  %1577 = vst.msk [vmem:[#allocation2 + $0x1f8] sm:$0xff] %vm1513_vm3, %v11727_v20  ;;  %v2305_v4 = vadd.f32 %v14059_v32, %v1685_v2  ;;  %v1309_v10 = vpop.f32.mrb[63].mxu0  ;;  %v1683_v48 = vld [vmem:[#allocation2 + $0x1c8] sm:$0xff]  ;;  %v13149_v32 = vld [vmem:[%s13443_s20 + $0xc0] sm:$0xff]  }
 0x16c   : > { %2414 = vst.msk [vmem:[#allocation2 + $0x1c0] sm:$0xff] %vm1513_vm3, %v2302_v6  ;;  %1575 = vst.msk [vmem:[#allocation2 + $0x1e8] sm:$0xff] %vm1513_vm3, %v1309_v10  ;;  %v2303_v39 = vadd.f32 %v14061_v0, %v1683_v48 }
 0x16d   : > { %2417 = vst.msk [vmem:[#allocation2 + $0x1d8] sm:$0xff] %vm1513_vm3, %v2305_v4  ;;  %11929 = vmatmul.mubr.msk.bf16.gmra.mrb[168].mxu0 %vm856_vm2, %v13148_v49 }
 0x16e   : > { %2415 = vst.msk [vmem:[#allocation2 + $0x1c8] sm:$0xff] %vm1513_vm3, %v2303_v39  ;;  %11932 = vmatprep.mubr.msk.bf16.mxu0 %vm856_vm2, %v13149_v32  ;;  %v13154_v32 = vld [vmem:[%s13443_s20 + $0xe8] sm:$0xff]  }
 0x170   : > { %v11730_v11 = vpop.f32.mrb[64].mxu0  ;;  %v1688_v0 = vld [vmem:[#allocation2 + $0x1f0] sm:$0xff]  ;;  %12083 = vmatmul.mubr.msk.bf16.gmra.mrb[168].mxu1 %vm856_vm2, %v13720_v54 }
 0x171   : > { %1580 = vst.msk [vmem:[#allocation2 + $0x210] sm:$0xff] %vm1513_vm3, %v11730_v11  ;;  %v2308_v44 = vadd.f32 %v14077_v31, %v1688_v0  ;;  %v1322_v25 = vpop.f32.mrb[65].mxu0  ;;  %v1686_v27 = vld [vmem:[#allocation2 + $0x1e0] sm:$0xff]  ;;  %12086 = vmatprep.mubr.msk.bf16.mxu1 %vm856_vm2, %v13725_v55 }
 0x172   : > { %1578 = vst.msk [vmem:[#allocation2 + $0x200] sm:$0xff] %vm1513_vm3, %v1322_v25  ;;  %v2306_v23 = vadd.f32 %v14082_v41, %v1686_v27  ;;  %v11731_v53 = vpop.f32.mrb[66].mxu0  ;;  %v1689_v8 = vld [vmem:[#allocation2 + $0x1f8] sm:$0xff]  ;;  %v14221_v41 = vpop.f32.mrb[60].mxu1 }
 0x173   : > { %2420 = vst.msk [vmem:[#allocation2 + $0x1f0] sm:$0xff] %vm1513_vm3, %v2308_v44  ;;  %1581 = vst.msk [vmem:[#allocation2 + $0x218] sm:$0xff] %vm1513_vm3, %v11731_v53  ;;  %v2309_v31 = vadd.f32 %v14087_v63, %v1689_v8  ;;  %v1325_v24 = vpop.f32.mrb[67].mxu0  ;;  %v1687_v15 = vld [vmem:[#allocation2 + $0x1e8] sm:$0xff]  ;;  %v14226_v52 = vpop.f32.mrb[61].mxu1  ;;  %v13151_v63 = vld [vmem:[%s13443_s20 + $0xd0] sm:$0xff]  }
 0x174   : > { %2418 = vst.msk [vmem:[#allocation2 + $0x1e0] sm:$0xff] %vm1513_vm3, %v2306_v23  ;;  %1579 = vst.msk [vmem:[#allocation2 + $0x208] sm:$0xff] %vm1513_vm3, %v1325_v24  ;;  %v2307_v50 = vadd.f32 %v14089_v16, %v1687_v15  ;;  %v14231_v22 = vpop.f32.mrb[62].mxu1 }
 0x175   : > { %2421 = vst.msk [vmem:[#allocation2 + $0x1f8] sm:$0xff] %vm1513_vm3, %v2309_v31  ;;  %11933 = vmatmul.mubr.msk.bf16.gmra.mrb[172].mxu0 %vm856_vm2, %v13150_v34  ;;  %v14233_v21 = vpop.f32.mrb[63].mxu1 }
 0x176   : > { %2419 = vst.msk [vmem:[#allocation2 + $0x1e8] sm:$0xff] %vm1513_vm3, %v2307_v50  ;;  %11936 = vmatprep.mubr.msk.bf16.mxu0 %vm856_vm2, %v13151_v63 }
 0x178   : > { %v11734_v12 = vpop.f32.mrb[68].mxu0  ;;  %v1692_v16 = vld [vmem:[#allocation2 + $0x210] sm:$0xff]  ;;  %12087 = vmatmul.mubr.msk.bf16.gmra.mrb[172].mxu1 %vm856_vm2, %v13738_v58 }
 0x179   : > { %1584 = vst.msk [vmem:[#allocation2 + $0x230] sm:$0xff] %vm1513_vm3, %v11734_v12  ;;  %v2312_v3 = vadd.f32 %v14105_v33, %v1692_v16  ;;  %v1338_v57 = vpop.f32.mrb[69].mxu0  ;;  %v1690_v46 = vld [vmem:[#allocation2 + $0x200] sm:$0xff]  ;;  %12090 = vmatprep.mubr.msk.bf16.mxu1 %vm856_vm2, %v13743_v59 }
 0x17a   : > { %1582 = vst.msk [vmem:[#allocation2 + $0x220] sm:$0xff] %vm1513_vm3, %v1338_v57  ;;  %v2310_v5 = vadd.f32 %v14110_v43, %v1690_v46  ;;  %v11735_v14 = vpop.f32.mrb[70].mxu0  ;;  %v1693_v29 = vld [vmem:[#allocation2 + $0x218] sm:$0xff]  ;;  %v14249_v43 = vpop.f32.mrb[64].mxu1 }
 0x17b   : > { %2424 = vst.msk [vmem:[#allocation2 + $0x210] sm:$0xff] %vm1513_vm3, %v2312_v3  ;;  %1585 = vst.msk [vmem:[#allocation2 + $0x238] sm:$0xff] %vm1513_vm3, %v11735_v14  ;;  %v2313_v33 = vadd.f32 %v14115_v28, %v1693_v29  ;;  %v1341_v42 = vpop.f32.mrb[71].mxu0  ;;  %v1691_v62 = vld [vmem:[#allocation2 + $0x208] sm:$0xff]  ;;  %v14254_v55 = vpop.f32.mrb[65].mxu1  ;;  %v13153_v28 = vld [vmem:[%s13443_s20 + $0xe0] sm:$0xff]  }
 0x17c   : > { %2422 = vst.msk [vmem:[#allocation2 + $0x200] sm:$0xff] %vm1513_vm3, %v2310_v5  ;;  %1583 = vst.msk [vmem:[#allocation2 + $0x228] sm:$0xff] %vm1513_vm3, %v1341_v42  ;;  %v2311_v54 = vadd.f32 %v14117_v17, %v1691_v62  ;;  %v14259_v18 = vpop.f32.mrb[66].mxu1  ;;  %v14322_v46 = vld [vmem:[%s13443_s20 + $0x198] sm:$0xff]  }
 0x17d   : > { %2425 = vst.msk [vmem:[#allocation2 + $0x218] sm:$0xff] %vm1513_vm3, %v2313_v33  ;;  %11937 = vmatmul.mubr.msk.bf16.gmra.mrb[176].mxu0 %vm856_vm2, %v13152_v19  ;;  %v14261_v26 = vpop.f32.mrb[67].mxu1  ;;  %v14329_v33 = vld [vmem:[%s13443_s20 + $0x1a0] sm:$0xff]   ;;  %v13160_v19 = vld [vmem:[%s13443_s20 + $0x108] sm:$0xff]  }
 0x17e   : > { %2423 = vst.msk [vmem:[#allocation2 + $0x208] sm:$0xff] %vm1513_vm3, %v2311_v54  ;;  %11940 = vmatprep.mubr.msk.bf16.mxu0 %vm856_vm2, %v13153_v28 }
 0x180   : > { %v11738_v30 = vpop.f32.mrb[72].mxu0  ;;  %v1696_v17 = vld [vmem:[#allocation2 + $0x230] sm:$0xff]  ;;  %12091 = vmatmul.mubr.msk.bf16.gmra.mrb[176].mxu1 %vm856_vm2, %v13752_v60 }
 0x181   : > { %1588 = vst.msk [vmem:[#allocation2 + $0x250] sm:$0xff] %vm1513_vm3, %v11738_v30  ;;  %v2316_v6 = vadd.f32 %v14133_v35, %v1696_v17  ;;  %v1354_v20 = vpop.f32.mrb[73].mxu0  ;;  %v1694_v2 = vld [vmem:[#allocation2 + $0x220] sm:$0xff]  ;;  %12094 = vmatprep.mubr.msk.bf16.mxu1 %vm856_vm2, %v13757_v61  ;;  %v13156_v61 = vld [vmem:[%s13443_s20 + $0xf8] sm:$0xff]  }
 0x182   : > { %1586 = vst.msk [vmem:[#allocation2 + $0x240] sm:$0xff] %vm1513_vm3, %v1354_v20  ;;  %v2314_v4 = vadd.f32 %v14138_v45, %v1694_v2  ;;  %v11739_v10 = vpop.f32.mrb[74].mxu0  ;;  %v1697_v48 = vld [vmem:[#allocation2 + $0x238] sm:$0xff]  ;;  %v14277_v45 = vpop.f32.mrb[68].mxu1 }
 0x183   : > { %2428 = vst.msk [vmem:[#allocation2 + $0x230] sm:$0xff] %vm1513_vm3, %v2316_v6  ;;  %1589 = vst.msk [vmem:[#allocation2 + $0x258] sm:$0xff] %vm1513_vm3, %v11739_v10  ;;  %v2317_v35 = vadd.f32 %v14143_v40, %v1697_v48  ;;  %v1357_v39 = vpop.f32.mrb[75].mxu0  ;;  %v1695_v49 = vld [vmem:[#allocation2 + $0x228] sm:$0xff]  ;;  %v14282_v59 = vpop.f32.mrb[69].mxu1  ;;  %v13155_v40 = vld [vmem:[%s13443_s20 + $0xf0] sm:$0xff]  }
 0x184   : > { %2426 = vst.msk [vmem:[#allocation2 + $0x220] sm:$0xff] %vm1513_vm3, %v2314_v4  ;;  %1587 = vst.msk [vmem:[#allocation2 + $0x248] sm:$0xff] %vm1513_vm3, %v1357_v39  ;;  %v2315_v58 = vadd.f32 %v14145_v7, %v1695_v49  ;;  %v14287_v11 = vpop.f32.mrb[70].mxu1  ;;  %v14356_v10 = vld [vmem:[%s13443_s20 + $0x1a8] sm:$0xff]   ;;  %v14363_v49 = vld [vmem:[%s13443_s20 + $0x1b0] sm:$0xff]  }
 0x185   : > { %2429 = vst.msk [vmem:[#allocation2 + $0x238] sm:$0xff] %vm1513_vm3, %v2317_v35  ;;  %11941 = vmatmul.mubr.msk.bf16.gmra.mrb[180].mxu0 %vm856_vm2, %v13154_v32  ;;  %v14289_v0 = vpop.f32.mrb[71].mxu1 }
 0x186   : > { %2427 = vst.msk [vmem:[#allocation2 + $0x228] sm:$0xff] %vm1513_vm3, %v2315_v58  ;;  %11944 = vmatprep.mubr.msk.bf16.mxu0 %vm856_vm2, %v13155_v40 }
 0x188   : > { %v11742_v44 = vpop.f32.mrb[76].mxu0  ;;  %v1700_v7 = vld [vmem:[#allocation2 + $0x250] sm:$0xff]  ;;  %12095 = vmatmul.mubr.msk.bf16.gmra.mrb[180].mxu1 %vm856_vm2, %v14322_v46 }
 0x189   : > { %1592 = vst.msk [vmem:[#allocation2 + $0x270] sm:$0xff] %vm1513_vm3, %v11742_v44  ;;  %v2320_v25 = vadd.f32 %v14161_v37, %v1700_v7  ;;  %v1370_v27 = vpop.f32.mrb[77].mxu0  ;;  %v1698_v23 = vld [vmem:[#allocation2 + $0x240] sm:$0xff]  ;;  %12098 = vmatprep.mubr.msk.bf16.mxu1 %vm856_vm2, %v14329_v33  ;;  %v13164_v44 = vld [vmem:[%s13443_s20 + $0x118] sm:$0xff]  }
 0x18a   : > { %1590 = vst.msk [vmem:[#allocation2 + $0x260] sm:$0xff] %vm1513_vm3, %v1370_v27  ;;  %v2318_v53 = vadd.f32 %v14166_v47, %v1698_v23  ;;  %v11743_v8 = vpop.f32.mrb[78].mxu0  ;;  %v1701_v31 = vld [vmem:[#allocation2 + $0x258] sm:$0xff]  ;;  %v14305_v47 = vpop.f32.mrb[72].mxu1 }
 0x18b   : > { %2432 = vst.msk [vmem:[#allocation2 + $0x250] sm:$0xff] %vm1513_vm3, %v2320_v25  ;;  %1593 = vst.msk [vmem:[#allocation2 + $0x278] sm:$0xff] %vm1513_vm3, %v11743_v8  ;;  %v2321_v37 = vadd.f32 %v14171_v56, %v1701_v31  ;;  %v1373_v24 = vpop.f32.mrb[79].mxu0  ;;  %v1699_v15 = vld [vmem:[#allocation2 + $0x248] sm:$0xff]  ;;  %v14310_v50 = vpop.f32.mrb[73].mxu1  ;;  %v13157_v56 = vld [vmem:[%s13443_s20 + $0x100] sm:$0xff]  }
 0x18c   : > { %2430 = vst.msk [vmem:[#allocation2 + $0x240] sm:$0xff] %vm1513_vm3, %v2318_v53  ;;  %1591 = vst.msk [vmem:[#allocation2 + $0x268] sm:$0xff] %vm1513_vm3, %v1373_v24  ;;  %v2319_v60 = vadd.f32 %v14176_v38, %v1699_v15  ;;  %v14315_v34 = vpop.f32.mrb[74].mxu1 }
 0x18d   : > { %2433 = vst.msk [vmem:[#allocation2 + $0x258] sm:$0xff] %vm1513_vm3, %v2321_v37  ;;  %11945 = vmatmul.mubr.msk.bf16.gmra.mrb[184].mxu0 %vm856_vm2, %v13156_v61  ;;  %v14317_v63 = vpop.f32.mrb[75].mxu1  ;;  %v14390_v37 = vld [vmem:[%s13443_s20 + $0x1b8] sm:$0xff]   ;;  %v14397_v61 = vld [vmem:[%s13443_s20 + $0x1c0] sm:$0xff]  }
 0x18e   : > { %2431 = vst.msk [vmem:[#allocation2 + $0x248] sm:$0xff] %vm1513_vm3, %v2319_v60  ;;  %11948 = vmatprep.mubr.msk.bf16.mxu0 %vm856_vm2, %v13157_v56  ;;  %v14339_v54 = vpop.f32.mrb[76].mxu1 }
 0x18f   : > { %v14344_v28 = vpop.f32.mrb[77].mxu1 }
 0x190   : > { %v11746_v38 = vpop.f32.mrb[80].mxu0  ;;  %v1704_v12 = vld [vmem:[#allocation2 + $0x270] sm:$0xff]  ;;  %v14349_v30 = vpop.f32.mrb[78].mxu1  ;;  %12099 = vmatmul.mubr.msk.bf16.gmra.mrb[184].mxu1 %vm856_vm2, %v14356_v10 }
 0x191   : > { %1596 = vst.msk [vmem:[#allocation2 + $0x290] sm:$0xff] %vm1513_vm3, %v11746_v38  ;;  %v2324_v16 = vadd.f32 %v14193_v13, %v1704_v12  ;;  %v1386_v3 = vpop.f32.mrb[81].mxu0  ;;  %v1702_v57 = vld [vmem:[#allocation2 + $0x260] sm:$0xff]  ;;  %v14351_v17 = vpop.f32.mrb[79].mxu1  ;;  %12102 = vmatprep.mubr.msk.bf16.mxu1 %vm856_vm2, %v14363_v49 }
 0x192   : > { %1594 = vst.msk [vmem:[#allocation2 + $0x280] sm:$0xff] %vm1513_vm3, %v1386_v3  ;;  %v2322_v5 = vadd.f32 %v14198_v36, %v1702_v57  ;;  %v11747_v14 = vpop.f32.mrb[82].mxu0  ;;  %v1705_v29 = vld [vmem:[#allocation2 + $0x278] sm:$0xff] }
 0x193   : > { %2436 = vst.msk [vmem:[#allocation2 + $0x270] sm:$0xff] %vm1513_vm3, %v2324_v16  ;;  %1597 = vst.msk [vmem:[#allocation2 + $0x298] sm:$0xff] %vm1513_vm3, %v11747_v14  ;;  %v2325_v13 = vadd.f32 %v14203_v51, %v1705_v29  ;;  %v1389_v42 = vpop.f32.mrb[83].mxu0  ;;  %v1703_v62 = vld [vmem:[#allocation2 + $0x268] sm:$0xff]  ;;  %v13161_v51 = vld [vmem:[%s13443_s20 + $0x110] sm:$0xff]   ;;  %v14373_v40 = vpop.f32.mrb[80].mxu1 }
 0x194   : > { %2434 = vst.msk [vmem:[#allocation2 + $0x260] sm:$0xff] %vm1513_vm3, %v2322_v5  ;;  %1595 = vst.msk [vmem:[#allocation2 + $0x288] sm:$0xff] %vm1513_vm3, %v1389_v42  ;;  %v2323_v36 = vadd.f32 %v14205_v9, %v1703_v62  ;;  %v14378_v7 = vpop.f32.mrb[81].mxu1  ;;  %v13168_v16 = vld [vmem:[%s13443_s20 + $0x128] sm:$0xff]   ;;  %v14422_v29 = vld [vmem:[%s13443_s20 + $0x1d0] sm:$0xff]  }
 0x195   : > { %2437 = vst.msk [vmem:[#allocation2 + $0x278] sm:$0xff] %vm1513_vm3, %v2325_v13  ;;  %11949 = vmatmul.mubr.msk.bf16.gmra.mrb[188].mxu0 %vm856_vm2, %v13160_v19  ;;  %v14383_v25 = vpop.f32.mrb[82].mxu1 }
 0x196   : > { %2435 = vst.msk [vmem:[#allocation2 + $0x268] sm:$0xff] %vm1513_vm3, %v2323_v36  ;;  %11952 = vmatprep.mubr.msk.bf16.mxu0 %vm856_vm2, %v13161_v51  ;;  %v14385_v27 = vpop.f32.mrb[83].mxu1  ;;  %v14427_v36 = vld [vmem:[%s13443_s20 + $0x1c8] sm:$0xff]  }
 0x198   : > { %v11750_v9 = vpop.f32.mrb[84].mxu0  ;;  %v1708_v6 = vld [vmem:[#allocation2 + $0x290] sm:$0xff]  ;;  %12103 = vmatmul.mubr.msk.bf16.gmra.mrb[188].mxu1 %vm856_vm2, %v14390_v37 }
 0x199   : > { %1600 = vst.msk [vmem:[#allocation2 + $0x2b0] sm:$0xff] %vm1513_vm3, %v11750_v9  ;;  %v2328_v20 = vadd.f32 %v14221_v41, %v1708_v6  ;;  %v1402_v2 = vpop.f32.mrb[85].mxu0  ;;  %v1706_v4 = vld [vmem:[#allocation2 + $0x280] sm:$0xff]  ;;  %12106 = vmatprep.mubr.msk.bf16.mxu1 %vm856_vm2, %v14397_v61 }
 0x19a   : > { %1598 = vst.msk [vmem:[#allocation2 + $0x2a0] sm:$0xff] %vm1513_vm3, %v1402_v2  ;;  %v2326_v48 = vadd.f32 %v14226_v52, %v1706_v4  ;;  %v11751_v35 = vpop.f32.mrb[86].mxu0  ;;  %v1709_v39 = vld [vmem:[#allocation2 + $0x298] sm:$0xff] }
 0x19b   : > { %2440 = vst.msk [vmem:[#allocation2 + $0x290] sm:$0xff] %vm1513_vm3, %v2328_v20  ;;  %1601 = vst.msk [vmem:[#allocation2 + $0x2b8] sm:$0xff] %vm1513_vm3, %v11751_v35  ;;  %v2329_v41 = vadd.f32 %v14231_v22, %v1709_v39  ;;  %v1405_v58 = vpop.f32.mrb[87].mxu0  ;;  %v1707_v32 = vld [vmem:[#allocation2 + $0x288] sm:$0xff]  ;;  %v13165_v22 = vld [vmem:[%s13443_s20 + $0x120] sm:$0xff]   ;;  %v14407_v12 = vpop.f32.mrb[84].mxu1 }
 0x19c   : > { %2438 = vst.msk [vmem:[#allocation2 + $0x280] sm:$0xff] %vm1513_vm3, %v2326_v48  ;;  %1599 = vst.msk [vmem:[#allocation2 + $0x2a8] sm:$0xff] %vm1513_vm3, %v1405_v58  ;;  %v2327_v52 = vadd.f32 %v14233_v21, %v1707_v32  ;;  %v14412_v3 = vpop.f32.mrb[85].mxu1  ;;  %v13171_v4 = vld [vmem:[%s13443_s20 + $0x138] sm:$0xff]   ;;  %v12959_v39 = vld [vmem:[%s13443_s20 + $0x1e0] sm:$0xff]  }
 0x19d   : > { %2441 = vst.msk [vmem:[#allocation2 + $0x298] sm:$0xff] %vm1513_vm3, %v2329_v41  ;;  %11953 = vmatmul.mubr.msk.bf16.gmra.mrb[192].mxu0 %vm856_vm2, %v13164_v44  ;;  %v14417_v57 = vpop.f32.mrb[86].mxu1 }
 0x19e   : > { %2439 = vst.msk [vmem:[#allocation2 + $0x288] sm:$0xff] %vm1513_vm3, %v2327_v52  ;;  %11956 = vmatprep.mubr.msk.bf16.mxu0 %vm856_vm2, %v13165_v22  ;;  %v14419_v5 = vpop.f32.mrb[87].mxu1 }
 0x1a0   : > { %v11754_v21 = vpop.f32.mrb[88].mxu0  ;;  %v1712_v23 = vld [vmem:[#allocation2 + $0x2b0] sm:$0xff]  ;;  %12107 = vmatmul.mubr.msk.bf16.gmra.mrb[192].mxu1 %vm856_vm2, %v14427_v36 }
 0x1a1   : > { %1604 = vst.msk [vmem:[#allocation2 + $0x2d0] sm:$0xff] %vm1513_vm3, %v11754_v21  ;;  %v2332_v53 = vadd.f32 %v14249_v43, %v1712_v23  ;;  %v1418_v8 = vpop.f32.mrb[89].mxu0  ;;  %v1710_v31 = vld [vmem:[#allocation2 + $0x2a0] sm:$0xff]  ;;  %12110 = vmatprep.mubr.msk.bf16.mxu1 %vm856_vm2, %v14422_v29 }
 0x1a2   : > { %1602 = vst.msk [vmem:[#allocation2 + $0x2c0] sm:$0xff] %vm1513_vm3, %v1418_v8  ;;  %v2330_v24 = vadd.f32 %v14254_v55, %v1710_v31  ;;  %v11755_v15 = vpop.f32.mrb[90].mxu0  ;;  %v1713_v60 = vld [vmem:[#allocation2 + $0x2b8] sm:$0xff] }
 0x1a3   : > { %2444 = vst.msk [vmem:[#allocation2 + $0x2b0] sm:$0xff] %vm1513_vm3, %v2332_v53  ;;  %1605 = vst.msk [vmem:[#allocation2 + $0x2d8] sm:$0xff] %vm1513_vm3, %v11755_v15  ;;  %v2333_v43 = vadd.f32 %v14259_v18, %v1713_v60  ;;  %v1421_v56 = vpop.f32.mrb[91].mxu0  ;;  %v1711_v38 = vld [vmem:[#allocation2 + $0x2a8] sm:$0xff]  ;;  %v13169_v18 = vld [vmem:[%s13443_s20 + $0x130] sm:$0xff]   ;;  %v14441_v2 = vpop.f32.mrb[88].mxu1 }
 0x1a4   : > { %2442 = vst.msk [vmem:[#allocation2 + $0x2a0] sm:$0xff] %vm1513_vm3, %v2330_v24  ;;  %1603 = vst.msk [vmem:[#allocation2 + $0x2c8] sm:$0xff] %vm1513_vm3, %v1421_v56  ;;  %v2331_v55 = vadd.f32 %v14261_v26, %v1711_v38  ;;  %v14446_v48 = vpop.f32.mrb[89].mxu1  ;;  %v13173_v15 = vld [vmem:[%s13443_s20 + $0x148] sm:$0xff]  }
 0x1a5   : > { %2445 = vst.msk [vmem:[#allocation2 + $0x2b8] sm:$0xff] %vm1513_vm3, %v2333_v43  ;;  %11957 = vmatmul.mubr.msk.bf16.gmra.mrb[196].mxu0 %vm856_vm2, %v13168_v16  ;;  %v14451_v35 = vpop.f32.mrb[90].mxu1  ;;  %v12960_v43 = vld [vmem:[%s13443_s20 + $0x1e8] sm:$0xff]  }
 0x1a6   : > { %2443 = vst.msk [vmem:[#allocation2 + $0x2a8] sm:$0xff] %vm1513_vm3, %v2331_v55  ;;  %11960 = vmatprep.mubr.msk.bf16.mxu0 %vm856_vm2, %v13169_v18  ;;  %v14454_v41 = vpop.f32.mrb[91].mxu1 }
 0x1a8   : > { %v11758_v26 = vpop.f32.mrb[92].mxu0  ;;  %v1716_v14 = vld [vmem:[#allocation2 + $0x2d0] sm:$0xff] }
 0x1a9   : > { %1608 = vst.msk [vmem:[#allocation2 + $0x2f0] sm:$0xff] %vm1513_vm3, %v11758_v26  ;;  %v2336_v13 = vadd.f32 %v14277_v45, %v1716_v14  ;;  %v1434_v42 = vpop.f32.mrb[93].mxu0  ;;  %v1714_v62 = vld [vmem:[#allocation2 + $0x2c0] sm:$0xff] }
 0x1aa   : > { %1606 = vst.msk [vmem:[#allocation2 + $0x2e0] sm:$0xff] %vm1513_vm3, %v1434_v42  ;;  %v2334_v19 = vadd.f32 %v14282_v59, %v1714_v62  ;;  %v11759_v51 = vpop.f32.mrb[94].mxu0  ;;  %v1717_v9 = vld [vmem:[#allocation2 + $0x2d8] sm:$0xff] }
 0x1ab   : > { %2448 = vst.msk [vmem:[#allocation2 + $0x2d0] sm:$0xff] %vm1513_vm3, %v2336_v13  ;;  %1609 = vst.msk [vmem:[#allocation2 + $0x2f8] sm:$0xff] %vm1513_vm3, %v11759_v51  ;;  %v2337_v45 = vadd.f32 %v14287_v11, %v1717_v9  ;;  %v1437_v6 = vpop.f32.mrb[95].mxu0  ;;  %v1715_v20 = vld [vmem:[#allocation2 + $0x2c8] sm:$0xff]  ;;  %v13172_v11 = vld [vmem:[%s13443_s20 + $0x140] sm:$0xff]   ;;  %v14472_v24 = vpop.f32.mrb[92].mxu1 }
 0x1ac   : > { %2446 = vst.msk [vmem:[#allocation2 + $0x2c0] sm:$0xff] %vm1513_vm3, %v2334_v19  ;;  %1607 = vst.msk [vmem:[#allocation2 + $0x2e8] sm:$0xff] %vm1513_vm3, %v1437_v6  ;;  %v2335_v59 = vadd.f32 %v14289_v0, %v1715_v20  ;;  %v14457_v0 = vld [vmem:[%s13443_s20 + $0x1d8] sm:$0xff]   ;;  %v14477_v60 = vpop.f32.mrb[93].mxu1 }
 0x1ad   : > { %2449 = vst.msk [vmem:[#allocation2 + $0x2d8] sm:$0xff] %vm1513_vm3, %v2337_v45  ;;  %11961 = vmatmul.mubr.msk.bf16.gmra.mrb[200].mxu0 %vm856_vm2, %v13171_v4  ;;  %12111 = vmatmul.mubr.msk.bf16.gmra.mrb[196].mxu1 %vm856_vm2, %v14457_v0  ;;  %v14483_v56 = vpop.f32.mrb[94].mxu1 }
 0x1ae   : > { %2447 = vst.msk [vmem:[#allocation2 + $0x2c8] sm:$0xff] %vm1513_vm3, %v2335_v59  ;;  %11964 = vmatprep.mubr.msk.bf16.mxu0 %vm856_vm2, %v13172_v11  ;;  %12114 = vmatprep.mubr.msk.bf16.mxu1 %vm856_vm2, %v12959_v39  ;;  %v14485_v38 = vpop.f32.mrb[95].mxu1 }
 0x1b0   : > { %v11762_v58 = vpop.f32.mrb[96].mxu0  ;;  %v1720_v32 = vld [vmem:[#allocation2 + $0x2f0] sm:$0xff] }
 0x1b1   : > { %1612 = vst.msk [vmem:[#allocation2 + $0x310] sm:$0xff] %vm1513_vm3, %v11762_v58  ;;  %v2340_v52 = vadd.f32 %v14305_v47, %v1720_v32  ;;  %v1450_v44 = vpop.f32.mrb[97].mxu0  ;;  %v1718_v22 = vld [vmem:[#allocation2 + $0x2e0] sm:$0xff] }
 0x1b2   : > { %1610 = vst.msk [vmem:[#allocation2 + $0x300] sm:$0xff] %vm1513_vm3, %v1450_v44  ;;  %v2338_v21 = vadd.f32 %v14310_v50, %v1718_v22  ;;  %v11763_v23 = vpop.f32.mrb[98].mxu0  ;;  %v1721_v53 = vld [vmem:[#allocation2 + $0x2f8] sm:$0xff] }
 0x1b3   : > { %2452 = vst.msk [vmem:[#allocation2 + $0x2f0] sm:$0xff] %vm1513_vm3, %v2340_v52  ;;  %1613 = vst.msk [vmem:[#allocation2 + $0x318] sm:$0xff] %vm1513_vm3, %v11763_v23  ;;  %v2341_v47 = vadd.f32 %v14315_v34, %v1721_v53  ;;  %v1453_v8 = vpop.f32.mrb[99].mxu0  ;;  %v1719_v31 = vld [vmem:[#allocation2 + $0x2e8] sm:$0xff]  ;;  %v13174_v34 = vld [vmem:[%s13443_s20 + $0x150] sm:$0xff]   ;;  %v14498_v9 = vpop.f32.mrb[96].mxu1 }
 0x1b4   : > { %2450 = vst.msk [vmem:[#allocation2 + $0x2e0] sm:$0xff] %vm1513_vm3, %v2338_v21  ;;  %1611 = vst.msk [vmem:[#allocation2 + $0x308] sm:$0xff] %vm1513_vm3, %v1453_v8  ;;  %v2339_v50 = vadd.f32 %v14317_v63, %v1719_v31  ;;  %v14503_v45 = vpop.f32.mrb[97].mxu1 }
 0x1b5   : > { %2453 = vst.msk [vmem:[#allocation2 + $0x2f8] sm:$0xff] %vm1513_vm3, %v2341_v47  ;;  %11965 = vmatmul.mubr.msk.bf16.gmra.mrb[204].mxu0 %vm856_vm2, %v13173_v15  ;;  %12115 = vmatmul.mubr.msk.bf16.gmra.mrb[200].mxu1 %vm856_vm2, %v12960_v43  ;;  %v14508_v6 = vpop.f32.mrb[98].mxu1 }
 0x1b6   : > { %2451 = vst.msk [vmem:[#allocation2 + $0x2e8] sm:$0xff] %vm1513_vm3, %v2339_v50  ;;  %11968 = vmatprep.mubr.msk.bf16.mxu0 %vm856_vm2, %v13174_v34  ;;  %v14510_v20 = vpop.f32.mrb[99].mxu1 }
 0x1b8   : > { %v11766_v63 = vpop.f32.mrb[100].mxu0  ;;  %v1724_v55 = vld [vmem:[#allocation2 + $0x310] sm:$0xff] }
 0x1b9   : > { %1616 = vst.msk [vmem:[#allocation2 + $0x330] sm:$0xff] %vm1513_vm3, %v11766_v63  ;;  %v2344_v16 = vadd.f32 %v14339_v54, %v1724_v55  ;;  %v1466_v18 = vpop.f32.mrb[101].mxu0  ;;  %v1722_v26 = vld [vmem:[#allocation2 + $0x300] sm:$0xff] }
 0x1ba   : > { %1614 = vst.msk [vmem:[#allocation2 + $0x320] sm:$0xff] %vm1513_vm3, %v1466_v18  ;;  %v2342_v14 = vadd.f32 %v14344_v28, %v1722_v26  ;;  %v11767_v13 = vpop.f32.mrb[102].mxu0  ;;  %v1725_v42 = vld [vmem:[#allocation2 + $0x318] sm:$0xff] }
 0x1bb   : > { %2456 = vst.msk [vmem:[#allocation2 + $0x310] sm:$0xff] %vm1513_vm3, %v2344_v16  ;;  %1617 = vst.msk [vmem:[#allocation2 + $0x338] sm:$0xff] %vm1513_vm3, %v11767_v13  ;;  %v2345_v62 = vadd.f32 %v14349_v30, %v1725_v42  ;;  %v1469_v19 = vpop.f32.mrb[103].mxu0  ;;  %v1723_v54 = vld [vmem:[#allocation2 + $0x308] sm:$0xff]  ;;  %v13175_v28 = vld [vmem:[%s13443_s20 + $0x158] sm:$0xff]   ;;  %v14522_v23 = vpop.f32.mrb[100].mxu1 }
 0x1bc   : > { %2454 = vst.msk [vmem:[#allocation2 + $0x300] sm:$0xff] %vm1513_vm3, %v2342_v14  ;;  %1615 = vst.msk [vmem:[#allocation2 + $0x328] sm:$0xff] %vm1513_vm3, %v1469_v19  ;;  %v2343_v51 = vadd.f32 %v14351_v17, %v1723_v54  ;;  %v13176_v30 = vld [vmem:[%s13443_s20 + $0x160] sm:$0xff]   ;;  %v14527_v53 = vpop.f32.mrb[101].mxu1  ;;  %v1628_v19 = vld [vmem:[#allocation2 + $0x10] sm:$0xff] }
 0x1bd   : > { %2457 = vst.msk [vmem:[#allocation2 + $0x318] sm:$0xff] %vm1513_vm3, %v2345_v62  ;;  %11969 = vmatmul.mubr.msk.bf16.gmra.mrb[208].mxu0 %vm856_vm2, %v13175_v28  ;;  %v14532_v47 = vpop.f32.mrb[102].mxu1 }
 0x1be   : > { %2455 = vst.msk [vmem:[#allocation2 + $0x308] sm:$0xff] %vm1513_vm3, %v2343_v51  ;;  %11972 = vmatprep.mubr.msk.bf16.mxu0 %vm856_vm2, %v13176_v30  ;;  %v14534_v8 = vpop.f32.mrb[103].mxu1  ;;  %v1626_v30 = vld [vmem:[#allocation2] sm:$0xff] }
 0x1c0   : > { %v11770_v59 = vpop.f32.mrb[104].mxu0  ;;  %v1728_v17 = vld [vmem:[#allocation2 + $0x330] sm:$0xff] }
 0x1c1   : > { %1620 = vst.msk [vmem:[#allocation2 + $0x350] sm:$0xff] %vm1513_vm3, %v11770_v59  ;;  %v2348_v4 = vadd.f32 %v14373_v40, %v1728_v17  ;;  %v1482_v11 = vpop.f32.mrb[105].mxu0  ;;  %v1726_v39 = vld [vmem:[#allocation2 + $0x320] sm:$0xff] }
 0x1c2   : > { %1618 = vst.msk [vmem:[#allocation2 + $0x340] sm:$0xff] %vm1513_vm3, %v1482_v11  ;;  %v2346_v58 = vadd.f32 %v14378_v7, %v1726_v39  ;;  %v11771_v32 = vpop.f32.mrb[106].mxu0  ;;  %v1729_v52 = vld [vmem:[#allocation2 + $0x338] sm:$0xff]  ;;  %v13177_v7 = vld [vmem:[%s13443_s20 + $0x168] sm:$0xff]  }
 0x1c3   : > { %2460 = vst.msk [vmem:[#allocation2 + $0x330] sm:$0xff] %vm1513_vm3, %v2348_v4  ;;  %1621 = vst.msk [vmem:[#allocation2 + $0x358] sm:$0xff] %vm1513_vm3, %v11771_v32  ;;  %v2349_v44 = vadd.f32 %v14383_v25, %v1729_v52  ;;  %v1485_v22 = vpop.f32.mrb[107].mxu0  ;;  %v1727_v21 = vld [vmem:[#allocation2 + $0x328] sm:$0xff]  ;;  %v13178_v25 = vld [vmem:[%s13443_s20 + $0x170] sm:$0xff]   ;;  %v14546_v14 = vpop.f32.mrb[104].mxu1 }
 0x1c4   : > { %2458 = vst.msk [vmem:[#allocation2 + $0x320] sm:$0xff] %vm1513_vm3, %v2346_v58  ;;  %1619 = vst.msk [vmem:[#allocation2 + $0x348] sm:$0xff] %vm1513_vm3, %v1485_v22  ;;  %v2347_v40 = vadd.f32 %v14385_v27, %v1727_v21  ;;  %v14551_v13 = vpop.f32.mrb[105].mxu1  ;;  %v1629_v39 = vld [vmem:[#allocation2 + $0x18] sm:$0xff]  ;;  %v1627_v22 = vld [vmem:[#allocation2 + $0x8] sm:$0xff] }
 0x1c5   : > { %2461 = vst.msk [vmem:[#allocation2 + $0x338] sm:$0xff] %vm1513_vm3, %v2349_v44  ;;  %11973 = vmatmul.mubr.msk.bf16.gmra.mrb[212].mxu0 %vm856_vm2, %v13177_v7  ;;  %v14556_v42 = vpop.f32.mrb[106].mxu1 }
 0x1c6   : > { %2459 = vst.msk [vmem:[#allocation2 + $0x328] sm:$0xff] %vm1513_vm3, %v2347_v40  ;;  %11976 = vmatprep.mubr.msk.bf16.mxu0 %vm856_vm2, %v13178_v25  ;;  %v14558_v62 = vpop.f32.mrb[107].mxu1  ;;  %v13181_v25 = vld [vmem:[%s13443_s20 + $0x188] sm:$0xff]  }
 0x1c8   : > { %v11774_v31 = vpop.f32.mrb[108].mxu0  ;;  %v1732_v27 = vld [vmem:[#allocation2 + $0x350] sm:$0xff] }
 0x1c9   : > { %1624 = vst.msk [vmem:[#allocation2 + $0x370] sm:$0xff] %vm1513_vm3, %v11774_v31  ;;  %v2352_v50 = vadd.f32 %v14407_v12, %v1732_v27  ;;  %v1498_v15 = vpop.f32.mrb[109].mxu0  ;;  %v1730_v43 = vld [vmem:[#allocation2 + $0x340] sm:$0xff]  ;;  %v13182_v31 = vld [vmem:[%s13443_s20 + $0x190] sm:$0xff]  }
 0x1ca   : > { %1622 = vst.msk [vmem:[#allocation2 + $0x360] sm:$0xff] %vm1513_vm3, %v1498_v15  ;;  %v2350_v34 = vadd.f32 %v14412_v3, %v1730_v43  ;;  %v11775_v63 = vpop.f32.mrb[110].mxu0  ;;  %v1733_v55 = vld [vmem:[#allocation2 + $0x358] sm:$0xff] }
 0x1cb   : > { %2464 = vst.msk [vmem:[#allocation2 + $0x350] sm:$0xff] %vm1513_vm3, %v2352_v50  ;;  %1625 = vst.msk [vmem:[#allocation2 + $0x378] sm:$0xff] %vm1513_vm3, %v11775_v63  ;;  %v2353_v16 = vadd.f32 %v14417_v57, %v1733_v55  ;;  %v1501_v18 = vpop.f32.mrb[111].mxu0  ;;  %v1731_v26 = vld [vmem:[#allocation2 + $0x348] sm:$0xff]  ;;  %v13179_v3 = vld [vmem:[%s13443_s20 + $0x178] sm:$0xff]   ;;  %v14568_v7 = vpop.f32.mrb[108].mxu1 }
 0x1cc   : > { %2462 = vst.msk [vmem:[#allocation2 + $0x340] sm:$0xff] %vm1513_vm3, %v2350_v34  ;;  %1623 = vst.msk [vmem:[#allocation2 + $0x368] sm:$0xff] %vm1513_vm3, %v1501_v18  ;;  %v2351_v12 = vadd.f32 %v14419_v5, %v1731_v26  ;;  %v13180_v57 = vld [vmem:[%s13443_s20 + $0x180] sm:$0xff]   ;;  %v1632_v50 = vld [vmem:[#allocation2 + $0x30] sm:$0xff] }
 0x1cd   : > { %2465 = vst.msk [vmem:[#allocation2 + $0x358] sm:$0xff] %vm1513_vm3, %v2353_v16  ;;  %11977 = vmatmul.mubr.msk.bf16.gmra.mrb[216].mxu0 %vm856_vm2, %v13179_v3  ;;  %v1630_v34 = vld [vmem:[#allocation2 + $0x20] sm:$0xff]  ;;  %v1633_v16 = vld [vmem:[#allocation2 + $0x38] sm:$0xff] }
 0x1ce   : > { %2463 = vst.msk [vmem:[#allocation2 + $0x348] sm:$0xff] %vm1513_vm3, %v2351_v12  ;;  %11980 = vmatprep.mubr.msk.bf16.mxu0 %vm856_vm2, %v13180_v57  ;;  %v1631_v12 = vld [vmem:[#allocation2 + $0x28] sm:$0xff] }
 0x1d0   : > { %v11780_v5 = vpop.f32.mrb[112].mxu0  ;;  %v1736_v54 = vld [vmem:[#allocation2 + $0x370] sm:$0xff] }
 0x1d1   : > { %v2248_v51 = vadd.f32 %v11780_v5, %v1628_v19  ;;  %v2356_v28 = vadd.f32 %v14441_v2, %v1736_v54  ;;  %v1799_v59 = vpop.f32.mrb[113].mxu0  ;;  %v1734_v17 = vld [vmem:[#allocation2 + $0x360] sm:$0xff] }
 0x1d2   : > { %v2246_v4 = vadd.f32 %v1799_v59, %v1626_v30  ;;  %v2354_v11 = vadd.f32 %v14446_v48, %v1734_v17  ;;  %v11781_v58 = vpop.f32.mrb[114].mxu0  ;;  %v1737_v32 = vld [vmem:[#allocation2 + $0x378] sm:$0xff]  ;;  %v1634_v17 = vld [vmem:[#allocation2 + $0x40] sm:$0xff] }
 0x1d3   : > { %2360 = vst.msk [vmem:[#allocation2 + $0x10] sm:$0xff] %vm1513_vm3, %v2248_v51  ;;  %2468 = vst.msk [vmem:[#allocation2 + $0x370] sm:$0xff] %vm1513_vm3, %v2356_v28  ;;  %v2249_v52 = vadd.f32 %v11781_v58, %v1629_v39  ;;  %v2357_v44 = vadd.f32 %v14451_v35, %v1737_v32  ;;  %v1802_v2 = vpop.f32.mrb[115].mxu0  ;;  %v1735_v21 = vld [vmem:[#allocation2 + $0x368] sm:$0xff]  ;;  %v14574_v35 = vpop.f32.mrb[109].mxu1  ;;  %v1636_v28 = vld [vmem:[#allocation2 + $0x50] sm:$0xff] }
 0x1d4   : > { %2358 = vst.msk [vmem:[#allocation2] sm:$0xff] %vm1513_vm3, %v2246_v4  ;;  %2466 = vst.msk [vmem:[#allocation2 + $0x360] sm:$0xff] %vm1513_vm3, %v2354_v11  ;;  %v2247_v48 = vadd.f32 %v1802_v2, %v1627_v22  ;;  %v2355_v40 = vadd.f32 %v14454_v41, %v1735_v21  ;;  %v14580_v27 = vpop.f32.mrb[110].mxu1  ;;  %v1637_v39 = vld [vmem:[#allocation2 + $0x58] sm:$0xff]  ;;  %v1635_v32 = vld [vmem:[#allocation2 + $0x48] sm:$0xff] }
 0x1d5   : > { %2361 = vst.msk [vmem:[#allocation2 + $0x18] sm:$0xff] %vm1513_vm3, %v2249_v52  ;;  %2469 = vst.msk [vmem:[#allocation2 + $0x378] sm:$0xff] %vm1513_vm3, %v2357_v44  ;;  %11981 = vmatmul.mubr.msk.bf16.gmra.mrb[220].mxu0 %vm856_vm2, %v13181_v25  ;;  %v14582_v41 = vpop.f32.mrb[111].mxu1 }
 0x1d6   : > { %2359 = vst.msk [vmem:[#allocation2 + $0x8] sm:$0xff] %vm1513_vm3, %v2247_v48  ;;  %2467 = vst.msk [vmem:[#allocation2 + $0x368] sm:$0xff] %vm1513_vm3, %v2355_v40  ;;  %11984 = vmatprep.mubr.msk.bf16.mxu0 %vm856_vm2, %v13182_v31  ;;  %v14586_v19 = vpop.f32.mrb[112].mxu1  ;;  %v1640_v48 = vld [vmem:[#allocation2 + $0x70] sm:$0xff]  ;;  %v1638_v31 = vld [vmem:[#allocation2 + $0x60] sm:$0xff] }
 0x1d7   : > { %v14591_v5 = vpop.f32.mrb[113].mxu1 }
 0x1d8   : > { %v11784_v15 = vpop.f32.mrb[116].mxu0  ;;  %v14596_v54 = vpop.f32.mrb[114].mxu1 }
 0x1d9   : > { %v2252_v43 = vadd.f32 %v11784_v15, %v1632_v50  ;;  %v1815_v63 = vpop.f32.mrb[117].mxu0  ;;  %v14598_v51 = vpop.f32.mrb[115].mxu1 }
 0x1da   : > { %v2250_v55 = vadd.f32 %v1815_v63, %v1630_v34  ;;  %v11785_v18 = vpop.f32.mrb[118].mxu0  ;;  %v1639_v63 = vld [vmem:[#allocation2 + $0x68] sm:$0xff] }
 0x1db   : > { %2364 = vst.msk [vmem:[#allocation2 + $0x30] sm:$0xff] %vm1513_vm3, %v2252_v43  ;;  %v2253_v26 = vadd.f32 %v11785_v18, %v1633_v16  ;;  %v1818_v3 = vpop.f32.mrb[119].mxu0  ;;  %v14602_v44 = vpop.f32.mrb[116].mxu1  ;;  %v1641_v43 = vld [vmem:[#allocation2 + $0x78] sm:$0xff] }
 0x1dc   : > { %2362 = vst.msk [vmem:[#allocation2 + $0x20] sm:$0xff] %vm1513_vm3, %v2250_v55  ;;  %v2251_v57 = vadd.f32 %v1818_v3, %v1631_v12  ;;  %v14607_v22 = vpop.f32.mrb[117].mxu1  ;;  %v1644_v3 = vld [vmem:[#allocation2 + $0x90] sm:$0xff] }
 0x1dd   : > { %2365 = vst.msk [vmem:[#allocation2 + $0x38] sm:$0xff] %vm1513_vm3, %v2253_v26  ;;  %11985 = vmatmul.mubr.msk.bf16.gmra.mrb[224].mxu0 %vm856_vm2, %v14322_v46  ;;  %v14612_v2 = vpop.f32.mrb[118].mxu1 }
 0x1de   : > { %2363 = vst.msk [vmem:[#allocation2 + $0x28] sm:$0xff] %vm1513_vm3, %v2251_v57  ;;  %11988 = vmatprep.mubr.msk.bf16.mxu0 %vm856_vm2, %v14329_v33  ;;  %v14614_v21 = vpop.f32.mrb[119].mxu1 }
 0x1e0   : > { %v11788_v30 = vpop.f32.mrb[120].mxu0 }
 0x1e1   : > { %v2256_v59 = vadd.f32 %v11788_v30, %v1636_v28  ;;  %v1831_v4 = vpop.f32.mrb[121].mxu0  ;;  %v1642_v30 = vld [vmem:[#allocation2 + $0x80] sm:$0xff] }
 0x1e2   : > { %v2254_v11 = vadd.f32 %v1831_v4, %v1634_v17  ;;  %v11789_v58 = vpop.f32.mrb[122].mxu0  ;;  %v1645_v4 = vld [vmem:[#allocation2 + $0x98] sm:$0xff] }
 0x1e3   : > { %2368 = vst.msk [vmem:[#allocation2 + $0x50] sm:$0xff] %vm1513_vm3, %v2256_v59  ;;  %v2257_v46 = vadd.f32 %v11789_v58, %v1637_v39  ;;  %v1834_v52 = vpop.f32.mrb[123].mxu0  ;;  %v14618_v16 = vpop.f32.mrb[120].mxu1  ;;  %v1643_v39 = vld [vmem:[#allocation2 + $0x88] sm:$0xff] }
 0x1e4   : > { %2366 = vst.msk [vmem:[#allocation2 + $0x40] sm:$0xff] %vm1513_vm3, %v2254_v11  ;;  %v2255_v33 = vadd.f32 %v1834_v52, %v1635_v32  ;;  %v14623_v18 = vpop.f32.mrb[121].mxu1 }
 0x1e5   : > { %2369 = vst.msk [vmem:[#allocation2 + $0x58] sm:$0xff] %vm1513_vm3, %v2257_v46  ;;  %11989 = vmatmul.mubr.msk.bf16.gmra.mrb[228].mxu0 %vm856_vm2, %v14356_v10  ;;  %v14628_v26 = vpop.f32.mrb[122].mxu1 }
 0x1e6   : > { %2367 = vst.msk [vmem:[#allocation2 + $0x48] sm:$0xff] %vm1513_vm3, %v2255_v33  ;;  %11992 = vmatprep.mubr.msk.bf16.mxu0 %vm856_vm2, %v14363_v49  ;;  %v14630_v12 = vpop.f32.mrb[123].mxu1 }
 0x1e8   : > { %v11792_v40 = vpop.f32.mrb[124].mxu0 }
 0x1e9   : > { %v2260_v25 = vadd.f32 %v11792_v40, %v1640_v48  ;;  %v1847_v50 = vpop.f32.mrb[125].mxu0  ;;  %v2472_v48 = vld [vmem:[#allocation2 + $0x10] sm:$0xff] }
 0x1ea   : > { %v2258_v15 = vadd.f32 %v1847_v50, %v1638_v31  ;;  %v11793_v34 = vpop.f32.mrb[126].mxu0  ;;  %v2470_v31 = vld [vmem:[#allocation2] sm:$0xff] }
 0x1eb   : > { %2372 = vst.msk [vmem:[#allocation2 + $0x70] sm:$0xff] %vm1513_vm3, %v2260_v25  ;;  %v2261_v10 = vadd.f32 %v11793_v34, %v1641_v43  ;;  %v1850_v55 = vpop.f32.mrb[127].mxu0  ;;  %v14634_v46 = vpop.f32.mrb[124].mxu1  ;;  %v2473_v43 = vld [vmem:[#allocation2 + $0x18] sm:$0xff] }
 0x1ec   : > { %2370 = vst.msk [vmem:[#allocation2 + $0x60] sm:$0xff] %vm1513_vm3, %v2258_v15  ;;  %v2259_v49 = vadd.f32 %v1850_v55, %v1639_v63  ;;  %v14639_v32 = vpop.f32.mrb[125].mxu1 }
 0x1ed   : > { %2373 = vst.msk [vmem:[#allocation2 + $0x78] sm:$0xff] %vm1513_vm3, %v2261_v10  ;;  %11993 = vmatmul.mubr.msk.bf16.gmra.mrb[232].mxu0 %vm856_vm2, %v14390_v37  ;;  %v14644_v52 = vpop.f32.mrb[126].mxu1  ;;  %v2471_v10 = vld [vmem:[#allocation2 + $0x8] sm:$0xff] }
 0x1ee   : > { %2371 = vst.msk [vmem:[#allocation2 + $0x68] sm:$0xff] %vm1513_vm3, %v2259_v49  ;;  %11996 = vmatprep.mubr.msk.bf16.mxu0 %vm856_vm2, %v14397_v61  ;;  %v14646_v33 = vpop.f32.mrb[127].mxu1 }
 0x1f0   : > { %v11796_v57 = vpop.f32.mrb[128].mxu0 }
 0x1f1   : > { %v2264_v28 = vadd.f32 %v11796_v57, %v1644_v3  ;;  %v1863_v59 = vpop.f32.mrb[129].mxu0  ;;  %v13183_v3 = vld [vmem:[%s13443_s20 + $0x40] sm:$0xff]  }
 0x1f2   : > { %v2262_v17 = vadd.f32 %v1863_v59, %v1642_v30  ;;  %v11797_v11 = vpop.f32.mrb[130].mxu0  ;;  %v2476_v30 = vld [vmem:[#allocation2 + $0x30] sm:$0xff] }
 0x1f3   : > { %2376 = vst.msk [vmem:[#allocation2 + $0x90] sm:$0xff] %vm1513_vm3, %v2264_v28  ;;  %v2265_v37 = vadd.f32 %v11797_v11, %v1645_v4  ;;  %v1866_v58 = vpop.f32.mrb[131].mxu0  ;;  %v14650_v55 = vpop.f32.mrb[128].mxu1  ;;  %v2474_v4 = vld [vmem:[#allocation2 + $0x20] sm:$0xff] }
 0x1f4   : > { %2374 = vst.msk [vmem:[#allocation2 + $0x80] sm:$0xff] %vm1513_vm3, %v2262_v17  ;;  %v2263_v61 = vadd.f32 %v1866_v58, %v1643_v39  ;;  %v14655_v49 = vpop.f32.mrb[129].mxu1  ;;  %v2477_v39 = vld [vmem:[#allocation2 + $0x38] sm:$0xff] }
 0x1f5   : > { %2377 = vst.msk [vmem:[#allocation2 + $0x98] sm:$0xff] %vm1513_vm3, %v2265_v37  ;;  %11997 = vmatmul.mubr.msk.bf16.gmra.mrb[236].mxu0 %vm856_vm2, %v14427_v36  ;;  %v14660_v57 = vpop.f32.mrb[130].mxu1 }
 0x1f6   : > { %2375 = vst.msk [vmem:[#allocation2 + $0x88] sm:$0xff] %vm1513_vm3, %v2263_v61  ;;  %12000 = vmatprep.mubr.msk.bf16.mxu0 %vm856_vm2, %v14422_v29  ;;  %v14662_v28 = vpop.f32.mrb[131].mxu1 }
 0x1f8   : > { %v11894_v40 = vpop.f32.mrb[132].mxu0 }
 0x1f9   : > { %v3092_v25 = vadd.f32 %v11894_v40, %v2472_v48  ;;  %v2643_v50 = vpop.f32.mrb[133].mxu0  ;;  %v2475_v40 = vld [vmem:[#allocation2 + $0x28] sm:$0xff] }
 0x1fa   : > { %v3090_v15 = vadd.f32 %v2643_v50, %v2470_v31  ;;  %v11895_v36 = vpop.f32.mrb[134].mxu0 }
 0x1fb   : > { %3204 = vst.msk [vmem:[#allocation2 + $0x10] sm:$0xff] %vm1513_vm3, %v3092_v25  ;;  %v3093_v34 = vadd.f32 %v11895_v36, %v2473_v43  ;;  %v2646_v63 = vpop.f32.mrb[135].mxu0  ;;  %v14668_v36 = vpop.f32.mrb[132].mxu1 }
 0x1fc   : > { %3202 = vst.msk [vmem:[#allocation2] sm:$0xff] %vm1513_vm3, %v3090_v15  ;;  %v3091_v29 = vadd.f32 %v2646_v63, %v2471_v10  ;;  %v14675_v63 = vpop.f32.mrb[133].mxu1 }
 0x1fd   : > { %3205 = vst.msk [vmem:[#allocation2 + $0x18] sm:$0xff] %vm1513_vm3, %v3093_v34  ;;  %12001 = vmatmul.mubr.msk.bf16.gmra.mrb[240].mxu0 %vm856_vm2, %v14457_v0 }
 0x1fe   : > { %3203 = vst.msk [vmem:[#allocation2 + $0x8] sm:$0xff] %vm1513_vm3, %v3091_v29  ;;  %12120 = vmatprep.mubr.msk.bf16.mxu0 %vm856_vm2, %v13183_v3  ;;  %v13185_v29 = vld [vmem:[%s13443_s20 + $0x50] sm:$0xff]   ;;  %v14682_v3 = vpop.f32.mrb[134].mxu1 }
 0x200   : > { %v11898_v59 = vpop.f32.mrb[136].mxu0 }
 0x201   : > { %v3096_v17 = vadd.f32 %v11898_v59, %v2476_v30  ;;  %v2659_v11 = vpop.f32.mrb[137].mxu0  ;;  %v2480_v30 = vld [vmem:[#allocation2 + $0x50] sm:$0xff] }
 0x202   : > { %v3094_v37 = vadd.f32 %v2659_v11, %v2474_v4  ;;  %v11899_v58 = vpop.f32.mrb[138].mxu0  ;;  %v3316_v0 = vld [vmem:[#allocation2 + $0x10] sm:$0xff]  ;;  %v2478_v4 = vld [vmem:[#allocation2 + $0x40] sm:$0xff] }
 0x203   : > { %3208 = vst.msk [vmem:[#allocation2 + $0x30] sm:$0xff] %vm1513_vm3, %v3096_v17  ;;  %v3097_v61 = vadd.f32 %v11899_v58, %v2477_v39  ;;  %v3936_v48 = vadd.f32 %v14472_v24, %v3316_v0  ;;  %v2662_v25 = vpop.f32.mrb[139].mxu0  ;;  %v3314_v31 = vld [vmem:[#allocation2] sm:$0xff]  ;;  %v13184_v24 = vld [vmem:[%s13443_s20 + $0x48] sm:$0xff]   ;;  %v2481_v39 = vld [vmem:[#allocation2 + $0x58] sm:$0xff] }
 0x204   : > { %3206 = vst.msk [vmem:[#allocation2 + $0x20] sm:$0xff] %vm1513_vm3, %v3094_v37  ;;  %v3095_v50 = vadd.f32 %v2662_v25, %v2475_v40  ;;  %v3934_v15 = vadd.f32 %v14477_v60, %v3314_v31  ;;  %v3317_v43 = vld [vmem:[#allocation2 + $0x18] sm:$0xff] }
 0x205   : > { %3209 = vst.msk [vmem:[#allocation2 + $0x38] sm:$0xff] %vm1513_vm3, %v3097_v61  ;;  %4048 = vst.msk [vmem:[#allocation2 + $0x10] sm:$0xff] %vm1513_vm3, %v3936_v48  ;;  %v3937_v34 = vadd.f32 %v14483_v56, %v3317_v43  ;;  %v3315_v10 = vld [vmem:[#allocation2 + $0x8] sm:$0xff]  ;;  %12121 = vmatmul.mubr.msk.bf16.vlgmr.msra.gmra.mrb[244].mxu0 %vm856_vm2, %v13184_v24  ;;  %v14685_v56 = vpop.f32.mrb[135].mxu1 }
 0x206   : > { %3207 = vst.msk [vmem:[#allocation2 + $0x28] sm:$0xff] %vm1513_vm3, %v3095_v50  ;;  %4046 = vst.msk [vmem:[#allocation2] sm:$0xff] %vm1513_vm3, %v3934_v15  ;;  %v3935_v60 = vadd.f32 %v14485_v38, %v3315_v10  ;;  %12124 = vmatprep.mubr.msk.bf16.mxu0 %vm856_vm2, %v13185_v29  ;;  %v2479_v48 = vld [vmem:[#allocation2 + $0x48] sm:$0xff]  ;;  %v14692_v43 = vpop.f32.mrb[136].mxu1 }
 0x207   : > { %4049 = vst.msk [vmem:[#allocation2 + $0x18] sm:$0xff] %vm1513_vm3, %v3937_v34  ;;  %v14699_v24 = vpop.f32.mrb[137].mxu1 }
 0x208   : > { %4047 = vst.msk [vmem:[#allocation2 + $0x8] sm:$0xff] %vm1513_vm3, %v3935_v60  ;;  %v11902_v59 = vpop.f32.mrb[140].mxu0  ;;  %v13187_v60 = vld [vmem:[%s13443_s20 + $0x60] sm:$0xff]   ;;  %v14706_v29 = vpop.f32.mrb[138].mxu1 }
 0x209   : > { %v3100_v17 = vadd.f32 %v11902_v59, %v2480_v30  ;;  %v2675_v11 = vpop.f32.mrb[141].mxu0  ;;  %v2484_v30 = vld [vmem:[#allocation2 + $0x70] sm:$0xff] }
 0x20a   : > { %v3098_v37 = vadd.f32 %v2675_v11, %v2478_v4  ;;  %v11903_v58 = vpop.f32.mrb[142].mxu0  ;;  %v3320_v38 = vld [vmem:[#allocation2 + $0x30] sm:$0xff]  ;;  %v2482_v4 = vld [vmem:[#allocation2 + $0x60] sm:$0xff] }
 0x20b   : > { %3212 = vst.msk [vmem:[#allocation2 + $0x50] sm:$0xff] %vm1513_vm3, %v3100_v17  ;;  %v3101_v0 = vadd.f32 %v11903_v58, %v2481_v39  ;;  %v3940_v61 = vadd.f32 %v14498_v9, %v3320_v38  ;;  %v2678_v40 = vpop.f32.mrb[143].mxu0  ;;  %v3318_v25 = vld [vmem:[#allocation2 + $0x20] sm:$0xff]  ;;  %v13186_v9 = vld [vmem:[%s13443_s20 + $0x58] sm:$0xff]  }
 0x20c   : > { %3210 = vst.msk [vmem:[#allocation2 + $0x40] sm:$0xff] %vm1513_vm3, %v3098_v37  ;;  %v3099_v31 = vadd.f32 %v2678_v40, %v2479_v48  ;;  %v3938_v50 = vadd.f32 %v14503_v45, %v3318_v25  ;;  %v3321_v15 = vld [vmem:[#allocation2 + $0x38] sm:$0xff] }
 0x20d   : > { %3213 = vst.msk [vmem:[#allocation2 + $0x58] sm:$0xff] %vm1513_vm3, %v3101_v0  ;;  %4052 = vst.msk [vmem:[#allocation2 + $0x30] sm:$0xff] %vm1513_vm3, %v3940_v61  ;;  %v3941_v34 = vadd.f32 %v14508_v6, %v3321_v15  ;;  %v3319_v10 = vld [vmem:[#allocation2 + $0x28] sm:$0xff]  ;;  %12125 = vmatmul.mubr.msk.bf16.gmra.mrb[248].mxu0 %vm856_vm2, %v13186_v9  ;;  %v14709_v6 = vpop.f32.mrb[139].mxu1  ;;  %v2485_v39 = vld [vmem:[#allocation2 + $0x78] sm:$0xff] }
 0x20e   : > { %3211 = vst.msk [vmem:[#allocation2 + $0x48] sm:$0xff] %vm1513_vm3, %v3099_v31  ;;  %4050 = vst.msk [vmem:[#allocation2 + $0x20] sm:$0xff] %vm1513_vm3, %v3938_v50  ;;  %v3939_v45 = vadd.f32 %v14510_v20, %v3319_v10  ;;  %12128 = vmatprep.mubr.msk.bf16.mxu0 %vm856_vm2, %v13187_v60  ;;  %v2483_v61 = vld [vmem:[#allocation2 + $0x68] sm:$0xff]  ;;  %v14716_v15 = vpop.f32.mrb[140].mxu1 }
 0x20f   : > { %4053 = vst.msk [vmem:[#allocation2 + $0x38] sm:$0xff] %vm1513_vm3, %v3941_v34  ;;  %v14723_v9 = vpop.f32.mrb[141].mxu1 }
 0x210   : > { %4051 = vst.msk [vmem:[#allocation2 + $0x28] sm:$0xff] %vm1513_vm3, %v3939_v45  ;;  %v11906_v59 = vpop.f32.mrb[144].mxu0  ;;  %v13189_v45 = vld [vmem:[%s13443_s20 + $0x70] sm:$0xff]   ;;  %v14730_v60 = vpop.f32.mrb[142].mxu1 }
 0x211   : > { %v3104_v17 = vadd.f32 %v11906_v59, %v2484_v30  ;;  %v2691_v11 = vpop.f32.mrb[145].mxu0  ;;  %v2488_v30 = vld [vmem:[#allocation2 + $0x90] sm:$0xff] }
 0x212   : > { %v3102_v37 = vadd.f32 %v2691_v11, %v2482_v4  ;;  %v11907_v58 = vpop.f32.mrb[146].mxu0  ;;  %v3324_v20 = vld [vmem:[#allocation2 + $0x50] sm:$0xff]  ;;  %v2486_v4 = vld [vmem:[#allocation2 + $0x80] sm:$0xff] }
 0x213   : > { %3216 = vst.msk [vmem:[#allocation2 + $0x70] sm:$0xff] %vm1513_vm3, %v3104_v17  ;;  %v3105_v38 = vadd.f32 %v11907_v58, %v2485_v39  ;;  %v3944_v0 = vadd.f32 %v14522_v23, %v3324_v20  ;;  %v2694_v48 = vpop.f32.mrb[147].mxu0  ;;  %v3322_v40 = vld [vmem:[#allocation2 + $0x40] sm:$0xff]  ;;  %v13188_v23 = vld [vmem:[%s13443_s20 + $0x68] sm:$0xff]   ;;  %v2489_v39 = vld [vmem:[#allocation2 + $0x98] sm:$0xff] }
 0x214   : > { %3214 = vst.msk [vmem:[#allocation2 + $0x60] sm:$0xff] %vm1513_vm3, %v3102_v37  ;;  %v3103_v25 = vadd.f32 %v2694_v48, %v2483_v61  ;;  %v3942_v31 = vadd.f32 %v14527_v53, %v3322_v40  ;;  %v3325_v50 = vld [vmem:[#allocation2 + $0x58] sm:$0xff] }
 0x215   : > { %3217 = vst.msk [vmem:[#allocation2 + $0x78] sm:$0xff] %vm1513_vm3, %v3105_v38  ;;  %4056 = vst.msk [vmem:[#allocation2 + $0x50] sm:$0xff] %vm1513_vm3, %v3944_v0  ;;  %v3945_v34 = vadd.f32 %v14532_v47, %v3325_v50  ;;  %v3323_v10 = vld [vmem:[#allocation2 + $0x48] sm:$0xff]  ;;  %12129 = vmatmul.mubr.msk.bf16.gmra.mrb[252].mxu0 %vm856_vm2, %v13188_v23  ;;  %v14733_v47 = vpop.f32.mrb[143].mxu1 }
 0x216   : > { %3215 = vst.msk [vmem:[#allocation2 + $0x68] sm:$0xff] %vm1513_vm3, %v3103_v25  ;;  %4054 = vst.msk [vmem:[#allocation2 + $0x40] sm:$0xff] %vm1513_vm3, %v3942_v31  ;;  %v3943_v53 = vadd.f32 %v14534_v8, %v3323_v10  ;;  %12132 = vmatprep.mubr.msk.bf16.mxu0 %vm856_vm2, %v13189_v45  ;;  %v2487_v0 = vld [vmem:[#allocation2 + $0x88] sm:$0xff]  ;;  %v14740_v50 = vpop.f32.mrb[144].mxu1 }
 0x217   : > { %4057 = vst.msk [vmem:[#allocation2 + $0x58] sm:$0xff] %vm1513_vm3, %v3945_v34  ;;  %v14747_v23 = vpop.f32.mrb[145].mxu1 }
 0x218   : > { %4055 = vst.msk [vmem:[#allocation2 + $0x48] sm:$0xff] %vm1513_vm3, %v3943_v53  ;;  %v11910_v59 = vpop.f32.mrb[148].mxu0  ;;  %v13191_v53 = vld [vmem:[%s13443_s20 + $0x80] sm:$0xff]   ;;  %v14754_v45 = vpop.f32.mrb[146].mxu1 }
 0x219   : > { %v3108_v17 = vadd.f32 %v11910_v59, %v2488_v30  ;;  %v2707_v11 = vpop.f32.mrb[149].mxu0  ;;  %v2492_v30 = vld [vmem:[#allocation2 + $0xb0] sm:$0xff] }
 0x21a   : > { %v3106_v37 = vadd.f32 %v2707_v11, %v2486_v4  ;;  %v11911_v58 = vpop.f32.mrb[150].mxu0  ;;  %v3328_v8 = vld [vmem:[#allocation2 + $0x70] sm:$0xff]  ;;  %v2490_v4 = vld [vmem:[#allocation2 + $0xa0] sm:$0xff] }
 0x21b   : > { %3220 = vst.msk [vmem:[#allocation2 + $0x90] sm:$0xff] %vm1513_vm3, %v3108_v17  ;;  %v3109_v20 = vadd.f32 %v11911_v58, %v2489_v39  ;;  %v3948_v38 = vadd.f32 %v14546_v14, %v3328_v8  ;;  %v2710_v61 = vpop.f32.mrb[151].mxu0  ;;  %v3326_v48 = vld [vmem:[#allocation2 + $0x60] sm:$0xff]  ;;  %v13190_v14 = vld [vmem:[%s13443_s20 + $0x78] sm:$0xff]  }
 0x21c   : > { %3218 = vst.msk [vmem:[#allocation2 + $0x80] sm:$0xff] %vm1513_vm3, %v3106_v37  ;;  %v3107_v40 = vadd.f32 %v2710_v61, %v2487_v0  ;;  %v3946_v25 = vadd.f32 %v14551_v13, %v3326_v48  ;;  %v3329_v31 = vld [vmem:[#allocation2 + $0x78] sm:$0xff] }
 0x21d   : > { %3221 = vst.msk [vmem:[#allocation2 + $0x98] sm:$0xff] %vm1513_vm3, %v3109_v20  ;;  %4060 = vst.msk [vmem:[#allocation2 + $0x70] sm:$0xff] %vm1513_vm3, %v3948_v38  ;;  %v3949_v34 = vadd.f32 %v14556_v42, %v3329_v31  ;;  %v3327_v10 = vld [vmem:[#allocation2 + $0x68] sm:$0xff]  ;;  %12133 = vmatmul.mubr.msk.bf16.gmra.mrb[0].mxu0 %vm856_vm2, %v13190_v14  ;;  %v14757_v42 = vpop.f32.mrb[147].mxu1  ;;  %v2493_v39 = vld [vmem:[#allocation2 + $0xb8] sm:$0xff] }
 0x21e   : > { %3219 = vst.msk [vmem:[#allocation2 + $0x88] sm:$0xff] %vm1513_vm3, %v3107_v40  ;;  %4058 = vst.msk [vmem:[#allocation2 + $0x60] sm:$0xff] %vm1513_vm3, %v3946_v25  ;;  %v3947_v13 = vadd.f32 %v14558_v62, %v3327_v10  ;;  %12136 = vmatprep.mubr.msk.bf16.mxu0 %vm856_vm2, %v13191_v53  ;;  %v2491_v38 = vld [vmem:[#allocation2 + $0xa8] sm:$0xff]  ;;  %v14764_v31 = vpop.f32.mrb[148].mxu1 }
 0x21f   : > { %4061 = vst.msk [vmem:[#allocation2 + $0x78] sm:$0xff] %vm1513_vm3, %v3949_v34  ;;  %v14771_v14 = vpop.f32.mrb[149].mxu1 }
 0x220   : > { %4059 = vst.msk [vmem:[#allocation2 + $0x68] sm:$0xff] %vm1513_vm3, %v3947_v13  ;;  %v11914_v59 = vpop.f32.mrb[152].mxu0  ;;  %v13193_v13 = vld [vmem:[%s13443_s20 + $0x90] sm:$0xff]   ;;  %v14778_v53 = vpop.f32.mrb[150].mxu1 }
 0x221   : > { %v3112_v17 = vadd.f32 %v11914_v59, %v2492_v30  ;;  %v2723_v11 = vpop.f32.mrb[153].mxu0  ;;  %v2496_v30 = vld [vmem:[#allocation2 + $0xd0] sm:$0xff] }
 0x222   : > { %v3110_v37 = vadd.f32 %v2723_v11, %v2490_v4  ;;  %v11915_v58 = vpop.f32.mrb[154].mxu0  ;;  %v3332_v62 = vld [vmem:[#allocation2 + $0x90] sm:$0xff]  ;;  %v2494_v4 = vld [vmem:[#allocation2 + $0xc0] sm:$0xff] }
 0x223   : > { %3224 = vst.msk [vmem:[#allocation2 + $0xb0] sm:$0xff] %vm1513_vm3, %v3112_v17  ;;  %v3113_v8 = vadd.f32 %v11915_v58, %v2493_v39  ;;  %v3952_v20 = vadd.f32 %v14568_v7, %v3332_v62  ;;  %v2726_v0 = vpop.f32.mrb[155].mxu0  ;;  %v3330_v61 = vld [vmem:[#allocation2 + $0x80] sm:$0xff]  ;;  %v13192_v7 = vld [vmem:[%s13443_s20 + $0x88] sm:$0xff]   ;;  %v2497_v39 = vld [vmem:[#allocation2 + $0xd8] sm:$0xff] }
 0x224   : > { %3222 = vst.msk [vmem:[#allocation2 + $0xa0] sm:$0xff] %vm1513_vm3, %v3110_v37  ;;  %v3111_v48 = vadd.f32 %v2726_v0, %v2491_v38  ;;  %v3950_v40 = vadd.f32 %v14574_v35, %v3330_v61  ;;  %v3333_v25 = vld [vmem:[#allocation2 + $0x98] sm:$0xff] }
 0x225   : > { %3225 = vst.msk [vmem:[#allocation2 + $0xb8] sm:$0xff] %vm1513_vm3, %v3113_v8  ;;  %4064 = vst.msk [vmem:[#allocation2 + $0x90] sm:$0xff] %vm1513_vm3, %v3952_v20  ;;  %v3953_v34 = vadd.f32 %v14580_v27, %v3333_v25  ;;  %v3331_v10 = vld [vmem:[#allocation2 + $0x88] sm:$0xff]  ;;  %12137 = vmatmul.mubr.msk.bf16.gmra.mrb[4].mxu0 %vm856_vm2, %v13192_v7  ;;  %v14781_v27 = vpop.f32.mrb[151].mxu1 }
 0x226   : > { %3223 = vst.msk [vmem:[#allocation2 + $0xa8] sm:$0xff] %vm1513_vm3, %v3111_v48  ;;  %4062 = vst.msk [vmem:[#allocation2 + $0x80] sm:$0xff] %vm1513_vm3, %v3950_v40  ;;  %v3951_v35 = vadd.f32 %v14582_v41, %v3331_v10  ;;  %12140 = vmatprep.mubr.msk.bf16.mxu0 %vm856_vm2, %v13193_v13  ;;  %v2495_v8 = vld [vmem:[#allocation2 + $0xc8] sm:$0xff]  ;;  %v14787_v48 = vpop.f32.mrb[152].mxu1 }
 0x227   : > { %4065 = vst.msk [vmem:[#allocation2 + $0x98] sm:$0xff] %vm1513_vm3, %v3953_v34  ;;  %v13194_v34 = vld [vmem:[%s13443_s20 + $0x98] sm:$0xff]   ;;  %v14793_v10 = vpop.f32.mrb[153].mxu1 }
 0x228   : > { %4063 = vst.msk [vmem:[#allocation2 + $0x88] sm:$0xff] %vm1513_vm3, %v3951_v35  ;;  %v11918_v59 = vpop.f32.mrb[156].mxu0  ;;  %v13195_v35 = vld [vmem:[%s13443_s20 + $0xa0] sm:$0xff]   ;;  %v14800_v13 = vpop.f32.mrb[154].mxu1 }
 0x229   : > { %v3116_v17 = vadd.f32 %v11918_v59, %v2496_v30  ;;  %v2739_v11 = vpop.f32.mrb[157].mxu0  ;;  %v14804_v30 = vpop.f32.mrb[155].mxu1  ;;  %v2500_v59 = vld [vmem:[#allocation2 + $0xf0] sm:$0xff] }
 0x22a   : > { %v3114_v37 = vadd.f32 %v2739_v11, %v2494_v4  ;;  %v11919_v41 = vpop.f32.mrb[158].mxu0  ;;  %v3336_v58 = vld [vmem:[#allocation2 + $0xb0] sm:$0xff]  ;;  %v2498_v4 = vld [vmem:[#allocation2 + $0xe0] sm:$0xff] }
 0x22b   : > { %3228 = vst.msk [vmem:[#allocation2 + $0xd0] sm:$0xff] %vm1513_vm3, %v3116_v17  ;;  %v3117_v62 = vadd.f32 %v11919_v41, %v2497_v39  ;;  %v2742_v20 = vpop.f32.mrb[159].mxu0  ;;  %v3956_v38 = vadd.f32 %v14586_v19, %v3336_v58  ;;  %v3334_v0 = vld [vmem:[#allocation2 + $0xa0] sm:$0xff]  ;;  %v2501_v39 = vld [vmem:[#allocation2 + $0xf8] sm:$0xff] }
 0x22c   : > { %3226 = vst.msk [vmem:[#allocation2 + $0xc0] sm:$0xff] %vm1513_vm3, %v3114_v37  ;;  %v3115_v61 = vadd.f32 %v2742_v20, %v2495_v8  ;;  %v3954_v40 = vadd.f32 %v14591_v5, %v3334_v0  ;;  %v3337_v25 = vld [vmem:[#allocation2 + $0xb8] sm:$0xff] }
 0x22d   : > { %3229 = vst.msk [vmem:[#allocation2 + $0xd8] sm:$0xff] %vm1513_vm3, %v3117_v62  ;;  %12141 = vmatmul.mubr.msk.bf16.gmra.mrb[8].mxu0 %vm856_vm2, %v13194_v34  ;;  %4068 = vst.msk [vmem:[#allocation2 + $0xb0] sm:$0xff] %vm1513_vm3, %v3956_v38  ;;  %v3957_v19 = vadd.f32 %v14596_v54, %v3337_v25  ;;  %v3335_v7 = vld [vmem:[#allocation2 + $0xa8] sm:$0xff] }
 0x22e   : > { %3227 = vst.msk [vmem:[#allocation2 + $0xc8] sm:$0xff] %vm1513_vm3, %v3115_v61  ;;  %12144 = vmatprep.mubr.msk.bf16.mxu0 %vm856_vm2, %v13195_v35  ;;  %4066 = vst.msk [vmem:[#allocation2 + $0xa0] sm:$0xff] %vm1513_vm3, %v3954_v40  ;;  %v3955_v5 = vadd.f32 %v14598_v51, %v3335_v7  ;;  %v2499_v51 = vld [vmem:[#allocation2 + $0xe8] sm:$0xff]  ;;  %v14811_v61 = vpop.f32.mrb[156].mxu1  ;;  %v13197_v35 = vld [vmem:[%s13443_s20 + $0xb0] sm:$0xff]  }
 0x22f   : > { %4069 = vst.msk [vmem:[#allocation2 + $0xb8] sm:$0xff] %vm1513_vm3, %v3957_v19  ;;  %v13196_v34 = vld [vmem:[%s13443_s20 + $0xa8] sm:$0xff]   ;;  %v14817_v19 = vpop.f32.mrb[157].mxu1 }
 0x230   : > { %v11922_v17 = vpop.f32.mrb[160].mxu0  ;;  %4067 = vst.msk [vmem:[#allocation2 + $0xa8] sm:$0xff] %vm1513_vm3, %v3955_v5  ;;  %v14824_v5 = vpop.f32.mrb[158].mxu1 }
 0x231   : > { %v3120_v54 = vadd.f32 %v11922_v17, %v2500_v59  ;;  %v2755_v11 = vpop.f32.mrb[161].mxu0  ;;  %v14828_v59 = vpop.f32.mrb[159].mxu1  ;;  %v2504_v17 = vld [vmem:[#allocation2 + $0x110] sm:$0xff] }
 0x232   : > { %v3118_v37 = vadd.f32 %v2755_v11, %v2498_v4  ;;  %v11923_v41 = vpop.f32.mrb[162].mxu0  ;;  %v3340_v58 = vld [vmem:[#allocation2 + $0xd0] sm:$0xff]  ;;  %v2502_v4 = vld [vmem:[#allocation2 + $0x100] sm:$0xff] }
 0x233   : > { %3232 = vst.msk [vmem:[#allocation2 + $0xf0] sm:$0xff] %vm1513_vm3, %v3120_v54  ;;  %v3121_v62 = vadd.f32 %v11923_v41, %v2501_v39  ;;  %v2758_v8 = vpop.f32.mrb[163].mxu0  ;;  %v3960_v20 = vadd.f32 %v14602_v44, %v3340_v58  ;;  %v3338_v38 = vld [vmem:[#allocation2 + $0xc0] sm:$0xff]  ;;  %v2505_v39 = vld [vmem:[#allocation2 + $0x118] sm:$0xff] }
 0x234   : > { %3230 = vst.msk [vmem:[#allocation2 + $0xe0] sm:$0xff] %vm1513_vm3, %v3118_v37  ;;  %v3119_v0 = vadd.f32 %v2758_v8, %v2499_v51  ;;  %v3958_v40 = vadd.f32 %v14607_v22, %v3338_v38  ;;  %v3341_v25 = vld [vmem:[#allocation2 + $0xd8] sm:$0xff] }
 0x235   : > { %3233 = vst.msk [vmem:[#allocation2 + $0xf8] sm:$0xff] %vm1513_vm3, %v3121_v62  ;;  %12145 = vmatmul.mubr.msk.bf16.gmra.mrb[12].mxu0 %vm856_vm2, %v13196_v34  ;;  %4072 = vst.msk [vmem:[#allocation2 + $0xd0] sm:$0xff] %vm1513_vm3, %v3960_v20  ;;  %v3961_v44 = vadd.f32 %v14612_v2, %v3341_v25  ;;  %v3339_v7 = vld [vmem:[#allocation2 + $0xc8] sm:$0xff]  ;;  %v13198_v34 = vld [vmem:[%s13443_s20 + $0xb8] sm:$0xff]  }
 0x236   : > { %3231 = vst.msk [vmem:[#allocation2 + $0xe8] sm:$0xff] %vm1513_vm3, %v3119_v0  ;;  %12148 = vmatprep.mubr.msk.bf16.mxu0 %vm856_vm2, %v13197_v35  ;;  %4070 = vst.msk [vmem:[#allocation2 + $0xc0] sm:$0xff] %vm1513_vm3, %v3958_v40  ;;  %v3959_v22 = vadd.f32 %v14614_v21, %v3339_v7  ;;  %v2503_v21 = vld [vmem:[#allocation2 + $0x108] sm:$0xff]  ;;  %v14835_v0 = vpop.f32.mrb[160].mxu1  ;;  %v13199_v35 = vld [vmem:[%s13443_s20 + $0xc0] sm:$0xff]  }
 0x237   : > { %4073 = vst.msk [vmem:[#allocation2 + $0xd8] sm:$0xff] %vm1513_vm3, %v3961_v44  ;;  %v14841_v44 = vpop.f32.mrb[161].mxu1 }
 0x238   : > { %v11926_v54 = vpop.f32.mrb[164].mxu0  ;;  %4071 = vst.msk [vmem:[#allocation2 + $0xc8] sm:$0xff] %vm1513_vm3, %v3959_v22  ;;  %v14848_v22 = vpop.f32.mrb[162].mxu1 }
 0x239   : > { %v3124_v2 = vadd.f32 %v11926_v54, %v2504_v17  ;;  %v2771_v11 = vpop.f32.mrb[165].mxu0  ;;  %v14852_v17 = vpop.f32.mrb[163].mxu1  ;;  %v2508_v54 = vld [vmem:[#allocation2 + $0x130] sm:$0xff] }
 0x23a   : > { %v3122_v37 = vadd.f32 %v2771_v11, %v2502_v4  ;;  %v11927_v41 = vpop.f32.mrb[166].mxu0  ;;  %v3344_v58 = vld [vmem:[#allocation2 + $0xf0] sm:$0xff]  ;;  %v2506_v4 = vld [vmem:[#allocation2 + $0x120] sm:$0xff] }
 0x23b   : > { %3236 = vst.msk [vmem:[#allocation2 + $0x110] sm:$0xff] %vm1513_vm3, %v3124_v2  ;;  %v3125_v62 = vadd.f32 %v11927_v41, %v2505_v39  ;;  %v2774_v51 = vpop.f32.mrb[167].mxu0  ;;  %v3964_v8 = vadd.f32 %v14618_v16, %v3344_v58  ;;  %v3342_v20 = vld [vmem:[#allocation2 + $0xe0] sm:$0xff]  ;;  %v2509_v39 = vld [vmem:[#allocation2 + $0x138] sm:$0xff] }
 0x23c   : > { %3234 = vst.msk [vmem:[#allocation2 + $0x100] sm:$0xff] %vm1513_vm3, %v3122_v37  ;;  %v3123_v38 = vadd.f32 %v2774_v51, %v2503_v21  ;;  %v3962_v40 = vadd.f32 %v14623_v18, %v3342_v20  ;;  %v3345_v25 = vld [vmem:[#allocation2 + $0xf8] sm:$0xff] }
 0x23d   : > { %3237 = vst.msk [vmem:[#allocation2 + $0x118] sm:$0xff] %vm1513_vm3, %v3125_v62  ;;  %12149 = vmatmul.mubr.msk.bf16.gmra.mrb[16].mxu0 %vm856_vm2, %v13198_v34  ;;  %4076 = vst.msk [vmem:[#allocation2 + $0xf0] sm:$0xff] %vm1513_vm3, %v3964_v8  ;;  %v3965_v16 = vadd.f32 %v14628_v26, %v3345_v25  ;;  %v3343_v7 = vld [vmem:[#allocation2 + $0xe8] sm:$0xff] }
 0x23e   : > { %3235 = vst.msk [vmem:[#allocation2 + $0x108] sm:$0xff] %vm1513_vm3, %v3123_v38  ;;  %12152 = vmatprep.mubr.msk.bf16.mxu0 %vm856_vm2, %v13199_v35  ;;  %4074 = vst.msk [vmem:[#allocation2 + $0xe0] sm:$0xff] %vm1513_vm3, %v3962_v40  ;;  %v3963_v18 = vadd.f32 %v14630_v12, %v3343_v7  ;;  %v2507_v12 = vld [vmem:[#allocation2 + $0x128] sm:$0xff]  ;;  %v14859_v38 = vpop.f32.mrb[164].mxu1  ;;  %v13201_v35 = vld [vmem:[%s13443_s20 + $0xd0] sm:$0xff]  }
 0x23f   : > { %4077 = vst.msk [vmem:[#allocation2 + $0xf8] sm:$0xff] %vm1513_vm3, %v3965_v16  ;;  %v13200_v34 = vld [vmem:[%s13443_s20 + $0xc8] sm:$0xff]   ;;  %v14865_v16 = vpop.f32.mrb[165].mxu1 }
 0x240   : > { %v11930_v2 = vpop.f32.mrb[168].mxu0  ;;  %4075 = vst.msk [vmem:[#allocation2 + $0xe8] sm:$0xff] %vm1513_vm3, %v3963_v18  ;;  %v14872_v18 = vpop.f32.mrb[166].mxu1 }
 0x241   : > { %v3128_v26 = vadd.f32 %v11930_v2, %v2508_v54  ;;  %v2787_v11 = vpop.f32.mrb[169].mxu0  ;;  %v14876_v54 = vpop.f32.mrb[167].mxu1  ;;  %v2512_v2 = vld [vmem:[#allocation2 + $0x150] sm:$0xff] }
 0x242   : > { %v3126_v37 = vadd.f32 %v2787_v11, %v2506_v4  ;;  %v11931_v41 = vpop.f32.mrb[170].mxu0  ;;  %v3348_v58 = vld [vmem:[#allocation2 + $0x110] sm:$0xff]  ;;  %v2510_v4 = vld [vmem:[#allocation2 + $0x140] sm:$0xff] }
 0x243   : > { %3240 = vst.msk [vmem:[#allocation2 + $0x130] sm:$0xff] %vm1513_vm3, %v3128_v26  ;;  %v3129_v62 = vadd.f32 %v11931_v41, %v2509_v39  ;;  %v2790_v21 = vpop.f32.mrb[171].mxu0  ;;  %v3968_v51 = vadd.f32 %v14634_v46, %v3348_v58  ;;  %v3346_v8 = vld [vmem:[#allocation2 + $0x100] sm:$0xff]  ;;  %v2513_v39 = vld [vmem:[#allocation2 + $0x158] sm:$0xff] }
 0x244   : > { %3238 = vst.msk [vmem:[#allocation2 + $0x120] sm:$0xff] %vm1513_vm3, %v3126_v37  ;;  %v3127_v20 = vadd.f32 %v2790_v21, %v2507_v12  ;;  %v3966_v40 = vadd.f32 %v14639_v32, %v3346_v8  ;;  %v3349_v25 = vld [vmem:[#allocation2 + $0x118] sm:$0xff] }
 0x245   : > { %3241 = vst.msk [vmem:[#allocation2 + $0x138] sm:$0xff] %vm1513_vm3, %v3129_v62  ;;  %12153 = vmatmul.mubr.msk.bf16.gmra.mrb[20].mxu0 %vm856_vm2, %v13200_v34  ;;  %4080 = vst.msk [vmem:[#allocation2 + $0x110] sm:$0xff] %vm1513_vm3, %v3968_v51  ;;  %v3969_v46 = vadd.f32 %v14644_v52, %v3349_v25  ;;  %v3347_v7 = vld [vmem:[#allocation2 + $0x108] sm:$0xff]  ;;  %v13202_v34 = vld [vmem:[%s13443_s20 + $0xd8] sm:$0xff]  }
 0x246   : > { %3239 = vst.msk [vmem:[#allocation2 + $0x128] sm:$0xff] %vm1513_vm3, %v3127_v20  ;;  %12156 = vmatprep.mubr.msk.bf16.mxu0 %vm856_vm2, %v13201_v35  ;;  %4078 = vst.msk [vmem:[#allocation2 + $0x100] sm:$0xff] %vm1513_vm3, %v3966_v40  ;;  %v3967_v32 = vadd.f32 %v14646_v33, %v3347_v7  ;;  %v2511_v33 = vld [vmem:[#allocation2 + $0x148] sm:$0xff]  ;;  %v14883_v20 = vpop.f32.mrb[168].mxu1  ;;  %v13203_v35 = vld [vmem:[%s13443_s20 + $0xe0] sm:$0xff]  }
 0x247   : > { %4081 = vst.msk [vmem:[#allocation2 + $0x118] sm:$0xff] %vm1513_vm3, %v3969_v46  ;;  %v14889_v46 = vpop.f32.mrb[169].mxu1 }
 0x248   : > { %v11934_v26 = vpop.f32.mrb[172].mxu0  ;;  %4079 = vst.msk [vmem:[#allocation2 + $0x108] sm:$0xff] %vm1513_vm3, %v3967_v32  ;;  %v14896_v32 = vpop.f32.mrb[170].mxu1 }
 0x249   : > { %v3132_v52 = vadd.f32 %v11934_v26, %v2512_v2  ;;  %v2803_v11 = vpop.f32.mrb[173].mxu0  ;;  %v14900_v2 = vpop.f32.mrb[171].mxu1  ;;  %v2516_v26 = vld [vmem:[#allocation2 + $0x170] sm:$0xff] }
 0x24a   : > { %v3130_v37 = vadd.f32 %v2803_v11, %v2510_v4  ;;  %v11935_v41 = vpop.f32.mrb[174].mxu0  ;;  %v3352_v58 = vld [vmem:[#allocation2 + $0x130] sm:$0xff]  ;;  %v2514_v4 = vld [vmem:[#allocation2 + $0x160] sm:$0xff] }
 0x24b   : > { %3244 = vst.msk [vmem:[#allocation2 + $0x150] sm:$0xff] %vm1513_vm3, %v3132_v52  ;;  %v3133_v62 = vadd.f32 %v11935_v41, %v2513_v39  ;;  %v2806_v12 = vpop.f32.mrb[175].mxu0  ;;  %v3972_v21 = vadd.f32 %v14650_v55, %v3352_v58  ;;  %v3350_v51 = vld [vmem:[#allocation2 + $0x120] sm:$0xff]  ;;  %v2517_v39 = vld [vmem:[#allocation2 + $0x178] sm:$0xff] }
 0x24c   : > { %3242 = vst.msk [vmem:[#allocation2 + $0x140] sm:$0xff] %vm1513_vm3, %v3130_v37  ;;  %v3131_v8 = vadd.f32 %v2806_v12, %v2511_v33  ;;  %v3970_v40 = vadd.f32 %v14655_v49, %v3350_v51  ;;  %v3353_v25 = vld [vmem:[#allocation2 + $0x138] sm:$0xff] }
 0x24d   : > { %3245 = vst.msk [vmem:[#allocation2 + $0x158] sm:$0xff] %vm1513_vm3, %v3133_v62  ;;  %12157 = vmatmul.mubr.msk.bf16.gmra.mrb[24].mxu0 %vm856_vm2, %v13202_v34  ;;  %4084 = vst.msk [vmem:[#allocation2 + $0x130] sm:$0xff] %vm1513_vm3, %v3972_v21  ;;  %v3973_v55 = vadd.f32 %v14660_v57, %v3353_v25  ;;  %v3351_v7 = vld [vmem:[#allocation2 + $0x128] sm:$0xff] }
 0x24e   : > { %3243 = vst.msk [vmem:[#allocation2 + $0x148] sm:$0xff] %vm1513_vm3, %v3131_v8  ;;  %12160 = vmatprep.mubr.msk.bf16.mxu0 %vm856_vm2, %v13203_v35  ;;  %4082 = vst.msk [vmem:[#allocation2 + $0x120] sm:$0xff] %vm1513_vm3, %v3970_v40  ;;  %v3971_v49 = vadd.f32 %v14662_v28, %v3351_v7  ;;  %v2515_v28 = vld [vmem:[#allocation2 + $0x168] sm:$0xff]  ;;  %v14907_v8 = vpop.f32.mrb[172].mxu1  ;;  %v13205_v35 = vld [vmem:[%s13443_s20 + $0xf0] sm:$0xff]  }
 0x24f   : > { %4085 = vst.msk [vmem:[#allocation2 + $0x138] sm:$0xff] %vm1513_vm3, %v3973_v55  ;;  %v13204_v34 = vld [vmem:[%s13443_s20 + $0xe8] sm:$0xff]   ;;  %v14913_v55 = vpop.f32.mrb[173].mxu1 }
 0x250   : > { %v11938_v52 = vpop.f32.mrb[176].mxu0  ;;  %4083 = vst.msk [vmem:[#allocation2 + $0x128] sm:$0xff] %vm1513_vm3, %v3971_v49  ;;  %v14920_v49 = vpop.f32.mrb[174].mxu1 }
 0x251   : > { %v3136_v57 = vadd.f32 %v11938_v52, %v2516_v26  ;;  %v2819_v11 = vpop.f32.mrb[177].mxu0  ;;  %v14924_v26 = vpop.f32.mrb[175].mxu1  ;;  %v2520_v52 = vld [vmem:[#allocation2 + $0x190] sm:$0xff] }
 0x252   : > { %v3134_v37 = vadd.f32 %v2819_v11, %v2514_v4  ;;  %v11939_v41 = vpop.f32.mrb[178].mxu0  ;;  %v3356_v58 = vld [vmem:[#allocation2 + $0x150] sm:$0xff]  ;;  %v2518_v4 = vld [vmem:[#allocation2 + $0x180] sm:$0xff] }
 0x253   : > { %3248 = vst.msk [vmem:[#allocation2 + $0x170] sm:$0xff] %vm1513_vm3, %v3136_v57  ;;  %v3137_v62 = vadd.f32 %v11939_v41, %v2517_v39  ;;  %v2822_v33 = vpop.f32.mrb[179].mxu0  ;;  %v3976_v12 = vadd.f32 %v14668_v36, %v3356_v58  ;;  %v3354_v21 = vld [vmem:[#allocation2 + $0x140] sm:$0xff]  ;;  %v2521_v39 = vld [vmem:[#allocation2 + $0x198] sm:$0xff] }
 0x254   : > { %3246 = vst.msk [vmem:[#allocation2 + $0x160] sm:$0xff] %vm1513_vm3, %v3134_v37  ;;  %v3135_v51 = vadd.f32 %v2822_v33, %v2515_v28  ;;  %v3974_v40 = vadd.f32 %v14675_v63, %v3354_v21  ;;  %v3357_v25 = vld [vmem:[#allocation2 + $0x158] sm:$0xff] }
 0x255   : > { %3249 = vst.msk [vmem:[#allocation2 + $0x178] sm:$0xff] %vm1513_vm3, %v3137_v62  ;;  %12161 = vmatmul.mubr.msk.bf16.gmra.mrb[28].mxu0 %vm856_vm2, %v13204_v34  ;;  %4088 = vst.msk [vmem:[#allocation2 + $0x150] sm:$0xff] %vm1513_vm3, %v3976_v12  ;;  %v3977_v36 = vadd.f32 %v14682_v3, %v3357_v25  ;;  %v3355_v7 = vld [vmem:[#allocation2 + $0x148] sm:$0xff]  ;;  %v13206_v34 = vld [vmem:[%s13443_s20 + $0xf8] sm:$0xff]  }
 0x256   : > { %3247 = vst.msk [vmem:[#allocation2 + $0x168] sm:$0xff] %vm1513_vm3, %v3135_v51  ;;  %12164 = vmatprep.mubr.msk.bf16.mxu0 %vm856_vm2, %v13205_v35  ;;  %4086 = vst.msk [vmem:[#allocation2 + $0x140] sm:$0xff] %vm1513_vm3, %v3974_v40  ;;  %v3975_v63 = vadd.f32 %v14685_v56, %v3355_v7  ;;  %v2519_v56 = vld [vmem:[#allocation2 + $0x188] sm:$0xff]  ;;  %v14931_v51 = vpop.f32.mrb[176].mxu1  ;;  %v13207_v35 = vld [vmem:[%s13443_s20 + $0x100] sm:$0xff]  }
 0x257   : > { %4089 = vst.msk [vmem:[#allocation2 + $0x158] sm:$0xff] %vm1513_vm3, %v3977_v36  ;;  %v14937_v36 = vpop.f32.mrb[177].mxu1 }
 0x258   : > { %v11942_v57 = vpop.f32.mrb[180].mxu0  ;;  %4087 = vst.msk [vmem:[#allocation2 + $0x148] sm:$0xff] %vm1513_vm3, %v3975_v63  ;;  %v14944_v63 = vpop.f32.mrb[178].mxu1 }
 0x259   : > { %v3140_v3 = vadd.f32 %v11942_v57, %v2520_v52  ;;  %v2835_v11 = vpop.f32.mrb[181].mxu0  ;;  %v14948_v52 = vpop.f32.mrb[179].mxu1  ;;  %v2524_v57 = vld [vmem:[#allocation2 + $0x1b0] sm:$0xff] }
 0x25a   : > { %v3138_v37 = vadd.f32 %v2835_v11, %v2518_v4  ;;  %v11943_v41 = vpop.f32.mrb[182].mxu0  ;;  %v3360_v58 = vld [vmem:[#allocation2 + $0x170] sm:$0xff]  ;;  %v2522_v4 = vld [vmem:[#allocation2 + $0x1a0] sm:$0xff] }
 0x25b   : > { %3252 = vst.msk [vmem:[#allocation2 + $0x190] sm:$0xff] %vm1513_vm3, %v3140_v3  ;;  %v3141_v62 = vadd.f32 %v11943_v41, %v2521_v39  ;;  %v2838_v28 = vpop.f32.mrb[183].mxu0  ;;  %v3980_v33 = vadd.f32 %v14692_v43, %v3360_v58  ;;  %v3358_v12 = vld [vmem:[#allocation2 + $0x160] sm:$0xff]  ;;  %v2525_v39 = vld [vmem:[#allocation2 + $0x1b8] sm:$0xff] }
 0x25c   : > { %3250 = vst.msk [vmem:[#allocation2 + $0x180] sm:$0xff] %vm1513_vm3, %v3138_v37  ;;  %v3139_v21 = vadd.f32 %v2838_v28, %v2519_v56  ;;  %v3978_v40 = vadd.f32 %v14699_v24, %v3358_v12  ;;  %v3361_v25 = vld [vmem:[#allocation2 + $0x178] sm:$0xff]  ;;  %v2523_v56 = vld [vmem:[#allocation2 + $0x1a8] sm:$0xff] }
 0x25d   : > { %3253 = vst.msk [vmem:[#allocation2 + $0x198] sm:$0xff] %vm1513_vm3, %v3141_v62  ;;  %12165 = vmatmul.mubr.msk.bf16.gmra.mrb[32].mxu0 %vm856_vm2, %v13206_v34  ;;  %4092 = vst.msk [vmem:[#allocation2 + $0x170] sm:$0xff] %vm1513_vm3, %v3980_v33  ;;  %v3981_v43 = vadd.f32 %v14706_v29, %v3361_v25  ;;  %v3359_v7 = vld [vmem:[#allocation2 + $0x168] sm:$0xff]  ;;  %v14956_v25 = vpop.f32.mrb[180].mxu1 }
 0x25e   : > { %3251 = vst.msk [vmem:[#allocation2 + $0x188] sm:$0xff] %vm1513_vm3, %v3139_v21  ;;  %12168 = vmatprep.mubr.msk.bf16.mxu0 %vm856_vm2, %v13207_v35  ;;  %4090 = vst.msk [vmem:[#allocation2 + $0x160] sm:$0xff] %vm1513_vm3, %v3978_v40  ;;  %v3979_v24 = vadd.f32 %v14709_v6, %v3359_v7  ;;  %v14963_v7 = vpop.f32.mrb[181].mxu1  ;;  %v13209_v35 = vld [vmem:[%s13443_s20 + $0x110] sm:$0xff]  }
 0x25f   : > { %4093 = vst.msk [vmem:[#allocation2 + $0x178] sm:$0xff] %vm1513_vm3, %v3981_v43 }
 0x260   : > { %v11946_v3 = vpop.f32.mrb[184].mxu0  ;;  %4091 = vst.msk [vmem:[#allocation2 + $0x168] sm:$0xff] %vm1513_vm3, %v3979_v24  ;;  %v14970_v24 = vpop.f32.mrb[182].mxu1 }
 0x261   : > { %v3144_v29 = vadd.f32 %v11946_v3, %v2524_v57  ;;  %v2851_v11 = vpop.f32.mrb[185].mxu0  ;;  %v2528_v57 = vld [vmem:[#allocation2 + $0x1d0] sm:$0xff] }
 0x262   : > { %v3142_v37 = vadd.f32 %v2851_v11, %v2522_v4  ;;  %v11947_v41 = vpop.f32.mrb[186].mxu0  ;;  %v3364_v58 = vld [vmem:[#allocation2 + $0x190] sm:$0xff]  ;;  %v2526_v4 = vld [vmem:[#allocation2 + $0x1c0] sm:$0xff] }
 0x263   : > { %3256 = vst.msk [vmem:[#allocation2 + $0x1b0] sm:$0xff] %vm1513_vm3, %v3144_v29  ;;  %v3145_v62 = vadd.f32 %v11947_v41, %v2525_v39  ;;  %v3984_v6 = vadd.f32 %v14716_v15, %v3364_v58  ;;  %v2854_v28 = vpop.f32.mrb[187].mxu0  ;;  %v3362_v33 = vld [vmem:[#allocation2 + $0x180] sm:$0xff]  ;;  %v13208_v15 = vld [vmem:[%s13443_s20 + $0x108] sm:$0xff]   ;;  %v2529_v39 = vld [vmem:[#allocation2 + $0x1d8] sm:$0xff] }
 0x264   : > { %3254 = vst.msk [vmem:[#allocation2 + $0x1a0] sm:$0xff] %vm1513_vm3, %v3142_v37  ;;  %v3143_v12 = vadd.f32 %v2854_v28, %v2523_v56  ;;  %v3982_v21 = vadd.f32 %v14723_v9, %v3362_v33  ;;  %v3365_v40 = vld [vmem:[#allocation2 + $0x198] sm:$0xff] }
 0x265   : > { %3257 = vst.msk [vmem:[#allocation2 + $0x1b8] sm:$0xff] %vm1513_vm3, %v3145_v62  ;;  %4096 = vst.msk [vmem:[#allocation2 + $0x190] sm:$0xff] %vm1513_vm3, %v3984_v6  ;;  %v3985_v34 = vadd.f32 %v14730_v60, %v3365_v40  ;;  %v3363_v43 = vld [vmem:[#allocation2 + $0x188] sm:$0xff]  ;;  %12169 = vmatmul.mubr.msk.bf16.gmra.mrb[36].mxu0 %vm856_vm2, %v13208_v15  ;;  %v14973_v60 = vpop.f32.mrb[183].mxu1 }
 0x266   : > { %3255 = vst.msk [vmem:[#allocation2 + $0x1a8] sm:$0xff] %vm1513_vm3, %v3143_v12  ;;  %4094 = vst.msk [vmem:[#allocation2 + $0x180] sm:$0xff] %vm1513_vm3, %v3982_v21  ;;  %v3983_v9 = vadd.f32 %v14733_v47, %v3363_v43  ;;  %12172 = vmatprep.mubr.msk.bf16.mxu0 %vm856_vm2, %v13209_v35  ;;  %v2527_v6 = vld [vmem:[#allocation2 + $0x1c8] sm:$0xff]  ;;  %v14980_v40 = vpop.f32.mrb[184].mxu1 }
 0x267   : > { %4097 = vst.msk [vmem:[#allocation2 + $0x198] sm:$0xff] %vm1513_vm3, %v3985_v34  ;;  %v14987_v15 = vpop.f32.mrb[185].mxu1 }
 0x268   : > { %4095 = vst.msk [vmem:[#allocation2 + $0x188] sm:$0xff] %vm1513_vm3, %v3983_v9  ;;  %v11950_v3 = vpop.f32.mrb[188].mxu0  ;;  %v13211_v9 = vld [vmem:[%s13443_s20 + $0x120] sm:$0xff]   ;;  %v14994_v35 = vpop.f32.mrb[186].mxu1 }
 0x269   : > { %v3148_v29 = vadd.f32 %v11950_v3, %v2528_v57  ;;  %v2867_v11 = vpop.f32.mrb[189].mxu0  ;;  %v2532_v57 = vld [vmem:[#allocation2 + $0x1f0] sm:$0xff] }
 0x26a   : > { %v3146_v37 = vadd.f32 %v2867_v11, %v2526_v4  ;;  %v11951_v41 = vpop.f32.mrb[190].mxu0  ;;  %v3368_v47 = vld [vmem:[#allocation2 + $0x1b0] sm:$0xff]  ;;  %v2530_v4 = vld [vmem:[#allocation2 + $0x1e0] sm:$0xff] }
 0x26b   : > { %3260 = vst.msk [vmem:[#allocation2 + $0x1d0] sm:$0xff] %vm1513_vm3, %v3148_v29  ;;  %v3149_v58 = vadd.f32 %v11951_v41, %v2529_v39  ;;  %v3988_v62 = vadd.f32 %v14740_v50, %v3368_v47  ;;  %v2870_v56 = vpop.f32.mrb[191].mxu0  ;;  %v3366_v28 = vld [vmem:[#allocation2 + $0x1a0] sm:$0xff]  ;;  %v13210_v50 = vld [vmem:[%s13443_s20 + $0x118] sm:$0xff]  }
 0x26c   : > { %3258 = vst.msk [vmem:[#allocation2 + $0x1c0] sm:$0xff] %vm1513_vm3, %v3146_v37  ;;  %v3147_v33 = vadd.f32 %v2870_v56, %v2527_v6  ;;  %v3986_v12 = vadd.f32 %v14747_v23, %v3366_v28  ;;  %v3369_v21 = vld [vmem:[#allocation2 + $0x1b8] sm:$0xff] }
 0x26d   : > { %3261 = vst.msk [vmem:[#allocation2 + $0x1d8] sm:$0xff] %vm1513_vm3, %v3149_v58  ;;  %4100 = vst.msk [vmem:[#allocation2 + $0x1b0] sm:$0xff] %vm1513_vm3, %v3988_v62  ;;  %v3989_v34 = vadd.f32 %v14754_v45, %v3369_v21  ;;  %v3367_v43 = vld [vmem:[#allocation2 + $0x1a8] sm:$0xff]  ;;  %12173 = vmatmul.mubr.msk.bf16.gmra.mrb[40].mxu0 %vm856_vm2, %v13210_v50  ;;  %v14997_v45 = vpop.f32.mrb[187].mxu1  ;;  %v2533_v39 = vld [vmem:[#allocation2 + $0x1f8] sm:$0xff] }
 0x26e   : > { %3259 = vst.msk [vmem:[#allocation2 + $0x1c8] sm:$0xff] %vm1513_vm3, %v3147_v33  ;;  %4098 = vst.msk [vmem:[#allocation2 + $0x1a0] sm:$0xff] %vm1513_vm3, %v3986_v12  ;;  %v3987_v23 = vadd.f32 %v14757_v42, %v3367_v43  ;;  %12176 = vmatprep.mubr.msk.bf16.mxu0 %vm856_vm2, %v13211_v9  ;;  %v2531_v62 = vld [vmem:[#allocation2 + $0x1e8] sm:$0xff]  ;;  %v15004_v21 = vpop.f32.mrb[188].mxu1 }
 0x26f   : > { %4101 = vst.msk [vmem:[#allocation2 + $0x1b8] sm:$0xff] %vm1513_vm3, %v3989_v34  ;;  %v15011_v50 = vpop.f32.mrb[189].mxu1 }
 0x270   : > { %4099 = vst.msk [vmem:[#allocation2 + $0x1a8] sm:$0xff] %vm1513_vm3, %v3987_v23  ;;  %v11954_v3 = vpop.f32.mrb[192].mxu0  ;;  %v13213_v23 = vld [vmem:[%s13443_s20 + $0x130] sm:$0xff]   ;;  %v15018_v9 = vpop.f32.mrb[190].mxu1 }
 0x271   : > { %v3152_v29 = vadd.f32 %v11954_v3, %v2532_v57  ;;  %v2883_v11 = vpop.f32.mrb[193].mxu0  ;;  %v2536_v57 = vld [vmem:[#allocation2 + $0x210] sm:$0xff] }
 0x272   : > { %v3150_v37 = vadd.f32 %v2883_v11, %v2530_v4  ;;  %v11955_v41 = vpop.f32.mrb[194].mxu0  ;;  %v3372_v42 = vld [vmem:[#allocation2 + $0x1d0] sm:$0xff]  ;;  %v2534_v4 = vld [vmem:[#allocation2 + $0x200] sm:$0xff] }
 0x273   : > { %3264 = vst.msk [vmem:[#allocation2 + $0x1f0] sm:$0xff] %vm1513_vm3, %v3152_v29  ;;  %v3153_v47 = vadd.f32 %v11955_v41, %v2533_v39  ;;  %v3992_v58 = vadd.f32 %v14764_v31, %v3372_v42  ;;  %v2886_v6 = vpop.f32.mrb[195].mxu0  ;;  %v3370_v56 = vld [vmem:[#allocation2 + $0x1c0] sm:$0xff]  ;;  %v13212_v31 = vld [vmem:[%s13443_s20 + $0x128] sm:$0xff]   ;;  %v2537_v39 = vld [vmem:[#allocation2 + $0x218] sm:$0xff] }
 0x274   : > { %3262 = vst.msk [vmem:[#allocation2 + $0x1e0] sm:$0xff] %vm1513_vm3, %v3150_v37  ;;  %v3151_v28 = vadd.f32 %v2886_v6, %v2531_v62  ;;  %v3990_v33 = vadd.f32 %v14771_v14, %v3370_v56  ;;  %v3373_v12 = vld [vmem:[#allocation2 + $0x1d8] sm:$0xff] }
 0x275   : > { %3265 = vst.msk [vmem:[#allocation2 + $0x1f8] sm:$0xff] %vm1513_vm3, %v3153_v47  ;;  %4104 = vst.msk [vmem:[#allocation2 + $0x1d0] sm:$0xff] %vm1513_vm3, %v3992_v58  ;;  %v3993_v34 = vadd.f32 %v14778_v53, %v3373_v12  ;;  %v3371_v43 = vld [vmem:[#allocation2 + $0x1c8] sm:$0xff]  ;;  %12177 = vmatmul.mubr.msk.bf16.gmra.mrb[44].mxu0 %vm856_vm2, %v13212_v31  ;;  %v15021_v53 = vpop.f32.mrb[191].mxu1 }
 0x276   : > { %3263 = vst.msk [vmem:[#allocation2 + $0x1e8] sm:$0xff] %vm1513_vm3, %v3151_v28  ;;  %4102 = vst.msk [vmem:[#allocation2 + $0x1c0] sm:$0xff] %vm1513_vm3, %v3990_v33  ;;  %v3991_v14 = vadd.f32 %v14781_v27, %v3371_v43  ;;  %12180 = vmatprep.mubr.msk.bf16.mxu0 %vm856_vm2, %v13213_v23  ;;  %v2535_v58 = vld [vmem:[#allocation2 + $0x208] sm:$0xff]  ;;  %v15028_v12 = vpop.f32.mrb[192].mxu1 }
 0x277   : > { %4105 = vst.msk [vmem:[#allocation2 + $0x1d8] sm:$0xff] %vm1513_vm3, %v3993_v34  ;;  %v15035_v31 = vpop.f32.mrb[193].mxu1 }
 0x278   : > { %4103 = vst.msk [vmem:[#allocation2 + $0x1c8] sm:$0xff] %vm1513_vm3, %v3991_v14  ;;  %v11958_v3 = vpop.f32.mrb[196].mxu0  ;;  %v13215_v14 = vld [vmem:[%s13443_s20 + $0x140] sm:$0xff]   ;;  %v15042_v23 = vpop.f32.mrb[194].mxu1 }
 0x279   : > { %v3156_v29 = vadd.f32 %v11958_v3, %v2536_v57  ;;  %v2899_v11 = vpop.f32.mrb[197].mxu0  ;;  %v2540_v57 = vld [vmem:[#allocation2 + $0x230] sm:$0xff] }
 0x27a   : > { %v3154_v37 = vadd.f32 %v2899_v11, %v2534_v4  ;;  %v11959_v41 = vpop.f32.mrb[198].mxu0  ;;  %v3376_v27 = vld [vmem:[#allocation2 + $0x1f0] sm:$0xff]  ;;  %v2538_v4 = vld [vmem:[#allocation2 + $0x220] sm:$0xff] }
 0x27b   : > { %3268 = vst.msk [vmem:[#allocation2 + $0x210] sm:$0xff] %vm1513_vm3, %v3156_v29  ;;  %v3157_v42 = vadd.f32 %v11959_v41, %v2537_v39  ;;  %v3996_v47 = vadd.f32 %v14787_v48, %v3376_v27  ;;  %v2902_v62 = vpop.f32.mrb[199].mxu0  ;;  %v3374_v6 = vld [vmem:[#allocation2 + $0x1e0] sm:$0xff]  ;;  %v13214_v48 = vld [vmem:[%s13443_s20 + $0x138] sm:$0xff]  }
 0x27c   : > { %3266 = vst.msk [vmem:[#allocation2 + $0x200] sm:$0xff] %vm1513_vm3, %v3154_v37  ;;  %v3155_v56 = vadd.f32 %v2902_v62, %v2535_v58  ;;  %v3994_v28 = vadd.f32 %v14793_v10, %v3374_v6  ;;  %v3377_v33 = vld [vmem:[#allocation2 + $0x1f8] sm:$0xff] }
 0x27d   : > { %3269 = vst.msk [vmem:[#allocation2 + $0x218] sm:$0xff] %vm1513_vm3, %v3157_v42  ;;  %4108 = vst.msk [vmem:[#allocation2 + $0x1f0] sm:$0xff] %vm1513_vm3, %v3996_v47  ;;  %v3997_v34 = vadd.f32 %v14800_v13, %v3377_v33  ;;  %v3375_v43 = vld [vmem:[#allocation2 + $0x1e8] sm:$0xff]  ;;  %12181 = vmatmul.mubr.msk.bf16.gmra.mrb[48].mxu0 %vm856_vm2, %v13214_v48  ;;  %v15045_v13 = vpop.f32.mrb[195].mxu1  ;;  %v2541_v39 = vld [vmem:[#allocation2 + $0x238] sm:$0xff] }
 0x27e   : > { %3267 = vst.msk [vmem:[#allocation2 + $0x208] sm:$0xff] %vm1513_vm3, %v3155_v56  ;;  %4106 = vst.msk [vmem:[#allocation2 + $0x1e0] sm:$0xff] %vm1513_vm3, %v3994_v28  ;;  %v3995_v10 = vadd.f32 %v14804_v30, %v3375_v43  ;;  %12184 = vmatprep.mubr.msk.bf16.mxu0 %vm856_vm2, %v13215_v14  ;;  %v2539_v47 = vld [vmem:[#allocation2 + $0x228] sm:$0xff] }
 0x27f   : > { %4109 = vst.msk [vmem:[#allocation2 + $0x1f8] sm:$0xff] %vm1513_vm3, %v3997_v34 }
 0x280   : > { %4107 = vst.msk [vmem:[#allocation2 + $0x1e8] sm:$0xff] %vm1513_vm3, %v3995_v10  ;;  %v11962_v3 = vpop.f32.mrb[200].mxu0  ;;  %v15052_v33 = vpop.f32.mrb[196].mxu1  ;;  %v13217_v10 = vld [vmem:[%s13443_s20 + $0x150] sm:$0xff]  }
 0x281   : > { %v3160_v29 = vadd.f32 %v11962_v3, %v2540_v57  ;;  %v2915_v11 = vpop.f32.mrb[201].mxu0  ;;  %v15059_v48 = vpop.f32.mrb[197].mxu1  ;;  %v2544_v57 = vld [vmem:[#allocation2 + $0x250] sm:$0xff] }
 0x282   : > { %v3158_v37 = vadd.f32 %v2915_v11, %v2538_v4  ;;  %v11963_v41 = vpop.f32.mrb[202].mxu0  ;;  %v3380_v30 = vld [vmem:[#allocation2 + $0x210] sm:$0xff]  ;;  %v15066_v14 = vpop.f32.mrb[198].mxu1  ;;  %v2542_v4 = vld [vmem:[#allocation2 + $0x240] sm:$0xff] }
 0x283   : > { %3272 = vst.msk [vmem:[#allocation2 + $0x230] sm:$0xff] %vm1513_vm3, %v3160_v29  ;;  %v3161_v27 = vadd.f32 %v11963_v41, %v2541_v39  ;;  %v4000_v42 = vadd.f32 %v14811_v61, %v3380_v30  ;;  %v2918_v58 = vpop.f32.mrb[203].mxu0  ;;  %v3378_v62 = vld [vmem:[#allocation2 + $0x200] sm:$0xff]  ;;  %v13216_v61 = vld [vmem:[%s13443_s20 + $0x148] sm:$0xff]   ;;  %v2545_v39 = vld [vmem:[#allocation2 + $0x258] sm:$0xff] }
 0x284   : > { %3270 = vst.msk [vmem:[#allocation2 + $0x220] sm:$0xff] %vm1513_vm3, %v3158_v37  ;;  %v3159_v6 = vadd.f32 %v2918_v58, %v2539_v47  ;;  %v3998_v56 = vadd.f32 %v14817_v19, %v3378_v62  ;;  %v3381_v28 = vld [vmem:[#allocation2 + $0x218] sm:$0xff] }
 0x285   : > { %3273 = vst.msk [vmem:[#allocation2 + $0x238] sm:$0xff] %vm1513_vm3, %v3161_v27  ;;  %4112 = vst.msk [vmem:[#allocation2 + $0x210] sm:$0xff] %vm1513_vm3, %v4000_v42  ;;  %v4001_v34 = vadd.f32 %v14824_v5, %v3381_v28  ;;  %v3379_v43 = vld [vmem:[#allocation2 + $0x208] sm:$0xff]  ;;  %12185 = vmatmul.mubr.msk.bf16.gmra.mrb[52].mxu0 %vm856_vm2, %v13216_v61  ;;  %v15069_v5 = vpop.f32.mrb[199].mxu1 }
 0x286   : > { %3271 = vst.msk [vmem:[#allocation2 + $0x228] sm:$0xff] %vm1513_vm3, %v3159_v6  ;;  %4110 = vst.msk [vmem:[#allocation2 + $0x200] sm:$0xff] %vm1513_vm3, %v3998_v56  ;;  %v3999_v19 = vadd.f32 %v14828_v59, %v3379_v43  ;;  %12188 = vmatprep.mubr.msk.bf16.mxu0 %vm856_vm2, %v13217_v10  ;;  %v2543_v42 = vld [vmem:[#allocation2 + $0x248] sm:$0xff] }
 0x287   : > { %4113 = vst.msk [vmem:[#allocation2 + $0x218] sm:$0xff] %vm1513_vm3, %v4001_v34 }
 0x288   : > { %4111 = vst.msk [vmem:[#allocation2 + $0x208] sm:$0xff] %vm1513_vm3, %v3999_v19  ;;  %v11966_v3 = vpop.f32.mrb[204].mxu0  ;;  %v15076_v28 = vpop.f32.mrb[200].mxu1  ;;  %v13219_v19 = vld [vmem:[%s13443_s20 + $0x160] sm:$0xff]  }
 0x289   : > { %v3164_v29 = vadd.f32 %v11966_v3, %v2544_v57  ;;  %v2931_v11 = vpop.f32.mrb[205].mxu0  ;;  %v15083_v61 = vpop.f32.mrb[201].mxu1  ;;  %v2548_v57 = vld [vmem:[#allocation2 + $0x270] sm:$0xff] }
 0x28a   : > { %v3162_v37 = vadd.f32 %v2931_v11, %v2542_v4  ;;  %v11967_v41 = vpop.f32.mrb[206].mxu0  ;;  %v3384_v59 = vld [vmem:[#allocation2 + $0x230] sm:$0xff]  ;;  %v15090_v10 = vpop.f32.mrb[202].mxu1  ;;  %v2546_v4 = vld [vmem:[#allocation2 + $0x260] sm:$0xff] }
 0x28b   : > { %3276 = vst.msk [vmem:[#allocation2 + $0x250] sm:$0xff] %vm1513_vm3, %v3164_v29  ;;  %v3165_v30 = vadd.f32 %v11967_v41, %v2545_v39  ;;  %v4004_v27 = vadd.f32 %v14835_v0, %v3384_v59  ;;  %v2934_v47 = vpop.f32.mrb[207].mxu0  ;;  %v3382_v58 = vld [vmem:[#allocation2 + $0x220] sm:$0xff]  ;;  %v13218_v0 = vld [vmem:[%s13443_s20 + $0x158] sm:$0xff]  }
 0x28c   : > { %3274 = vst.msk [vmem:[#allocation2 + $0x240] sm:$0xff] %vm1513_vm3, %v3162_v37  ;;  %v3163_v62 = vadd.f32 %v2934_v47, %v2543_v42  ;;  %v4002_v6 = vadd.f32 %v14841_v44, %v3382_v58  ;;  %v3385_v56 = vld [vmem:[#allocation2 + $0x238] sm:$0xff] }
 0x28d   : > { %3277 = vst.msk [vmem:[#allocation2 + $0x258] sm:$0xff] %vm1513_vm3, %v3165_v30  ;;  %4116 = vst.msk [vmem:[#allocation2 + $0x230] sm:$0xff] %vm1513_vm3, %v4004_v27  ;;  %v4005_v34 = vadd.f32 %v14848_v22, %v3385_v56  ;;  %v3383_v43 = vld [vmem:[#allocation2 + $0x228] sm:$0xff]  ;;  %12189 = vmatmul.mubr.msk.bf16.gmra.mrb[56].mxu0 %vm856_vm2, %v13218_v0  ;;  %v15093_v22 = vpop.f32.mrb[203].mxu1  ;;  %v2549_v39 = vld [vmem:[#allocation2 + $0x278] sm:$0xff] }
 0x28e   : > { %3275 = vst.msk [vmem:[#allocation2 + $0x248] sm:$0xff] %vm1513_vm3, %v3163_v62  ;;  %4114 = vst.msk [vmem:[#allocation2 + $0x220] sm:$0xff] %vm1513_vm3, %v4002_v6  ;;  %v4003_v44 = vadd.f32 %v14852_v17, %v3383_v43  ;;  %12192 = vmatprep.mubr.msk.bf16.mxu0 %vm856_vm2, %v13219_v19  ;;  %v2547_v27 = vld [vmem:[#allocation2 + $0x268] sm:$0xff]  ;;  %v13221_v0 = vld [vmem:[%s13443_s20 + $0x170] sm:$0xff]  }
 0x28f   : > { %4117 = vst.msk [vmem:[#allocation2 + $0x238] sm:$0xff] %vm1513_vm3, %v4005_v34  ;;  %v13220_v43 = vld [vmem:[%s13443_s20 + $0x168] sm:$0xff]   ;;  %v2550_v19 = vld [vmem:[#allocation2 + $0x280] sm:$0xff] }
 0x290   : > { %4115 = vst.msk [vmem:[#allocation2 + $0x228] sm:$0xff] %vm1513_vm3, %v4003_v44  ;;  %v11970_v3 = vpop.f32.mrb[208].mxu0 }
 0x291   : > { %v3168_v29 = vadd.f32 %v11970_v3, %v2548_v57  ;;  %v2947_v11 = vpop.f32.mrb[209].mxu0 }
 0x292   : > { %v3166_v37 = vadd.f32 %v2947_v11, %v2546_v4  ;;  %v11971_v41 = vpop.f32.mrb[210].mxu0  ;;  %v3388_v17 = vld [vmem:[#allocation2 + $0x250] sm:$0xff] }
 0x293   : > { %3280 = vst.msk [vmem:[#allocation2 + $0x270] sm:$0xff] %vm1513_vm3, %v3168_v29  ;;  %v3169_v59 = vadd.f32 %v11971_v41, %v2549_v39  ;;  %v4008_v30 = vadd.f32 %v14859_v38, %v3388_v17  ;;  %v2950_v42 = vpop.f32.mrb[211].mxu0  ;;  %v3386_v47 = vld [vmem:[#allocation2 + $0x240] sm:$0xff]  ;;  %v2553_v29 = vld [vmem:[#allocation2 + $0x298] sm:$0xff]  ;;  %v2551_v39 = vld [vmem:[#allocation2 + $0x288] sm:$0xff] }
 0x294   : > { %3278 = vst.msk [vmem:[#allocation2 + $0x260] sm:$0xff] %vm1513_vm3, %v3166_v37  ;;  %v3167_v58 = vadd.f32 %v2950_v42, %v2547_v27  ;;  %v4006_v62 = vadd.f32 %v14865_v16, %v3386_v47  ;;  %v3389_v6 = vld [vmem:[#allocation2 + $0x258] sm:$0xff]  ;;  %v2552_v16 = vld [vmem:[#allocation2 + $0x290] sm:$0xff] }
 0x295   : > { %3281 = vst.msk [vmem:[#allocation2 + $0x278] sm:$0xff] %vm1513_vm3, %v3169_v59  ;;  %4120 = vst.msk [vmem:[#allocation2 + $0x250] sm:$0xff] %vm1513_vm3, %v4008_v30  ;;  %v4009_v56 = vadd.f32 %v14872_v18, %v3389_v6  ;;  %v3387_v34 = vld [vmem:[#allocation2 + $0x248] sm:$0xff]  ;;  %12193 = vmatmul.mubr.msk.bf16.gmra.mrb[60].mxu0 %vm856_vm2, %v13220_v43 }
 0x296   : > { %3279 = vst.msk [vmem:[#allocation2 + $0x268] sm:$0xff] %vm1513_vm3, %v3167_v58  ;;  %4118 = vst.msk [vmem:[#allocation2 + $0x240] sm:$0xff] %vm1513_vm3, %v4006_v62  ;;  %v4007_v38 = vadd.f32 %v14876_v54, %v3387_v34  ;;  %12196 = vmatprep.mubr.msk.bf16.mxu0 %vm856_vm2, %v13221_v0  ;;  %v13222_v58 = vld [vmem:[%s13443_s20 + $0x178] sm:$0xff]   ;;  %v13223_v62 = vld [vmem:[%s13443_s20 + $0x180] sm:$0xff]  }
 0x297   : > { %4121 = vst.msk [vmem:[#allocation2 + $0x258] sm:$0xff] %vm1513_vm3, %v4009_v56  ;;  %v2554_v56 = vld [vmem:[#allocation2 + $0x2a0] sm:$0xff] }
 0x298   : > { %4119 = vst.msk [vmem:[#allocation2 + $0x248] sm:$0xff] %vm1513_vm3, %v4007_v38  ;;  %v11974_v44 = vpop.f32.mrb[212].mxu0  ;;  %v2557_v38 = vld [vmem:[#allocation2 + $0x2b8] sm:$0xff] }
 0x299   : > { %v3172_v18 = vadd.f32 %v11974_v44, %v2552_v16  ;;  %v2963_v57 = vpop.f32.mrb[213].mxu0 }
 0x29a   : > { %v3170_v3 = vadd.f32 %v2963_v57, %v2550_v19  ;;  %v11975_v4 = vpop.f32.mrb[214].mxu0  ;;  %v3392_v11 = vld [vmem:[#allocation2 + $0x270] sm:$0xff] }
 0x29b   : > { %3284 = vst.msk [vmem:[#allocation2 + $0x290] sm:$0xff] %vm1513_vm3, %v3172_v18  ;;  %v3173_v54 = vadd.f32 %v11975_v4, %v2553_v29  ;;  %v4012_v37 = vadd.f32 %v14883_v20, %v3392_v11  ;;  %v2966_v41 = vpop.f32.mrb[215].mxu0  ;;  %v3390_v17 = vld [vmem:[#allocation2 + $0x260] sm:$0xff]  ;;  %v2555_v18 = vld [vmem:[#allocation2 + $0x2a8] sm:$0xff] }
 0x29c   : > { %3282 = vst.msk [vmem:[#allocation2 + $0x280] sm:$0xff] %vm1513_vm3, %v3170_v3  ;;  %v3171_v59 = vadd.f32 %v2966_v41, %v2551_v39  ;;  %v4010_v30 = vadd.f32 %v14889_v46, %v3390_v17  ;;  %v3393_v27 = vld [vmem:[#allocation2 + $0x278] sm:$0xff]  ;;  %v2556_v46 = vld [vmem:[#allocation2 + $0x2b0] sm:$0xff]  ;;  %v2558_v17 = vld [vmem:[#allocation2 + $0x2c0] sm:$0xff] }
 0x29d   : > { %3285 = vst.msk [vmem:[#allocation2 + $0x298] sm:$0xff] %vm1513_vm3, %v3173_v54  ;;  %4124 = vst.msk [vmem:[#allocation2 + $0x270] sm:$0xff] %vm1513_vm3, %v4012_v37  ;;  %v4013_v42 = vadd.f32 %v14896_v32, %v3393_v27  ;;  %v3391_v47 = vld [vmem:[#allocation2 + $0x268] sm:$0xff]  ;;  %12197 = vmatmul.mubr.msk.bf16.gmra.mrb[64].mxu0 %vm856_vm2, %v13222_v58  ;;  %v13225_v39 = vld [vmem:[%s13443_s20 + $0x190] sm:$0xff]  }
 0x29e   : > { %3283 = vst.msk [vmem:[#allocation2 + $0x288] sm:$0xff] %vm1513_vm3, %v3171_v59  ;;  %4122 = vst.msk [vmem:[#allocation2 + $0x260] sm:$0xff] %vm1513_vm3, %v4010_v30  ;;  %v4011_v20 = vadd.f32 %v14900_v2, %v3391_v47  ;;  %12200 = vmatprep.mubr.msk.bf16.mxu0 %vm856_vm2, %v13223_v62  ;;  %v13224_v37 = vld [vmem:[%s13443_s20 + $0x188] sm:$0xff]   ;;  %v2561_v27 = vld [vmem:[#allocation2 + $0x2d8] sm:$0xff] }
 0x29f   : > { %4125 = vst.msk [vmem:[#allocation2 + $0x278] sm:$0xff] %vm1513_vm3, %v4013_v42 }
 0x2a0   : > { %4123 = vst.msk [vmem:[#allocation2 + $0x268] sm:$0xff] %vm1513_vm3, %v4011_v20  ;;  %v11978_v6 = vpop.f32.mrb[216].mxu0  ;;  %v2559_v20 = vld [vmem:[#allocation2 + $0x2c8] sm:$0xff] }
 0x2a1   : > { %v3176_v32 = vadd.f32 %v11978_v6, %v2556_v46  ;;  %v2979_v34 = vpop.f32.mrb[217].mxu0 }
 0x2a2   : > { %v3174_v43 = vadd.f32 %v2979_v34, %v2554_v56  ;;  %v11979_v0 = vpop.f32.mrb[218].mxu0  ;;  %v3396_v16 = vld [vmem:[#allocation2 + $0x290] sm:$0xff] }
 0x2a3   : > { %3288 = vst.msk [vmem:[#allocation2 + $0x2b0] sm:$0xff] %vm1513_vm3, %v3176_v32  ;;  %v3177_v2 = vadd.f32 %v11979_v0, %v2557_v38  ;;  %v4016_v44 = vadd.f32 %v14907_v8, %v3396_v16  ;;  %v2982_v19 = vpop.f32.mrb[219].mxu0  ;;  %v3394_v57 = vld [vmem:[#allocation2 + $0x280] sm:$0xff]  ;;  %v13226_v38 = vld [vmem:[%s13443_s20 + $0x198] sm:$0xff]  }
 0x2a4   : > { %3286 = vst.msk [vmem:[#allocation2 + $0x2a0] sm:$0xff] %vm1513_vm3, %v3174_v43  ;;  %v3175_v3 = vadd.f32 %v2982_v19, %v2555_v18  ;;  %v4014_v29 = vadd.f32 %v14913_v55, %v3394_v57  ;;  %v3397_v4 = vld [vmem:[#allocation2 + $0x298] sm:$0xff]  ;;  %v2560_v55 = vld [vmem:[#allocation2 + $0x2d0] sm:$0xff]  ;;  %v13227_v0 = vld [vmem:[%s13443_s20 + $0x1a0] sm:$0xff]  }
 0x2a5   : > { %3289 = vst.msk [vmem:[#allocation2 + $0x2b8] sm:$0xff] %vm1513_vm3, %v3177_v2  ;;  %4128 = vst.msk [vmem:[#allocation2 + $0x290] sm:$0xff] %vm1513_vm3, %v4016_v44  ;;  %v4017_v11 = vadd.f32 %v14920_v49, %v3397_v4  ;;  %v3395_v54 = vld [vmem:[#allocation2 + $0x288] sm:$0xff]  ;;  %12201 = vmatmul.mubr.msk.bf16.gmra.mrb[68].mxu0 %vm856_vm2, %v13224_v37  ;;  %v2562_v2 = vld [vmem:[#allocation2 + $0x2e0] sm:$0xff] }
 0x2a6   : > { %3287 = vst.msk [vmem:[#allocation2 + $0x2a8] sm:$0xff] %vm1513_vm3, %v3175_v3  ;;  %4126 = vst.msk [vmem:[#allocation2 + $0x280] sm:$0xff] %vm1513_vm3, %v4014_v29  ;;  %v4015_v8 = vadd.f32 %v14924_v26, %v3395_v54  ;;  %12204 = vmatprep.mubr.msk.bf16.mxu0 %vm856_vm2, %v13225_v39  ;;  %v2565_v19 = vld [vmem:[#allocation2 + $0x2f8] sm:$0xff]  ;;  %v2563_v4 = vld [vmem:[#allocation2 + $0x2e8] sm:$0xff] }
 0x2a7   : > { %4129 = vst.msk [vmem:[#allocation2 + $0x298] sm:$0xff] %vm1513_vm3, %v4017_v11 }
 0x2a8   : > { %4127 = vst.msk [vmem:[#allocation2 + $0x288] sm:$0xff] %vm1513_vm3, %v4015_v8  ;;  %v11982_v41 = vpop.f32.mrb[220].mxu0 }
 0x2a9   : > { %v3180_v49 = vadd.f32 %v11982_v41, %v2560_v55  ;;  %v2995_v59 = vpop.f32.mrb[221].mxu0 }
 0x2aa   : > { %v3178_v30 = vadd.f32 %v2995_v59, %v2558_v17  ;;  %v11983_v42 = vpop.f32.mrb[222].mxu0  ;;  %v3400_v47 = vld [vmem:[#allocation2 + $0x2b0] sm:$0xff] }
 0x2ab   : > { %3292 = vst.msk [vmem:[#allocation2 + $0x2d0] sm:$0xff] %vm1513_vm3, %v3180_v49  ;;  %v3181_v26 = vadd.f32 %v11983_v42, %v2561_v27  ;;  %v4020_v58 = vadd.f32 %v14931_v51, %v3400_v47  ;;  %v2998_v62 = vpop.f32.mrb[223].mxu0  ;;  %v3398_v46 = vld [vmem:[#allocation2 + $0x2a0] sm:$0xff]  ;;  %v13228_v49 = vld [vmem:[%s13443_s20 + $0x1a8] sm:$0xff]   ;;  %v13229_v17 = vld [vmem:[%s13443_s20 + $0x1b0] sm:$0xff]  }
 0x2ac   : > { %3290 = vst.msk [vmem:[#allocation2 + $0x2c0] sm:$0xff] %vm1513_vm3, %v3178_v30  ;;  %v3179_v6 = vadd.f32 %v2998_v62, %v2559_v20  ;;  %v4018_v32 = vadd.f32 %v14937_v36, %v3398_v46  ;;  %v3401_v56 = vld [vmem:[#allocation2 + $0x2b8] sm:$0xff]  ;;  %v2564_v36 = vld [vmem:[#allocation2 + $0x2f0] sm:$0xff]  ;;  %v2566_v27 = vld [vmem:[#allocation2 + $0x300] sm:$0xff] }
 0x2ad   : > { %3293 = vst.msk [vmem:[#allocation2 + $0x2d8] sm:$0xff] %vm1513_vm3, %v3181_v26  ;;  %4132 = vst.msk [vmem:[#allocation2 + $0x2b0] sm:$0xff] %vm1513_vm3, %v4020_v58  ;;  %v4021_v34 = vadd.f32 %v14944_v63, %v3401_v56  ;;  %v3399_v43 = vld [vmem:[#allocation2 + $0x2a8] sm:$0xff]  ;;  %12205 = vmatmul.mubr.msk.bf16.gmra.mrb[72].mxu0 %vm856_vm2, %v13226_v38  ;;  %v2569_v26 = vld [vmem:[#allocation2 + $0x318] sm:$0xff] }
 0x2ae   : > { %3291 = vst.msk [vmem:[#allocation2 + $0x2c8] sm:$0xff] %vm1513_vm3, %v3179_v6  ;;  %4130 = vst.msk [vmem:[#allocation2 + $0x2a0] sm:$0xff] %vm1513_vm3, %v4018_v32  ;;  %v4019_v51 = vadd.f32 %v14948_v52, %v3399_v43  ;;  %12208 = vmatprep.mubr.msk.bf16.mxu0 %vm856_vm2, %v13227_v0  ;;  %v2567_v46 = vld [vmem:[#allocation2 + $0x308] sm:$0xff]  ;;  %v13230_v0 = vld [vmem:[%s13443_s20 + $0x1b8] sm:$0xff]  }
 0x2af   : > { %4133 = vst.msk [vmem:[#allocation2 + $0x2b8] sm:$0xff] %vm1513_vm3, %v4021_v34 }
 0x2b0   : > { %4131 = vst.msk [vmem:[#allocation2 + $0x2a8] sm:$0xff] %vm1513_vm3, %v4019_v51  ;;  %v11986_v16 = vpop.f32.mrb[224].mxu0 }
 0x2b1   : > { %v3184_v63 = vadd.f32 %v11986_v16, %v2564_v36  ;;  %v3011_v44 = vpop.f32.mrb[225].mxu0  ;;  %v13231_v36 = vld [vmem:[%s13443_s20 + $0x1c0] sm:$0xff]  }
 0x2b2   : > { %v3182_v18 = vadd.f32 %v3011_v44, %v2562_v2  ;;  %v11987_v57 = vpop.f32.mrb[226].mxu0  ;;  %v3404_v3 = vld [vmem:[#allocation2 + $0x2d0] sm:$0xff] }
 0x2b3   : > { %3296 = vst.msk [vmem:[#allocation2 + $0x2f0] sm:$0xff] %vm1513_vm3, %v3184_v63  ;;  %v3185_v52 = vadd.f32 %v11987_v57, %v2565_v19  ;;  %v4024_v29 = vadd.f32 %v14956_v25, %v3404_v3  ;;  %v3014_v11 = vpop.f32.mrb[227].mxu0  ;;  %v3402_v54 = vld [vmem:[#allocation2 + $0x2c0] sm:$0xff] }
 0x2b4   : > { %3294 = vst.msk [vmem:[#allocation2 + $0x2e0] sm:$0xff] %vm1513_vm3, %v3182_v18  ;;  %v3183_v37 = vadd.f32 %v3014_v11, %v2563_v4  ;;  %v4022_v8 = vadd.f32 %v14963_v7, %v3402_v54  ;;  %v3405_v39 = vld [vmem:[#allocation2 + $0x2d8] sm:$0xff]  ;;  %v12965_v7 = vld [vmem:[%s17782_s5 + $0x4] ss:$28 sps:$4 sm:$0xff]  }
 0x2b5   : > { %3297 = vst.msk [vmem:[#allocation2 + $0x2f8] sm:$0xff] %vm1513_vm3, %v3185_v52  ;;  %4136 = vst.msk [vmem:[#allocation2 + $0x2d0] sm:$0xff] %vm1513_vm3, %v4024_v29  ;;  %v4025_v55 = vadd.f32 %v14970_v24, %v3405_v39  ;;  %v3403_v41 = vld [vmem:[#allocation2 + $0x2c8] sm:$0xff]  ;;  %12209 = vmatmul.mubr.msk.bf16.gmra.mrb[76].mxu0 %vm856_vm2, %v13228_v49  ;;  %v2568_v24 = vld [vmem:[#allocation2 + $0x310] sm:$0xff]  ;;  %6467 = vmatprep.mubr.bf16.mxu1 %v12965_v7 }
 0x2b6   : > { %3295 = vst.msk [vmem:[#allocation2 + $0x2e8] sm:$0xff] %vm1513_vm3, %v3183_v37  ;;  %4134 = vst.msk [vmem:[#allocation2 + $0x2c0] sm:$0xff] %vm1513_vm3, %v4022_v8  ;;  %v4023_v25 = vadd.f32 %v14973_v60, %v3403_v41  ;;  %12212 = vmatprep.mubr.msk.bf16.mxu0 %vm856_vm2, %v13229_v17  ;;  %v2570_v63 = vld [vmem:[#allocation2 + $0x320] sm:$0xff]  ;;  %v2573_v18 = vld [vmem:[#allocation2 + $0x338] sm:$0xff] }
 0x2b7   : > { %4137 = vst.msk [vmem:[#allocation2 + $0x2d8] sm:$0xff] %vm1513_vm3, %v4025_v55  ;;  %v2571_v52 = vld [vmem:[#allocation2 + $0x328] sm:$0xff]  ;;  %v13233_v41 = vld [vmem:[%s13443_s20 + $0x1d0] sm:$0xff]  }
 0x2b8   : > { %4135 = vst.msk [vmem:[#allocation2 + $0x2c8] sm:$0xff] %vm1513_vm3, %v4023_v25  ;;  %v11990_v59 = vpop.f32.mrb[228].mxu0  ;;  %v13232_v55 = vld [vmem:[%s13443_s20 + $0x1c8] sm:$0xff]   ;;  %v2574_v25 = vld [vmem:[#allocation2 + $0x340] sm:$0xff] }
 0x2b9   : > { %v3188_v30 = vadd.f32 %v11990_v59, %v2568_v24  ;;  %v3027_v42 = vpop.f32.mrb[229].mxu0  ;;  %v2577_v24 = vld [vmem:[#allocation2 + $0x358] sm:$0xff] }
 0x2ba   : > { %v3186_v47 = vadd.f32 %v3027_v42, %v2566_v27  ;;  %v11991_v60 = vpop.f32.mrb[230].mxu0  ;;  %v3408_v58 = vld [vmem:[#allocation2 + $0x2f0] sm:$0xff]  ;;  %v2575_v42 = vld [vmem:[#allocation2 + $0x348] sm:$0xff] }
 0x2bb   : > { %3300 = vst.msk [vmem:[#allocation2 + $0x310] sm:$0xff] %vm1513_vm3, %v3188_v30  ;;  %v3189_v20 = vadd.f32 %v11991_v60, %v2569_v26  ;;  %v4028_v62 = vadd.f32 %v14980_v40, %v3408_v58  ;;  %v3030_v6 = vpop.f32.mrb[231].mxu0  ;;  %v3406_v32 = vld [vmem:[#allocation2 + $0x2e0] sm:$0xff] }
 0x2bc   : > { %3298 = vst.msk [vmem:[#allocation2 + $0x300] sm:$0xff] %vm1513_vm3, %v3186_v47  ;;  %v3187_v56 = vadd.f32 %v3030_v6, %v2567_v46  ;;  %v4026_v34 = vadd.f32 %v14987_v15, %v3406_v32  ;;  %v3409_v43 = vld [vmem:[#allocation2 + $0x2f8] sm:$0xff]  ;;  %v2572_v15 = vld [vmem:[#allocation2 + $0x330] sm:$0xff]  ;;  %v13235_v32 = vld [vmem:[%s13443_s20 + $0x1e0] sm:$0xff]  }
 0x2bd   : > { %3301 = vst.msk [vmem:[#allocation2 + $0x318] sm:$0xff] %vm1513_vm3, %v3189_v20  ;;  %4140 = vst.msk [vmem:[#allocation2 + $0x2f0] sm:$0xff] %vm1513_vm3, %v4028_v62  ;;  %v4029_v38 = vadd.f32 %v14994_v35, %v3409_v43  ;;  %v3407_v51 = vld [vmem:[#allocation2 + $0x2e8] sm:$0xff]  ;;  %12213 = vmatmul.mubr.msk.bf16.gmra.mrb[80].mxu0 %vm856_vm2, %v13230_v0  ;;  %v13234_v6 = vld [vmem:[%s13443_s20 + $0x1d8] sm:$0xff]  }
 0x2be   : > { %3299 = vst.msk [vmem:[#allocation2 + $0x308] sm:$0xff] %vm1513_vm3, %v3187_v56  ;;  %4138 = vst.msk [vmem:[#allocation2 + $0x2e0] sm:$0xff] %vm1513_vm3, %v4026_v34  ;;  %v4027_v40 = vadd.f32 %v14997_v45, %v3407_v51  ;;  %12216 = vmatprep.mubr.msk.bf16.mxu0 %vm856_vm2, %v13231_v36  ;;  %v2578_v34 = vld [vmem:[#allocation2 + $0x360] sm:$0xff]  ;;  %v2581_v51 = vld [vmem:[#allocation2 + $0x378] sm:$0xff] }
 0x2bf   : > { %4141 = vst.msk [vmem:[#allocation2 + $0x2f8] sm:$0xff] %vm1513_vm3, %v4029_v38  ;;  %v12961_v36 = vld [vmem:[%s13443_s20 + $0x1f0] sm:$0xff]  }
 0x2c0   : > { %4139 = vst.msk [vmem:[#allocation2 + $0x2e8] sm:$0xff] %vm1513_vm3, %v4027_v40  ;;  %v11994_v16 = vpop.f32.mrb[232].mxu0 }
 0x2c1   : > { %v3192_v35 = vadd.f32 %v11994_v16, %v2572_v15  ;;  %v3043_v2 = vpop.f32.mrb[233].mxu0  ;;  %v2579_v16 = vld [vmem:[#allocation2 + $0x368] sm:$0xff] }
 0x2c2   : > { %v3190_v44 = vadd.f32 %v3043_v2, %v2570_v63  ;;  %v11995_v19 = vpop.f32.mrb[234].mxu0  ;;  %v3412_v57 = vld [vmem:[#allocation2 + $0x310] sm:$0xff] }
 0x2c3   : > { %3304 = vst.msk [vmem:[#allocation2 + $0x330] sm:$0xff] %vm1513_vm3, %v3192_v35  ;;  %v3193_v45 = vadd.f32 %v11995_v19, %v2573_v18  ;;  %v4032_v3 = vadd.f32 %v15004_v21, %v3412_v57  ;;  %v3046_v29 = vpop.f32.mrb[235].mxu0  ;;  %v3410_v4 = vld [vmem:[#allocation2 + $0x300] sm:$0xff] }
 0x2c4   : > { %3302 = vst.msk [vmem:[#allocation2 + $0x320] sm:$0xff] %vm1513_vm3, %v3190_v44  ;;  %v3191_v11 = vadd.f32 %v3046_v29, %v2571_v52  ;;  %v4030_v54 = vadd.f32 %v15011_v50, %v3410_v4  ;;  %v3413_v37 = vld [vmem:[#allocation2 + $0x318] sm:$0xff]  ;;  %v2576_v50 = vld [vmem:[#allocation2 + $0x350] sm:$0xff] }
 0x2c5   : > { %3305 = vst.msk [vmem:[#allocation2 + $0x338] sm:$0xff] %vm1513_vm3, %v3193_v45  ;;  %4144 = vst.msk [vmem:[#allocation2 + $0x310] sm:$0xff] %vm1513_vm3, %v4032_v3  ;;  %v4033_v8 = vadd.f32 %v15018_v9, %v3413_v37  ;;  %v3411_v39 = vld [vmem:[#allocation2 + $0x308] sm:$0xff]  ;;  %12217 = vmatmul.mubr.msk.bf16.gmra.mrb[84].mxu0 %vm856_vm2, %v13232_v55  ;;  %v12962_v4 = vld [vmem:[%s13443_s20 + $0x1f8] sm:$0xff]  }
 0x2c6   : > { %3303 = vst.msk [vmem:[#allocation2 + $0x328] sm:$0xff] %vm1513_vm3, %v3191_v11  ;;  %4142 = vst.msk [vmem:[#allocation2 + $0x300] sm:$0xff] %vm1513_vm3, %v4030_v54  ;;  %v4031_v21 = vadd.f32 %v15021_v53, %v3411_v39  ;;  %12220 = vmatprep.mubr.msk.bf16.mxu0 %vm856_vm2, %v13233_v41  ;;  %v13236_v45 = vld [vmem:[%s13443_s20 + $0x1e8] sm:$0xff]   ;;  %v4161_v37 = vld [vmem:[#allocation2 + $0x18] sm:$0xff]  ;;  %s13306_s20 = smov 18  }
 0x2c7   : > { %4145 = vst.msk [vmem:[#allocation2 + $0x318] sm:$0xff] %vm1513_vm3, %v4033_v8 }
 0x2c8   : > { %4143 = vst.msk [vmem:[#allocation2 + $0x308] sm:$0xff] %vm1513_vm3, %v4031_v21  ;;  %v11998_v49 = vpop.f32.mrb[236].mxu0  ;;  %v4159_v21 = vld [vmem:[#allocation2 + $0x8] sm:$0xff] }
 0x2c9   : > { %v3196_v9 = vadd.f32 %v11998_v49, %v2576_v50  ;;  %v3059_v17 = vpop.f32.mrb[237].mxu0 }
 0x2ca   : > { %v3194_v7 = vadd.f32 %v3059_v17, %v2574_v25  ;;  %v11999_v59 = vpop.f32.mrb[238].mxu0  ;;  %v3416_v30 = vld [vmem:[#allocation2 + $0x330] sm:$0xff] }
 0x2cb   : > { %3308 = vst.msk [vmem:[#allocation2 + $0x350] sm:$0xff] %vm1513_vm3, %v3196_v9  ;;  %v3197_v53 = vadd.f32 %v11999_v59, %v2577_v24  ;;  %v4036_v27 = vadd.f32 %v15028_v12, %v3416_v30  ;;  %v3062_v47 = vpop.f32.mrb[239].mxu0  ;;  %v3414_v26 = vld [vmem:[#allocation2 + $0x320] sm:$0xff] }
 0x2cc   : > { %3306 = vst.msk [vmem:[#allocation2 + $0x340] sm:$0xff] %vm1513_vm3, %v3194_v7  ;;  %v3195_v60 = vadd.f32 %v3062_v47, %v2575_v42  ;;  %v4034_v58 = vadd.f32 %v15035_v31, %v3414_v26  ;;  %v3417_v20 = vld [vmem:[#allocation2 + $0x338] sm:$0xff]  ;;  %v2580_v31 = vld [vmem:[#allocation2 + $0x370] sm:$0xff]  ;;  %v4162_v59 = vld [vmem:[#allocation2 + $0x20] sm:$0xff] }
 0x2cd   : > { %3309 = vst.msk [vmem:[#allocation2 + $0x358] sm:$0xff] %vm1513_vm3, %v3197_v53  ;;  %4148 = vst.msk [vmem:[#allocation2 + $0x330] sm:$0xff] %vm1513_vm3, %v4036_v27  ;;  %v4037_v62 = vadd.f32 %v15042_v23, %v3417_v20  ;;  %v3415_v46 = vld [vmem:[#allocation2 + $0x328] sm:$0xff]  ;;  %12221 = vmatmul.mubr.msk.bf16.gmra.mrb[88].mxu0 %vm856_vm2, %v13234_v6 }
 0x2ce   : > { %3307 = vst.msk [vmem:[#allocation2 + $0x348] sm:$0xff] %vm1513_vm3, %v3195_v60  ;;  %4146 = vst.msk [vmem:[#allocation2 + $0x320] sm:$0xff] %vm1513_vm3, %v4034_v58  ;;  %v4035_v12 = vadd.f32 %v15045_v13, %v3415_v46  ;;  %12224 = vmatprep.mubr.msk.bf16.mxu0 %vm856_vm2, %v13235_v32  ;;  %v4163_v47 = vld [vmem:[#allocation2 + $0x28] sm:$0xff]  ;;  %v4168_v60 = vld [vmem:[#allocation2 + $0x50] sm:$0xff] }
 0x2cf   : > { %4149 = vst.msk [vmem:[#allocation2 + $0x338] sm:$0xff] %vm1513_vm3, %v4037_v62  ;;  %v4166_v62 = vld [vmem:[#allocation2 + $0x40] sm:$0xff] }
 0x2d0   : > { %4147 = vst.msk [vmem:[#allocation2 + $0x328] sm:$0xff] %vm1513_vm3, %v4035_v12  ;;  %v12002_v23 = vpop.f32.mrb[240].mxu0  ;;  %v4169_v12 = vld [vmem:[#allocation2 + $0x58] sm:$0xff] }
 0x2d1   : > { %v3200_v56 = vadd.f32 %v12002_v23, %v2580_v31  ;;  %v3075_v43 = vpop.f32.mrb[241].mxu0  ;;  %v4167_v23 = vld [vmem:[#allocation2 + $0x48] sm:$0xff] }
 0x2d2   : > { %v3198_v38 = vadd.f32 %v3075_v43, %v2578_v34  ;;  %v12003_v0 = vpop.f32.mrb[242].mxu0  ;;  %v3420_v40 = vld [vmem:[#allocation2 + $0x350] sm:$0xff] }
 0x2d3   : > { %3312 = vst.msk [vmem:[#allocation2 + $0x370] sm:$0xff] %vm1513_vm3, %v3200_v56  ;;  %v3201_v13 = vadd.f32 %v12003_v0, %v2581_v51  ;;  %v4040_v15 = vadd.f32 %v15052_v33, %v3420_v40  ;;  %v3078_v35 = vpop.f32.mrb[243].mxu0  ;;  %v3418_v63 = vld [vmem:[#allocation2 + $0x340] sm:$0xff]  ;;  %v4172_v43 = vld [vmem:[#allocation2 + $0x70] sm:$0xff] }
 0x2d4   : > { %3310 = vst.msk [vmem:[#allocation2 + $0x360] sm:$0xff] %vm1513_vm3, %v3198_v38  ;;  %v3199_v2 = vadd.f32 %v3078_v35, %v2579_v16  ;;  %v4038_v44 = vadd.f32 %v15059_v48, %v3418_v63  ;;  %v3421_v18 = vld [vmem:[#allocation2 + $0x358] sm:$0xff]  ;;  %v4160_v48 = vld [vmem:[#allocation2 + $0x10] sm:$0xff]  ;;  %v4170_v0 = vld [vmem:[#allocation2 + $0x60] sm:$0xff] }
 0x2d5   : > { %3313 = vst.msk [vmem:[#allocation2 + $0x378] sm:$0xff] %vm1513_vm3, %v3201_v13  ;;  %4152 = vst.msk [vmem:[#allocation2 + $0x350] sm:$0xff] %vm1513_vm3, %v4040_v15  ;;  %v4041_v19 = vadd.f32 %v15066_v14, %v3421_v18  ;;  %v3419_v57 = vld [vmem:[#allocation2 + $0x348] sm:$0xff]  ;;  %12225 = vmatmul.mubr.msk.bf16.gmra.mrb[92].mxu0 %vm856_vm2, %v13236_v45  ;;  %v4158_v14 = vld [vmem:[#allocation2] sm:$0xff] }
 0x2d6   : > { %3311 = vst.msk [vmem:[#allocation2 + $0x368] sm:$0xff] %vm1513_vm3, %v3199_v2  ;;  %4150 = vst.msk [vmem:[#allocation2 + $0x340] sm:$0xff] %vm1513_vm3, %v4038_v44  ;;  %v4039_v33 = vadd.f32 %v15069_v5, %v3419_v57  ;;  %12228 = vmatprep.mubr.msk.bf16.mxu0 %vm856_vm2, %v12961_v36  ;;  %v4173_v13 = vld [vmem:[#allocation2 + $0x78] sm:$0xff]  ;;  %v4171_v35 = vld [vmem:[#allocation2 + $0x68] sm:$0xff] }
 0x2d7   : > { %4153 = vst.msk [vmem:[#allocation2 + $0x358] sm:$0xff] %vm1513_vm3, %v4041_v19  ;;  %v4176_v44 = vld [vmem:[#allocation2 + $0x90] sm:$0xff]  ;;  %v4174_v57 = vld [vmem:[#allocation2 + $0x80] sm:$0xff] }
 0x2d8   : > { %4151 = vst.msk [vmem:[#allocation2 + $0x348] sm:$0xff] %vm1513_vm3, %v4039_v33  ;;  %v12122_v3 = vpop.f32.mrb[244].mxu0 }
 0x2d9   : > { %v4780_v52 = vadd.f32 %v12122_v3, %v4160_v48  ;;  %v4331_v29 = vpop.f32.mrb[245].mxu0  ;;  %v4177_v48 = vld [vmem:[#allocation2 + $0x98] sm:$0xff] }
 0x2da   : > { %v4778_v11 = vadd.f32 %v4331_v29, %v4158_v14  ;;  %v3424_v54 = vld [vmem:[#allocation2 + $0x370] sm:$0xff]  ;;  %v12123_v8 = vpop.f32.mrb[246].mxu0  ;;  %v4175_v14 = vld [vmem:[#allocation2 + $0x88] sm:$0xff] }
 0x2db   : > { %4892 = vst.msk [vmem:[#allocation2 + $0x10] sm:$0xff] %vm1513_vm3, %v4780_v52  ;;  %v4044_v5 = vadd.f32 %v15076_v28, %v3424_v54  ;;  %v4781_v39 = vadd.f32 %v12123_v8, %v4161_v37  ;;  %v3422_v55 = vld [vmem:[#allocation2 + $0x360] sm:$0xff]  ;;  %v4334_v41 = vpop.f32.mrb[247].mxu0 }
 0x2dc   : > { %4890 = vst.msk [vmem:[#allocation2] sm:$0xff] %vm1513_vm3, %v4778_v11  ;;  %v4042_v50 = vadd.f32 %v15083_v61, %v3422_v55  ;;  %v4779_v49 = vadd.f32 %v4334_v41, %v4159_v21  ;;  %v3425_v9 = vld [vmem:[#allocation2 + $0x378] sm:$0xff]  ;;  %v4164_v61 = vld [vmem:[#allocation2 + $0x30] sm:$0xff] }
 0x2dd   : > { %4156 = vst.msk [vmem:[#allocation2 + $0x370] sm:$0xff] %vm1513_vm3, %v4044_v5  ;;  %4893 = vst.msk [vmem:[#allocation2 + $0x18] sm:$0xff] %vm1513_vm3, %v4781_v39  ;;  %v4045_v25 = vadd.f32 %v15090_v10, %v3425_v9  ;;  %v3423_v17 = vld [vmem:[#allocation2 + $0x368] sm:$0xff]  ;;  %12229 = vmatmul.mubr.msk.bf16.gmra.mrb[96].mxu0 %vm856_vm2, %v12962_v4  ;;  %v4165_v10 = vld [vmem:[#allocation2 + $0x38] sm:$0xff]  ;;  %vm7154_vm2 = vcmask 90160  }
 0x2de   : > { %4154 = vst.msk [vmem:[#allocation2 + $0x360] sm:$0xff] %vm1513_vm3, %v4042_v50  ;;  %4891 = vst.msk [vmem:[#allocation2 + $0x8] sm:$0xff] %vm1513_vm3, %v4779_v49  ;;  %v4043_v28 = vadd.f32 %v15093_v22, %v3423_v17  ;;  %v4180_v49 = vld [vmem:[#allocation2 + $0xb0] sm:$0xff] }
 0x2df   : > { %4157 = vst.msk [vmem:[#allocation2 + $0x378] sm:$0xff] %vm1513_vm3, %v4045_v25 }
 0x2e0   : > { %4155 = vst.msk [vmem:[#allocation2 + $0x368] sm:$0xff] %vm1513_vm3, %v4043_v28  ;;  %v12126_v7 = vpop.f32.mrb[248].mxu0 }
 0x2e1   : > { %v4784_v24 = vadd.f32 %v12126_v7, %v4164_v61  ;;  %v4347_v30 = vpop.f32.mrb[249].mxu0  ;;  %v4178_v7 = vld [vmem:[#allocation2 + $0xa0] sm:$0xff] }
 0x2e2   : > { %v4782_v53 = vadd.f32 %v4347_v30, %v4162_v59  ;;  %v12127_v27 = vpop.f32.mrb[250].mxu0  ;;  %v15281_v41 = vld [vmem:[#allocation2 + $0x10] sm:$0xff] }
 0x2e3   : > { %4896 = vst.msk [vmem:[#allocation2 + $0x30] sm:$0xff] %vm1513_vm3, %v4784_v24  ;;  %v4785_v42 = vadd.f32 %v12127_v27, %v4165_v10  ;;  %v4350_v26 = vpop.f32.mrb[251].mxu0  ;;  %v15279_v21 = vld [vmem:[#allocation2] sm:$0xff] }
 0x2e4   : > { %4894 = vst.msk [vmem:[#allocation2 + $0x20] sm:$0xff] %vm1513_vm3, %v4782_v53  ;;  %v4783_v22 = vadd.f32 %v4350_v26, %v4163_v47  ;;  %v15274_v8 = vld [vmem:[#allocation2 + $0x18] sm:$0xff]  ;;  %v5222_v26 = vrot.slane %v15279_v21, 1 }
 0x2e5   : > { %4897 = vst.msk [vmem:[#allocation2 + $0x38] sm:$0xff] %vm1513_vm3, %v4785_v42  ;;  %v15272_v54 = vld [vmem:[#allocation2 + $0x8] sm:$0xff]  ;;  %v5227_v28 = vrot.slane %v15274_v8, 1  ;;  %v4181_v42 = vld [vmem:[#allocation2 + $0xb8] sm:$0xff] }
 0x2e6   : > { %4895 = vst.msk [vmem:[#allocation2 + $0x28] sm:$0xff] %vm1513_vm3, %v4783_v22  ;;  %v5223_v25 = vrot.slane %v15272_v54, 1  ;;  %v5225_v22 = vrot.slane %v15281_v41, 1 }
 0x2e8   : > { %v12130_v58 = vpop.f32.mrb[252].mxu0 }
 0x2e9   : > { %v4788_v20 = vadd.f32 %v12130_v58, %v4168_v60  ;;  %v4363_v46 = vpop.f32.mrb[253].mxu0  ;;  %v4179_v58 = vld [vmem:[#allocation2 + $0xa8] sm:$0xff] }
 0x2ea   : > { %v4786_v6 = vadd.f32 %v4363_v46, %v4166_v62  ;;  %v12131_v32 = vpop.f32.mrb[254].mxu0  ;;  %v5008_v37 = vld [vmem:[#allocation2 + $0x30] sm:$0xff] }
 0x2eb   : > { %4900 = vst.msk [vmem:[#allocation2 + $0x50] sm:$0xff] %vm1513_vm3, %v4788_v20  ;;  %v4789_v31 = vadd.f32 %v12131_v32, %v4169_v12  ;;  %v4366_v56 = vpop.f32.mrb[255].mxu0  ;;  %v5006_v5 = vld [vmem:[#allocation2 + $0x20] sm:$0xff]  ;;  %v5233_v17 = vrot.slane %v5008_v37, 1 }
 0x2ec   : > { %4898 = vst.msk [vmem:[#allocation2 + $0x40] sm:$0xff] %vm1513_vm3, %v4786_v6  ;;  %v4787_v34 = vadd.f32 %v4366_v56, %v4167_v23  ;;  %v5009_v39 = vld [vmem:[#allocation2 + $0x38] sm:$0xff]  ;;  %v5229_v59 = vrot.slane %v5006_v5, 1  ;;  %v5228_v23 = vsel %vm1025_vm0, %v5225_v22, %v5227_v28 }
 0x2ed   : > { %4901 = vst.msk [vmem:[#allocation2 + $0x58] sm:$0xff] %vm1513_vm3, %v4789_v31  ;;  %v5007_v11 = vld [vmem:[#allocation2 + $0x28] sm:$0xff]  ;;  %v5235_v30 = vrot.slane %v5009_v39, 1  ;;  %v5224_v31 = vsel %vm1025_vm0, %v5222_v26, %v5223_v25 }
 0x2ee   : > { %4899 = vst.msk [vmem:[#allocation2 + $0x48] sm:$0xff] %vm1513_vm3, %v4787_v34  ;;  %v5231_v50 = vrot.slane %v5007_v11, 1  ;;  %v5226_v34 = vsel %vm1025_vm0, %v5223_v25, %v5225_v22 }
 0x2f0   : > { %v12134_v38 = vpop.f32.mrb[0].mxu0  ;;  %v5232_v62 = vsel %vm1025_vm0, %v5229_v59, %v5231_v50  ;;  %v5234_v46 = vsel %vm1025_vm0, %v5231_v50, %v5233_v17 }
 0x2f1   : > { %v4792_v51 = vadd.f32 %v12134_v38, %v4172_v43  ;;  %v4379_v40 = vpop.f32.mrb[1].mxu0  ;;  %v5230_v43 = vsel %vm1025_vm0, %v5227_v28, %v5229_v59  ;;  %v5236_v38 = vsel %vm1025_vm0, %v5233_v17, %v5235_v30 }
 0x2f2   : > { %v4790_v36 = vadd.f32 %v4379_v40, %v4170_v0  ;;  %v12135_v15 = vpop.f32.mrb[2].mxu0  ;;  %v5012_v12 = vld [vmem:[#allocation2 + $0x50] sm:$0xff]  ;;  %v15307_v40 = vmax.f32 %v5006_v5, %v5232_v62 }
 0x2f3   : > { %4904 = vst.msk [vmem:[#allocation2 + $0x70] sm:$0xff] %vm1513_vm3, %v4792_v51  ;;  %v4793_v16 = vadd.f32 %v12135_v15, %v4173_v13  ;;  %v4382_v63 = vpop.f32.mrb[3].mxu0  ;;  %v15277_v55 = vld [vmem:[#allocation2 + $0x40] sm:$0xff]  ;;  %v5241_v15 = vrot.slane %v5012_v12, 1 }
 0x2f4   : > { %4902 = vst.msk [vmem:[#allocation2 + $0x60] sm:$0xff] %vm1513_vm3, %v4790_v36  ;;  %v4791_v2 = vadd.f32 %v4382_v63, %v4171_v35  ;;  %v5237_v53 = vrot.slane %v15277_v55, 1  ;;  %v15286_v10 = vld [vmem:[#allocation2 + $0x58] sm:$0xff]  ;;  %v15309_v36 = vmax.f32 %v5007_v11, %v5234_v46  ;;  %v4184_v35 = vld [vmem:[#allocation2 + $0xd0] sm:$0xff] }
 0x2f5   : > { %4905 = vst.msk [vmem:[#allocation2 + $0x78] sm:$0xff] %vm1513_vm3, %v4793_v16  ;;  %v15293_v6 = vld [vmem:[#allocation2 + $0x48] sm:$0xff]  ;;  %v5243_v56 = vrot.slane %v15286_v10, 1  ;;  %v5545_v16 = vmax.f32 %v15279_v21, %v5224_v31  ;;  %v4185_v11 = vld [vmem:[#allocation2 + $0xd8] sm:$0xff] }
 0x2f6   : > { %4903 = vst.msk [vmem:[#allocation2 + $0x68] sm:$0xff] %vm1513_vm3, %v4791_v2  ;;  %v5238_v51 = vsel %vm1025_vm0, %v5235_v30, %v5237_v53  ;;  %v5239_v13 = vrot.slane %v15293_v6, 1 }
 0x2f7   : > { %v15329_v5 = vmax.f32 %v5545_v16, %v15307_v40 }
 0x2f8   : > { %v12138_v18 = vpop.f32.mrb[4].mxu0  ;;  %v5240_v21 = vsel %vm1025_vm0, %v5237_v53, %v5239_v13  ;;  %v5242_v53 = vsel %vm1025_vm0, %v5239_v13, %v5241_v15 }
 0x2f9   : > { %v4796_v19 = vadd.f32 %v12138_v18, %v4176_v44  ;;  %v4395_v45 = vpop.f32.mrb[5].mxu0  ;;  %v5546_v18 = vmax.f32 %v15272_v54, %v5226_v34  ;;  %v15361_v22 = vmax.f32 %v15277_v55, %v5240_v21  ;;  %v4188_v55 = vld [vmem:[#allocation2 + $0xf0] sm:$0xff] }
 0x2fa   : > { %v4794_v33 = vadd.f32 %v4395_v45, %v4174_v57  ;;  %v12139_v3 = vpop.f32.mrb[6].mxu0  ;;  %v15320_v57 = vmax.f32 %v5009_v39, %v5238_v51  ;;  %v5244_v45 = vsel %vm1025_vm0, %v5241_v15, %v5243_v56  ;;  %v4186_v15 = vld [vmem:[#allocation2 + $0xe0] sm:$0xff] }
 0x2fb   : > { %4908 = vst.msk [vmem:[#allocation2 + $0x90] sm:$0xff] %vm1513_vm3, %v4796_v19  ;;  %v4797_v52 = vadd.f32 %v12139_v3, %v4177_v48  ;;  %v4398_v29 = vpop.f32.mrb[7].mxu0  ;;  %v15318_v19 = vmax.f32 %v5008_v37, %v5236_v38  ;;  %v4182_v48 = vld [vmem:[#allocation2 + $0xc0] sm:$0xff]  ;;  %v4183_v37 = vld [vmem:[#allocation2 + $0xc8] sm:$0xff]  ;;  %v15332_v39 = vmax.f32 %v5546_v18, %v15309_v36  ;;  %v15340_v28 = vmax.f32 %v5012_v12, %v5244_v45  ;;  %v4189_v45 = vld [vmem:[#allocation2 + $0xf8] sm:$0xff] }
 0x2fc   : > { %4906 = vst.msk [vmem:[#allocation2 + $0x80] sm:$0xff] %vm1513_vm3, %v4794_v33  ;;  %v4795_v4 = vadd.f32 %v4398_v29, %v4175_v14  ;;  %v5547_v14 = vmax.f32 %v15281_v41, %v5228_v23  ;;  %v5548_v29 = vmax.f32 %v15274_v8, %v5230_v43  ;;  %v15338_v17 = vld [vmem:[#allocation2 + $0x60] sm:$0xff] }
 0x2fd   : > { %4909 = vst.msk [vmem:[#allocation2 + $0x98] sm:$0xff] %vm1513_vm3, %v4797_v52  ;;  %v5245_v62 = vrot.slane %v15338_v17, 1  ;;  %v5883_v46 = vpack.c.bf16 %v15332_v39, %v15329_v5  ;;  %v5681_v31 = vmax.f32 %v15318_v19, %v15340_v28 }
 0x2fe   : > { %4907 = vst.msk [vmem:[#allocation2 + $0x88] sm:$0xff] %vm1513_vm3, %v4795_v4  ;;  %v15348_v59 = vmax.f32 %v5547_v14, %v15318_v19  ;;  %v15351_v30 = vmax.f32 %v5548_v29, %v15320_v57  ;;  %v4187_v29 = vld [vmem:[#allocation2 + $0xe8] sm:$0xff] }
 0x300   : > { %v12142_v9 = vpop.f32.mrb[8].mxu0 }
 0x301   : > { %v4800_v61 = vadd.f32 %v12142_v9, %v4180_v49  ;;  %v4411_v24 = vpop.f32.mrb[9].mxu0 }
 0x302   : > { %v4798_v27 = vadd.f32 %v4411_v24, %v4178_v7  ;;  %v12143_v47 = vpop.f32.mrb[10].mxu0  ;;  %v15315_v44 = vld [vmem:[#allocation2 + $0x90] sm:$0xff] }
 0x303   : > { %4912 = vst.msk [vmem:[#allocation2 + $0xb0] sm:$0xff] %vm1513_vm3, %v4800_v61  ;;  %v4801_v60 = vadd.f32 %v12143_v47, %v4181_v42  ;;  %v4414_v20 = vpop.f32.mrb[11].mxu0  ;;  %v15313_v2 = vld [vmem:[#allocation2 + $0x80] sm:$0xff]  ;;  %v5257_v25 = vrot.slane %v15315_v44, 1 }
 0x304   : > { %4910 = vst.msk [vmem:[#allocation2 + $0xa0] sm:$0xff] %vm1513_vm3, %v4798_v27  ;;  %v4799_v32 = vadd.f32 %v4414_v20, %v4179_v58  ;;  %v5253_v8 = vrot.slane %v15313_v2, 1  ;;  %v15343_v7 = vld [vmem:[#allocation2 + $0x98] sm:$0xff] }
 0x305   : > { %4913 = vst.msk [vmem:[#allocation2 + $0xb8] sm:$0xff] %vm1513_vm3, %v4801_v60  ;;  %v15305_v0 = vld [vmem:[#allocation2 + $0x88] sm:$0xff]  ;;  %v5259_v12 = vrot.slane %v15343_v7, 1 }
 0x306   : > { %4911 = vst.msk [vmem:[#allocation2 + $0xa8] sm:$0xff] %vm1513_vm3, %v4799_v32  ;;  %v5255_v52 = vrot.slane %v15305_v0, 1  ;;  %v15369_v32 = vmax.f32 %v15293_v6, %v5242_v53 }
 0x307   : > { %v5260_v5 = vsel %vm1025_vm0, %v5257_v25, %v5259_v12 }
 0x308   : > { %v12146_v63 = vpop.f32.mrb[12].mxu0  ;;  %v5256_v42 = vsel %vm1025_vm0, %v5253_v8, %v5255_v52  ;;  %v5258_v47 = vsel %vm1025_vm0, %v5255_v52, %v5257_v25  ;;  %v15395_v52 = vld [vmem:[#allocation2 + $0x68] sm:$0xff]  ;;  %v5680_v25 = vmax.f32 %v15309_v36, %v15369_v32 }
 0x309   : > { %v4804_v33 = vadd.f32 %v12146_v63, %v4184_v35  ;;  %v4427_v3 = vpop.f32.mrb[13].mxu0  ;;  %v15376_v38 = vmax.f32 %v15313_v2, %v5256_v42  ;;  %v15379_v51 = vmax.f32 %v15305_v0, %v5258_v47  ;;  %v5246_v0 = vsel %vm1025_vm0, %v5243_v56, %v5245_v62 }
 0x30a   : > { %v4802_v4 = vadd.f32 %v4427_v3, %v4182_v48  ;;  %v12147_v54 = vpop.f32.mrb[14].mxu0  ;;  %v5024_v41 = vld [vmem:[#allocation2 + $0xb0] sm:$0xff]  ;;  %v5884_v48 = vpack.c.bf16 %v15351_v30, %v15348_v59  ;;  %v5679_v3 = vmax.f32 %v15307_v40, %v15361_v22  ;;  %v5247_v47 = vrot.slane %v15395_v52, 1 }
 0x30b   : > { %4916 = vst.msk [vmem:[#allocation2 + $0xd0] sm:$0xff] %vm1513_vm3, %v4804_v33  ;;  %v4805_v50 = vadd.f32 %v12147_v54, %v4185_v11  ;;  %v4430_v49 = vpop.f32.mrb[15].mxu0  ;;  %v5022_v9 = vld [vmem:[#allocation2 + $0xa0] sm:$0xff]  ;;  %v5265_v20 = vrot.slane %v5024_v41, 1  ;;  %v15428_v36 = vmax.f32 %v15286_v10, %v5246_v0  ;;  %v4196_v59 = vld [vmem:[#allocation2 + $0x130] sm:$0xff] }
 0x30c   : > { %4914 = vst.msk [vmem:[#allocation2 + $0xc0] sm:$0xff] %vm1513_vm3, %v4802_v4  ;;  %v4803_v61 = vadd.f32 %v4430_v49, %v4183_v37  ;;  %v15345_v24 = vld [vmem:[#allocation2 + $0xb8] sm:$0xff]  ;;  %v5261_v60 = vrot.slane %v5022_v9, 1 }
 0x30d   : > { %4917 = vst.msk [vmem:[#allocation2 + $0xd8] sm:$0xff] %vm1513_vm3, %v4805_v50  ;;  %v5023_v27 = vld [vmem:[#allocation2 + $0xa8] sm:$0xff]  ;;  %v5267_v26 = vrot.slane %v15345_v24, 1 }
 0x30e   : > { %4915 = vst.msk [vmem:[#allocation2 + $0xc8] sm:$0xff] %vm1513_vm3, %v4803_v61  ;;  %v5263_v58 = vrot.slane %v5023_v27, 1  ;;  %v5262_v21 = vsel %vm1025_vm0, %v5259_v12, %v5261_v60  ;;  %v15409_v61 = vld [vmem:[#allocation2 + $0x70] sm:$0xff] }
 0x30f   : > { %v5268_v63 = vsel %vm1025_vm0, %v5265_v20, %v5267_v26  ;;  %v15422_v12 = vmax.f32 %v15343_v7, %v5262_v21 }
 0x310   : > { %v12150_v23 = vpop.f32.mrb[16].mxu0  ;;  %v5264_v34 = vsel %vm1025_vm0, %v5261_v60, %v5263_v58  ;;  %v5266_v43 = vsel %vm1025_vm0, %v5263_v58, %v5265_v20  ;;  %v15405_v49 = vmax.f32 %v5024_v41, %v5268_v63  ;;  %v15419_v60 = vmax.f32 %v15315_v44, %v5260_v5 }
 0x311   : > { %v4808_v13 = vadd.f32 %v12150_v23, %v4188_v55  ;;  %v4443_v16 = vpop.f32.mrb[17].mxu0  ;;  %v15381_v6 = vmax.f32 %v5022_v9, %v5264_v34  ;;  %v15383_v35 = vmax.f32 %v5023_v27, %v5266_v43  ;;  %v5249_v23 = vrot.slane %v15409_v61, 1  ;;  %v5017_v34 = vld [vmem:[#allocation2 + $0x78] sm:$0xff]  ;;  %v4192_v43 = vld [vmem:[#allocation2 + $0x110] sm:$0xff] }
 0x312   : > { %v4806_v18 = vadd.f32 %v4443_v16, %v4186_v15  ;;  %v12151_v33 = vpop.f32.mrb[18].mxu0  ;;  %v5028_v39 = vld [vmem:[#allocation2 + $0xd0] sm:$0xff]  ;;  %v5693_v44 = vmax.f32 %v15419_v60, %v15405_v49  ;;  %v4190_v16 = vld [vmem:[#allocation2 + $0x100] sm:$0xff] }
 0x313   : > { %4920 = vst.msk [vmem:[#allocation2 + $0xf0] sm:$0xff] %vm1513_vm3, %v4808_v13  ;;  %v4809_v14 = vadd.f32 %v12151_v33, %v4189_v45  ;;  %v4446_v4 = vpop.f32.mrb[19].mxu0  ;;  %v5691_v11 = vmax.f32 %v15376_v38, %v15381_v6  ;;  %v5692_v54 = vmax.f32 %v15379_v51, %v15383_v35  ;;  %v5026_v37 = vld [vmem:[#allocation2 + $0xc0] sm:$0xff]  ;;  %v5273_v20 = vrot.slane %v5028_v39, 1  ;;  %v4193_v33 = vld [vmem:[#allocation2 + $0x118] sm:$0xff] }
 0x314   : > { %4918 = vst.msk [vmem:[#allocation2 + $0xe0] sm:$0xff] %vm1513_vm3, %v4806_v18  ;;  %v4807_v56 = vadd.f32 %v4446_v4, %v4187_v29  ;;  %v5269_v50 = vrot.slane %v5026_v37, 1  ;;  %v15407_v9 = vld [vmem:[#allocation2 + $0xd8] sm:$0xff]  ;;  %v5250_v29 = vsel %vm1025_vm0, %v5247_v47, %v5249_v23  ;;  %v5251_v4 = vrot.slane %v5017_v34, 1 }
 0x315   : > { %4921 = vst.msk [vmem:[#allocation2 + $0xf8] sm:$0xff] %vm1513_vm3, %v4809_v14  ;;  %v5891_v53 = vpack.c.bf16 %v5692_v54, %v5691_v11  ;;  %v5027_v27 = vld [vmem:[#allocation2 + $0xc8] sm:$0xff]  ;;  %v5275_v42 = vrot.slane %v15407_v9, 1  ;;  %v5248_v14 = vsel %vm1025_vm0, %v5245_v62, %v5247_v47 }
 0x316   : > { %4919 = vst.msk [vmem:[#allocation2 + $0xe8] sm:$0xff] %vm1513_vm3, %v4807_v56  ;;  %v5270_v41 = vsel %vm1025_vm0, %v5267_v26, %v5269_v50  ;;  %v5271_v58 = vrot.slane %v5027_v27, 1  ;;  %v4191_v54 = vld [vmem:[#allocation2 + $0x108] sm:$0xff] }
 0x317   : > { %11230 = vmatprep.subr.bf16.mxu1 %v5891_v53  ;;  %v15425_v55 = vmax.f32 %v15345_v24, %v5270_v41  ;;  %v5276_v15 = vsel %vm1025_vm0, %v5273_v20, %v5275_v42 }
 0x318   : > { %v12154_v26 = vpop.f32.mrb[20].mxu0  ;;  %11231 = vmatpush3.bf16.msra.mxu1 %v5883_v46  ;;  %v5272_v13 = vsel %vm1025_vm0, %v5269_v50, %v5271_v58  ;;  %v5274_v7 = vsel %vm1025_vm0, %v5271_v58, %v5273_v20  ;;  %v15452_v47 = vmax.f32 %v5028_v39, %v5276_v15  ;;  %v5254_v58 = vsel %vm1025_vm0, %v5251_v4, %v5253_v8 }
 0x319   : > { %v4812_v24 = vadd.f32 %v12154_v26, %v4192_v43  ;;  %v4459_v63 = vpop.f32.mrb[21].mxu0  ;;  %v5694_v10 = vmax.f32 %v15422_v12, %v15425_v55  ;;  %v15438_v18 = vmax.f32 %v5026_v37, %v5272_v13  ;;  %v15440_v45 = vmax.f32 %v5027_v27, %v5274_v7  ;;  %v4194_v7 = vld [vmem:[#allocation2 + $0x120] sm:$0xff] }
 0x31a   : > { %v4810_v46 = vadd.f32 %v4459_v63, %v4190_v16  ;;  %v12155_v0 = vpop.f32.mrb[22].mxu0  ;;  %v5032_v53 = vld [vmem:[#allocation2 + $0xf0] sm:$0xff]  ;;  %v5682_v20 = vmax.f32 %v15320_v57, %v15428_v36  ;;  %v15478_v57 = vmax.f32 %v15395_v52, %v5250_v29  ;;  %v4197_v16 = vld [vmem:[#allocation2 + $0x138] sm:$0xff] }
 0x31b   : > { %4924 = vst.msk [vmem:[#allocation2 + $0x110] sm:$0xff] %vm1513_vm3, %v4812_v24  ;;  %v4813_v11 = vadd.f32 %v12155_v0, %v4193_v33  ;;  %v4462_v5 = vpop.f32.mrb[23].mxu0  ;;  %v5892_v56 = vpack.c.bf16 %v5694_v10, %v5693_v44  ;;  %v5695_v37 = vmax.f32 %v15381_v6, %v15438_v18  ;;  %v5696_v21 = vmax.f32 %v15383_v35, %v15440_v45  ;;  %v5030_v50 = vld [vmem:[#allocation2 + $0xe0] sm:$0xff]  ;;  %v4195_v33 = vld [vmem:[#allocation2 + $0x128] sm:$0xff] }
 0x31c   : > { %4922 = vst.msk [vmem:[#allocation2 + $0x100] sm:$0xff] %vm1513_vm3, %v4810_v46  ;;  %v4811_v62 = vadd.f32 %v4462_v5, %v4191_v54  ;;  %v5277_v27 = vrot.slane %v5030_v50, 1  ;;  %v15454_v41 = vld [vmem:[#allocation2 + $0xf8] sm:$0xff]  ;;  %v5885_v35 = vpack.c.bf16 %v5680_v25, %v5679_v3  ;;  %v5281_v26 = vrot.slane %v5032_v53, 1 }
 0x31d   : > { %4925 = vst.msk [vmem:[#allocation2 + $0x118] sm:$0xff] %vm1513_vm3, %v4813_v11  ;;  %11232 = vmatprep.subr.bf16.mxu1 %v5892_v56  ;;  %v5893_v6 = vpack.c.bf16 %v5696_v21, %v5695_v37  ;;  %v5031_v43 = vld [vmem:[#allocation2 + $0xe8] sm:$0xff]  ;;  %v5283_v39 = vrot.slane %v15454_v41, 1  ;;  %v15472_v44 = vmax.f32 %v15338_v17, %v5248_v14  ;;  %v5252_v3 = vsel %vm1025_vm0, %v5249_v23, %v5251_v4 }
 0x31e   : > { %4923 = vst.msk [vmem:[#allocation2 + $0x108] sm:$0xff] %vm1513_vm3, %v4811_v62  ;;  %11233 = vmatpush3.bf16.msra.mxu1 %v5884_v48  ;;  %v5278_v2 = vsel %vm1025_vm0, %v5275_v42, %v5277_v27  ;;  %v5279_v8 = vrot.slane %v5031_v43, 1  ;;  %v15481_v25 = vmax.f32 %v5017_v34, %v5254_v58  ;;  %v5697_v48 = vmax.f32 %v15405_v49, %v15452_v47 }
 0x31f   : > { %11234 = vmatprep.subr.bf16.mxu1 %v5893_v6  ;;  %v15475_v40 = vmax.f32 %v15407_v9, %v5278_v2  ;;  %v5284_v13 = vsel %vm1025_vm0, %v5281_v26, %v5283_v39  ;;  %v5886_v49 = vpack.c.bf16 %v5682_v20, %v5681_v31  ;;  %v5683_v10 = vmax.f32 %v15361_v22, %v15472_v44 }
 0x320   : > { %v12158_v30 = vpop.f32.mrb[24].mxu0  ;;  %v5280_v42 = vsel %vm1025_vm0, %v5277_v27, %v5279_v8  ;;  %v5282_v17 = vsel %vm1025_vm0, %v5279_v8, %v5281_v26  ;;  %v15500_v46 = vmax.f32 %v15409_v61, %v5252_v3  ;;  %v5684_v61 = vmax.f32 %v15369_v32, %v15478_v57  ;;  %v4200_v27 = vld [vmem:[#allocation2 + $0x150] sm:$0xff]  ;;  %v4201_v3 = vld [vmem:[#allocation2 + $0x158] sm:$0xff] }
 0x321   : > { %v4816_v9 = vadd.f32 %v12158_v30, %v4196_v59  ;;  %v4475_v15 = vpop.f32.mrb[25].mxu0  ;;  %v5698_v52 = vmax.f32 %v15425_v55, %v15475_v40  ;;  %v15490_v23 = vmax.f32 %v5030_v50, %v5280_v42  ;;  %v15492_v34 = vmax.f32 %v5031_v43, %v5282_v17  ;;  %v4199_v42 = vld [vmem:[#allocation2 + $0x148] sm:$0xff] }
 0x322   : > { %v4814_v24 = vadd.f32 %v4475_v15, %v4194_v7  ;;  %v12159_v63 = vpop.f32.mrb[26].mxu0  ;;  %11235 = vmatpush3.bf16.msra.mxu1 %v5885_v35  ;;  %v5036_v31 = vld [vmem:[#allocation2 + $0x110] sm:$0xff]  ;;  %v15510_v54 = vmax.f32 %v5032_v53, %v5284_v13  ;;  %v5685_v62 = vmax.f32 %v15340_v28, %v15500_v46  ;;  %v5887_v6 = vpack.c.bf16 %v5684_v61, %v5683_v10  ;;  %v4203_v61 = vld [vmem:[#allocation2 + $0x168] sm:$0xff] }
 0x323   : > { %4928 = vst.msk [vmem:[#allocation2 + $0x130] sm:$0xff] %vm1513_vm3, %v4816_v9  ;;  %v4817_v55 = vadd.f32 %v12159_v63, %v4197_v16  ;;  %v4478_v0 = vpop.f32.mrb[27].mxu0  ;;  %v5894_v14 = vpack.c.bf16 %v5698_v52, %v5697_v48  ;;  %v5699_v29 = vmax.f32 %v15438_v18, %v15490_v23  ;;  %v5700_v4 = vmax.f32 %v15440_v45, %v15492_v34  ;;  %v5034_v19 = vld [vmem:[#allocation2 + $0x100] sm:$0xff] }
 0x324   : > { %4926 = vst.msk [vmem:[#allocation2 + $0x120] sm:$0xff] %vm1513_vm3, %v4814_v24  ;;  %v4815_v22 = vadd.f32 %v4478_v0, %v4195_v33  ;;  %v5285_v11 = vrot.slane %v5034_v19, 1  ;;  %v5037_v5 = vld [vmem:[#allocation2 + $0x118] sm:$0xff]  ;;  %v5686_v18 = vmax.f32 %v15428_v36, %v15481_v25  ;;  %v5289_v50 = vrot.slane %v5036_v31, 1 }
 0x325   : > { %4929 = vst.msk [vmem:[#allocation2 + $0x138] sm:$0xff] %vm1513_vm3, %v4817_v55  ;;  %11236 = vmatprep.subr.bf16.mxu1 %v5894_v14  ;;  %v5895_v56 = vpack.c.bf16 %v5700_v4, %v5699_v29  ;;  %v5035_v45 = vld [vmem:[#allocation2 + $0x108] sm:$0xff]  ;;  %v5291_v32 = vrot.slane %v5037_v5, 1  ;;  %v5701_v36 = vmax.f32 %v15452_v47, %v15510_v54  ;;  %v5687_v52 = vmax.f32 %v15472_v44, %v15376_v38  ;;  %v4204_v44 = vld [vmem:[#allocation2 + $0x170] sm:$0xff]  ;;  %v4202_v55 = vld [vmem:[#allocation2 + $0x160] sm:$0xff] }
 0x326   : > { %4927 = vst.msk [vmem:[#allocation2 + $0x128] sm:$0xff] %vm1513_vm3, %v4815_v22  ;;  %11237 = vmatpush3.bf16.msra.mxu1 %v5886_v49  ;;  %v5286_v37 = vsel %vm1025_vm0, %v5283_v39, %v5285_v11  ;;  %v5287_v21 = vrot.slane %v5035_v45, 1  ;;  %v4198_v39 = vld [vmem:[#allocation2 + $0x140] sm:$0xff]  ;;  %v5888_v30 = vpack.c.bf16 %v5686_v18, %v5685_v62  ;;  %v5688_v24 = vmax.f32 %v15478_v57, %v15379_v51  ;;  %v4205_v4 = vld [vmem:[#allocation2 + $0x178] sm:$0xff] }
 0x327   : > { %11238 = vmatprep.subr.bf16.mxu1 %v5895_v56  ;;  %v5576_v53 = vmax.f32 %v15454_v41, %v5286_v37  ;;  %v5292_v47 = vsel %vm1025_vm0, %v5289_v50, %v5291_v32  ;;  %v5690_v49 = vmax.f32 %v15481_v25, %v15422_v12  ;;  %v4208_v56 = vld [vmem:[#allocation2 + $0x190] sm:$0xff]  ;;  %v4206_v37 = vld [vmem:[#allocation2 + $0x180] sm:$0xff]  ;;  %v5791_v62 = vld [vmem:[%s17782_s5 + $0x38] sm:$0xff] }
 0x328   : > { %v12162_v58 = vpop.f32.mrb[28].mxu0  ;;  %v5288_v35 = vsel %vm1025_vm0, %v5285_v11, %v5287_v21  ;;  %v5290_v20 = vsel %vm1025_vm0, %v5287_v21, %v5289_v50  ;;  %v15544_v63 = vmax.f32 %v5036_v31, %v5292_v47  ;;  %v5889_v57 = vpack.c.bf16 %v5688_v24, %v5687_v52 }
 0x329   : > { %v4820_v43 = vadd.f32 %v12162_v58, %v4200_v27  ;;  %v4491_v2 = vpop.f32.mrb[29].mxu0  ;;  %v5702_v8 = vmax.f32 %v15475_v40, %v5576_v53  ;;  %v15525_v26 = vmax.f32 %v5034_v19, %v5288_v35  ;;  %v15527_v41 = vmax.f32 %v5035_v45, %v5290_v20  ;;  %v5795_v27 = vld [vmem:[%s17782_s5 + $0x54] sm:$0xff] }
 0x32a   : > { %v4818_v28 = vadd.f32 %v4491_v2, %v4198_v39  ;;  %v12163_v59 = vpop.f32.mrb[30].mxu0  ;;  %11239 = vmatpush3.bf16.msra.mxu1 %v5887_v6  ;;  %v5705_v0 = vmax.f32 %v15510_v54, %v15544_v63  ;;  %v5689_v31 = vmax.f32 %v15500_v46, %v15419_v60  ;;  %v12963_v54 = vld [vmem:[%s17782_s5] ss:$28 sps:$4 sm:$0xff]   ;;  %v13302_v46 = vmov 0.0   ;;  %v4207_v6 = vld [vmem:[#allocation2 + $0x188] sm:$0xff] }
 0x32b   : > { %4932 = vst.msk [vmem:[#allocation2 + $0x150] sm:$0xff] %vm1513_vm3, %v4820_v43  ;;  %v4821_v48 = vadd.f32 %v12163_v59, %v4201_v3  ;;  %v4494_v17 = vpop.f32.mrb[31].mxu0  ;;  %v5896_v13 = vpack.c.bf16 %v5702_v8, %v5701_v36  ;;  %v5703_v40 = vmax.f32 %v15490_v23, %v15525_v26  ;;  %v5704_v9 = vmax.f32 %v15492_v34, %v15527_v41  ;;  %v15535_v7 = vld [vmem:[#allocation2 + $0x120] sm:$0xff]  ;;  %v12966_v60 = vld [vmem:[%s17782_s5 + $0x3c] ss:$28 sps:$4 sm:$0xff]   ;;  %v5040_v8 = vld [vmem:[#allocation2 + $0x130] sm:$0xff] }
 0x32c   : > { %4930 = vst.msk [vmem:[#allocation2 + $0x140] sm:$0xff] %vm1513_vm3, %v4818_v28  ;;  %v4819_v15 = vadd.f32 %v4494_v17, %v4199_v42  ;;  %v5293_v16 = vrot.slane %v15535_v7, 1  ;;  %12232 = vmatprep.subr.bf16.mxu0 %v13302_v46  ;;  %v10655_v43 = vcombine.low %v5791_v62, %v5795_v27  ;;  %v12968_v2 = vld [vmem:[%s17782_s5 + $0x74] ss:$28 sps:$4 sm:$0xff]   ;;  %v5041_v3 = vld [vmem:[#allocation2 + $0x138] sm:$0xff]  ;;  %v4210_v17 = vld [vmem:[#allocation2 + $0x1a0] sm:$0xff]  ;;  %12244 = vmatprep.mubr.msk.bf16.mxu0 %vm13303_vm4, %v13302_v46 }
 0x32d   : > { %4933 = vst.msk [vmem:[#allocation2 + $0x158] sm:$0xff] %vm1513_vm3, %v4821_v48  ;;  %11240 = vmatprep.subr.bf16.mxu1 %v5896_v13  ;;  %v5897_v23 = vpack.c.bf16 %v5704_v9, %v5703_v40  ;;  %v5039_v35 = vld [vmem:[#allocation2 + $0x128] sm:$0xff]  ;;  %v4212_v59 = vld [vmem:[#allocation2 + $0x1b0] sm:$0xff]  ;;  %v5299_v52 = vrot.slane %v5041_v3, 1  ;;  %v4214_v27 = vld [vmem:[#allocation2 + $0x1c0] sm:$0xff] }
 0x32e   : > { %4931 = vst.msk [vmem:[#allocation2 + $0x148] sm:$0xff] %vm1513_vm3, %v4819_v15  ;;  %11241 = vmatpush3.bf16.msra.mxu1 %v5888_v30  ;;  %v5294_v34 = vsel %vm1025_vm0, %v5291_v32, %v5293_v16  ;;  %v4209_v32 = vld [vmem:[#allocation2 + $0x198] sm:$0xff]  ;;  %v5295_v28 = vrot.slane %v5039_v35, 1  ;;  %v5799_v40 = vld [vmem:[%s17782_s5 + $0x70] sm:$0xff]  ;;  %v5297_v15 = vrot.slane %v5040_v8, 1 }
 0x32f   : > { %11242 = vmatprep.subr.bf16.mxu1 %v5897_v23  ;;  %v15550_v38 = vmax.f32 %v5037_v5, %v5294_v34  ;;  %v5890_v5 = vpack.c.bf16 %v5690_v49, %v5689_v31  ;;  %v5803_v9 = vld [vmem:[%s17782_s5 + $0x8c] sm:$0xff]  ;;  %v4213_v23 = vld [vmem:[#allocation2 + $0x1b8] sm:$0xff]  ;;  %v15618_v31 = vld [vmem:[%s17782_s5 + $0xe0] sm:$0xff] }
 0x330   : > { %v12166_v51 = vpop.f32.mrb[32].mxu0 }
 0x331   : > { %v4824_v10 = vadd.f32 %v12166_v51, %v4204_v44  ;;  %v4507_v33 = vpop.f32.mrb[33].mxu0  ;;  %v5706_v14 = vmax.f32 %v5576_v53, %v15550_v38  ;;  %v5296_v44 = vsel %vm1025_vm0, %v5293_v16, %v5295_v28  ;;  %v15606_v16 = vld [vmem:[%s17782_s5 + $0xa8] sm:$0xff] }
 0x332   : > { %v4822_v29 = vadd.f32 %v4507_v33, %v4202_v55  ;;  %v12167_v19 = vpop.f32.mrb[34].mxu0  ;;  %11243 = vmatpush3.bf16.msra.mxu1 %v5889_v57  ;;  %v5044_v57 = vld [vmem:[#allocation2 + $0x150] sm:$0xff]  ;;  %v5298_v33 = vsel %vm1025_vm0, %v5295_v28, %v5297_v15 }
 0x333   : > { %4936 = vst.msk [vmem:[#allocation2 + $0x170] sm:$0xff] %vm1513_vm3, %v4824_v10  ;;  %v4825_v22 = vadd.f32 %v12167_v19, %v4205_v4  ;;  %v4510_v12 = vpop.f32.mrb[35].mxu0  ;;  %v5898_v25 = vpack.c.bf16 %v5706_v14, %v5705_v0  ;;  %v15579_v39 = vld [vmem:[#allocation2 + $0x140] sm:$0xff]  ;;  %v4211_v10 = vld [vmem:[#allocation2 + $0x1a8] sm:$0xff] }
 0x334   : > { %4934 = vst.msk [vmem:[#allocation2 + $0x160] sm:$0xff] %vm1513_vm3, %v4822_v29  ;;  %v4823_v11 = vadd.f32 %v4510_v12, %v4203_v61  ;;  %v5301_v47 = vrot.slane %v15579_v39, 1  ;;  %v15586_v48 = vld [vmem:[#allocation2 + $0x158] sm:$0xff]  ;;  %v10662_v29 = vcombine.low %v5799_v40, %v5803_v9  ;;  %v15613_v19 = vld [vmem:[%s17782_s5 + $0xc4] sm:$0xff]  ;;  %v15626_v61 = vmax.f32 %v15535_v7, %v5296_v44 }
 0x335   : > { %4937 = vst.msk [vmem:[#allocation2 + $0x178] sm:$0xff] %vm1513_vm3, %v4825_v22  ;;  %11244 = vmatprep.subr.bf16.mxu1 %v5898_v25  ;;  %v15597_v51 = vld [vmem:[#allocation2 + $0x148] sm:$0xff]  ;;  %v5307_v0 = vrot.slane %v15586_v48, 1  ;;  %v15623_v22 = vld [vmem:[%s17782_s5 + $0xfc] sm:$0xff]  ;;  %v5300_v12 = vsel %vm1025_vm0, %v5297_v15, %v5299_v52 }
 0x336   : > { %4935 = vst.msk [vmem:[#allocation2 + $0x168] sm:$0xff] %vm1513_vm3, %v4823_v11  ;;  %11245 = vmatpush3.bf16.msra.mxu1 %v5890_v5  ;;  %v5302_v4 = vsel %vm1025_vm0, %v5299_v52, %v5301_v47  ;;  %v5303_v25 = vrot.slane %v15597_v51, 1  ;;  %v5305_v11 = vrot.slane %v5044_v57, 1  ;;  %v12970_v5 = vld [vmem:[%s17782_s5 + $0xac] ss:$28 sps:$4 sm:$0xff]  }
 0x338   : > { %v12170_v18 = vpop.f32.mrb[36].mxu0  ;;  %v5308_v7 = vsel %vm1025_vm0, %v5305_v11, %v5307_v0 }
 0x339   : > { %v4828_v45 = vadd.f32 %v12170_v18, %v4208_v56  ;;  %v4523_v21 = vpop.f32.mrb[37].mxu0  ;;  %6468 = vmatmul.mubr.bf16.vlgmr.msra.gmra.mrb[204].mxu1 %v12963_v54  ;;  %v15638_v56 = vmax.f32 %v5041_v3, %v5302_v4  ;;  %v4216_v18 = vld [vmem:[#allocation2 + $0x1d0] sm:$0xff]  ;;  %v4215_v3 = vld [vmem:[#allocation2 + $0x1c8] sm:$0xff] }
 0x33a   : > { %v4826_v50 = vadd.f32 %v4523_v21, %v4206_v37  ;;  %v12171_v53 = vpop.f32.mrb[38].mxu0  ;;  %6475 = vmatprep.mubr.bf16.mxu1 %v12966_v60  ;;  %v15636_v60 = vmax.f32 %v5039_v35, %v5298_v33  ;;  %v10669_v37 = vcombine.low %v15606_v16, %v15613_v19  ;;  %v15659_v35 = vld [vmem:[%s17782_s5 + $0x118] sm:$0xff] }
 0x33b   : > { %4940 = vst.msk [vmem:[#allocation2 + $0x190] sm:$0xff] %vm1513_vm3, %v4828_v45  ;;  %v4829_v58 = vadd.f32 %v12171_v53, %v4209_v32  ;;  %v4526_v36 = vpop.f32.mrb[39].mxu0  ;;  %v10676_v32 = vcombine.low %v15618_v31, %v15623_v22  ;;  %v15651_v53 = vmax.f32 %v5040_v8, %v5300_v12  ;;  %v4217_v8 = vld [vmem:[#allocation2 + $0x1d8] sm:$0xff]  ;;  %v5710_v15 = vmax.f32 %v15550_v38, %v15638_v56 }
 0x33c   : > { %4938 = vst.msk [vmem:[#allocation2 + $0x180] sm:$0xff] %vm1513_vm3, %v4826_v50  ;;  %v4827_v20 = vadd.f32 %v4526_v36, %v4207_v6  ;;  %v5707_v36 = vmax.f32 %v15525_v26, %v15626_v61  ;;  %v5708_v26 = vmax.f32 %v15527_v41, %v15636_v60  ;;  %v15681_v41 = vld [vmem:[#allocation2 + $0x160] sm:$0xff] }
 0x33d   : > { %4941 = vst.msk [vmem:[#allocation2 + $0x198] sm:$0xff] %vm1513_vm3, %v4829_v58  ;;  %v5309_v16 = vrot.slane %v15681_v41, 1 }
 0x33e   : > { %4939 = vst.msk [vmem:[#allocation2 + $0x188] sm:$0xff] %vm1513_vm3, %v4827_v20  ;;  %v15664_v20 = vld [vmem:[%s17782_s5 + $0x134] sm:$0xff]  ;;  %v5899_v4 = vpack.c.bf16 %v5708_v26, %v5707_v36  ;;  %v15739_v26 = vld [vmem:[#allocation2 + $0x168] sm:$0xff] }
 0x33f   : > { %v10683_v44 = vcombine.low %v15659_v35, %v15664_v20  ;;  %v5831_v35 = vld [vmem:[%s17782_s5 + $0x150] sm:$0xff] }
 0x340   : > { %v12174_v30 = vpop.f32.mrb[40].mxu0  ;;  %v5835_v20 = vld [vmem:[%s17782_s5 + $0x16c] sm:$0xff] }
 0x341   : > { %v4832_v42 = vadd.f32 %v12174_v30, %v4212_v59  ;;  %v4539_v13 = vpop.f32.mrb[41].mxu0  ;;  %6476 = vmatmul.mubr.bf16.gmra.mrb[208].mxu1 %v10655_v43  ;;  %v5304_v43 = vsel %vm1025_vm0, %v5301_v47, %v5303_v25  ;;  %v5306_v59 = vsel %vm1025_vm0, %v5303_v25, %v5305_v11  ;;  %v15670_v30 = vmax.f32 %v5044_v57, %v5308_v7  ;;  %v4220_v25 = vld [vmem:[#allocation2 + $0x1f0] sm:$0xff] }
 0x342   : > { %v4830_v24 = vadd.f32 %v4539_v13, %v4210_v17  ;;  %v12175_v34 = vpop.f32.mrb[42].mxu0  ;;  %6483 = vmatprep.mubr.bf16.mxu1 %v12968_v2  ;;  %v15647_v50 = vld [vmem:[#allocation2 + $0x190] sm:$0xff]  ;;  %v15693_v57 = vmax.f32 %v15579_v39, %v5304_v43  ;;  %v15702_v33 = vmax.f32 %v15597_v51, %v5306_v59  ;;  %v15741_v59 = vld [vmem:[#allocation2 + $0x178] sm:$0xff] }
 0x343   : > { %4944 = vst.msk [vmem:[#allocation2 + $0x1b0] sm:$0xff] %vm1513_vm3, %v4832_v42  ;;  %v4833_v49 = vadd.f32 %v12175_v34, %v4213_v23  ;;  %v4542_v55 = vpop.f32.mrb[43].mxu0  ;;  %v15645_v21 = vld [vmem:[#allocation2 + $0x180] sm:$0xff]  ;;  %v5321_v9 = vrot.slane %v15647_v50, 1  ;;  %v5709_v34 = vmax.f32 %v15544_v63, %v15651_v53  ;;  %v5713_v51 = vmax.f32 %v15651_v53, %v15670_v30 }
 0x344   : > { %4942 = vst.msk [vmem:[#allocation2 + $0x1a0] sm:$0xff] %vm1513_vm3, %v4830_v24  ;;  %v4831_v14 = vadd.f32 %v4542_v55, %v4211_v10  ;;  %v5317_v47 = vrot.slane %v15645_v21, 1  ;;  %v15684_v24 = vld [vmem:[#allocation2 + $0x198] sm:$0xff] }
 0x345   : > { %4945 = vst.msk [vmem:[#allocation2 + $0x1b8] sm:$0xff] %vm1513_vm3, %v4833_v49  ;;  %v15634_v54 = vld [vmem:[#allocation2 + $0x188] sm:$0xff]  ;;  %v5323_v19 = vrot.slane %v15684_v24, 1  ;;  %v15712_v12 = vpack.c.bf16 %v5710_v15, %v5709_v34 }
 0x346   : > { %4943 = vst.msk [vmem:[#allocation2 + $0x1a8] sm:$0xff] %vm1513_vm3, %v4831_v14  ;;  %v5319_v6 = vrot.slane %v15634_v54, 1 }
 0x348   : > { %v12178_v45 = vpop.f32.mrb[44].mxu0  ;;  %v5320_v49 = vsel %vm1025_vm0, %v5317_v47, %v5319_v6  ;;  %v5322_v10 = vsel %vm1025_vm0, %v5319_v6, %v5321_v9 }
 0x349   : > { %v4836_v62 = vadd.f32 %v12178_v45, %v4216_v18  ;;  %v4555_v58 = vpop.f32.mrb[45].mxu0  ;;  %6484 = vmatmul.mubr.bf16.gmra.mrb[212].mxu1 %v10662_v29  ;;  %v12972_v29 = vld [vmem:[%s17782_s5 + $0xe4] ss:$28 sps:$4 sm:$0xff]   ;;  %v15719_v18 = vmax.f32 %v15645_v21, %v5320_v49  ;;  %v15722_v45 = vmax.f32 %v15634_v54, %v5322_v10  ;;  %v5712_v54 = vmax.f32 %v15636_v60, %v15702_v33 }
 0x34a   : > { %v4834_v2 = vadd.f32 %v4555_v58, %v4214_v27  ;;  %v12179_v28 = vpop.f32.mrb[46].mxu0  ;;  %6491 = vmatprep.mubr.bf16.mxu1 %v12970_v5  ;;  %v15675_v40 = vld [vmem:[#allocation2 + $0x1b0] sm:$0xff]  ;;  %v4218_v27 = vld [vmem:[#allocation2 + $0x1e0] sm:$0xff] }
 0x34b   : > { %4948 = vst.msk [vmem:[#allocation2 + $0x1d0] sm:$0xff] %vm1513_vm3, %v4836_v62  ;;  %v4837_v42 = vadd.f32 %v12179_v28, %v4217_v8  ;;  %v4558_v17 = vpop.f32.mrb[47].mxu0  ;;  %v15673_v13 = vld [vmem:[#allocation2 + $0x1a0] sm:$0xff]  ;;  %v5329_v14 = vrot.slane %v15675_v40, 1  ;;  %v4221_v8 = vld [vmem:[#allocation2 + $0x1f8] sm:$0xff] }
 0x34c   : > { %4946 = vst.msk [vmem:[#allocation2 + $0x1c0] sm:$0xff] %vm1513_vm3, %v4834_v2  ;;  %v4835_v52 = vadd.f32 %v4558_v17, %v4215_v3  ;;  %v15686_v23 = vld [vmem:[#allocation2 + $0x1b8] sm:$0xff]  ;;  %v5325_v63 = vrot.slane %v15673_v13, 1  ;;  %v5711_v3 = vmax.f32 %v15626_v61, %v15693_v57  ;;  %v4219_v17 = vld [vmem:[#allocation2 + $0x1e8] sm:$0xff]  ;;  %v12976_v61 = vld [vmem:[%s17782_s5 + $0x154] ss:$28 sps:$4 sm:$0xff]  }
 0x34d   : > { %4949 = vst.msk [vmem:[#allocation2 + $0x1d8] sm:$0xff] %vm1513_vm3, %v4837_v42  ;;  %v5055_v38 = vld [vmem:[#allocation2 + $0x1a8] sm:$0xff]  ;;  %v5331_v55 = vrot.slane %v15686_v23, 1 }
 0x34e   : > { %4947 = vst.msk [vmem:[#allocation2 + $0x1c8] sm:$0xff] %vm1513_vm3, %v4835_v52  ;;  %v5327_v39 = vrot.slane %v5055_v38, 1  ;;  %v5326_v10 = vsel %vm1025_vm0, %v5323_v19, %v5325_v63 }
 0x34f   : > { %v5332_v43 = vsel %vm1025_vm0, %v5329_v14, %v5331_v55 }
 0x350   : > { %v12182_v11 = vpop.f32.mrb[48].mxu0  ;;  %v5328_v5 = vsel %vm1025_vm0, %v5325_v63, %v5327_v39  ;;  %v5330_v7 = vsel %vm1025_vm0, %v5327_v39, %v5329_v14  ;;  %v15752_v14 = vmax.f32 %v15675_v40, %v5332_v43  ;;  %v15771_v43 = vmax.f32 %v15684_v24, %v5326_v10 }
 0x351   : > { %v4840_v62 = vadd.f32 %v12182_v11, %v4220_v25  ;;  %v4571_v58 = vpop.f32.mrb[49].mxu0  ;;  %6492 = vmatmul.mubr.bf16.gmra.mrb[216].mxu1 %v10669_v37  ;;  %v15725_v6 = vmax.f32 %v15673_v13, %v5328_v5  ;;  %v15727_v36 = vmax.f32 %v5055_v38, %v5330_v7  ;;  %v5310_v37 = vsel %vm1025_vm0, %v5307_v0, %v5309_v16  ;;  %v15756_v25 = vld [vmem:[#allocation2 + $0x170] sm:$0xff] }
 0x352   : > { %v4838_v2 = vadd.f32 %v4571_v58, %v4218_v27  ;;  %v12183_v28 = vpop.f32.mrb[50].mxu0  ;;  %6499 = vmatprep.mubr.bf16.mxu1 %v12972_v29  ;;  %v5324_v38 = vsel %vm1025_vm0, %v5321_v9, %v5323_v19  ;;  %v5060_v49 = vld [vmem:[#allocation2 + $0x1d0] sm:$0xff]  ;;  %v5311_v7 = vrot.slane %v15739_v26, 1  ;;  %v12974_v58 = vld [vmem:[%s17782_s5 + $0x11c] ss:$28 sps:$4 sm:$0xff]  }
 0x353   : > { %4952 = vst.msk [vmem:[#allocation2 + $0x1f0] sm:$0xff] %vm1513_vm3, %v4840_v62  ;;  %v4841_v42 = vadd.f32 %v12183_v28, %v4221_v8  ;;  %v4574_v13 = vpop.f32.mrb[51].mxu0  ;;  %v5723_v15 = vmax.f32 %v15719_v18, %v15725_v6  ;;  %v5724_v52 = vmax.f32 %v15722_v45, %v15727_v36  ;;  %v5058_v34 = vld [vmem:[#allocation2 + $0x1c0] sm:$0xff]  ;;  %v5315_v62 = vrot.slane %v15741_v59, 1 }
 0x354   : > { %4950 = vst.msk [vmem:[#allocation2 + $0x1e0] sm:$0xff] %vm1513_vm3, %v4838_v2  ;;  %v4839_v0 = vadd.f32 %v4574_v13, %v4219_v17  ;;  %v5333_v39 = vrot.slane %v5058_v34, 1  ;;  %v15754_v29 = vld [vmem:[#allocation2 + $0x1d8] sm:$0xff]  ;;  %v15765_v40 = vmax.f32 %v15647_v50, %v5324_v38  ;;  %v5337_v27 = vrot.slane %v5060_v49, 1  ;;  %v4224_v50 = vld [vmem:[#allocation2 + $0x210] sm:$0xff] }
 0x355   : > { %4953 = vst.msk [vmem:[#allocation2 + $0x1f8] sm:$0xff] %vm1513_vm3, %v4841_v42  ;;  %v5907_v11 = vpack.c.bf16 %v5724_v52, %v5723_v15  ;;  %v5059_v5 = vld [vmem:[#allocation2 + $0x1c8] sm:$0xff]  ;;  %v5339_v9 = vrot.slane %v15754_v29, 1  ;;  %v15777_v8 = vmax.f32 %v15586_v48, %v5310_v37 }
 0x356   : > { %4951 = vst.msk [vmem:[#allocation2 + $0x1e8] sm:$0xff] %vm1513_vm3, %v4839_v0  ;;  %v5334_v63 = vsel %vm1025_vm0, %v5331_v55, %v5333_v39  ;;  %v5335_v19 = vrot.slane %v5059_v5, 1  ;;  %v5313_v55 = vrot.slane %v15756_v25, 1  ;;  %v5725_v42 = vmax.f32 %v15765_v40, %v15752_v14  ;;  %v4225_v0 = vld [vmem:[#allocation2 + $0x218] sm:$0xff] }
 0x357   : > { %11324 = vmatprep.subr.bf16.mxu1 %v5907_v11  ;;  %v15774_v2 = vmax.f32 %v15686_v23, %v5334_v63  ;;  %v5340_v24 = vsel %vm1025_vm0, %v5337_v27, %v5339_v9  ;;  %v4222_v23 = vld [vmem:[#allocation2 + $0x200] sm:$0xff] }
 0x358   : > { %v12186_v28 = vpop.f32.mrb[52].mxu0  ;;  %11325 = vmatpush3.bf16.msra.mxu1 %v5899_v4  ;;  %v5336_v17 = vsel %vm1025_vm0, %v5333_v39, %v5335_v19  ;;  %v5338_v13 = vsel %vm1025_vm0, %v5335_v19, %v5337_v27  ;;  %v5312_v39 = vsel %vm1025_vm0, %v5309_v16, %v5311_v7  ;;  %v5314_v11 = vsel %vm1025_vm0, %v5311_v7, %v5313_v55 }
 0x359   : > { %v4844_v15 = vadd.f32 %v12186_v28, %v4224_v50  ;;  %v4587_v52 = vpop.f32.mrb[53].mxu0  ;;  %6500 = vmatmul.mubr.bf16.gmra.mrb[220].mxu1 %v10676_v32  ;;  %v5726_v48 = vmax.f32 %v15771_v43, %v15774_v2  ;;  %v15790_v4 = vmax.f32 %v5058_v34, %v5336_v17  ;;  %v15792_v37 = vmax.f32 %v5059_v5, %v5338_v13  ;;  %v4223_v32 = vld [vmem:[#allocation2 + $0x208] sm:$0xff] }
 0x35a   : > { %v4842_v38 = vadd.f32 %v4587_v52, %v4222_v23  ;;  %v12187_v10 = vpop.f32.mrb[54].mxu0  ;;  %6507 = vmatprep.mubr.bf16.mxu1 %v12974_v58  ;;  %v5316_v31 = vsel %vm1025_vm0, %v5313_v55, %v5315_v62  ;;  %v5064_v58 = vld [vmem:[#allocation2 + $0x1f0] sm:$0xff]  ;;  %v15805_v50 = vmax.f32 %v5060_v49, %v5340_v24  ;;  %v5318_v28 = vsel %vm1025_vm0, %v5315_v62, %v5317_v47 }
 0x35b   : > { %4956 = vst.msk [vmem:[#allocation2 + $0x210] sm:$0xff] %vm1513_vm3, %v4844_v15  ;;  %v4845_v22 = vadd.f32 %v12187_v10, %v4225_v0  ;;  %v4590_v34 = vpop.f32.mrb[55].mxu0  ;;  %v5908_v63 = vpack.c.bf16 %v5726_v48, %v5725_v42  ;;  %v5727_v5 = vmax.f32 %v15725_v6, %v15790_v4  ;;  %v5728_v19 = vmax.f32 %v15727_v36, %v15792_v37  ;;  %v5062_v27 = vld [vmem:[#allocation2 + $0x1e0] sm:$0xff] }
 0x35c   : > { %4954 = vst.msk [vmem:[#allocation2 + $0x200] sm:$0xff] %vm1513_vm3, %v4842_v38  ;;  %v4843_v16 = vadd.f32 %v4590_v34, %v4223_v32  ;;  %v5341_v7 = vrot.slane %v5062_v27, 1  ;;  %v15807_v55 = vld [vmem:[#allocation2 + $0x1f8] sm:$0xff]  ;;  %v5901_v36 = vpack.c.bf16 %v5712_v54, %v5711_v3  ;;  %v5714_v49 = vmax.f32 %v15638_v56, %v15777_v8 }
 0x35d   : > { %4957 = vst.msk [vmem:[#allocation2 + $0x218] sm:$0xff] %vm1513_vm3, %v4845_v22  ;;  %11326 = vmatprep.subr.bf16.mxu1 %v5908_v63  ;;  %v5909_v6 = vpack.c.bf16 %v5728_v19, %v5727_v5  ;;  %v5063_v42 = vld [vmem:[#allocation2 + $0x1e8] sm:$0xff]  ;;  %v5347_v17 = vrot.slane %v15807_v55, 1  ;;  %v5345_v62 = vrot.slane %v5064_v58, 1  ;;  %v15829_v60 = vmax.f32 %v15681_v41, %v5312_v39  ;;  %v4229_v38 = vld [vmem:[#allocation2 + $0x238] sm:$0xff] }
 0x35e   : > { %4955 = vst.msk [vmem:[#allocation2 + $0x208] sm:$0xff] %vm1513_vm3, %v4843_v16  ;;  %11327 = vmatpush3.bf16.msra.mxu1 %v15712_v12  ;;  %v5342_v21 = vsel %vm1025_vm0, %v5339_v9, %v5341_v7  ;;  %v5343_v47 = vrot.slane %v5063_v42, 1  ;;  %v15835_v3 = vmax.f32 %v15739_v26, %v5314_v11  ;;  %v15838_v12 = vmax.f32 %v15756_v25, %v5316_v31  ;;  %v4228_v9 = vld [vmem:[#allocation2 + $0x230] sm:$0xff]  ;;  %v4226_v26 = vld [vmem:[#allocation2 + $0x220] sm:$0xff]  ;;  %v4227_v39 = vld [vmem:[#allocation2 + $0x228] sm:$0xff] }
 0x35f   : > { %11328 = vmatprep.subr.bf16.mxu1 %v5909_v6  ;;  %v15832_v56 = vmax.f32 %v15754_v29, %v5342_v21  ;;  %v15841_v54 = vmax.f32 %v15741_v59, %v5318_v28  ;;  %v5729_v24 = vmax.f32 %v15752_v14, %v15805_v50  ;;  %v5348_v29 = vsel %vm1025_vm0, %v5345_v62, %v5347_v17 }
 0x360   : > { %v12190_v13 = vpop.f32.mrb[56].mxu0  ;;  %v5344_v41 = vsel %vm1025_vm0, %v5341_v7, %v5343_v47  ;;  %v5346_v15 = vsel %vm1025_vm0, %v5343_v47, %v5345_v62  ;;  %v5902_v10 = vpack.c.bf16 %v5714_v49, %v5713_v51  ;;  %v15876_v5 = vmax.f32 %v5064_v58, %v5348_v29  ;;  %v12978_v58 = vld [vmem:[%s17782_s5 + $0x18c] ss:$28 sps:$4 sm:$0xff]   ;;  %v4232_v49 = vld [vmem:[#allocation2 + $0x250] sm:$0xff] }
 0x361   : > { %v4848_v23 = vadd.f32 %v12190_v13, %v4228_v9  ;;  %v4603_v52 = vpop.f32.mrb[57].mxu0  ;;  %6508 = vmatmul.mubr.bf16.gmra.mrb[224].mxu1 %v10683_v44  ;;  %v5730_v59 = vmax.f32 %v15774_v2, %v15832_v56  ;;  %v15853_v25 = vmax.f32 %v5062_v27, %v5344_v41  ;;  %v15855_v48 = vmax.f32 %v5063_v42, %v5346_v15  ;;  %v4230_v9 = vld [vmem:[#allocation2 + $0x240] sm:$0xff]  ;;  %v4233_v15 = vld [vmem:[#allocation2 + $0x258] sm:$0xff] }
 0x362   : > { %v4846_v14 = vadd.f32 %v4603_v52, %v4226_v26  ;;  %v12191_v0 = vpop.f32.mrb[58].mxu0  ;;  %11329 = vmatpush3.bf16.msra.mxu1 %v5901_v36  ;;  %6515 = vmatprep.mubr.bf16.mxu1 %v12976_v61  ;;  %v5715_v44 = vmax.f32 %v15693_v57, %v15829_v60  ;;  %v5068_v32 = vld [vmem:[#allocation2 + $0x210] sm:$0xff]  ;;  %v5716_v57 = vmax.f32 %v15702_v33, %v15835_v3  ;;  %v5843_v26 = vld [vmem:[%s17782_s5 + $0x1a4] sm:$0xff] }
 0x363   : > { %4960 = vst.msk [vmem:[#allocation2 + $0x230] sm:$0xff] %vm1513_vm3, %v4848_v23  ;;  %v4849_v2 = vadd.f32 %v12191_v0, %v4229_v38  ;;  %v4606_v11 = vpop.f32.mrb[59].mxu0  ;;  %v5910_v31 = vpack.c.bf16 %v5730_v59, %v5729_v24  ;;  %v5731_v53 = vmax.f32 %v15790_v4, %v15853_v25  ;;  %v5732_v51 = vmax.f32 %v15792_v37, %v15855_v48  ;;  %v5066_v22 = vld [vmem:[#allocation2 + $0x200] sm:$0xff]  ;;  %v5839_v23 = vld [vmem:[%s17782_s5 + $0x188] sm:$0xff] }
 0x364   : > { %4958 = vst.msk [vmem:[#allocation2 + $0x220] sm:$0xff] %vm1513_vm3, %v4846_v14  ;;  %v4847_v34 = vadd.f32 %v4606_v11, %v4227_v39  ;;  %v5349_v63 = vrot.slane %v5066_v22, 1  ;;  %v5069_v19 = vld [vmem:[#allocation2 + $0x218] sm:$0xff]  ;;  %v10690_v4 = vcombine.low %v5831_v35, %v5835_v20  ;;  %v5718_v37 = vmax.f32 %v15777_v8, %v15841_v54  ;;  %v4231_v59 = vld [vmem:[#allocation2 + $0x248] sm:$0xff] }
 0x365   : > { %4961 = vst.msk [vmem:[#allocation2 + $0x238] sm:$0xff] %vm1513_vm3, %v4849_v2  ;;  %11330 = vmatprep.subr.bf16.mxu1 %v5910_v31  ;;  %v5911_v27 = vpack.c.bf16 %v5732_v51, %v5731_v53  ;;  %v5067_v16 = vld [vmem:[#allocation2 + $0x208] sm:$0xff]  ;;  %v5353_v33 = vrot.slane %v5068_v32, 1  ;;  %v5355_v6 = vrot.slane %v5069_v19, 1  ;;  %v5717_v8 = vmax.f32 %v15670_v30, %v15838_v12 }
 0x366   : > { %4959 = vst.msk [vmem:[#allocation2 + $0x228] sm:$0xff] %vm1513_vm3, %v4847_v34  ;;  %11331 = vmatpush3.bf16.msra.mxu1 %v5902_v10  ;;  %v5350_v7 = vsel %vm1025_vm0, %v5347_v17, %v5349_v63  ;;  %v5351_v28 = vrot.slane %v5067_v16, 1  ;;  %v5903_v21 = vpack.c.bf16 %v5716_v57, %v5715_v44  ;;  %v5733_v17 = vmax.f32 %v15805_v50, %v15876_v5 }
 0x367   : > { %11332 = vmatprep.subr.bf16.mxu1 %v5911_v27  ;;  %v15887_v36 = vmax.f32 %v15807_v55, %v5350_v7  ;;  %v5904_v50 = vpack.c.bf16 %v5718_v37, %v5717_v8  ;;  %v5719_v44 = vmax.f32 %v15829_v60, %v15719_v18  ;;  %v5720_v2 = vmax.f32 %v15835_v3, %v15722_v45  ;;  %v12980_v18 = vld [vmem:[%s17782_s5 + $0x1c4] ss:$28 sps:$4 sm:$0xff]   ;;  %v4236_v60 = vld [vmem:[#allocation2 + $0x270] sm:$0xff] }
 0x368   : > { %v12194_v42 = vpop.f32.mrb[60].mxu0  ;;  %v5352_v47 = vsel %vm1025_vm0, %v5349_v63, %v5351_v28  ;;  %v5354_v62 = vsel %vm1025_vm0, %v5351_v28, %v5353_v33  ;;  %v10697_v11 = vcombine.low %v5839_v23, %v5843_v26  ;;  %v5722_v51 = vmax.f32 %v15841_v54, %v15771_v43  ;;  %v5847_v43 = vld [vmem:[%s17782_s5 + $0x1c0] sm:$0xff]  ;;  %v4244_v23 = vld [vmem:[#allocation2 + $0x2b0] sm:$0xff] }
 0x369   : > { %v4852_v61 = vadd.f32 %v12194_v42, %v4232_v49  ;;  %v4619_v13 = vpop.f32.mrb[61].mxu0  ;;  %6516 = vmatmul.mubr.bf16.gmra.mrb[228].mxu1 %v10690_v4  ;;  %v5734_v55 = vmax.f32 %v15832_v56, %v15887_v36  ;;  %v15897_v24 = vmax.f32 %v5066_v22, %v5352_v47  ;;  %v15899_v30 = vmax.f32 %v5067_v16, %v5354_v62  ;;  %v4237_v4 = vld [vmem:[#allocation2 + $0x278] sm:$0xff]  ;;  %v4235_v16 = vld [vmem:[#allocation2 + $0x268] sm:$0xff]  ;;  %v4238_v49 = vld [vmem:[#allocation2 + $0x280] sm:$0xff] }
 0x36a   : > { %v4850_v41 = vadd.f32 %v4619_v13, %v4230_v9  ;;  %v12195_v29 = vpop.f32.mrb[62].mxu0  ;;  %11333 = vmatpush3.bf16.msra.mxu1 %v5903_v21  ;;  %6523 = vmatprep.mubr.bf16.mxu1 %v12978_v58  ;;  %v5356_v56 = vsel %vm1025_vm0, %v5353_v33, %v5355_v6  ;;  %v5905_v53 = vpack.c.bf16 %v5720_v2, %v5719_v44  ;;  %v5851_v54 = vld [vmem:[%s17782_s5 + $0x1dc] sm:$0xff]  ;;  %v4239_v13 = vld [vmem:[#allocation2 + $0x288] sm:$0xff]  ;;  %v5072_v44 = vld [vmem:[#allocation2 + $0x230] sm:$0xff] }
 0x36b   : > { %4964 = vst.msk [vmem:[#allocation2 + $0x250] sm:$0xff] %vm1513_vm3, %v4852_v61  ;;  %v4853_v52 = vadd.f32 %v12195_v29, %v4233_v15  ;;  %v4622_v14 = vpop.f32.mrb[63].mxu0  ;;  %v5912_v38 = vpack.c.bf16 %v5734_v55, %v5733_v17  ;;  %v5735_v0 = vmax.f32 %v15853_v25, %v15897_v24  ;;  %v5736_v10 = vmax.f32 %v15855_v48, %v15899_v30  ;;  %v15913_v35 = vld [vmem:[#allocation2 + $0x220] sm:$0xff]  ;;  %v4241_v17 = vld [vmem:[#allocation2 + $0x298] sm:$0xff]  ;;  %v12984_v29 = vld [vmem:[%s17782_s5 + $0x234] ss:$28 sps:$4 sm:$0xff]  }
 0x36c   : > { %4962 = vst.msk [vmem:[#allocation2 + $0x240] sm:$0xff] %vm1513_vm3, %v4850_v41  ;;  %v4851_v20 = vadd.f32 %v4622_v14, %v4231_v59  ;;  %v5357_v39 = vrot.slane %v15913_v35, 1  ;;  %v15922_v31 = vmax.f32 %v5068_v32, %v5356_v56  ;;  %v4234_v32 = vld [vmem:[#allocation2 + $0x260] sm:$0xff]  ;;  %v5721_v37 = vmax.f32 %v15838_v12, %v15765_v40  ;;  %v12982_v12 = vld [vmem:[%s17782_s5 + $0x1fc] ss:$28 sps:$4 sm:$0xff]  }
 0x36d   : > { %4965 = vst.msk [vmem:[#allocation2 + $0x258] sm:$0xff] %vm1513_vm3, %v4853_v52  ;;  %11334 = vmatprep.subr.bf16.mxu1 %v5912_v38  ;;  %v5913_v25 = vpack.c.bf16 %v5736_v10, %v5735_v0  ;;  %v10704_v40 = vcombine.low %v5847_v43, %v5851_v54  ;;  %v5855_v62 = vld [vmem:[%s17782_s5 + $0x1f8] sm:$0xff]  ;;  %v4242_v52 = vld [vmem:[#allocation2 + $0x2a0] sm:$0xff]  ;;  %v5863_v38 = vld [vmem:[%s17782_s5 + $0x230] sm:$0xff] }
 0x36e   : > { %4963 = vst.msk [vmem:[#allocation2 + $0x248] sm:$0xff] %vm1513_vm3, %v4851_v20  ;;  %11335 = vmatpush3.bf16.msra.mxu1 %v5904_v50  ;;  %v5358_v48 = vsel %vm1025_vm0, %v5355_v6, %v5357_v39  ;;  %v5737_v57 = vmax.f32 %v15876_v5, %v15922_v31  ;;  %v5906_v58 = vpack.c.bf16 %v5722_v51, %v5721_v37  ;;  %v4240_v6 = vld [vmem:[#allocation2 + $0x290] sm:$0xff]  ;;  %v5071_v50 = vld [vmem:[#allocation2 + $0x228] sm:$0xff]  ;;  %v4245_v14 = vld [vmem:[#allocation2 + $0x2b8] sm:$0xff] }
 0x36f   : > { %11336 = vmatprep.subr.bf16.mxu1 %v5913_v25  ;;  %v15931_v45 = vmax.f32 %v5069_v19, %v5358_v48  ;;  %v5859_v61 = vld [vmem:[%s17782_s5 + $0x214] sm:$0xff]  ;;  %v5867_v20 = vld [vmem:[%s17782_s5 + $0x24c] sm:$0xff]  ;;  %v5359_v2 = vrot.slane %v5071_v50, 1 }
 0x370   : > { %v12198_v3 = vpop.f32.mrb[64].mxu0  ;;  %v10711_v15 = vcombine.low %v5855_v62, %v5859_v61  ;;  %v15973_v25 = vld [vmem:[#allocation2 + $0x238] sm:$0xff]  ;;  %v4243_v48 = vld [vmem:[#allocation2 + $0x2a8] sm:$0xff] }
 0x371   : > { %v4856_v22 = vadd.f32 %v12198_v3, %v4236_v60  ;;  %v4635_v34 = vpop.f32.mrb[65].mxu0  ;;  %6524 = vmatmul.mubr.bf16.gmra.mrb[232].mxu1 %v10697_v11  ;;  %v5738_v63 = vmax.f32 %v15887_v36, %v15931_v45  ;;  %v10718_v3 = vcombine.low %v5863_v38, %v5867_v20  ;;  %v5363_v51 = vrot.slane %v15973_v25, 1 }
 0x372   : > { %v4854_v27 = vadd.f32 %v4635_v34, %v4234_v32  ;;  %v12199_v19 = vpop.f32.mrb[66].mxu0  ;;  %11337 = vmatpush3.bf16.msra.mxu1 %v5905_v53  ;;  %6531 = vmatprep.mubr.bf16.mxu1 %v12980_v18  ;;  %v5361_v53 = vrot.slane %v5072_v44, 1  ;;  %v12986_v32 = vld [vmem:[%s17782_s5 + $0x26c] ss:$28 sps:$4 sm:$0xff]  }
 0x373   : > { %4968 = vst.msk [vmem:[#allocation2 + $0x270] sm:$0xff] %vm1513_vm3, %v4856_v22  ;;  %v4857_v5 = vadd.f32 %v12199_v19, %v4237_v4  ;;  %v4638_v7 = vpop.f32.mrb[67].mxu0  ;;  %v5914_v28 = vpack.c.bf16 %v5738_v63, %v5737_v57  ;;  %v4248_v22 = vld [vmem:[#allocation2 + $0x2d0] sm:$0xff]  ;;  %v5360_v57 = vsel %vm1025_vm0, %v5357_v39, %v5359_v2  ;;  %v4246_v63 = vld [vmem:[#allocation2 + $0x2c0] sm:$0xff] }
 0x374   : > { %4966 = vst.msk [vmem:[#allocation2 + $0x260] sm:$0xff] %vm1513_vm3, %v4854_v27  ;;  %v4855_v33 = vadd.f32 %v4638_v7, %v4235_v16  ;;  %v15991_v27 = vld [vmem:[%s17782_s5 + $0x268] sm:$0xff]  ;;  %v5362_v4 = vsel %vm1025_vm0, %v5359_v2, %v5361_v53  ;;  %v15994_v19 = vld [vmem:[#allocation2 + $0x240] sm:$0xff] }
 0x375   : > { %4969 = vst.msk [vmem:[#allocation2 + $0x278] sm:$0xff] %vm1513_vm3, %v4857_v5  ;;  %11338 = vmatprep.subr.bf16.mxu1 %v5914_v28  ;;  %v15998_v54 = vld [vmem:[#allocation2 + $0x248] sm:$0xff]  ;;  %v16000_v5 = vld [vmem:[#allocation2 + $0x258] sm:$0xff] }
 0x376   : > { %4967 = vst.msk [vmem:[#allocation2 + $0x268] sm:$0xff] %vm1513_vm3, %v4855_v33  ;;  %11339 = vmatpush3.bf16.msra.mxu1 %v5906_v58  ;;  %v5875_v39 = vld [vmem:[%s17782_s5 + $0x284] sm:$0xff] }
 0x377   : > { %v16011_v58 = vld [vmem:[%s17782_s5 + $0x2a0] sm:$0x33] }
 0x378   : > { %v12202_v36 = vpop.f32.mrb[68].mxu0 }
 0x379   : > { %v4860_v8 = vadd.f32 %v12202_v36, %v4240_v6  ;;  %v4651_v42 = vpop.f32.mrb[69].mxu0  ;;  %6532 = vmatmul.mubr.bf16.gmra.mrb[236].mxu1 %v10704_v40  ;;  %v16014_v40 = vmax.f32 %v15913_v35, %v5360_v57  ;;  %v4249_v36 = vld [vmem:[#allocation2 + $0x2d8] sm:$0xff] }
 0x37a   : > { %v4858_v21 = vadd.f32 %v4651_v42, %v4238_v49  ;;  %v12203_v47 = vpop.f32.mrb[70].mxu0  ;;  %6539 = vmatprep.mubr.bf16.mxu1 %v12982_v12  ;;  %v5364_v12 = vsel %vm1025_vm0, %v5361_v53, %v5363_v51  ;;  %v4247_v49 = vld [vmem:[#allocation2 + $0x2c8] sm:$0xff]  ;;  %v16017_v42 = vmax.f32 %v5071_v50, %v5362_v4  ;;  %v10733_v50 = vcombine.high %v16011_v58, %v16011_v58 }
 0x37b   : > { %4972 = vst.msk [vmem:[#allocation2 + $0x290] sm:$0xff] %vm1513_vm3, %v4860_v8  ;;  %v4861_v9 = vadd.f32 %v12203_v47, %v4241_v17  ;;  %v4654_v55 = vpop.f32.mrb[71].mxu0  ;;  %v5076_v17 = vld [vmem:[#allocation2 + $0x250] sm:$0xff] }
 0x37c   : > { %4970 = vst.msk [vmem:[#allocation2 + $0x280] sm:$0xff] %vm1513_vm3, %v4858_v21  ;;  %v4859_v41 = vadd.f32 %v4654_v55, %v4239_v13  ;;  %v5365_v21 = vrot.slane %v15994_v19, 1  ;;  %v5367_v13 = vrot.slane %v15998_v54, 1  ;;  %v5371_v55 = vrot.slane %v16000_v5, 1 }
 0x37d   : > { %4973 = vst.msk [vmem:[#allocation2 + $0x298] sm:$0xff] %vm1513_vm3, %v4861_v9  ;;  %v5740_v20 = vmax.f32 %v15899_v30, %v16017_v42 }
 0x37e   : > { %4971 = vst.msk [vmem:[#allocation2 + $0x288] sm:$0xff] %vm1513_vm3, %v4859_v41  ;;  %v5366_v2 = vsel %vm1025_vm0, %v5363_v51, %v5365_v21  ;;  %v4250_v51 = vld [vmem:[#allocation2 + $0x2e0] sm:$0xff] }
 0x380   : > { %v12206_v26 = vpop.f32.mrb[72].mxu0 }
 0x381   : > { %v4864_v56 = vadd.f32 %v12206_v26, %v4244_v23  ;;  %v4667_v59 = vpop.f32.mrb[73].mxu0  ;;  %6540 = vmatmul.mubr.bf16.gmra.mrb[240].mxu1 %v10711_v15  ;;  %v10725_v15 = vcombine.low %v15991_v27, %v5875_v39  ;;  %v16071_v39 = vmax.f32 %v15973_v25, %v5366_v2 }
 0x382   : > { %v4862_v0 = vadd.f32 %v4667_v59, %v4242_v52  ;;  %v12207_v10 = vpop.f32.mrb[74].mxu0  ;;  %6547 = vmatprep.mubr.bf16.mxu1 %v12984_v29  ;;  %v16005_v28 = vld [vmem:[#allocation2 + $0x290] sm:$0xff]  ;;  %v16041_v52 = vmax.f32 %v5072_v44, %v5364_v12  ;;  %v5369_v59 = vrot.slane %v5076_v17, 1 }
 0x383   : > { %4976 = vst.msk [vmem:[#allocation2 + $0x2b0] sm:$0xff] %vm1513_vm3, %v4864_v56  ;;  %v4865_v11 = vadd.f32 %v12207_v10, %v4245_v14  ;;  %v4670_v18 = vpop.f32.mrb[75].mxu0  ;;  %v15996_v43 = vld [vmem:[#allocation2 + $0x280] sm:$0xff]  ;;  %v5385_v29 = vrot.slane %v16005_v28, 1  ;;  %v5739_v56 = vmax.f32 %v15897_v24, %v16014_v40  ;;  %v5368_v24 = vsel %vm1025_vm0, %v5365_v21, %v5367_v13 }
 0x384   : > { %4974 = vst.msk [vmem:[#allocation2 + $0x2a0] sm:$0xff] %vm1513_vm3, %v4862_v0  ;;  %v4863_v60 = vadd.f32 %v4670_v18, %v4243_v48  ;;  %v5381_v9 = vrot.slane %v15996_v43, 1  ;;  %v5372_v44 = vsel %vm1025_vm0, %v5369_v59, %v5371_v55  ;;  %v5370_v30 = vsel %vm1025_vm0, %v5367_v13, %v5369_v59  ;;  %v5085_v4 = vld [vmem:[#allocation2 + $0x298] sm:$0xff] }
 0x385   : > { %4977 = vst.msk [vmem:[#allocation2 + $0x2b8] sm:$0xff] %vm1513_vm3, %v4865_v11  ;;  %v15983_v34 = vld [vmem:[#allocation2 + $0x288] sm:$0xff]  ;;  %v4252_v11 = vld [vmem:[#allocation2 + $0x2f0] sm:$0xff]  ;;  %v16076_v12 = vmax.f32 %v5076_v17, %v5372_v44  ;;  %v5742_v2 = vmax.f32 %v15931_v45, %v16071_v39 }
 0x386   : > { %4975 = vst.msk [vmem:[#allocation2 + $0x2a8] sm:$0xff] %vm1513_vm3, %v4863_v60  ;;  %v5383_v33 = vrot.slane %v15983_v34, 1 }
 0x387   : > { %v5745_v44 = vmax.f32 %v16041_v52, %v16076_v12 }
 0x388   : > { %v12210_v37 = vpop.f32.mrb[76].mxu0  ;;  %v5384_v26 = vsel %vm1025_vm0, %v5381_v9, %v5383_v33  ;;  %v5386_v14 = vsel %vm1025_vm0, %v5383_v33, %v5385_v29  ;;  %v16074_v33 = vmax.f32 %v15994_v19, %v5368_v24 }
 0x389   : > { %v4868_v16 = vadd.f32 %v12210_v37, %v4248_v22  ;;  %v4683_v7 = vpop.f32.mrb[77].mxu0  ;;  %6548 = vmatmul.mubr.bf16.gmra.mrb[244].mxu1 %v10718_v3  ;;  %v16059_v3 = vmax.f32 %v15996_v43, %v5384_v26  ;;  %v16063_v57 = vmax.f32 %v15983_v34, %v5386_v14  ;;  %v16103_v26 = vpack.c.bf16 %v5740_v20, %v5739_v56  ;;  %v4256_v56 = vld [vmem:[#allocation2 + $0x310] sm:$0xff]  ;;  %v12992_v43 = vld [vmem:[%s17782_s5 + $0x40] ss:$28 sps:$4 sm:$0xff]  }
 0x38a   : > { %v4866_v6 = vadd.f32 %v4683_v7, %v4246_v63  ;;  %v12211_v8 = vpop.f32.mrb[78].mxu0  ;;  %6555 = vmatprep.mubr.bf16.mxu1 %v12986_v32  ;;  %v16023_v35 = vld [vmem:[#allocation2 + $0x2b0] sm:$0xff] }
 0x38b   : > { %4980 = vst.msk [vmem:[#allocation2 + $0x2d0] sm:$0xff] %vm1513_vm3, %v4868_v16  ;;  %v4869_v47 = vadd.f32 %v12211_v8, %v4249_v36  ;;  %v4686_v62 = vpop.f32.mrb[79].mxu0  ;;  %v16021_v61 = vld [vmem:[#allocation2 + $0x2a0] sm:$0xff]  ;;  %v5393_v10 = vrot.slane %v16023_v35, 1  ;;  %v4253_v16 = vld [vmem:[#allocation2 + $0x2f8] sm:$0xff] }
 0x38c   : > { %4978 = vst.msk [vmem:[#allocation2 + $0x2c0] sm:$0xff] %vm1513_vm3, %v4866_v6  ;;  %v4867_v41 = vadd.f32 %v4686_v62, %v4247_v49  ;;  %v5389_v38 = vrot.slane %v16021_v61, 1  ;;  %v5089_v53 = vld [vmem:[#allocation2 + $0x2b8] sm:$0xff]  ;;  %v4251_v6 = vld [vmem:[#allocation2 + $0x2e8] sm:$0xff]  ;;  %v16088_v62 = vmax.f32 %v15998_v54, %v5370_v30 }
 0x38d   : > { %4981 = vst.msk [vmem:[#allocation2 + $0x2d8] sm:$0xff] %vm1513_vm3, %v4869_v47  ;;  %v5087_v23 = vld [vmem:[#allocation2 + $0x2a8] sm:$0xff]  ;;  %v5395_v25 = vrot.slane %v5089_v53, 1  ;;  %v5387_v47 = vrot.slane %v5085_v4, 1 }
 0x38e   : > { %4979 = vst.msk [vmem:[#allocation2 + $0x2c8] sm:$0xff] %vm1513_vm3, %v4867_v41  ;;  %v5391_v0 = vrot.slane %v5087_v23, 1  ;;  %v10732_v41 = vcombine.low %v16011_v58, %v16011_v58  ;;  %v12991_v54 = vld [vmem:[%s17782_s5 + $0xc] ss:$28 sps:$4 sm:$0xff]  }
 0x38f   : > { %v5390_v59 = vsel %vm1025_vm0, %v5387_v47, %v5389_v38 }
 0x390   : > { %v12214_v48 = vpop.f32.mrb[80].mxu0  ;;  %v5392_v18 = vsel %vm1025_vm0, %v5389_v38, %v5391_v0  ;;  %v5394_v60 = vsel %vm1025_vm0, %v5391_v0, %v5393_v10 }
 0x391   : > { %v4872_v22 = vadd.f32 %v12214_v48, %v4252_v11  ;;  %v4699_v32 = vpop.f32.mrb[81].mxu0  ;;  %6556 = vmatmul.mubr.bf16.gmra.mrb[248].mxu1 %v10725_v15  ;;  %v16066_v63 = vmax.f32 %v16021_v61, %v5392_v18  ;;  %v16068_v27 = vmax.f32 %v5087_v23, %v5394_v60  ;;  %v16090_v61 = vld [vmem:[#allocation2 + $0x260] sm:$0xff]  ;;  %v5741_v15 = vmax.f32 %v15922_v31, %v16041_v52  ;;  %v16122_v18 = vld [vmem:[#allocation2 + $0x268] sm:$0xff] }
 0x392   : > { %v4870_v37 = vadd.f32 %v4699_v32, %v4250_v51  ;;  %v12215_v7 = vpop.f32.mrb[82].mxu0  ;;  %6563 = vmatprep.mubr.bf16.mxu1 %v10733_v50  ;;  %v16097_v23 = vld [vmem:[#allocation2 + $0x2d0] sm:$0xff]  ;;  %v5396_v31 = vsel %vm1025_vm0, %v5393_v10, %v5395_v25  ;;  %v5373_v24 = vrot.slane %v16090_v61, 1  ;;  %v5743_v48 = vmax.f32 %v16014_v40, %v16074_v33  ;;  %v4254_v60 = vld [vmem:[#allocation2 + $0x300] sm:$0xff] }
 0x393   : > { %4984 = vst.msk [vmem:[#allocation2 + $0x2f0] sm:$0xff] %vm1513_vm3, %v4872_v22  ;;  %v4873_v34 = vadd.f32 %v12215_v7, %v4253_v16  ;;  %v4702_v36 = vpop.f32.mrb[83].mxu0  ;;  %v5755_v8 = vmax.f32 %v16059_v3, %v16066_v63  ;;  %v5756_v49 = vmax.f32 %v16063_v57, %v16068_v27  ;;  %v16083_v21 = vld [vmem:[#allocation2 + $0x2c0] sm:$0xff]  ;;  %v5401_v38 = vrot.slane %v16097_v23, 1 }
 0x394   : > { %4982 = vst.msk [vmem:[#allocation2 + $0x2e0] sm:$0xff] %vm1513_vm3, %v4870_v37  ;;  %v4871_v19 = vadd.f32 %v4702_v36, %v4251_v6  ;;  %v5397_v17 = vrot.slane %v16083_v21, 1  ;;  %v16107_v58 = vld [vmem:[#allocation2 + $0x2d8] sm:$0xff]  ;;  %v5744_v10 = vmax.f32 %v16017_v42, %v16088_v62  ;;  %v5388_v22 = vsel %vm1025_vm0, %v5385_v29, %v5387_v47 }
 0x395   : > { %4985 = vst.msk [vmem:[#allocation2 + $0x2f8] sm:$0xff] %vm1513_vm3, %v4873_v34  ;;  %v5923_v13 = vpack.c.bf16 %v5756_v49, %v5755_v8  ;;  %v5091_v50 = vld [vmem:[#allocation2 + $0x2c8] sm:$0xff]  ;;  %v5403_v51 = vrot.slane %v16107_v58, 1  ;;  %v4257_v37 = vld [vmem:[#allocation2 + $0x318] sm:$0xff]  ;;  %v16131_v42 = vmax.f32 %v16023_v35, %v5396_v31  ;;  %v16135_v34 = vld [vmem:[#allocation2 + $0x270] sm:$0xff]  ;;  %v16138_v36 = vpack.c.bf16 %v5742_v2, %v5741_v15 }
 0x396   : > { %4983 = vst.msk [vmem:[#allocation2 + $0x2e8] sm:$0xff] %vm1513_vm3, %v4871_v19  ;;  %v5398_v14 = vsel %vm1025_vm0, %v5395_v25, %v5397_v17  ;;  %v5399_v0 = vrot.slane %v5091_v50, 1  ;;  %v5374_v35 = vsel %vm1025_vm0, %v5371_v55, %v5373_v24  ;;  %v5375_v49 = vrot.slane %v16122_v18, 1  ;;  %v12989_v55 = vld [vmem:[%s17782_s5 + $0x8] ss:$28 sps:$4 sm:$0xff]  }
 0x397   : > { %11418 = vmatprep.subr.bf16.mxu1 %v5923_v13  ;;  %v16115_v11 = vmax.f32 %v5089_v53, %v5398_v14  ;;  %v16127_v53 = vmax.f32 %v5085_v4, %v5390_v59  ;;  %v4255_v4 = vld [vmem:[#allocation2 + $0x308] sm:$0xff]  ;;  %v16148_v19 = vmax.f32 %v16005_v28, %v5388_v22  ;;  %v16153_v13 = vld [vmem:[#allocation2 + $0x278] sm:$0xff]  ;;  %v5404_v28 = vsel %vm1025_vm0, %v5401_v38, %v5403_v51  ;;  %v12994_v31 = vld [vmem:[%s17782_s5 + $0x44] ss:$28 sps:$4 sm:$0xff]  }
 0x398   : > { %v12218_v20 = vpop.f32.mrb[84].mxu0  ;;  %v5400_v16 = vsel %vm1025_vm0, %v5397_v17, %v5399_v0  ;;  %v5402_v7 = vsel %vm1025_vm0, %v5399_v0, %v5401_v38  ;;  %v5377_v14 = vrot.slane %v16135_v34, 1  ;;  %v5376_v38 = vsel %vm1025_vm0, %v5373_v24, %v5375_v49 }
 0x399   : > { %v4876_v45 = vadd.f32 %v12218_v20, %v4256_v56  ;;  %v4715_v30 = vpop.f32.mrb[85].mxu0  ;;  %6564 = vmatmul.mubr.bf16.gmra.mrb[252].mxu1 %v10732_v41  ;;  %v5758_v47 = vmax.f32 %v16127_v53, %v16115_v11  ;;  %v16160_v41 = vmax.f32 %v16083_v21, %v5400_v16  ;;  %v16162_v15 = vmax.f32 %v5091_v50, %v5402_v7 }
 0x39a   : > { %v4874_v32 = vadd.f32 %v4715_v30, %v4254_v60  ;;  %v12219_v40 = vpop.f32.mrb[86].mxu0  ;;  %6603 = vmatprep.mubr.bf16.mxu1 %v12991_v54  ;;  %v16165_v59 = vld [vmem:[#allocation2 + $0x2f0] sm:$0xff]  ;;  %v5757_v0 = vmax.f32 %v16148_v19, %v16131_v42  ;;  %v16174_v21 = vpack.c.bf16 %v5744_v10, %v5743_v48  ;;  %v16178_v20 = vmax.f32 %v16000_v5, %v5374_v35  ;;  %v4258_v5 = vld [vmem:[#allocation2 + $0x320] sm:$0xff] }
 0x39b   : > { %4988 = vst.msk [vmem:[#allocation2 + $0x310] sm:$0xff] %vm1513_vm3, %v4876_v45  ;;  %v4877_v29 = vadd.f32 %v12219_v40, %v4257_v37  ;;  %v4718_v6 = vpop.f32.mrb[87].mxu0  ;;  %v16140_v8 = vld [vmem:[#allocation2 + $0x2e0] sm:$0xff]  ;;  %v5378_v45 = vsel %vm1025_vm0, %v5375_v49, %v5377_v14  ;;  %v5379_v60 = vrot.slane %v16153_v13, 1  ;;  %v4260_v30 = vld [vmem:[#allocation2 + $0x330] sm:$0xff]  ;;  %v16184_v37 = vmax.f32 %v16097_v23, %v5404_v28  ;;  %v4261_v23 = vld [vmem:[#allocation2 + $0x338] sm:$0xff] }
 0x39c   : > { %4986 = vst.msk [vmem:[#allocation2 + $0x300] sm:$0xff] %vm1513_vm3, %v4874_v32  ;;  %v4875_v25 = vadd.f32 %v4718_v6, %v4255_v4  ;;  %v5405_v17 = vrot.slane %v16140_v8, 1  ;;  %v5097_v56 = vld [vmem:[#allocation2 + $0x2f8] sm:$0xff]  ;;  %v5924_v32 = vpack.c.bf16 %v5758_v47, %v5757_v0  ;;  %v5409_v10 = vrot.slane %v16165_v59, 1  ;;  %v4259_v49 = vld [vmem:[#allocation2 + $0x328] sm:$0xff] }
 0x39d   : > { %4989 = vst.msk [vmem:[#allocation2 + $0x318] sm:$0xff] %vm1513_vm3, %v4877_v29  ;;  %v5095_v54 = vld [vmem:[#allocation2 + $0x2e8] sm:$0xff]  ;;  %v5759_v24 = vmax.f32 %v16066_v63, %v16160_v41  ;;  %v5760_v16 = vmax.f32 %v16068_v27, %v16162_v15  ;;  %v5411_v7 = vrot.slane %v5097_v56, 1  ;;  %v5380_v47 = vsel %vm1025_vm0, %v5377_v14, %v5379_v60 }
 0x39e   : > { %4987 = vst.msk [vmem:[#allocation2 + $0x308] sm:$0xff] %vm1513_vm3, %v4875_v25  ;;  %v5406_v50 = vsel %vm1025_vm0, %v5403_v51, %v5405_v17  ;;  %v5407_v2 = vrot.slane %v5095_v54, 1  ;;  %v16199_v25 = vmax.f32 %v16090_v61, %v5376_v38  ;;  %v16209_v28 = vmax.f32 %v16122_v18, %v5378_v45 }
 0x39f   : > { %v16187_v48 = vmax.f32 %v16107_v58, %v5406_v50  ;;  %v5925_v61 = vpack.c.bf16 %v5760_v16, %v5759_v24  ;;  %v5761_v18 = vmax.f32 %v16131_v42, %v16184_v37  ;;  %v5746_v45 = vmax.f32 %v16071_v39, %v16178_v20 }
 0x3a0   : > { %v12222_v22 = vpop.f32.mrb[88].mxu0  ;;  %v5408_v58 = vsel %vm1025_vm0, %v5405_v17, %v5407_v2  ;;  %v5410_v6 = vsel %vm1025_vm0, %v5407_v2, %v5409_v10  ;;  %v12997_v2 = vld [vmem:[%s17782_s5 + $0x7c] ss:$28 sps:$4 sm:$0xff]  }
 0x3a1   : > { %v4880_v51 = vadd.f32 %v12222_v22, %v4260_v30  ;;  %v4731_v40 = vpop.f32.mrb[89].mxu0  ;;  %6604 = vmatmul.mubr.bf16.vlgmr.msra.gmra.mrb[0].mxu1 %v12989_v55  ;;  %v5762_v55 = vmax.f32 %v16115_v11, %v16187_v48  ;;  %v16220_v14 = vmax.f32 %v5095_v54, %v5410_v6  ;;  %v5412_v11 = vsel %vm1025_vm0, %v5409_v10, %v5411_v7  ;;  %v4264_v30 = vld [vmem:[#allocation2 + $0x350] sm:$0xff] }
 0x3a2   : > { %v4878_v29 = vadd.f32 %v4731_v40, %v4258_v5  ;;  %11419 = vmatpush3.bf16.msra.mxu1 %v16103_v26  ;;  %v12223_v4 = vpop.f32.mrb[90].mxu0  ;;  %6611 = vmatprep.mubr.bf16.mxu1 %v12994_v31  ;;  %v5382_v26 = vsel %vm1025_vm0, %v5379_v60, %v5381_v9  ;;  %v16211_v31 = vld [vmem:[#allocation2 + $0x310] sm:$0xff]  ;;  %v16218_v9 = vmax.f32 %v16140_v8, %v5408_v58 }
 0x3a3   : > { %4992 = vst.msk [vmem:[#allocation2 + $0x330] sm:$0xff] %vm1513_vm3, %v4880_v51  ;;  %v4881_v35 = vadd.f32 %v12223_v4, %v4261_v23  ;;  %11420 = vmatprep.subr.bf16.mxu1 %v5924_v32  ;;  %v4734_v63 = vpop.f32.mrb[91].mxu0  ;;  %v5098_v27 = vld [vmem:[#allocation2 + $0x300] sm:$0xff]  ;;  %v16232_v8 = vmax.f32 %v16153_v13, %v5382_v26  ;;  %v5417_v42 = vrot.slane %v16211_v31, 1  ;;  %v5926_v32 = vpack.c.bf16 %v5762_v55, %v5761_v18  ;;  %v4263_v4 = vld [vmem:[#allocation2 + $0x348] sm:$0xff] }
 0x3a4   : > { %4990 = vst.msk [vmem:[#allocation2 + $0x320] sm:$0xff] %vm1513_vm3, %v4878_v29  ;;  %v4879_v17 = vadd.f32 %v4734_v63, %v4259_v49  ;;  %v5413_v0 = vrot.slane %v5098_v27, 1  ;;  %v5747_v10 = vmax.f32 %v16074_v33, %v16199_v25  ;;  %v16245_v13 = vmax.f32 %v16165_v59, %v5412_v11  ;;  %v5101_v5 = vld [vmem:[#allocation2 + $0x318] sm:$0xff]  ;;  %v13000_v11 = vld [vmem:[%s17782_s5 + $0xb4] ss:$28 sps:$4 sm:$0xff]  }
 0x3a5   : > { %4993 = vst.msk [vmem:[#allocation2 + $0x338] sm:$0xff] %vm1513_vm3, %v4881_v35  ;;  %v5099_v50 = vld [vmem:[#allocation2 + $0x308] sm:$0xff]  ;;  %v5764_v24 = vmax.f32 %v16162_v15, %v16220_v14  ;;  %v4265_v33 = vld [vmem:[#allocation2 + $0x358] sm:$0xff]  ;;  %v5748_v29 = vmax.f32 %v16088_v62, %v16209_v28  ;;  %v5750_v23 = vmax.f32 %v16178_v20, %v16232_v8  ;;  %v5419_v49 = vrot.slane %v5101_v5, 1 }
 0x3a6   : > { %4991 = vst.msk [vmem:[#allocation2 + $0x328] sm:$0xff] %vm1513_vm3, %v4879_v17  ;;  %11421 = vmatpush3.bf16.msra.mxu1 %v16138_v36  ;;  %v5414_v38 = vsel %vm1025_vm0, %v5411_v7, %v5413_v0  ;;  %v5415_v54 = vrot.slane %v5099_v50, 1  ;;  %v16239_v36 = vmax.f32 %v16135_v34, %v5380_v47  ;;  %v5763_v34 = vmax.f32 %v16160_v41, %v16218_v9 }
 0x3a7   : > { %11422 = vmatprep.subr.bf16.mxu1 %v5925_v61  ;;  %v16236_v60 = vmax.f32 %v5097_v56, %v5414_v38  ;;  %v4262_v56 = vld [vmem:[#allocation2 + $0x340] sm:$0xff]  ;;  %v5918_v20 = vpack.c.bf16 %v5746_v45, %v5745_v44  ;;  %v5919_v44 = vpack.c.bf16 %v5748_v29, %v5747_v10  ;;  %v4268_v38 = vld [vmem:[#allocation2 + $0x370] sm:$0xff] }
 0x3a8   : > { %v12226_v22 = vpop.f32.mrb[92].mxu0  ;;  %v5416_v51 = vsel %vm1025_vm0, %v5413_v0, %v5415_v54  ;;  %v5418_v16 = vsel %vm1025_vm0, %v5415_v54, %v5417_v42  ;;  %v5927_v17 = vpack.c.bf16 %v5764_v24, %v5763_v34  ;;  %v5749_v55 = vmax.f32 %v16076_v12, %v16239_v36  ;;  %v4269_v34 = vld [vmem:[#allocation2 + $0x378] sm:$0xff] }
 0x3a9   : > { %v4884_v39 = vadd.f32 %v12226_v22, %v4264_v30  ;;  %v4747_v40 = vpop.f32.mrb[93].mxu0  ;;  %6612 = vmatmul.mubr.bf16.gmra.mrb[4].mxu1 %v12992_v43  ;;  %v5766_v58 = vmax.f32 %v16187_v48, %v16236_v60  ;;  %v16261_v6 = vmax.f32 %v5098_v27, %v5416_v51  ;;  %v5642_v63 = vmax.f32 %v5099_v50, %v5418_v16  ;;  %v12995_v48 = vld [vmem:[%s17782_s5 + $0x78] ss:$28 sps:$4 sm:$0xff]   ;;  %v4266_v51 = vld [vmem:[#allocation2 + $0x360] sm:$0xff] }
 0x3aa   : > { %v4882_v7 = vadd.f32 %v4747_v40, %v4262_v56  ;;  %11423 = vmatpush3.bf16.msra.mxu1 %v16174_v21  ;;  %v12227_v59 = vpop.f32.mrb[94].mxu0  ;;  %6619 = vmatprep.mubr.bf16.mxu1 %v12997_v2  ;;  %v5104_v35 = vld [vmem:[#allocation2 + $0x330] sm:$0xff]  ;;  %v5765_v27 = vmax.f32 %v16184_v37, %v16245_v13  ;;  %v5920_v18 = vpack.c.bf16 %v5750_v23, %v5749_v55 }
 0x3ab   : > { %4996 = vst.msk [vmem:[#allocation2 + $0x350] sm:$0xff] %vm1513_vm3, %v4884_v39  ;;  %v4885_v41 = vadd.f32 %v12227_v59, %v4265_v33  ;;  %11424 = vmatprep.subr.bf16.mxu1 %v5926_v32  ;;  %v4750_v15 = vpop.f32.mrb[95].mxu0  ;;  %v5102_v21 = vld [vmem:[#allocation2 + $0x320] sm:$0xff]  ;;  %v5425_v43 = vrot.slane %v5104_v35, 1  ;;  %v5767_v12 = vmax.f32 %v16218_v9, %v16261_v6  ;;  %v5420_v2 = vsel %vm1025_vm0, %v5417_v42, %v5419_v49 }
 0x3ac   : > { %4994 = vst.msk [vmem:[#allocation2 + $0x340] sm:$0xff] %vm1513_vm3, %v4882_v7  ;;  %v4883_v62 = vadd.f32 %v4750_v15, %v4263_v4  ;;  %v5421_v47 = vrot.slane %v5102_v21, 1  ;;  %v16267_v26 = vld [vmem:[#allocation2 + $0x338] sm:$0xff]  ;;  %v5928_v37 = vpack.c.bf16 %v5766_v58, %v5765_v27  ;;  %v5768_v45 = vmax.f32 %v16220_v14, %v5642_v63  ;;  %v4267_v7 = vld [vmem:[#allocation2 + $0x368] sm:$0xff] }
 0x3ad   : > { %4997 = vst.msk [vmem:[#allocation2 + $0x358] sm:$0xff] %vm1513_vm3, %v4885_v41  ;;  %v5103_v0 = vld [vmem:[#allocation2 + $0x328] sm:$0xff]  ;;  %v5427_v52 = vrot.slane %v16267_v26, 1  ;;  %v5751_v24 = vmax.f32 %v16199_v25, %v16059_v3  ;;  %v5752_v23 = vmax.f32 %v16209_v28, %v16063_v57 }
 0x3ae   : > { %4995 = vst.msk [vmem:[#allocation2 + $0x348] sm:$0xff] %vm1513_vm3, %v4883_v62  ;;  %11425 = vmatpush3.bf16.msra.mxu1 %v5918_v20  ;;  %v5423_v61 = vrot.slane %v5103_v0, 1  ;;  %v5422_v50 = vsel %vm1025_vm0, %v5419_v49, %v5421_v47  ;;  %v12998_v57 = vld [vmem:[%s17782_s5 + $0xb0] ss:$28 sps:$4 sm:$0xff]  }
 0x3af   : > { %11426 = vmatprep.subr.bf16.mxu1 %v5927_v17  ;;  %v16289_v32 = vmax.f32 %v5101_v5, %v5422_v50  ;;  %v5428_v9 = vsel %vm1025_vm0, %v5425_v43, %v5427_v52  ;;  %v5643_v5 = vmax.f32 %v16211_v31, %v5420_v2  ;;  %v13003_v62 = vld [vmem:[%s17782_s5 + $0xec] ss:$28 sps:$4 sm:$0xff]   ;;  %v5754_v17 = vmax.f32 %v16232_v8, %v16127_v53 }
 0x3b0   : > { %v12230_v54 = vpop.f32.mrb[96].mxu0  ;;  %v5424_v30 = vsel %vm1025_vm0, %v5421_v47, %v5423_v61  ;;  %v5426_v22 = vsel %vm1025_vm0, %v5423_v61, %v5425_v43  ;;  %v16308_v15 = vmax.f32 %v5104_v35, %v5428_v9  ;;  %v5921_v47 = vpack.c.bf16 %v5752_v23, %v5751_v24 }
 0x3b1   : > { %v4888_v10 = vadd.f32 %v12230_v54, %v4268_v38  ;;  %v4763_v39 = vpop.f32.mrb[97].mxu0  ;;  %6620 = vmatmul.mubr.bf16.gmra.mrb[8].mxu1 %v12995_v48  ;;  %v16291_v56 = vmax.f32 %v5102_v21, %v5424_v30  ;;  %v16293_v40 = vmax.f32 %v5103_v0, %v5426_v22  ;;  %v5770_v25 = vmax.f32 %v16236_v60, %v16289_v32  ;;  %v13001_v54 = vld [vmem:[%s17782_s5 + $0xe8] ss:$28 sps:$4 sm:$0xff]  }
 0x3b2   : > { %v4886_v42 = vadd.f32 %v4763_v39, %v4266_v51  ;;  %11427 = vmatpush3.bf16.msra.mxu1 %v5919_v44  ;;  %v12231_v14 = vpop.f32.mrb[98].mxu0  ;;  %6627 = vmatprep.mubr.bf16.mxu1 %v13000_v11  ;;  %v5108_v4 = vld [vmem:[#allocation2 + $0x350] sm:$0xff]  ;;  %v5769_v60 = vmax.f32 %v16245_v13, %v5643_v5  ;;  %v5773_v13 = vmax.f32 %v5643_v5, %v16308_v15  ;;  %v13006_v22 = vld [vmem:[%s17782_s5 + $0x124] ss:$28 sps:$4 sm:$0xff]  }
 0x3b3   : > { %5000 = vst.msk [vmem:[#allocation2 + $0x370] sm:$0xff] %vm1513_vm3, %v4888_v10  ;;  %v4889_v16 = vadd.f32 %v12231_v14, %v4269_v34  ;;  %11428 = vmatprep.subr.bf16.mxu1 %v5928_v37  ;;  %v4766_v33 = vpop.f32.mrb[99].mxu0  ;;  %v5771_v59 = vmax.f32 %v16261_v6, %v16291_v56  ;;  %v5772_v29 = vmax.f32 %v5642_v63, %v16293_v40  ;;  %v5106_v41 = vld [vmem:[#allocation2 + $0x340] sm:$0xff]  ;;  %v5433_v63 = vrot.slane %v5108_v4, 1 }
 0x3b4   : > { %4998 = vst.msk [vmem:[#allocation2 + $0x360] sm:$0xff] %vm1513_vm3, %v4886_v42  ;;  %v4887_v3 = vadd.f32 %v4766_v33, %v4267_v7  ;;  %v5429_v31 = vrot.slane %v5106_v41, 1  ;;  %v16310_v58 = vld [vmem:[#allocation2 + $0x358] sm:$0xff]  ;;  %v5929_v6 = vpack.c.bf16 %v5768_v45, %v5767_v12  ;;  %v5930_v27 = vpack.c.bf16 %v5770_v25, %v5769_v60  ;;  %v13015_v60 = vld [vmem:[%s17782_s5 + $0x1cc] ss:$28 sps:$4 sm:$0xff]  }
 0x3b5   : > { %5001 = vst.msk [vmem:[#allocation2 + $0x378] sm:$0xff] %vm1513_vm3, %v4889_v16  ;;  %v5931_v21 = vpack.c.bf16 %v5772_v29, %v5771_v59  ;;  %v5107_v28 = vld [vmem:[#allocation2 + $0x348] sm:$0xff]  ;;  %v16317_v49 = vrot.slane %v16310_v58, 1  ;;  %v5753_v53 = vmax.f32 %v16239_v36, %v16148_v19 }
 0x3b6   : > { %4999 = vst.msk [vmem:[#allocation2 + $0x368] sm:$0xff] %vm1513_vm3, %v4887_v3  ;;  %11429 = vmatpush3.bf16.msra.mxu1 %v5920_v18  ;;  %v5430_v35 = vsel %vm1025_vm0, %v5427_v52, %v5429_v31  ;;  %v5431_v20 = vrot.slane %v5107_v28, 1  ;;  %v13009_v3 = vld [vmem:[%s17782_s5 + $0x15c] ss:$28 sps:$4 sm:$0xff]  }
 0x3b7   : > { %11430 = vmatprep.subr.bf16.mxu1 %v5929_v6  ;;  %12233 = vmatpush3.bf16.msra.mxu0 %v5931_v21  ;;  %v5648_v48 = vmax.f32 %v16267_v26, %v5430_v35  ;;  %v5436_v43 = vsel %vm1025_vm0, %v5433_v63, %v16317_v49  ;;  %v5922_v18 = vpack.c.bf16 %v5754_v17, %v5753_v53  ;;  %v13030_v6 = vld [vmem:[%s17782_s5 + $0x18] ss:$28 sps:$4 sm:$0xff]   ;;  %v13038_v35 = vld [vmem:[%s17782_s5 + $0x88] ss:$28 sps:$4 sm:$0xff]  }
 0x3b8   : > { %12234 = vmatprep.subr.bf16.mxu0 %v13302_v46  ;;  %v5432_v55 = vsel %vm1025_vm0, %v5429_v31, %v5431_v20  ;;  %v5434_v0 = vsel %vm1025_vm0, %v5431_v20, %v5433_v63  ;;  %v5651_v12 = vmax.f32 %v5108_v4, %v5436_v43  ;;  %v5652_v10 = vmax.f32 %v16310_v58, %v16317_v49  ;;  %v13007_v21 = vld [vmem:[%s17782_s5 + $0x158] ss:$28 sps:$4 sm:$0xff]   ;;  %v13018_v20 = vld [vmem:[%s17782_s5 + $0x204] ss:$28 sps:$4 sm:$0xff]  }
 0x3b9   : > { %6628 = vmatmul.mubr.bf16.gmra.mrb[12].mxu1 %v12998_v57  ;;  %v5774_v52 = vmax.f32 %v16289_v32, %v5648_v48  ;;  %v5649_v44 = vmax.f32 %v5106_v41, %v5432_v55  ;;  %v5650_v61 = vmax.f32 %v5107_v28, %v5434_v0  ;;  %v13004_v41 = vld [vmem:[%s17782_s5 + $0x120] ss:$28 sps:$4 sm:$0xff]   ;;  %v6430_v4 = vsel %vm6428_vm5, 4294967295, %v13301_v1  ;;  %v13012_v57 = vld [vmem:[%s17782_s5 + $0x194] ss:$28 sps:$4 sm:$0xff]  }
 0x3ba   : > { %11431 = vmatpush3.bf16.msra.mxu1 %v5921_v47  ;;  %6635 = vmatprep.mubr.bf16.mxu1 %v13003_v62  ;;  %v5112_v8 = vld [vmem:[#allocation2 + $0x370] sm:$0xff]  ;;  %v5777_v9 = vmax.f32 %v16308_v15, %v5651_v12  ;;  %v6431_v15 = vsel %vm6429_vm6, %v6430_v4, 0  ;;  %v13013_v62 = vld [vmem:[%s17782_s5 + $0x1c8] ss:$28 sps:$4 sm:$0xff]   ;;  %v13042_v63 = vld [vmem:[%s17782_s5 + $0xc0] ss:$28 sps:$4 sm:$0xff]  }
 0x3bb   : > { %11432 = vmatprep.subr.bf16.mxu1 %v5930_v27  ;;  %v5932_v26 = vpack.c.bf16 %v5774_v52, %v5773_v13  ;;  %v5775_v11 = vmax.f32 %v16291_v56, %v5649_v44  ;;  %v5776_v50 = vmax.f32 %v16293_v40, %v5650_v61  ;;  %v5110_v37 = vld [vmem:[#allocation2 + $0x360] sm:$0xff]  ;;  %v5661_v19 = vrot.slane %v5112_v8, 1  ;;  %v13034_v28 = vld [vmem:[%s17782_s5 + $0x50] ss:$28 sps:$4 sm:$0xff]   ;;  %v13021_v17 = vld [vmem:[%s17782_s5 + $0x23c] ss:$28 sps:$4 sm:$0xff]  }
 0x3bc   : > { %v5657_v2 = vrot.slane %v5110_v37, 1  ;;  %v5113_v38 = vld [vmem:[#allocation2 + $0x378] sm:$0xff]  ;;  %v13024_v13 = vld [vmem:[%s17782_s5 + $0x274] ss:$28 sps:$4 sm:$0xff]   ;;  %v5880_v55 = vld [vmem:[%s17782_s5 + $0x2a8] sm:$0x33] }
 0x3bd   : > { %12235 = vmatpush3.bf16.msra.mxu0 %v5932_v26  ;;  %v5111_v45 = vld [vmem:[#allocation2 + $0x368] sm:$0xff]  ;;  %v5663_v36 = vrot.slane %v5113_v38, 1  ;;  %v5933_v51 = vpack.c.bf16 %v5776_v50, %v5775_v11  ;;  %v13016_v47 = vld [vmem:[%s17782_s5 + $0x200] ss:$28 sps:$4 sm:$0xff]   ;;  %v13019_v27 = vld [vmem:[%s17782_s5 + $0x238] ss:$28 sps:$4 sm:$0xff]   ;;  %v10734_v43 = vcombine.low %v5880_v55, %v5880_v55 }
 0x3be   : > { %11433 = vmatpush3.bf16.msra.mxu1 %v5922_v18  ;;  %12236 = vmatprep.subr.bf16.mxu0 %v13302_v46  ;;  %v5658_v30 = vsel %vm1025_vm0, %v16317_v49, %v5657_v2  ;;  %v5659_v32 = vrot.slane %v5111_v45, 1  ;;  %v13010_v49 = vld [vmem:[%s17782_s5 + $0x190] ss:$28 sps:$4 sm:$0xff]   ;;  %v13062_v50 = vld [vmem:[%s17782_s5 + $0x1d8] ss:$28 sps:$4 sm:$0xff]   ;;  %vm7360_vm6 = vcmask 190608  }
 0x3bf   : > { %v5670_v39 = vmax.f32 %v16310_v58, %v5658_v30  ;;  %v5664_v56 = vsel %vm1025_vm0, %v5661_v19, %v5663_v36  ;;  %v5674_v40 = vmax.f32 %v5113_v38, %v5663_v36  ;;  %12296 = vmatprep.subr.bf16.mxu1 %v13302_v46  ;;  %v13050_v0 = vld [vmem:[%s17782_s5 + $0x130] ss:$28 sps:$4 sm:$0xff]   ;;  %v13031_v18 = vld [vmem:[%s17782_s5 + $0x48] ss:$28 sps:$4 sm:$0xff]  }
 0x3c0   : > { %v5660_v42 = vsel %vm1025_vm0, %v5657_v2, %v5659_v32  ;;  %v5662_v34 = vsel %vm1025_vm0, %v5659_v32, %v5661_v19  ;;  %v5673_v14 = vmax.f32 %v5112_v8, %v5664_v56  ;;  %v13022_v52 = vld [vmem:[%s17782_s5 + $0x270] ss:$28 sps:$4 sm:$0xff]   ;;  %v13058_v8 = vld [vmem:[%s17782_s5 + $0x1a0] ss:$28 sps:$4 sm:$0xff]  }
 0x3c1   : > { %6636 = vmatmul.mubr.bf16.gmra.mrb[16].mxu1 %v13001_v54  ;;  %12237 = vmatpush3.bf16.msra.mxu0 %v5933_v51  ;;  %v5778_v24 = vmax.f32 %v5648_v48, %v5670_v39  ;;  %v5671_v5 = vmax.f32 %v5110_v37, %v5660_v42  ;;  %v5672_v16 = vmax.f32 %v5111_v45, %v5662_v34  ;;  %v13046_v48 = vld [vmem:[%s17782_s5 + $0xf8] ss:$28 sps:$4 sm:$0xff]   ;;  %v13027_v26 = vld [vmem:[%s17782_s5 + $0x10] ss:$28 sps:$4 sm:$0xff]   ;;  %v13037_v2 = vld [vmem:[%s17782_s5 + $0x84] ss:$28 sps:$4 sm:$0xff]  }
 0x3c2   : > { %12238 = vmatprep.subr.bf16.mxu0 %v13302_v46  ;;  %6643 = vmatprep.mubr.bf16.mxu1 %v13006_v22  ;;  %v5781_v7 = vmax.f32 %v5651_v12, %v5673_v14  ;;  %v5782_v23 = vmax.f32 %v5652_v10, %v5674_v40  ;;  %v13029_v53 = vld [vmem:[%s17782_s5 + $0x14] ss:$28 sps:$4 sm:$0xff]   ;;  %v13033_v11 = vld [vmem:[%s17782_s5 + $0x4c] ss:$28 sps:$4 sm:$0xff]   ;;  %v13035_v22 = vld [vmem:[%s17782_s5 + $0x80] ss:$28 sps:$4 sm:$0xff]  }
 0x3c3   : > { %v5934_v33 = vpack.c.bf16 %v5778_v24, %v5777_v9  ;;  %v5779_v59 = vmax.f32 %v5649_v44, %v5671_v5  ;;  %v5780_v29 = vmax.f32 %v5650_v61, %v5672_v16  ;;  %v10735_v44 = vcombine.high %v5880_v55, %v5880_v55  ;;  %v13054_v61 = vld [vmem:[%s17782_s5 + $0x168] ss:$28 sps:$4 sm:$0xff]   ;;  %v13066_v36 = vld [vmem:[%s17782_s5 + $0x210] ss:$28 sps:$4 sm:$0xff]   ;;  %v13041_v10 = vld [vmem:[%s17782_s5 + $0xbc] ss:$28 sps:$4 sm:$0xff]  }
 0x3c4   : > { %v5936_v31 = vpack.c.bf16 %v5782_v23, %v5781_v7  ;;  %v13070_v9 = vld [vmem:[%s17782_s5 + $0x248] ss:$28 sps:$4 sm:$0xff]   ;;  %v13039_v34 = vld [vmem:[%s17782_s5 + $0xb8] ss:$28 sps:$4 sm:$0xff]   ;;  %v13043_v23 = vld [vmem:[%s17782_s5 + $0xf0] ss:$28 sps:$4 sm:$0xff]  }
 0x3c5   : > { %12239 = vmatpush3.bf16.msra.mxu0 %v5934_v33  ;;  %v5935_v25 = vpack.c.bf16 %v5780_v29, %v5779_v59  ;;  %v13045_v24 = vld [vmem:[%s17782_s5 + $0xf4] ss:$28 sps:$4 sm:$0xff]   ;;  %v13074_v59 = vld [vmem:[%s17782_s5 + $0x280] ss:$28 sps:$4 sm:$0xff]   ;;  %v13049_v4 = vld [vmem:[%s17782_s5 + $0x12c] ss:$28 sps:$4 sm:$0xff]  }
 0x3c6   : > { %12240 = vmatprep.subr.bf16.mxu0 %v13302_v46  ;;  %v6433_v58 = vand.u32 %v6431_v15, %v5936_v31 }
 0x3c9   : > { %6644 = vmatmul.mubr.bf16.gmra.mrb[20].mxu1 %v13004_v41  ;;  %12241 = vmatpush3.bf16.msra.mxu0 %v5935_v25 }
 0x3ca   : > { %12242 = vmatprep.subr.bf16.mxu0 %v13302_v46  ;;  %6651 = vmatprep.mubr.bf16.mxu1 %v13009_v3 }
 0x3cd   : > { %12243 = vmatpush3.bf16.msra.mxu0 %v6433_v58  ;;  %v13077_v58 = vld [vmem:[%s17782_s5 + $0x2b8] ss:$0 sps:$4 sm:$0x33]  }
 0x3d0   : > { %12245 = vmatmul.mubr.msk.bf16.vlgmr.msra.gmra.mrb[100].mxu0 %vm6388_vm7, %v13030_v6 }
 0x3d1   : > { %6652 = vmatmul.mubr.bf16.gmra.mrb[24].mxu1 %v13007_v21  ;;  %12248 = vmatprep.mubr.msk.bf16.mxu0 %vm13303_vm4, %v13302_v46  ;;  %v13047_v21 = vld [vmem:[%s17782_s5 + $0x128] ss:$28 sps:$4 sm:$0xff]  }
 0x3d2   : > { %6659 = vmatprep.mubr.bf16.mxu1 %v13012_v57 }
 0x3d8   : > { %12249 = vmatmul.mubr.msk.bf16.gmra.mrb[104].mxu0 %vm6388_vm7, %v13034_v28  ;;  %v13053_v28 = vld [vmem:[%s17782_s5 + $0x164] ss:$28 sps:$4 sm:$0xff]  }
 0x3d9   : > { %6660 = vmatmul.mubr.bf16.gmra.mrb[28].mxu1 %v13010_v49  ;;  %12252 = vmatprep.mubr.msk.bf16.mxu0 %vm13303_vm4, %v13302_v46 }
 0x3da   : > { %6667 = vmatprep.mubr.bf16.mxu1 %v13015_v60 }
 0x3e0   : > { %12253 = vmatmul.mubr.msk.bf16.gmra.mrb[108].mxu0 %vm6388_vm7, %v13038_v35 }
 0x3e1   : > { %6668 = vmatmul.mubr.bf16.gmra.mrb[32].mxu1 %v13013_v62  ;;  %12256 = vmatprep.mubr.msk.bf16.mxu0 %vm13303_vm4, %v13302_v46 }
 0x3e2   : > { %6675 = vmatprep.mubr.bf16.mxu1 %v13018_v20 }
 0x3e8   : > { %12257 = vmatmul.mubr.msk.bf16.gmra.mrb[112].mxu0 %vm6388_vm7, %v13042_v63  ;;  %v13051_v63 = vld [vmem:[%s17782_s5 + $0x160] ss:$28 sps:$4 sm:$0xff]  }
 0x3e9   : > { %6676 = vmatmul.mubr.bf16.gmra.mrb[36].mxu1 %v13016_v47  ;;  %12260 = vmatprep.mubr.msk.bf16.mxu0 %vm13303_vm4, %v13302_v46 }
 0x3ea   : > { %6683 = vmatprep.mubr.bf16.mxu1 %v13021_v17  ;;  %v13057_v17 = vld [vmem:[%s17782_s5 + $0x19c] ss:$28 sps:$4 sm:$0xff]  }
 0x3f0   : > { %12261 = vmatmul.mubr.msk.bf16.gmra.mrb[116].mxu0 %vm6388_vm7, %v13046_v48 }
 0x3f1   : > { %6684 = vmatmul.mubr.bf16.gmra.mrb[40].mxu1 %v13019_v27  ;;  %12264 = vmatprep.mubr.msk.bf16.mxu0 %vm13303_vm4, %v13302_v46 }
 0x3f2   : > { %6691 = vmatprep.mubr.bf16.mxu1 %v13024_v13 }
 0x3f8   : > { %12265 = vmatmul.mubr.msk.bf16.gmra.mrb[120].mxu0 %vm6388_vm7, %v13050_v0 }
 0x3f9   : > { %6692 = vmatmul.mubr.bf16.gmra.mrb[44].mxu1 %v13022_v52  ;;  %12268 = vmatprep.mubr.msk.bf16.mxu0 %vm13303_vm4, %v13302_v46  ;;  %v13055_v52 = vld [vmem:[%s17782_s5 + $0x198] ss:$28 sps:$4 sm:$0xff]  }
 0x3fa   : > { %6699 = vmatprep.mubr.bf16.mxu1 %v10735_v44 }
 0x400   : > { %12269 = vmatmul.mubr.msk.bf16.gmra.mrb[124].mxu0 %vm6388_vm7, %v13054_v61  ;;  %v13061_v61 = vld [vmem:[%s17782_s5 + $0x1d4] ss:$28 sps:$4 sm:$0xff]  }
 0x401   : > { %6700 = vmatmul.mubr.bf16.gmra.mrb[48].mxu1 %v10734_v43  ;;  %12272 = vmatprep.mubr.msk.bf16.mxu0 %vm13303_vm4, %v13302_v46 }
 0x402   : > { %6739 = vmatprep.mubr.bf16.mxu1 %v13029_v53 }
 0x408   : > { %12273 = vmatmul.mubr.msk.bf16.gmra.mrb[128].mxu0 %vm6388_vm7, %v13058_v8 }
 0x409   : > { %6740 = vmatmul.mubr.bf16.vlgmr.msra.gmra.mrb[52].mxu1 %v13027_v26  ;;  %12276 = vmatprep.mubr.msk.bf16.mxu0 %vm13303_vm4, %v13302_v46 }
 0x40a   : > { %6747 = vmatprep.mubr.bf16.mxu1 %v13033_v11 }
 0x40c   : > { %v11246_v37 = vpop.f32.mrb[204].mxu1 }
 0x40d   : > { %v11247_v12 = vpop.f32.mrb[205].mxu1 }
 0x40e   : > { %v16469_v38 = vadd.f32 %v11247_v12, %v11246_v37  ;;  %v11249_v54 = vpop.f32.mrb[206].mxu1 }
 0x40f   : > { %v11250_v45 = vpop.f32.mrb[207].mxu1 }
 0x410   : > { %12277 = vmatmul.mubr.msk.bf16.gmra.mrb[132].mxu0 %vm6388_vm7, %v13062_v50  ;;  %v16472_v19 = vadd.f32 %v11250_v45, %v11249_v54  ;;  %v13059_v50 = vld [vmem:[%s17782_s5 + $0x1d0] ss:$28 sps:$4 sm:$0xff]  }
 0x411   : > { %6748 = vmatmul.mubr.bf16.gmra.mrb[56].mxu1 %v13031_v18  ;;  %12280 = vmatprep.mubr.msk.bf16.mxu0 %vm13303_vm4, %v13302_v46  ;;  %v13065_v18 = vld [vmem:[%s17782_s5 + $0x20c] ss:$28 sps:$4 sm:$0xff]  }
 0x412   : > { %6755 = vmatprep.mubr.bf16.mxu1 %v13037_v2 }
 0x414   : > { %v11252_v30 = vpop.f32.mrb[208].mxu1 }
 0x415   : > { %v11253_v32 = vpop.f32.mrb[209].mxu1 }
 0x416   : > { %v16485_v51 = vadd.f32 %v11253_v32, %v11252_v30  ;;  %v11255_v39 = vpop.f32.mrb[210].mxu1  ;;  %v13063_v30 = vld [vmem:[%s17782_s5 + $0x208] ss:$28 sps:$4 sm:$0xff]  }
 0x417   : > { %v11256_v56 = vpop.f32.mrb[211].mxu1  ;;  %v13069_v32 = vld [vmem:[%s17782_s5 + $0x244] ss:$28 sps:$4 sm:$0xff]  }
 0x418   : > { %12281 = vmatmul.mubr.msk.bf16.gmra.mrb[136].mxu0 %vm6388_vm7, %v13066_v36  ;;  %v16488_v40 = vadd.f32 %v11256_v56, %v11255_v39 }
 0x419   : > { %6756 = vmatmul.mubr.bf16.gmra.mrb[60].mxu1 %v13035_v22  ;;  %12284 = vmatprep.mubr.msk.bf16.mxu0 %vm13303_vm4, %v13302_v46 }
 0x41a   : > { %6763 = vmatprep.mubr.bf16.mxu1 %v13041_v10 }
 0x41c   : > { %v11258_v42 = vpop.f32.mrb[212].mxu1 }
 0x41d   : > { %v11259_v14 = vpop.f32.mrb[213].mxu1 }
 0x41e   : > { %v16501_v5 = vadd.f32 %v11259_v14, %v11258_v42  ;;  %v11261_v16 = vpop.f32.mrb[214].mxu1 }
 0x41f   : > { %v11262_v7 = vpop.f32.mrb[215].mxu1 }
 0x420   : > { %12285 = vmatmul.mubr.msk.bf16.gmra.mrb[140].mxu0 %vm6388_vm7, %v13070_v9  ;;  %v16504_v33 = vadd.f32 %v11262_v7, %v11261_v16 }
 0x421   : > { %6764 = vmatmul.mubr.bf16.gmra.mrb[64].mxu1 %v13039_v34  ;;  %12288 = vmatprep.mubr.msk.bf16.mxu0 %vm13303_vm4, %v13302_v46  ;;  %v13067_v34 = vld [vmem:[%s17782_s5 + $0x240] ss:$28 sps:$4 sm:$0xff]  }
 0x422   : > { %6771 = vmatprep.mubr.bf16.mxu1 %v13045_v24  ;;  %v13073_v24 = vld [vmem:[%s17782_s5 + $0x27c] ss:$28 sps:$4 sm:$0xff]  }
 0x424   : > { %v11264_v29 = vpop.f32.mrb[216].mxu1 }
 0x425   : > { %v11265_v41 = vpop.f32.mrb[217].mxu1 }
 0x426   : > { %v16517_v3 = vadd.f32 %v11265_v41, %v11264_v29  ;;  %v11267_v25 = vpop.f32.mrb[218].mxu1 }
 0x427   : > { %v11268_v31 = vpop.f32.mrb[219].mxu1 }
 0x428   : > { %12289 = vmatmul.mubr.msk.bf16.gmra.mrb[144].mxu0 %vm6388_vm7, %v13074_v59  ;;  %v16520_v15 = vadd.f32 %v11268_v31, %v11267_v25 }
 0x429   : > { %6772 = vmatmul.mubr.bf16.gmra.mrb[68].mxu1 %v13043_v23  ;;  %12292 = vmatprep.mubr.msk.bf16.mxu0 %vm13303_vm4, %v13302_v46  ;;  %v5881_v23 = vld [vmem:[%s17782_s5 + $0x2b0] sm:$0x33] }
 0x42a   : > { %6779 = vmatprep.mubr.bf16.mxu1 %v13049_v4  ;;  %v13071_v4 = vld [vmem:[%s17782_s5 + $0x278] ss:$28 sps:$4 sm:$0xff]   ;;  %v10737_v31 = vcombine.high %v5881_v23, %v5881_v23 }
 0x42c   : > { %v11270_v6 = vpop.f32.mrb[220].mxu1 }
 0x42d   : > { %v11271_v57 = vpop.f32.mrb[221].mxu1 }
 0x42e   : > { %v16533_v49 = vadd.f32 %v11271_v57, %v11270_v6  ;;  %v11273_v60 = vpop.f32.mrb[222].mxu1 }
 0x42f   : > { %v11274_v35 = vpop.f32.mrb[223].mxu1 }
 0x430   : > { %12293 = vmatmul.mubr.msk.bf16.gmra.mrb[148].mxu0 %vm6388_vm7, %v13077_v58  ;;  %v16536_v62 = vadd.f32 %v11274_v35, %v11273_v60  ;;  %v10736_v60 = vcombine.low %v5881_v23, %v5881_v23  ;;  %vm7463_vm7 = vcmask 240832  }
 0x431   : > { %6780 = vmatmul.mubr.bf16.gmra.mrb[72].mxu1 %v13047_v21 }
 0x432   : > { %6787 = vmatprep.mubr.bf16.mxu1 %v13053_v28 }
 0x434   : > { %v11276_v20 = vpop.f32.mrb[224].mxu1 }
 0x435   : > { %v11277_v47 = vpop.f32.mrb[225].mxu1 }
 0x436   : > { %v16544_v48 = vadd.f32 %v11277_v47, %v11276_v20  ;;  %v11279_v27 = vpop.f32.mrb[226].mxu1 }
 0x437   : > { %v11280_v13 = vpop.f32.mrb[227].mxu1 }
 0x438   : > { %v16546_v55 = vadd.f32 %v11280_v13, %v11279_v27 }
 0x439   : > { %6788 = vmatmul.mubr.bf16.gmra.mrb[76].mxu1 %v13051_v63 }
 0x43a   : > { %6795 = vmatprep.mubr.bf16.mxu1 %v13057_v17 }
 0x43c   : > { %v11282_v0 = vpop.f32.mrb[228].mxu1 }
 0x43d   : > { %v11283_v44 = vpop.f32.mrb[229].mxu1 }
 0x43e   : > { %v16554_v43 = vadd.f32 %v11283_v44, %v11282_v0  ;;  %v11285_v53 = vpop.f32.mrb[230].mxu1 }
 0x43f   : > { %v11286_v8 = vpop.f32.mrb[231].mxu1 }
 0x440   : > { %v16556_v26 = vadd.f32 %v11286_v8, %v11285_v53 }
 0x441   : > { %6796 = vmatmul.mubr.bf16.gmra.mrb[80].mxu1 %v13055_v52 }
 0x442   : > { %6803 = vmatprep.mubr.bf16.mxu1 %v13061_v61  ;;  %v16609_v61 = vld [vmem:[%s17779_s2] ss:$0 sm:$0xff] }
 0x443   : > { %v6486_v23 = vadd.f32 %v16501_v5, %v16609_v61  ;;  %v6497_v5 = vadd.f32 %v16520_v15, %v16609_v61 }
 0x444   : > { %v11288_v11 = vpop.f32.mrb[232].mxu1 }
 0x445   : > { %v11289_v37 = vpop.f32.mrb[233].mxu1 }
 0x446   : > { %v16564_v12 = vadd.f32 %v11289_v37, %v11288_v11  ;;  %v11291_v2 = vpop.f32.mrb[234].mxu1  ;;  %v6470_v11 = vadd.f32 %v16469_v38, %v16609_v61  ;;  %v6481_v38 = vadd.f32 %v16488_v40, %v16609_v61 }
 0x447   : > { %v11292_v54 = vpop.f32.mrb[235].mxu1 }
 0x448   : > { %v16566_v45 = vadd.f32 %v11292_v54, %v11291_v2  ;;  %v6473_v2 = vadd.f32 %v16472_v19, %v16609_v61 }
 0x449   : > { %6804 = vmatmul.mubr.bf16.gmra.mrb[84].mxu1 %v13059_v50 }
 0x44a   : > { %6811 = vmatprep.mubr.bf16.mxu1 %v13065_v18 }
 0x44c   : > { %v11294_v36 = vpop.f32.mrb[236].mxu1 }
 0x44d   : > { %v11295_v22 = vpop.f32.mrb[237].mxu1 }
 0x44e   : > { %v16574_v10 = vadd.f32 %v11295_v22, %v11294_v36  ;;  %v11297_v39 = vpop.f32.mrb[238].mxu1 }
 0x44f   : > { %v11298_v56 = vpop.f32.mrb[239].mxu1 }
 0x450   : > { %v16576_v9 = vadd.f32 %v11298_v56, %v11297_v39  ;;  %v6478_v39 = vadd.f32 %v16485_v51, %v16609_v61  ;;  %v6489_v51 = vadd.f32 %v16504_v33, %v16609_v61 }
 0x451   : > { %6812 = vmatmul.mubr.bf16.gmra.mrb[88].mxu1 %v13063_v30 }
 0x452   : > { %6819 = vmatprep.mubr.bf16.mxu1 %v13069_v32 }
 0x454   : > { %v11300_v42 = vpop.f32.mrb[240].mxu1 }
 0x455   : > { %v11301_v14 = vpop.f32.mrb[241].mxu1 }
 0x456   : > { %v16584_v16 = vadd.f32 %v11301_v14, %v11300_v42  ;;  %v11303_v7 = vpop.f32.mrb[242].mxu1 }
 0x457   : > { %v11304_v59 = vpop.f32.mrb[243].mxu1 }
 0x458   : > { %v16586_v29 = vadd.f32 %v11304_v59, %v11303_v7 }
 0x459   : > { %6820 = vmatmul.mubr.bf16.gmra.mrb[92].mxu1 %v13067_v34 }
 0x45a   : > { %6827 = vmatprep.mubr.bf16.mxu1 %v13073_v24 }
 0x45c   : > { %v11306_v41 = vpop.f32.mrb[244].mxu1 }
 0x45d   : > { %v11307_v25 = vpop.f32.mrb[245].mxu1 }
 0x45e   : > { %v16594_v58 = vadd.f32 %v11307_v25, %v11306_v41  ;;  %v11309_v6 = vpop.f32.mrb[246].mxu1 }
 0x45f   : > { %v11310_v21 = vpop.f32.mrb[247].mxu1 }
 0x460   : > { %v16596_v57 = vadd.f32 %v11310_v21, %v11309_v6 }
 0x461   : > { %6828 = vmatmul.mubr.bf16.gmra.mrb[96].mxu1 %v13071_v4 }
 0x462   : > { %6835 = vmatprep.mubr.bf16.mxu1 %v10737_v31 }
 0x464   : > { %v11312_v28 = vpop.f32.mrb[248].mxu1 }
 0x465   : > { %v11313_v35 = vpop.f32.mrb[249].mxu1 }
 0x466   : > { %v16598_v20 = vadd.f32 %v11313_v35, %v11312_v28  ;;  %v11315_v63 = vpop.f32.mrb[250].mxu1 }
 0x467   : > { %v11316_v47 = vpop.f32.mrb[251].mxu1 }
 0x468   : > { %v16600_v17 = vadd.f32 %v11316_v47, %v11315_v63 }
 0x469   : > { %6836 = vmatmul.mubr.bf16.gmra.mrb[100].mxu1 %v10736_v60  ;;  %v6494_v60 = vadd.f32 %v16517_v3, %v16609_v61  ;;  %v6505_v3 = vadd.f32 %v16536_v62, %v16609_v61 }
 0x46a   : > { %12300 = vmatprep.mubr.msk.bf16.mxu1 %vm13303_vm4, %v13302_v46 }
 0x46c   : > { %v11318_v27 = vpop.f32.mrb[252].mxu1 }
 0x46d   : > { %v11319_v13 = vpop.f32.mrb[253].mxu1 }
 0x46e   : > { %v16604_v0 = vadd.f32 %v11319_v13, %v11318_v27  ;;  %v11321_v52 = vpop.f32.mrb[254].mxu1 }
 0x46f   : > { %v11322_v44 = vpop.f32.mrb[255].mxu1 }
 0x474   : > { %v11340_v53 = vpop.f32.mrb[0].mxu1 }
 0x475   : > { %v11341_v8 = vpop.f32.mrb[1].mxu1 }
 0x476   : > { %v11342_v50 = vadd.f32 %v11341_v8, %v11340_v53  ;;  %v11343_v37 = vpop.f32.mrb[2].mxu1  ;;  %v6502_v53 = vadd.f32 %v16533_v49, %v16609_v61  ;;  %v6513_v49 = vadd.f32 %v16546_v55, %v16609_v61  ;;  %v6521_v55 = vadd.f32 %v16556_v26, %v16609_v61 }
 0x477   : > { %v11344_v18 = vpop.f32.mrb[3].mxu1  ;;  %v6529_v26 = vadd.f32 %v16566_v45, %v16609_v61  ;;  %v6537_v45 = vadd.f32 %v16576_v9, %v16609_v61  ;;  %v6545_v9 = vadd.f32 %v16586_v29, %v16609_v61  ;;  %v6553_v29 = vadd.f32 %v16596_v57, %v16609_v61 }
 0x478   : > { %v16615_v54 = vadd.f32 %v11342_v50, %v6470_v11  ;;  %v11345_v36 = vadd.f32 %v11344_v18, %v11343_v37  ;;  %v6561_v57 = vadd.f32 %v16600_v17, %v16609_v61 }
 0x47a   : > { %v16617_v30 = vadd.f32 %v11345_v36, %v6473_v2 }
 0x47c   : > { %v11346_v22 = vpop.f32.mrb[4].mxu1 }
 0x47d   : > { %v11347_v32 = vpop.f32.mrb[5].mxu1 }
 0x47e   : > { %v11348_v56 = vadd.f32 %v11347_v32, %v11346_v22  ;;  %v11349_v42 = vpop.f32.mrb[6].mxu1  ;;  %v6510_v22 = vadd.f32 %v16544_v48, %v16609_v61  ;;  %v6518_v48 = vadd.f32 %v16554_v43, %v16609_v61  ;;  %v6526_v43 = vadd.f32 %v16564_v12, %v16609_v61 }
 0x47f   : > { %v11350_v34 = vpop.f32.mrb[7].mxu1  ;;  %v6534_v12 = vadd.f32 %v16574_v10, %v16609_v61  ;;  %v6542_v10 = vadd.f32 %v16584_v16, %v16609_v61  ;;  %v6550_v16 = vadd.f32 %v16594_v58, %v16609_v61  ;;  %v6558_v58 = vadd.f32 %v16598_v20, %v16609_v61 }
 0x480   : > { %v16623_v14 = vadd.f32 %v11348_v56, %v6478_v39  ;;  %v11351_v24 = vadd.f32 %v11350_v34, %v11349_v42  ;;  %v6566_v20 = vadd.f32 %v16604_v0, %v16609_v61 }
 0x482   : > { %v16625_v19 = vadd.f32 %v11351_v24, %v6481_v38 }
 0x484   : > { %v11352_v7 = vpop.f32.mrb[8].mxu1 }
 0x485   : > { %v11353_v59 = vpop.f32.mrb[9].mxu1 }
 0x486   : > { %v11354_v41 = vadd.f32 %v11353_v59, %v11352_v7  ;;  %v11355_v4 = vpop.f32.mrb[10].mxu1 }
 0x487   : > { %v11356_v25 = vpop.f32.mrb[11].mxu1 }
 0x488   : > { %v16631_v31 = vadd.f32 %v11354_v41, %v6486_v23  ;;  %v11357_v6 = vadd.f32 %v11356_v25, %v11355_v4 }
 0x48a   : > { %v16633_v40 = vadd.f32 %v11357_v6, %v6489_v51 }
 0x48c   : > { %v11358_v21 = vpop.f32.mrb[12].mxu1 }
 0x48d   : > { %v11359_v28 = vpop.f32.mrb[13].mxu1 }
 0x48e   : > { %v11360_v35 = vadd.f32 %v11359_v28, %v11358_v21  ;;  %v11361_v63 = vpop.f32.mrb[14].mxu1 }
 0x48f   : > { %v11362_v47 = vpop.f32.mrb[15].mxu1 }
 0x490   : > { %v16639_v27 = vadd.f32 %v11360_v35, %v6494_v60  ;;  %v11363_v13 = vadd.f32 %v11362_v47, %v11361_v63 }
 0x492   : > { %v16641_v33 = vadd.f32 %v11363_v13, %v6497_v5 }
 0x494   : > { %v11364_v52 = vpop.f32.mrb[16].mxu1 }
 0x495   : > { %v11365_v44 = vpop.f32.mrb[17].mxu1 }
 0x496   : > { %v11366_v8 = vadd.f32 %v11365_v44, %v11364_v52  ;;  %v11367_v11 = vpop.f32.mrb[18].mxu1 }
 0x497   : > { %v11368_v50 = vpop.f32.mrb[19].mxu1 }
 0x498   : > { %v16647_v37 = vadd.f32 %v11366_v8, %v6502_v53  ;;  %v11369_v18 = vadd.f32 %v11368_v50, %v11367_v11 }
 0x49a   : > { %v16649_v15 = vadd.f32 %v11369_v18, %v6505_v3 }
 0x49c   : > { %v11370_v2 = vpop.f32.mrb[20].mxu1 }
 0x49d   : > { %v11371_v36 = vpop.f32.mrb[21].mxu1 }
 0x49e   : > { %v11372_v32 = vadd.f32 %v11371_v36, %v11370_v2  ;;  %v11373_v39 = vpop.f32.mrb[22].mxu1 }
 0x49f   : > { %v11374_v56 = vpop.f32.mrb[23].mxu1 }
 0x4a0   : > { %v16655_v42 = vadd.f32 %v11372_v32, %v6510_v22  ;;  %v11375_v34 = vadd.f32 %v11374_v56, %v11373_v39 }
 0x4a2   : > { %v16657_v62 = vadd.f32 %v11375_v34, %v6513_v49 }
 0x4a3   : > { %v16659_v38 = vpop.f32.mrb[100].mxu0 }
 0x4a4   : > { %v11376_v24 = vpop.f32.mrb[24].mxu1  ;;  %v12246_v7 = vpop.f32.mrb[101].mxu0 }
 0x4a5   : > { %v11377_v59 = vpop.f32.mrb[25].mxu1  ;;  %v16661_v23 = vpop.f32.mrb[102].mxu0 }
 0x4a6   : > { %v11378_v41 = vadd.f32 %v11377_v59, %v11376_v24  ;;  %v11379_v4 = vpop.f32.mrb[26].mxu1  ;;  %v12247_v25 = vpop.f32.mrb[103].mxu0 }
 0x4a7   : > { %v11380_v51 = vpop.f32.mrb[27].mxu1 }
 0x4a8   : > { %v16667_v6 = vadd.f32 %v11378_v41, %v6518_v48  ;;  %v11381_v21 = vadd.f32 %v11380_v51, %v11379_v4 }
 0x4aa   : > { %v16669_v28 = vadd.f32 %v11381_v21, %v6521_v55 }
 0x4ab   : > { %v16671_v60 = vpop.f32.mrb[104].mxu0 }
 0x4ac   : > { %v11382_v35 = vpop.f32.mrb[28].mxu1  ;;  %v12250_v63 = vpop.f32.mrb[105].mxu0 }
 0x4ad   : > { %v11383_v47 = vpop.f32.mrb[29].mxu1  ;;  %v16673_v5 = vpop.f32.mrb[106].mxu0 }
 0x4ae   : > { %v11384_v13 = vadd.f32 %v11383_v47, %v11382_v35  ;;  %v11385_v52 = vpop.f32.mrb[30].mxu1  ;;  %v12251_v44 = vpop.f32.mrb[107].mxu0 }
 0x4af   : > { %v11386_v53 = vpop.f32.mrb[31].mxu1 }
 0x4b0   : > { %v16679_v8 = vadd.f32 %v11384_v13, %v6526_v43  ;;  %v11387_v11 = vadd.f32 %v11386_v53, %v11385_v52 }
 0x4b2   : > { %v16681_v50 = vadd.f32 %v11387_v11, %v6529_v26 }
 0x4b3   : > { %v16683_v3 = vpop.f32.mrb[108].mxu0 }
 0x4b4   : > { %v11388_v18 = vpop.f32.mrb[32].mxu1  ;;  %v12254_v2 = vpop.f32.mrb[109].mxu0 }
 0x4b5   : > { %v11389_v36 = vpop.f32.mrb[33].mxu1  ;;  %v16685_v22 = vpop.f32.mrb[110].mxu0 }
 0x4b6   : > { %v11390_v32 = vadd.f32 %v11389_v36, %v11388_v18  ;;  %v11391_v39 = vpop.f32.mrb[34].mxu1  ;;  %v12255_v56 = vpop.f32.mrb[111].mxu0 }
 0x4b7   : > { %v11392_v49 = vpop.f32.mrb[35].mxu1 }
 0x4b8   : > { %v16691_v34 = vadd.f32 %v11390_v32, %v6534_v12  ;;  %v11393_v24 = vadd.f32 %v11392_v49, %v11391_v39 }
 0x4ba   : > { %v16693_v7 = vadd.f32 %v11393_v24, %v6537_v45 }
 0x4bb   : > { %v16695_v59 = vpop.f32.mrb[112].mxu0 }
 0x4bc   : > { %v11394_v48 = vpop.f32.mrb[36].mxu1  ;;  %v12258_v41 = vpop.f32.mrb[113].mxu0 }
 0x4bd   : > { %v11395_v4 = vpop.f32.mrb[37].mxu1  ;;  %v16697_v25 = vpop.f32.mrb[114].mxu0 }
 0x4be   : > { %v11396_v51 = vadd.f32 %v11395_v4, %v11394_v48  ;;  %v11397_v55 = vpop.f32.mrb[38].mxu1  ;;  %v12259_v21 = vpop.f32.mrb[115].mxu0 }
 0x4bf   : > { %v11398_v35 = vpop.f32.mrb[39].mxu1 }
 0x4c0   : > { %v16703_v63 = vadd.f32 %v11396_v51, %v6542_v10  ;;  %v11399_v47 = vadd.f32 %v11398_v35, %v11397_v55 }
 0x4c2   : > { %v16705_v43 = vadd.f32 %v11399_v47, %v6545_v9 }
 0x4c3   : > { %v16707_v13 = vpop.f32.mrb[116].mxu0 }
 0x4c4   : > { %v11400_v52 = vpop.f32.mrb[40].mxu1  ;;  %v12262_v44 = vpop.f32.mrb[117].mxu0 }
 0x4c5   : > { %v11401_v53 = vpop.f32.mrb[41].mxu1  ;;  %v16709_v26 = vpop.f32.mrb[118].mxu0 }
 0x4c6   : > { %v11402_v11 = vadd.f32 %v11401_v53, %v11400_v52  ;;  %v11403_v18 = vpop.f32.mrb[42].mxu1  ;;  %v12263_v2 = vpop.f32.mrb[119].mxu0 }
 0x4c7   : > { %v11404_v36 = vpop.f32.mrb[43].mxu1 }
 0x4c8   : > { %v16715_v12 = vadd.f32 %v11402_v11, %v6550_v16  ;;  %v11405_v32 = vadd.f32 %v11404_v36, %v11403_v18 }
 0x4ca   : > { %v16717_v39 = vadd.f32 %v11405_v32, %v6553_v29 }
 0x4cb   : > { %v16719_v56 = vpop.f32.mrb[120].mxu0 }
 0x4cc   : > { %v11406_v49 = vpop.f32.mrb[44].mxu1  ;;  %v12266_v45 = vpop.f32.mrb[121].mxu0 }
 0x4cd   : > { %v11407_v24 = vpop.f32.mrb[45].mxu1  ;;  %v16721_v48 = vpop.f32.mrb[122].mxu0 }
 0x4ce   : > { %v11408_v41 = vadd.f32 %v11407_v24, %v11406_v49  ;;  %v11409_v4 = vpop.f32.mrb[46].mxu1  ;;  %v12267_v10 = vpop.f32.mrb[123].mxu0 }
 0x4cf   : > { %v11410_v51 = vpop.f32.mrb[47].mxu1 }
 0x4d0   : > { %v16727_v55 = vadd.f32 %v11408_v41, %v6558_v58  ;;  %v11411_v21 = vadd.f32 %v11410_v51, %v11409_v4 }
 0x4d2   : > { %v16729_v35 = vadd.f32 %v11411_v21, %v6561_v57 }
 0x4d3   : > { %v16731_v9 = vpop.f32.mrb[124].mxu0 }
 0x4d4   : > { %v11412_v47 = vpop.f32.mrb[48].mxu1  ;;  %v12270_v52 = vpop.f32.mrb[125].mxu0 }
 0x4d5   : > { %v11413_v44 = vpop.f32.mrb[49].mxu1  ;;  %v16733_v53 = vpop.f32.mrb[126].mxu0 }
 0x4d6   : > { %v11414_v16 = vadd.f32 %v11413_v44, %v11412_v47  ;;  %v11415_v11 = vpop.f32.mrb[50].mxu1  ;;  %v12271_v18 = vpop.f32.mrb[127].mxu0 }
 0x4d7   : > { %v11416_v2 = vpop.f32.mrb[51].mxu1 }
 0x4d8   : > { %v16737_v17 = vadd.f32 %v11414_v16, %v6566_v20 }
 0x4db   : > { %v16739_v36 = vpop.f32.mrb[128].mxu0 }
 0x4dc   : > { %v11434_v29 = vpop.f32.mrb[52].mxu1  ;;  %v12274_v32 = vpop.f32.mrb[129].mxu0 }
 0x4dd   : > { %v11435_v49 = vpop.f32.mrb[53].mxu1  ;;  %v16741_v45 = vpop.f32.mrb[130].mxu0 }
 0x4de   : > { %v11436_v24 = vadd.f32 %v11435_v49, %v11434_v29  ;;  %v11437_v58 = vpop.f32.mrb[54].mxu1  ;;  %v12275_v41 = vpop.f32.mrb[131].mxu0 }
 0x4df   : > { %v11438_v4 = vpop.f32.mrb[55].mxu1 }
 0x4e0   : > { %v11439_v10 = vadd.f32 %v11438_v4, %v11437_v58  ;;  %v6742_v0 = vadd.f32 %v11436_v24, %v16615_v54 }
 0x4e2   : > { %v6878_v61 = vadd.f32 %v16659_v38, %v6742_v0  ;;  %v6745_v51 = vadd.f32 %v11439_v10, %v16617_v30 }
 0x4e3   : > { %v16746_v57 = vpop.f32.mrb[132].mxu0 }
 0x4e4   : > { %v16748_v21 = vmax.f32 %v6878_v61, 0.0  ;;  %v6881_v47 = vadd.f32 %v16661_v23, %v6745_v51  ;;  %v11440_v52 = vpop.f32.mrb[56].mxu1  ;;  %v12278_v44 = vpop.f32.mrb[133].mxu0 }
 0x4e5   : > { %v11441_v20 = vpop.f32.mrb[57].mxu1  ;;  %v16751_v16 = vpop.f32.mrb[134].mxu0 }
 0x4e6   : > { %7004 = vst.msk [vmem:[#allocation3] sm:$0xff] %vm1513_vm3, %v16748_v21  ;;  %v16755_v11 = vmax.f32 %v6881_v47, 0.0  ;;  %v11442_v54 = vadd.f32 %v11441_v20, %v11440_v52  ;;  %v11443_v38 = vpop.f32.mrb[58].mxu1  ;;  %7156 = vrot.lane.b32.xlu1 %v16748_v21, %s13304_s16  ;;  %7053 = vrot.lane.b32.xlu0 %v16748_v21, %s13305_s21  ;;  %v12279_v30 = vpop.f32.mrb[135].mxu0 }
 0x4e7   : > { %v11444_v23 = vpop.f32.mrb[59].mxu1 }
 0x4e8   : > { %7005 = vst.msk [vmem:[#allocation3 + $0x8] sm:$0xff] %vm1513_vm3, %v16755_v11  ;;  %v11445_v18 = vadd.f32 %v11444_v23, %v11443_v38  ;;  %v6750_v2 = vadd.f32 %v11442_v54, %v16623_v14 }
 0x4ea   : > { %v6886_v29 = vadd.f32 %v16671_v60, %v6750_v2  ;;  %7055 = vrot.lane.b32.xlu0 %v16755_v11, %s13305_s21  ;;  %v6753_v32 = vadd.f32 %v11445_v18, %v16625_v19 }
 0x4eb   : > { %v16768_v49 = vpop.f32.mrb[136].mxu0 }
 0x4ec   : > { %v6981_v24 = vmax.f32 %v6886_v29, 0.0  ;;  %v6889_v58 = vadd.f32 %v16673_v5, %v6753_v32  ;;  %v11446_v41 = vpop.f32.mrb[60].mxu1  ;;  %v12282_v4 = vpop.f32.mrb[137].mxu0 }
 0x4ed   : > { %v11447_v10 = vpop.f32.mrb[61].mxu1  ;;  %v16771_v0 = vpop.f32.mrb[138].mxu0 }
 0x4ee   : > { %7006 = vst.msk [vmem:[#allocation3 + $0x10] sm:$0xff] %vm1513_vm3, %v6981_v24  ;;  %v6982_v14 = vmax.f32 %v6889_v58, 0.0  ;;  %v11448_v61 = vadd.f32 %v11447_v10, %v11446_v41  ;;  %v11449_v60 = vpop.f32.mrb[62].mxu1  ;;  %7158 = vrot.lane.b32.xlu0 %v16755_v11, %s13304_s16  ;;  %7057 = vrot.lane.b32.xlu1 %v6981_v24, %s13305_s21  ;;  %v12283_v19 = vpop.f32.mrb[139].mxu0 }
 0x4ef   : > { %v11450_v51 = vpop.f32.mrb[63].mxu1 }
 0x4f0   : > { %7007 = vst.msk [vmem:[#allocation3 + $0x18] sm:$0xff] %vm1513_vm3, %v6982_v14  ;;  %v11451_v5 = vadd.f32 %v11450_v51, %v11449_v60  ;;  %v6758_v47 = vadd.f32 %v11448_v61, %v16631_v31 }
 0x4f2   : > { %v6894_v52 = vadd.f32 %v16683_v3, %v6758_v47  ;;  %7261 = vrot.lane.b32.xlu0 %v16755_v11, %s13306_s20  ;;  %7160 = vrot.lane.b32.xlu1 %v6981_v24, %s13304_s16  ;;  %v6761_v44 = vadd.f32 %v11451_v5, %v16633_v40 }
 0x4f3   : > { %v16784_v20 = vpop.f32.mrb[140].mxu0 }
 0x4f4   : > { %v6983_v54 = vmax.f32 %v6894_v52, 0.0  ;;  %v6897_v38 = vadd.f32 %v16685_v22, %v6761_v44  ;;  %v11452_v30 = vpop.f32.mrb[64].mxu1  ;;  %v12286_v23 = vpop.f32.mrb[141].mxu0  ;;  %v13079_v44 = vld [vmem:[%s17780_s3 + $0x18] sm:$0x7f]  }
 0x4f5   : > { %v11453_v18 = vpop.f32.mrb[65].mxu1  ;;  %v16787_v2 = vpop.f32.mrb[142].mxu0  ;;  %v7566_v23 = vsel %vm1025_vm0, %v13079_v44, 0 }
 0x4f6   : > { %7008 = vst.msk [vmem:[#allocation3 + $0x20] sm:$0xff] %vm1513_vm3, %v6983_v54  ;;  %v16790_v31 = vmax.f32 %v6897_v38, 0.0  ;;  %v11454_v3 = vadd.f32 %v11453_v18, %v11452_v30  ;;  %v11455_v29 = vpop.f32.mrb[66].mxu1  ;;  %7366 = vrot.lane.b32.xlu0 %v6981_v24, %s13307_s22  ;;  %7263 = vrot.lane.b32.xlu1 %v6981_v24, %s13306_s20  ;;  %v12287_v40 = vpop.f32.mrb[143].mxu0 }
 0x4f7   : > { %v11456_v32 = vpop.f32.mrb[67].mxu1 }
 0x4f8   : > { %7009 = vst.msk [vmem:[#allocation3 + $0x28] sm:$0xff] %vm1513_vm3, %v16790_v31  ;;  %v11457_v22 = vadd.f32 %v11456_v32, %v11455_v29  ;;  %v6766_v58 = vadd.f32 %v11454_v3, %v16639_v27  ;;  %v13078_v27 = vld [vmem:[%s17780_s3 + $0x10] sm:$0xff]  }
 0x4f9   : > { %12297 = vmatpush3.bf16.msra.mxu1 %v13078_v27 }
 0x4fa   : > { %v6902_v41 = vadd.f32 %v16695_v59, %v6766_v58  ;;  %7162 = vrot.lane.b32.xlu0 %v6982_v14, %s13304_s16  ;;  %7059 = vrot.lane.b32.xlu1 %v6982_v14, %s13305_s21  ;;  %v6769_v4 = vadd.f32 %v11457_v22, %v16641_v33 }
 0x4fb   : > { %v16801_v10 = vpop.f32.mrb[144].mxu0  ;;  %12298 = vmatprep.subr.bf16.mxu1 %v13302_v46 }
 0x4fc   : > { %v16803_v61 = vmax.f32 %v6902_v41, 0.0  ;;  %v6905_v24 = vadd.f32 %v16697_v25, %v6769_v4  ;;  %v11458_v60 = vpop.f32.mrb[68].mxu1  ;;  %v12290_v19 = vpop.f32.mrb[145].mxu0 }
 0x4fd   : > { %v11459_v51 = vpop.f32.mrb[69].mxu1  ;;  %v16809_v59 = vpop.f32.mrb[146].mxu0  ;;  %12299 = vmatpush3.bf16.msra.mxu1 %v7566_v23 }
 0x4fe   : > { %7010 = vst.msk [vmem:[#allocation3 + $0x30] sm:$0xff] %vm1513_vm3, %v16803_v61  ;;  %v16813_v5 = vmax.f32 %v6905_v24, 0.0  ;;  %v11460_v33 = vadd.f32 %v11459_v51, %v11458_v60  ;;  %v11461_v47 = vpop.f32.mrb[70].mxu1  ;;  %7265 = vrot.lane.b32.xlu0 %v6982_v14, %s13306_s20  ;;  %7368 = vrot.lane.b32.xlu1 %v6982_v14, %s13307_s22  ;;  %v12291_v25 = vpop.f32.mrb[147].mxu0 }
 0x4ff   : > { %v11462_v52 = vpop.f32.mrb[71].mxu1  ;;  %12336 = vmatprep.subr.bf16.mxu1 %v13302_v46 }
 0x500   : > { %7011 = vst.msk [vmem:[#allocation3 + $0x38] sm:$0xff] %vm1513_vm3, %v16813_v5  ;;  %v11463_v38 = vadd.f32 %v11462_v52, %v11461_v47  ;;  %v6774_v30 = vadd.f32 %v11460_v33, %v16647_v37 }
 0x502   : > { %v6910_v18 = vadd.f32 %v16707_v13, %v6774_v30  ;;  %7164 = vrot.lane.b32.xlu1 %v6983_v54, %s13304_s16  ;;  %7061 = vrot.lane.b32.xlu0 %v6983_v54, %s13305_s21  ;;  %v6777_v14 = vadd.f32 %v11463_v38, %v16649_v15 }
 0x503   : > { %v16829_v3 = vpop.f32.mrb[148].mxu0 }
 0x504   : > { %v16831_v29 = vmax.f32 %v6910_v18, 0.0  ;;  %v6913_v40 = vadd.f32 %v16709_v26, %v6777_v14  ;;  %v11464_v37 = vpop.f32.mrb[72].mxu1  ;;  %v12294_v32 = vpop.f32.mrb[149].mxu0 }
 0x505   : > { %v11465_v22 = vpop.f32.mrb[73].mxu1  ;;  %v6976_v58 = vpop.f32.mrb[150].mxu0 }
 0x506   : > { %7012 = vst.msk [vmem:[#allocation3 + $0x40] sm:$0xff] %vm1513_vm3, %v16831_v29  ;;  %v16837_v13 = vmax.f32 %v6913_v40, 0.0  ;;  %v11466_v41 = vadd.f32 %v11465_v22, %v11464_v37  ;;  %v11467_v15 = vpop.f32.mrb[74].mxu1  ;;  %7267 = vrot.lane.b32.xlu1 %v6983_v54, %s13306_s20  ;;  %7370 = vrot.lane.b32.xlu0 %v6983_v54, %s13307_s22  ;;  %v12295_v4 = vpop.f32.mrb[151].mxu0 }
 0x507   : > { %v11468_v24 = vpop.f32.mrb[75].mxu1 }
 0x508   : > { %7013 = vst.msk [vmem:[#allocation3 + $0x48] sm:$0xff] %vm1513_vm3, %v16837_v13  ;;  %v11469_v26 = vadd.f32 %v11468_v24, %v11467_v15  ;;  %v6782_v60 = vadd.f32 %v11466_v41, %v16655_v42 }
 0x50a   : > { %v6918_v19 = vadd.f32 %v16719_v56, %v6782_v60  ;;  %7063 = vrot.lane.b32.xlu1 %v16790_v31, %s13305_s21  ;;  %7065 = vrot.lane.b32.xlu0 %v16803_v61, %s13305_s21  ;;  %v6785_v27 = vadd.f32 %v11469_v26, %v16657_v62 }
 0x50c   : > { %v16850_v51 = vmax.f32 %v6918_v19, 0.0  ;;  %v6921_v54 = vadd.f32 %v16721_v48, %v6785_v27  ;;  %v11470_v33 = vpop.f32.mrb[76].mxu1 }
 0x50d   : > { %v11471_v47 = vpop.f32.mrb[77].mxu1 }
 0x50e   : > { %7014 = vst.msk [vmem:[#allocation3 + $0x50] sm:$0xff] %vm1513_vm3, %v16850_v51  ;;  %v16855_v42 = vmax.f32 %v6921_v54, 0.0  ;;  %v11472_v56 = vadd.f32 %v11471_v47, %v11470_v33  ;;  %v11473_v25 = vpop.f32.mrb[78].mxu1  ;;  %7166 = vrot.lane.b32.xlu1 %v16790_v31, %s13304_s16  ;;  %7168 = vrot.lane.b32.xlu0 %v16803_v61, %s13304_s16 }
 0x50f   : > { %v11474_v62 = vpop.f32.mrb[79].mxu1 }
 0x510   : > { %7015 = vst.msk [vmem:[#allocation3 + $0x58] sm:$0xff] %vm1513_vm3, %v16855_v42  ;;  %v11475_v48 = vadd.f32 %v11474_v62, %v11473_v25  ;;  %v6790_v52 = vadd.f32 %v11472_v56, %v16667_v6 }
 0x512   : > { %v6926_v44 = vadd.f32 %v16731_v9, %v6790_v52  ;;  %7269 = vrot.lane.b32.xlu1 %v16790_v31, %s13306_s20  ;;  %7271 = vrot.lane.b32.xlu0 %v16803_v61, %s13306_s20  ;;  %v6793_v38 = vadd.f32 %v11475_v48, %v16669_v28 }
 0x514   : > { %v16870_v30 = vmax.f32 %v6926_v44, 0.0  ;;  %v6929_v23 = vadd.f32 %v16733_v53, %v6793_v38  ;;  %v11476_v18 = vpop.f32.mrb[80].mxu1 }
 0x515   : > { %v11477_v14 = vpop.f32.mrb[81].mxu1 }
 0x516   : > { %7016 = vst.msk [vmem:[#allocation3 + $0x60] sm:$0xff] %vm1513_vm3, %v16870_v30  ;;  %v16875_v6 = vmax.f32 %v6929_v23, 0.0  ;;  %v11478_v9 = vadd.f32 %v11477_v14, %v11476_v18  ;;  %v11479_v40 = vpop.f32.mrb[82].mxu1  ;;  %7372 = vrot.lane.b32.xlu1 %v16790_v31, %s13307_s22  ;;  %7374 = vrot.lane.b32.xlu0 %v16803_v61, %s13307_s22 }
 0x517   : > { %v11480_v28 = vpop.f32.mrb[83].mxu1 }
 0x518   : > { %7017 = vst.msk [vmem:[#allocation3 + $0x68] sm:$0xff] %vm1513_vm3, %v16875_v6  ;;  %v11481_v53 = vadd.f32 %v11480_v28, %v11479_v40  ;;  %v6798_v37 = vadd.f32 %v11478_v9, %v16679_v8 }
 0x51a   : > { %v6934_v32 = vadd.f32 %v16739_v36, %v6798_v37  ;;  %7067 = vrot.lane.b32.xlu1 %v16813_v5, %s13305_s21  ;;  %7069 = vrot.lane.b32.xlu0 %v16831_v29, %s13305_s21  ;;  %v6801_v31 = vadd.f32 %v11481_v53, %v16681_v50 }
 0x51c   : > { %v16890_v22 = vmax.f32 %v6934_v32, 0.0  ;;  %v6937_v61 = vadd.f32 %v16741_v45, %v6801_v31  ;;  %v11482_v58 = vpop.f32.mrb[84].mxu1 }
 0x51d   : > { %v11483_v41 = vpop.f32.mrb[85].mxu1 }
 0x51e   : > { %7018 = vst.msk [vmem:[#allocation3 + $0x70] sm:$0xff] %vm1513_vm3, %v16890_v22  ;;  %v16895_v8 = vmax.f32 %v6937_v61, 0.0  ;;  %v11484_v36 = vadd.f32 %v11483_v41, %v11482_v58  ;;  %v11485_v15 = vpop.f32.mrb[86].mxu1  ;;  %7170 = vrot.lane.b32.xlu1 %v16813_v5, %s13304_s16  ;;  %7172 = vrot.lane.b32.xlu0 %v16831_v29, %s13304_s16 }
 0x51f   : > { %v11486_v50 = vpop.f32.mrb[87].mxu1 }
 0x520   : > { %7019 = vst.msk [vmem:[#allocation3 + $0x78] sm:$0xff] %vm1513_vm3, %v16895_v8  ;;  %v11487_v45 = vadd.f32 %v11486_v50, %v11485_v15  ;;  %v6806_v4 = vadd.f32 %v11484_v36, %v16691_v34 }
 0x522   : > { %v6942_v24 = vadd.f32 %v16746_v57, %v6806_v4  ;;  %7273 = vrot.lane.b32.xlu1 %v16813_v5, %s13306_s20  ;;  %7275 = vrot.lane.b32.xlu0 %v16831_v29, %s13306_s20  ;;  %v6809_v26 = vadd.f32 %v11487_v45, %v16693_v7 }
 0x524   : > { %v16910_v60 = vmax.f32 %v6942_v24, 0.0  ;;  %v6945_v19 = vadd.f32 %v16751_v16, %v6809_v26  ;;  %v11488_v27 = vpop.f32.mrb[88].mxu1 }
 0x525   : > { %v11489_v54 = vpop.f32.mrb[89].mxu1 }
 0x526   : > { %7020 = vst.msk [vmem:[#allocation3 + $0x80] sm:$0xff] %vm1513_vm3, %v16910_v60  ;;  %v16915_v34 = vmax.f32 %v6945_v19, 0.0  ;;  %v11490_v57 = vadd.f32 %v11489_v54, %v11488_v27  ;;  %v11491_v33 = vpop.f32.mrb[90].mxu1  ;;  %7376 = vrot.lane.b32.xlu1 %v16813_v5, %s13307_s22  ;;  %7378 = vrot.lane.b32.xlu0 %v16831_v29, %s13307_s22 }
 0x527   : > { %v11492_v7 = vpop.f32.mrb[91].mxu1 }
 0x528   : > { %7021 = vst.msk [vmem:[#allocation3 + $0x88] sm:$0xff] %vm1513_vm3, %v16915_v34  ;;  %v11493_v16 = vadd.f32 %v11492_v7, %v11491_v33  ;;  %v6814_v47 = vadd.f32 %v11490_v57, %v16703_v63 }
 0x52a   : > { %v6950_v56 = vadd.f32 %v16768_v49, %v6814_v47  ;;  %7071 = vrot.lane.b32.xlu1 %v16837_v13, %s13305_s21  ;;  %7073 = vrot.lane.b32.xlu0 %v16850_v51, %s13305_s21  ;;  %v6817_v5 = vadd.f32 %v11493_v16, %v16705_v43  ;;  %v13080_v47 = vld [vmem:[%s17780_s3] sm:$0xff]  }
 0x52c   : > { %v16930_v25 = vmax.f32 %v6950_v56, 0.0  ;;  %v6953_v29 = vadd.f32 %v16771_v0, %v6817_v5  ;;  %v11494_v62 = vpop.f32.mrb[92].mxu1  ;;  %v13081_v5 = vld [vmem:[%s17780_s3 + $0x8] sm:$0x7f]  }
 0x52d   : > { %v11495_v48 = vpop.f32.mrb[93].mxu1 }
 0x52e   : > { %7022 = vst.msk [vmem:[#allocation3 + $0x90] sm:$0xff] %vm1513_vm3, %v16930_v25  ;;  %v16935_v63 = vmax.f32 %v6953_v29, 0.0  ;;  %v11496_v49 = vadd.f32 %v11495_v48, %v11494_v62  ;;  %v11497_v52 = vpop.f32.mrb[94].mxu1  ;;  %7174 = vrot.lane.b32.xlu1 %v16837_v13, %s13304_s16  ;;  %7176 = vrot.lane.b32.xlu0 %v16850_v51, %s13304_s16 }
 0x52f   : > { %v11498_v43 = vpop.f32.mrb[95].mxu1 }
 0x530   : > { %7023 = vst.msk [vmem:[#allocation3 + $0x98] sm:$0xff] %vm1513_vm3, %v16935_v63  ;;  %v11499_v0 = vadd.f32 %v11498_v43, %v11497_v52  ;;  %v6822_v44 = vadd.f32 %v11496_v49, %v16715_v12 }
 0x532   : > { %v6958_v38 = vadd.f32 %v16784_v20, %v6822_v44  ;;  %7277 = vrot.lane.b32.xlu1 %v16837_v13, %s13306_s20  ;;  %7279 = vrot.lane.b32.xlu0 %v16850_v51, %s13306_s20  ;;  %v6825_v23 = vadd.f32 %v11499_v0, %v16717_v39 }
 0x534   : > { %v16950_v18 = vmax.f32 %v6958_v38, 0.0  ;;  %v6961_v14 = vadd.f32 %v16787_v2, %v6825_v23  ;;  %v11500_v9 = vpop.f32.mrb[96].mxu1 }
 0x535   : > { %v11501_v40 = vpop.f32.mrb[97].mxu1 }
 0x536   : > { %7024 = vst.msk [vmem:[#allocation3 + $0xa0] sm:$0xff] %vm1513_vm3, %v16950_v18  ;;  %v16955_v12 = vmax.f32 %v6961_v14, 0.0  ;;  %v11502_v20 = vadd.f32 %v11501_v40, %v11500_v9  ;;  %v11503_v28 = vpop.f32.mrb[98].mxu1  ;;  %7380 = vrot.lane.b32.xlu1 %v16837_v13, %s13307_s22  ;;  %7382 = vrot.lane.b32.xlu0 %v16850_v51, %s13307_s22 }
 0x537   : > { %v11504_v39 = vpop.f32.mrb[99].mxu1 }
 0x538   : > { %7025 = vst.msk [vmem:[#allocation3 + $0xa8] sm:$0xff] %vm1513_vm3, %v16955_v12  ;;  %v11505_v2 = vadd.f32 %v11504_v39, %v11503_v28  ;;  %v6830_v53 = vadd.f32 %v11502_v20, %v16727_v55 }
 0x53a   : > { %v6966_v37 = vadd.f32 %v16801_v10, %v6830_v53  ;;  %7075 = vrot.lane.b32.xlu1 %v16855_v42, %s13305_s21  ;;  %7077 = vrot.lane.b32.xlu0 %v16870_v30, %s13305_s21  ;;  %v6833_v13 = vadd.f32 %v11505_v2, %v16729_v35 }
 0x53c   : > { %v16970_v32 = vmax.f32 %v6966_v37, 0.0  ;;  %v6969_v51 = vadd.f32 %v16809_v59, %v6833_v13  ;;  %v11506_v31 = vpop.f32.mrb[100].mxu1 }
 0x53d   : > { %v11507_v61 = vpop.f32.mrb[101].mxu1 }
 0x53e   : > { %7026 = vst.msk [vmem:[#allocation3 + $0xb0] sm:$0xff] %vm1513_vm3, %v16970_v32  ;;  %v16975_v55 = vmax.f32 %v6969_v51, 0.0  ;;  %v11508_v10 = vadd.f32 %v11507_v61, %v11506_v31  ;;  %7178 = vrot.lane.b32.xlu1 %v16855_v42, %s13304_s16  ;;  %7180 = vrot.lane.b32.xlu0 %v16870_v30, %s13304_s16  ;;  %v11509_v58 = vpop.f32.mrb[102].mxu1 }
 0x53f   : > { %v11510_v35 = vpop.f32.mrb[103].mxu1 }
 0x540   : > { %7027 = vst.msk [vmem:[#allocation3 + $0xb8] sm:$0xff] %vm1513_vm3, %v16975_v55  ;;  %v6838_v59 = vadd.f32 %v11508_v10, %v16737_v17  ;;  %vm7257_vm3 = vcmask 140384  }
 0x542   : > { %v16985_v41 = vadd.f32 %v16829_v3, %v6838_v59  ;;  %7281 = vrot.lane.b32.xlu1 %v16855_v42, %s13306_s20  ;;  %7283 = vrot.lane.b32.xlu0 %v16870_v30, %s13306_s20 }
 0x544   : > { %v7003_v53 = vmax.f32 %v16985_v41, 0.0 }
 0x546   : > { %7384 = vrot.lane.b32.xlu1 %v16855_v42, %s13307_s22  ;;  %7386 = vrot.lane.b32.xlu0 %v16870_v30, %s13307_s22 }
 0x54a   : > { %7079 = vrot.lane.b32.xlu1 %v16875_v6, %s13305_s21  ;;  %7081 = vrot.lane.b32.xlu0 %v16890_v22, %s13305_s21 }
 0x54e   : > { %7182 = vrot.lane.b32.xlu1 %v16875_v6, %s13304_s16  ;;  %7184 = vrot.lane.b32.xlu0 %v16890_v22, %s13304_s16 }
 0x552   : > { %7285 = vrot.lane.b32.xlu1 %v16875_v6, %s13306_s20  ;;  %7287 = vrot.lane.b32.xlu0 %v16890_v22, %s13306_s20 }
 0x556   : > { %7388 = vrot.lane.b32.xlu1 %v16875_v6, %s13307_s22  ;;  %7390 = vrot.lane.b32.xlu0 %v16890_v22, %s13307_s22 }
 0x558   : > { %v7157_v17 = vpop.permute.xlu1 %7156  ;;  %v7054_v3 = vpop.permute.xlu0 %7053 }
 0x559   : > { %7129 = vst.msk [vmem:[#allocation3 - $0x1] sm:$0xfe] %vm7128_vm8, %v7054_v3  ;;  %vm8591_vm8 = vcmask 990208  }
 0x55a   : > { %7232 = vst.msk [vmem:[#allocation3 - $0x2] sm:$0xfc] %vm7231_vm9, %v7157_v17  ;;  %7083 = vrot.lane.b32.xlu1 %v16895_v8, %s13305_s21  ;;  %7085 = vrot.lane.b32.xlu0 %v16910_v60, %s13305_s21  ;;  %vm8498_vm9 = vcmask 1041408  }
 0x55c   : > { %v7056_v42 = vpop.permute.xlu0 %7055 }
 0x55d   : > { %7131 = vst.msk [vmem:[#allocation3 + $0x7] sm:$0xff] %vm7130_vm10, %v7056_v42 }
 0x55e   : > { %7186 = vrot.lane.b32.xlu1 %v16895_v8, %s13304_s16  ;;  %7188 = vrot.lane.b32.xlu0 %v16910_v60, %s13304_s16 }
 0x560   : > { %v7159_v30 = vpop.permute.xlu0 %7158  ;;  %v7058_v6 = vpop.permute.xlu1 %7057 }
 0x561   : > { %7234 = vst.msk [vmem:[#allocation3 + $0x6] sm:$0xff] %vm7233_vm11, %v7159_v30 }
 0x562   : > { %7132 = vst.msk [vmem:[#allocation3 + $0xf] sm:$0xff] %vm7130_vm10, %v7058_v6  ;;  %7289 = vrot.lane.b32.xlu1 %v16895_v8, %s13306_s20  ;;  %7291 = vrot.lane.b32.xlu0 %v16910_v60, %s13306_s20 }
 0x564   : > { %v7262_v22 = vpop.permute.xlu0 %7261  ;;  %v7161_v36 = vpop.permute.xlu1 %7160 }
 0x565   : > { %7337 = vst.msk [vmem:[#allocation3 + $0x5] sm:$0xff] %vm7336_vm12, %v7262_v22 }
 0x566   : > { %7235 = vst.msk [vmem:[#allocation3 + $0xe] sm:$0xff] %vm7233_vm11, %v7161_v36  ;;  %7392 = vrot.lane.b32.xlu1 %v16895_v8, %s13307_s22  ;;  %7394 = vrot.lane.b32.xlu0 %v16910_v60, %s13307_s22 }
 0x568   : > { %v7367_v15 = vpop.permute.xlu0 %7366  ;;  %v7264_v50 = vpop.permute.xlu1 %7263 }
 0x569   : > { %7338 = vst.msk [vmem:[#allocation3 + $0xd] sm:$0xff] %vm7336_vm12, %v7264_v50 }
 0x56a   : > { %7441 = vst.msk [vmem:[#allocation3 + $0xc] sm:$0xff] %vm7439_vm13, %v7367_v15  ;;  %7087 = vrot.lane.b32.xlu1 %v16915_v34, %s13305_s21  ;;  %7089 = vrot.lane.b32.xlu0 %v16930_v25, %s13305_s21 }
 0x56c   : > { %v7163_v45 = vpop.permute.xlu0 %7162  ;;  %v7060_v4 = vpop.permute.xlu1 %7059 }
 0x56d   : > { %7133 = vst.msk [vmem:[#allocation3 + $0x17] sm:$0xff] %vm7130_vm10, %v7060_v4 }
 0x56e   : > { %7236 = vst.msk [vmem:[#allocation3 + $0x16] sm:$0xff] %vm7233_vm11, %v7163_v45  ;;  %7190 = vrot.lane.b32.xlu1 %v16915_v34, %s13304_s16  ;;  %7192 = vrot.lane.b32.xlu0 %v16930_v25, %s13304_s16 }
 0x570   : > { %v7266_v8 = vpop.permute.xlu0 %7265  ;;  %v7369_v24 = vpop.permute.xlu1 %7368 }
 0x571   : > { %7339 = vst.msk [vmem:[#allocation3 + $0x15] sm:$0xff] %vm7336_vm12, %v7266_v8 }
 0x572   : > { %7442 = vst.msk [vmem:[#allocation3 + $0x14] sm:$0xff] %vm7439_vm13, %v7369_v24  ;;  %7293 = vrot.lane.b32.xlu1 %v16915_v34, %s13306_s20  ;;  %7295 = vrot.lane.b32.xlu0 %v16930_v25, %s13306_s20 }
 0x574   : > { %v7165_v26 = vpop.permute.xlu1 %7164  ;;  %v7062_v60 = vpop.permute.xlu0 %7061 }
 0x575   : > { %7134 = vst.msk [vmem:[#allocation3 + $0x1f] sm:$0xff] %vm7130_vm10, %v7062_v60 }
 0x576   : > { %7237 = vst.msk [vmem:[#allocation3 + $0x1e] sm:$0xff] %vm7233_vm11, %v7165_v26  ;;  %7396 = vrot.lane.b32.xlu1 %v16915_v34, %s13307_s22  ;;  %7398 = vrot.lane.b32.xlu0 %v16930_v25, %s13307_s22 }
 0x578   : > { %v7268_v19 = vpop.permute.xlu1 %7267  ;;  %v7371_v27 = vpop.permute.xlu0 %7370 }
 0x579   : > { %7340 = vst.msk [vmem:[#allocation3 + $0x1d] sm:$0xff] %vm7336_vm12, %v7268_v19  ;;  %v7495_v7 = vld [vmem:[#allocation3 + $0xe] sm:$0xff] }
 0x57a   : > { %7443 = vst.msk [vmem:[#allocation3 + $0x1c] sm:$0xff] %vm7439_vm13, %v7371_v27  ;;  %7194 = vrot.lane.b32.xlu0 %v16935_v63, %s13304_s16  ;;  %7091 = vrot.lane.b32.xlu1 %v16935_v63, %s13305_s21 }
 0x57c   : > { %v7064_v54 = vpop.permute.xlu1 %7063  ;;  %v7066_v57 = vpop.permute.xlu0 %7065 }
 0x57d   : > { %7135 = vst.msk [vmem:[#allocation3 + $0x27] sm:$0xff] %vm7130_vm10, %v7064_v54  ;;  %7136 = vst.msk [vmem:[#allocation3 + $0x2f] sm:$0xff] %vm7130_vm10, %v7066_v57 }
 0x57e   : > { %7400 = vrot.lane.b32.xlu0 %v16935_v63, %s13307_s22  ;;  %7297 = vrot.lane.b32.xlu1 %v16935_v63, %s13306_s20 }
 0x580   : > { %v7167_v34 = vpop.permute.xlu1 %7166  ;;  %v7169_v33 = vpop.permute.xlu0 %7168 }
 0x581   : > { %v7496_v16 = vld [vmem:[#allocation3 + $0x16] sm:$0xff]  ;;  %7238 = vst.msk [vmem:[#allocation3 + $0x26] sm:$0xff] %vm7233_vm11, %v7167_v34  ;;  %7239 = vst.msk [vmem:[#allocation3 + $0x2e] sm:$0xff] %vm7233_vm11, %v7169_v33 }
 0x582   : > { %v7512_v56 = vpack.c.bf16 %v7496_v16, %v7495_v7  ;;  %7362 = vrot.lane.b32.xlu0 %v16748_v21, %s13307_s22  ;;  %7259 = vrot.lane.b32.xlu1 %v16748_v21, %s13306_s20  ;;  %v7711_v21 = vsel %vm1025_vm0, %v13081_v5, 0 }
 0x584   : > { %12301 = vmatmul.mubr.msk.bf16.vlgmr.msra.gmra.mrb[104].mxu1 %vm7537_vm14, %v7512_v56  ;;  %v7270_v25 = vpop.permute.xlu1 %7269  ;;  %v7272_v29 = vpop.permute.xlu0 %7271 }
 0x585   : > { %7341 = vst.msk [vmem:[#allocation3 + $0x25] sm:$0xff] %vm7336_vm12, %v7270_v25  ;;  %7342 = vst.msk [vmem:[#allocation3 + $0x2d] sm:$0xff] %vm7336_vm12, %v7272_v29  ;;  %12304 = vmatprep.mubr.msk.bf16.mxu1 %vm13303_vm4, %v13302_v46  ;;  %12337 = vmatpush3.bf16.msra.mxu1 %v13080_v47 }
 0x586   : > { %7364 = vrot.lane.b32.xlu1 %v16755_v11, %s13307_s22  ;;  %7093 = vrot.lane.b32.xlu0 %v16950_v18, %s13305_s21 }
 0x587   : > { %12338 = vmatprep.subr.bf16.mxu1 %v13302_v46 }
 0x588   : > { %v7373_v62 = vpop.permute.xlu1 %7372  ;;  %v7375_v48 = vpop.permute.xlu0 %7374 }
 0x589   : > { %7444 = vst.msk [vmem:[#allocation3 + $0x24] sm:$0xff] %vm7439_vm13, %v7373_v62  ;;  %7445 = vst.msk [vmem:[#allocation3 + $0x2c] sm:$0xff] %vm7439_vm13, %v7375_v48  ;;  %12339 = vmatpush3.bf16.msra.mxu1 %v7711_v21 }
 0x58a   : > { %7196 = vrot.lane.b32.xlu1 %v16950_v18, %s13304_s16  ;;  %7299 = vrot.lane.b32.xlu0 %v16950_v18, %s13306_s20 }
 0x58b   : > { %12376 = vmatprep.subr.bf16.mxu1 %v13302_v46 }
 0x58c   : > { %v7068_v11 = vpop.permute.xlu1 %7067  ;;  %v7070_v63 = vpop.permute.xlu0 %7069 }
 0x58d   : > { %7137 = vst.msk [vmem:[#allocation3 + $0x37] sm:$0xff] %vm7130_vm10, %v7068_v11  ;;  %7138 = vst.msk [vmem:[#allocation3 + $0x3f] sm:$0xff] %vm7130_vm10, %v7070_v63 }
 0x58e   : > { %7402 = vrot.lane.b32.xlu1 %v16950_v18, %s13307_s22  ;;  %7095 = vrot.lane.b32.xlu0 %v16955_v12, %s13305_s21 }
 0x590   : > { %v7171_v49 = vpop.permute.xlu1 %7170  ;;  %v7173_v52 = vpop.permute.xlu0 %7172  ;;  %v7497_v43 = vld [vmem:[#allocation3 + $0x1e] sm:$0xff]  ;;  %v7498_v0 = vld [vmem:[#allocation3 + $0x26] sm:$0xff] }
 0x591   : > { %7240 = vst.msk [vmem:[#allocation3 + $0x36] sm:$0xff] %vm7233_vm11, %v7171_v49  ;;  %7241 = vst.msk [vmem:[#allocation3 + $0x3e] sm:$0xff] %vm7233_vm11, %v7173_v52  ;;  %v7513_v44 = vpack.c.bf16 %v7498_v0, %v7497_v43 }
 0x592   : > { %7198 = vrot.lane.b32.xlu1 %v16955_v12, %s13304_s16  ;;  %7301 = vrot.lane.b32.xlu0 %v16955_v12, %s13306_s20 }
 0x593   : > { %12305 = vmatmul.mubr.msk.bf16.gmra.mrb[108].mxu1 %vm7537_vm14, %v7513_v44 }
 0x594   : > { %v7274_v38 = vpop.permute.xlu1 %7273  ;;  %v7276_v23 = vpop.permute.xlu0 %7275  ;;  %12308 = vmatprep.mubr.msk.bf16.mxu1 %vm13303_vm4, %v13302_v46 }
 0x595   : > { %7343 = vst.msk [vmem:[#allocation3 + $0x35] sm:$0xff] %vm7336_vm12, %v7274_v38  ;;  %7344 = vst.msk [vmem:[#allocation3 + $0x3d] sm:$0xff] %vm7336_vm12, %v7276_v23 }
 0x596   : > { %7404 = vrot.lane.b32.xlu1 %v16955_v12, %s13307_s22  ;;  %7097 = vrot.lane.b32.xlu0 %v16970_v32, %s13305_s21 }
 0x598   : > { %v7377_v18 = vpop.permute.xlu1 %7376  ;;  %v7379_v14 = vpop.permute.xlu0 %7378 }
 0x599   : > { %7446 = vst.msk [vmem:[#allocation3 + $0x34] sm:$0xff] %vm7439_vm13, %v7377_v18  ;;  %7447 = vst.msk [vmem:[#allocation3 + $0x3c] sm:$0xff] %vm7439_vm13, %v7379_v14 }
 0x59a   : > { %7200 = vrot.lane.b32.xlu1 %v16970_v32, %s13304_s16  ;;  %7303 = vrot.lane.b32.xlu0 %v16970_v32, %s13306_s20 }
 0x59c   : > { %v7072_v9 = vpop.permute.xlu1 %7071  ;;  %v7074_v40 = vpop.permute.xlu0 %7073 }
 0x59d   : > { %7139 = vst.msk [vmem:[#allocation3 + $0x47] sm:$0xff] %vm7130_vm10, %v7072_v9  ;;  %7140 = vst.msk [vmem:[#allocation3 + $0x4f] sm:$0xff] %vm7130_vm10, %v7074_v40 }
 0x59e   : > { %7406 = vrot.lane.b32.xlu1 %v16970_v32, %s13307_s22  ;;  %7099 = vrot.lane.b32.xlu0 %v16975_v55, %s13305_s21 }
 0x5a0   : > { %v7175_v12 = vpop.permute.xlu1 %7174  ;;  %v7177_v20 = vpop.permute.xlu0 %7176  ;;  %v7499_v28 = vld [vmem:[#allocation3 + $0x2e] sm:$0xff]  ;;  %v7500_v39 = vld [vmem:[#allocation3 + $0x36] sm:$0xff] }
 0x5a1   : > { %7242 = vst.msk [vmem:[#allocation3 + $0x46] sm:$0xff] %vm7233_vm11, %v7175_v12  ;;  %7243 = vst.msk [vmem:[#allocation3 + $0x4e] sm:$0xff] %vm7233_vm11, %v7177_v20  ;;  %v7514_v2 = vpack.c.bf16 %v7500_v39, %v7499_v28 }
 0x5a2   : > { %7202 = vrot.lane.b32.xlu1 %v16975_v55, %s13304_s16  ;;  %7305 = vrot.lane.b32.xlu0 %v16975_v55, %s13306_s20 }
 0x5a3   : > { %12309 = vmatmul.mubr.msk.bf16.gmra.mrb[112].mxu1 %vm7537_vm14, %v7514_v2 }
 0x5a4   : > { %v7278_v37 = vpop.permute.xlu1 %7277  ;;  %v7280_v13 = vpop.permute.xlu0 %7279  ;;  %12312 = vmatprep.mubr.msk.bf16.mxu1 %vm13303_vm4, %v13302_v46 }
 0x5a5   : > { %7345 = vst.msk [vmem:[#allocation3 + $0x45] sm:$0xff] %vm7336_vm12, %v7278_v37  ;;  %7346 = vst.msk [vmem:[#allocation3 + $0x4d] sm:$0xff] %vm7336_vm12, %v7280_v13 }
 0x5a6   : > { %7408 = vrot.lane.b32.xlu1 %v16975_v55, %s13307_s22  ;;  %7101 = vrot.lane.b32.xlu0 %v7003_v53, %s13305_s21  ;;  %v17153_v55 = vld [vmem:[#allocation3 + $0x38] sm:$0xff] }
 0x5a8   : > { %v7381_v32 = vpop.permute.xlu1 %7380  ;;  %v7383_v51 = vpop.permute.xlu0 %7382 }
 0x5a9   : > { %7448 = vst.msk [vmem:[#allocation3 + $0x44] sm:$0xff] %vm7439_vm13, %v7381_v32  ;;  %7449 = vst.msk [vmem:[#allocation3 + $0x4c] sm:$0xff] %vm7439_vm13, %v7383_v51 }
 0x5aa   : > { %7204 = vrot.lane.b32.xlu1 %v7003_v53, %s13304_s16  ;;  %7307 = vrot.lane.b32.xlu0 %v7003_v53, %s13306_s20  ;;  %s433_s16 = scalar_lea.vmem [#allocation4], %s432_s23  ;;  %s13243_s20 = scalar_lea.vmem %s13242_s1, 32 }
 0x5ab   : > { %s10229_s21 = sshll.u32 %s433_s16, 4  ;;  %s17737_s21 = int_to_ptr.vmem [resolvable:$true] %s10229_s21 }
 0x5ac   : > { %v7076_v31 = vpop.permute.xlu1 %7075  ;;  %v7078_v61 = vpop.permute.xlu0 %7077  ;;  %s13237_s29 = scalar_lea.vmem %s17737_s21, 16  ;;  %p13244_p0 = scmp.lt.s32.totalorder %s17737_s21, %s13242_s1 }
 0x5ad   : > { %7141 = vst.msk [vmem:[#allocation3 + $0x57] sm:$0xff] %vm7130_vm10, %v7076_v31  ;;  %7142 = vst.msk [vmem:[#allocation3 + $0x5f] sm:$0xff] %vm7130_vm10, %v7078_v61  ;;  %p13238_p11 = scmp.ne.s32.totalorder %s17737_s21, %s13237_s29  ;;  %p13245_p1 = scmp.lt.s32.totalorder %s13243_s20, %s13237_s29 }
 0x5ae   : > { %7410 = vrot.lane.b32.xlu1 %v7003_v53, %s13307_s22 }
 0x5af   : > { %p13239_p12 = pnand %p13238_p11, %p13417_p5  ;;  %p13246_p2 = por %p13245_p1, %p13244_p0 }
 0x5b0   : > { %v17155_v10 = vld [vmem:[#allocation3 + $0x40] sm:$0xff]  ;;  %v7179_v58 = vpop.permute.xlu1 %7178  ;;  %v7181_v35 = vpop.permute.xlu0 %7180  ;;  %v17170_v50 = vld [vmem:[#allocation3 + $0x48] sm:$0xff] }
 0x5b1   : > { %v7501_v59 = vld [vmem:[#allocation3 + $0x3e] sm:$0xff]  ;;  %v7502_v41 = vld [vmem:[#allocation3 + $0x46] sm:$0xff]  ;;  %v8220_v17 = vpack.c.bf16 %v17155_v10, %v17153_v55  ;;  %7244 = vst.msk [vmem:[#allocation3 + $0x56] sm:$0xff] %vm7233_vm11, %v7179_v58  ;;  %7245 = vst.msk [vmem:[#allocation3 + $0x5e] sm:$0xff] %vm7233_vm11, %v7181_v35  ;;  %p13240_p13 = pneg %p13239_p12 }
 0x5b2   : > { %v7515_v3 = vpack.c.bf16 %v7502_v41, %v7501_v59 }
 0x5b3   : > { %p13247_p3 = pnand %p13246_p2, %p13240_p13 }
 0x5b4   : > { %12313 = vmatmul.mubr.msk.bf16.gmra.mrb[116].mxu1 %vm7537_vm14, %v7515_v3  ;;  %v7282_v42 = vpop.permute.xlu1 %7281  ;;  %v7284_v30 = vpop.permute.xlu0 %7283 }
 0x5b5   : > { %12316 = vmatprep.mubr.msk.bf16.mxu1 %vm13303_vm4, %v13302_v46  ;;  %7347 = vst.msk [vmem:[#allocation3 + $0x55] sm:$0xff] %vm7336_vm12, %v7282_v42  ;;  %7348 = vst.msk [vmem:[#allocation3 + $0x5d] sm:$0xff] %vm7336_vm12, %v7284_v30 }
 0x5b8   : > { %v7385_v6 = vpop.permute.xlu1 %7384  ;;  %v7387_v22 = vpop.permute.xlu0 %7386 }
 0x5b9   : > { %7450 = vst.msk [vmem:[#allocation3 + $0x54] sm:$0xff] %vm7439_vm13, %v7385_v6  ;;  %7451 = vst.msk [vmem:[#allocation3 + $0x5c] sm:$0xff] %vm7439_vm13, %v7387_v22 }
 0x5bc   : > { %v7080_v36 = vpop.permute.xlu1 %7079  ;;  %v7082_v15 = vpop.permute.xlu0 %7081 }
 0x5bd   : > { %7143 = vst.msk [vmem:[#allocation3 + $0x67] sm:$0xff] %vm7130_vm10, %v7080_v36  ;;  %7144 = vst.msk [vmem:[#allocation3 + $0x6f] sm:$0xff] %vm7130_vm10, %v7082_v15 }
 0x5c0   : > { %v7183_v45 = vpop.permute.xlu1 %7182  ;;  %v7185_v4 = vpop.permute.xlu0 %7184  ;;  %v7503_v8 = vld [vmem:[#allocation3 + $0x4e] sm:$0xff]  ;;  %v7504_v24 = vld [vmem:[#allocation3 + $0x56] sm:$0xff] }
 0x5c1   : > { %v17172_v26 = vld [vmem:[#allocation3 + $0x50] sm:$0xff]  ;;  %7246 = vst.msk [vmem:[#allocation3 + $0x66] sm:$0xff] %vm7233_vm11, %v7183_v45  ;;  %7247 = vst.msk [vmem:[#allocation3 + $0x6e] sm:$0xff] %vm7233_vm11, %v7185_v4  ;;  %v7516_v60 = vpack.c.bf16 %v7504_v24, %v7503_v8  ;;  %v17187_v16 = vld [vmem:[#allocation3 + $0x58] sm:$0xff] }
 0x5c2   : > { %v8221_v19 = vpack.c.bf16 %v17172_v26, %v17170_v50 }
 0x5c3   : > { %12317 = vmatmul.mubr.msk.bf16.gmra.mrb[120].mxu1 %vm7537_vm14, %v7516_v60  ;;  %v13082_v60 = vld [vmem:[%s17780_s3 + $0x20] sm:$0xff]  }
 0x5c4   : > { %v7286_v27 = vpop.permute.xlu1 %7285  ;;  %v7288_v54 = vpop.permute.xlu0 %7287  ;;  %12320 = vmatprep.mubr.msk.bf16.mxu1 %vm13303_vm4, %v13302_v46 }
 0x5c5   : > { %7349 = vst.msk [vmem:[#allocation3 + $0x65] sm:$0xff] %vm7336_vm12, %v7286_v27  ;;  %7350 = vst.msk [vmem:[#allocation3 + $0x6d] sm:$0xff] %vm7336_vm12, %v7288_v54  ;;  %v13083_v27 = vld [vmem:[%s17780_s3 + $0x28] sm:$0x7f]  }
 0x5c8   : > { %v7389_v57 = vpop.permute.xlu1 %7388  ;;  %v7391_v34 = vpop.permute.xlu0 %7390 }
 0x5c9   : > { %7452 = vst.msk [vmem:[#allocation3 + $0x64] sm:$0xff] %vm7439_vm13, %v7389_v57  ;;  %7453 = vst.msk [vmem:[#allocation3 + $0x6c] sm:$0xff] %vm7439_vm13, %v7391_v34  ;;  %v7887_v34 = vsel %vm1025_vm0, %v13083_v27, 0 }
 0x5cc   : > { %v7084_v33 = vpop.permute.xlu1 %7083  ;;  %v7086_v7 = vpop.permute.xlu0 %7085 }
 0x5cd   : > { %7145 = vst.msk [vmem:[#allocation3 + $0x77] sm:$0xff] %vm7130_vm10, %v7084_v33  ;;  %7146 = vst.msk [vmem:[#allocation3 + $0x7f] sm:$0xff] %vm7130_vm10, %v7086_v7  ;;  %v7468_v33 = vld [vmem:[#allocation3 + $0x18] sm:$0xff] }
 0x5d0   : > { %v7187_v47 = vpop.permute.xlu1 %7186  ;;  %v7189_v56 = vpop.permute.xlu0 %7188  ;;  %v7505_v5 = vld [vmem:[#allocation3 + $0x5e] sm:$0xff]  ;;  %v7506_v25 = vld [vmem:[#allocation3 + $0x66] sm:$0xff] }
 0x5d1   : > { %v17189_v29 = vld [vmem:[#allocation3 + $0x60] sm:$0xff]  ;;  %7248 = vst.msk [vmem:[#allocation3 + $0x76] sm:$0xff] %vm7233_vm11, %v7187_v47  ;;  %7249 = vst.msk [vmem:[#allocation3 + $0x7e] sm:$0xff] %vm7233_vm11, %v7189_v56  ;;  %v7517_v21 = vpack.c.bf16 %v7506_v25, %v7505_v5  ;;  %v17204_v0 = vld [vmem:[#allocation3 + $0x68] sm:$0xff] }
 0x5d2   : > { %v8222_v62 = vpack.c.bf16 %v17189_v29, %v17187_v16  ;;  %v7467_v56 = vld [vmem:[#allocation3 + $0x10] sm:$0xff] }
 0x5d3   : > { %12321 = vmatmul.mubr.msk.bf16.gmra.mrb[124].mxu1 %vm7537_vm14, %v7517_v21  ;;  %v7483_v5 = vpack.c.bf16 %v7468_v33, %v7467_v56 }
 0x5d4   : > { %v7290_v48 = vpop.permute.xlu1 %7289  ;;  %v7292_v11 = vpop.permute.xlu0 %7291  ;;  %12324 = vmatprep.mubr.msk.bf16.mxu1 %vm13303_vm4, %v13302_v46 }
 0x5d5   : > { %7351 = vst.msk [vmem:[#allocation3 + $0x75] sm:$0xff] %vm7336_vm12, %v7290_v48  ;;  %7352 = vst.msk [vmem:[#allocation3 + $0x7d] sm:$0xff] %vm7336_vm12, %v7292_v11  ;;  %v7469_v48 = vld [vmem:[#allocation3 + $0x20] sm:$0xff]  ;;  %v7470_v11 = vld [vmem:[#allocation3 + $0x28] sm:$0xff] }
 0x5d8   : > { %v7393_v63 = vpop.permute.xlu1 %7392  ;;  %v7395_v49 = vpop.permute.xlu0 %7394 }
 0x5d9   : > { %7454 = vst.msk [vmem:[#allocation3 + $0x74] sm:$0xff] %vm7439_vm13, %v7393_v63  ;;  %7455 = vst.msk [vmem:[#allocation3 + $0x7c] sm:$0xff] %vm7439_vm13, %v7395_v49 }
 0x5dc   : > { %v7088_v52 = vpop.permute.xlu1 %7087  ;;  %v7090_v43 = vpop.permute.xlu0 %7089 }
 0x5dd   : > { %7147 = vst.msk [vmem:[#allocation3 + $0x87] sm:$0xff] %vm7130_vm10, %v7088_v52  ;;  %7148 = vst.msk [vmem:[#allocation3 + $0x8f] sm:$0xff] %vm7130_vm10, %v7090_v43  ;;  %v7484_v52 = vpack.c.bf16 %v7470_v11, %v7469_v48  ;;  %v8011_v11 = vld [vmem:[#allocation3 + $0x32] sm:$0xff] }
 0x5e0   : > { %v7191_v44 = vpop.permute.xlu1 %7190  ;;  %v7193_v38 = vpop.permute.xlu0 %7192  ;;  %v7507_v23 = vld [vmem:[#allocation3 + $0x6e] sm:$0xff]  ;;  %v7508_v18 = vld [vmem:[#allocation3 + $0x76] sm:$0xff] }
 0x5e1   : > { %v17206_v14 = vld [vmem:[#allocation3 + $0x70] sm:$0xff]  ;;  %7250 = vst.msk [vmem:[#allocation3 + $0x86] sm:$0xff] %vm7233_vm11, %v7191_v44  ;;  %7251 = vst.msk [vmem:[#allocation3 + $0x8e] sm:$0xff] %vm7233_vm11, %v7193_v38  ;;  %v7518_v9 = vpack.c.bf16 %v7508_v18, %v7507_v23  ;;  %v17221_v37 = vld [vmem:[#allocation3 + $0x78] sm:$0xff] }
 0x5e2   : > { %v8223_v40 = vpack.c.bf16 %v17206_v14, %v17204_v0  ;;  %v7471_v38 = vld [vmem:[#allocation3 + $0x30] sm:$0xff] }
 0x5e3   : > { %12325 = vmatmul.mubr.msk.bf16.gmra.mrb[128].mxu1 %vm7537_vm14, %v7518_v9  ;;  %v7485_v9 = vpack.c.bf16 %v17153_v55, %v7471_v38  ;;  %v8013_v38 = vld [vmem:[#allocation3 + $0x42] sm:$0xff] }
 0x5e4   : > { %v7294_v12 = vpop.permute.xlu1 %7293  ;;  %v7296_v20 = vpop.permute.xlu0 %7295  ;;  %12328 = vmatprep.mubr.msk.bf16.mxu1 %vm13303_vm4, %v13302_v46 }
 0x5e5   : > { %7353 = vst.msk [vmem:[#allocation3 + $0x85] sm:$0xff] %vm7336_vm12, %v7294_v12  ;;  %7354 = vst.msk [vmem:[#allocation3 + $0x8d] sm:$0xff] %vm7336_vm12, %v7296_v20 }
 0x5e8   : > { %v7397_v28 = vpop.permute.xlu1 %7396  ;;  %v7399_v39 = vpop.permute.xlu0 %7398 }
 0x5e9   : > { %7456 = vst.msk [vmem:[#allocation3 + $0x84] sm:$0xff] %vm7439_vm13, %v7397_v28  ;;  %7457 = vst.msk [vmem:[#allocation3 + $0x8c] sm:$0xff] %vm7439_vm13, %v7399_v39  ;;  %v7486_v39 = vpack.c.bf16 %v17170_v50, %v17155_v10 }
 0x5ec   : > { %v7195_v2 = vpop.permute.xlu0 %7194  ;;  %v7092_v53 = vpop.permute.xlu1 %7091 }
 0x5ed   : > { %7149 = vst.msk [vmem:[#allocation3 + $0x97] sm:$0xff] %vm7130_vm10, %v7092_v53  ;;  %v7488_v53 = vpack.c.bf16 %v17204_v0, %v17189_v29 }
 0x5ee   : > { %7252 = vst.msk [vmem:[#allocation3 + $0x96] sm:$0xff] %vm7233_vm11, %v7195_v2  ;;  %v7487_v2 = vpack.c.bf16 %v17187_v16, %v17172_v26 }
 0x5f0   : > { %v7401_v13 = vpop.permute.xlu0 %7400  ;;  %v7298_v32 = vpop.permute.xlu1 %7297  ;;  %v7509_v51 = vld [vmem:[#allocation3 + $0x7e] sm:$0xff]  ;;  %v7510_v31 = vld [vmem:[#allocation3 + $0x86] sm:$0xff] }
 0x5f1   : > { %v17223_v61 = vld [vmem:[#allocation3 + $0x80] sm:$0xff]  ;;  %7355 = vst.msk [vmem:[#allocation3 + $0x95] sm:$0xff] %vm7336_vm12, %v7298_v32  ;;  %v7519_v58 = vpack.c.bf16 %v7510_v31, %v7509_v51  ;;  %v8213_v10 = vld [vmem:[#allocation3 + $0x88] sm:$0xff] }
 0x5f2   : > { %v8224_v35 = vpack.c.bf16 %v17223_v61, %v17221_v37  ;;  %7458 = vst.msk [vmem:[#allocation3 + $0x94] sm:$0xff] %vm7439_vm13, %v7401_v13  ;;  %v7489_v13 = vpack.c.bf16 %v17221_v37, %v17206_v14  ;;  %v7490_v32 = vpack.c.bf16 %v17223_v61, %v17223_v61  ;;  %v7818_v51 = vld [vmem:[#allocation3 + $0x24] sm:$0xff]  ;;  %v7817_v31 = vld [vmem:[#allocation3 + $0x1c] sm:$0xff] }
 0x5f3   : > { %12329 = vmatmul.mubr.msk.bf16.gmra.mrb[132].mxu1 %vm7537_vm14, %v7519_v58  ;;  %v13084_v58 = vld [vmem:[%s17780_s3 + $0x30] sm:$0xff]   ;;  %v7830_v33 = vld [vmem:[#allocation3 + $0x84] sm:$0xff] }
 0x5f4   : > { %v7363_v59 = vpop.permute.xlu0 %7362  ;;  %v7260_v41 = vpop.permute.xlu1 %7259  ;;  %12332 = vmatprep.mubr.msk.bf16.mxu1 %vm13303_vm4, %v13302_v46 }
 0x5f5   : > { %7335 = vst.msk [vmem:[#allocation3 - $0x3] sm:$0xf8] %vm7334_vm15, %v7260_v41  ;;  %v13085_v41 = vld [vmem:[%s17780_s3 + $0x38] sm:$0x7f]  }
 0x5f6   : > { %7438 = vst.msk [vmem:[#allocation3 - $0x4] sm:$0xf0] %vm7437_vm1, %v7363_v59  ;;  %v7834_v59 = vpack.c.bf16 %v7818_v51, %v7817_v31  ;;  %v8021_v51 = vld [vmem:[#allocation3 + $0x82] sm:$0xff]  ;;  %v8020_v31 = vld [vmem:[#allocation3 + $0x7a] sm:$0xff] }
 0x5f8   : > { %v7365_v3 = vpop.permute.xlu1 %7364  ;;  %v7094_v42 = vpop.permute.xlu0 %7093 }
 0x5f9   : > { %7440 = vst.msk [vmem:[#allocation3 + $0x4] sm:$0xff] %vm7439_vm13, %v7365_v3  ;;  %v7511_v30 = vld [vmem:[#allocation3 + $0x8e] sm:$0xff]  ;;  %v8080_v3 = vsel %vm1025_vm0, %v13085_v41, 0 }
 0x5fa   : > { %7150 = vst.msk [vmem:[#allocation3 + $0x9f] sm:$0xff] %vm7130_vm10, %v7094_v42  ;;  %v7520_v6 = vpack.c.bf16 %v7511_v30, %v7511_v30  ;;  %v7820_v42 = vld [vmem:[#allocation3 + $0x34] sm:$0xff]  ;;  %v7819_v30 = vld [vmem:[#allocation3 + $0x2c] sm:$0xff] }
 0x5fb   : > { %v7832_v56 = vld [vmem:[#allocation3 + $0x94] sm:$0xff]  ;;  %v8022_v41 = vld [vmem:[#allocation3 + $0x8a] sm:$0xff] }
 0x5fc   : > { %12333 = vmatmul.mubr.msk.bf16.gmra.mrb[136].mxu1 %vm7537_vm14, %v7520_v6  ;;  %v7197_v22 = vpop.permute.xlu1 %7196  ;;  %v7300_v36 = vpop.permute.xlu0 %7299  ;;  %v7835_v6 = vpack.c.bf16 %v7820_v42, %v7819_v30  ;;  %v8214_v55 = vld [vmem:[#allocation3 + $0x90] sm:$0xff] }
 0x5fd   : > { %7253 = vst.msk [vmem:[#allocation3 + $0x9e] sm:$0xff] %vm7233_vm11, %v7197_v22  ;;  %12340 = vmatprep.mubr.msk.bf16.mxu1 %vm13303_vm4, %v13302_v46  ;;  %v7822_v22 = vld [vmem:[#allocation3 + $0x44] sm:$0xff] }
 0x5fe   : > { %7356 = vst.msk [vmem:[#allocation3 + $0x9d] sm:$0xff] %vm7336_vm12, %v7300_v36  ;;  %v7821_v36 = vld [vmem:[#allocation3 + $0x3c] sm:$0xff] }
 0x600   : > { %v7465_v15 = vld [vmem:[#allocation3] sm:$0xff]  ;;  %v7466_v45 = vld [vmem:[#allocation3 + $0x8] sm:$0xff]  ;;  %v7403_v4 = vpop.permute.xlu1 %7402  ;;  %v7096_v8 = vpop.permute.xlu0 %7095 }
 0x601   : > { %v7482_v24 = vpack.c.bf16 %v7466_v45, %v7465_v15  ;;  %7459 = vst.msk [vmem:[#allocation3 + $0x9c] sm:$0xff] %vm7439_vm13, %v7403_v4  ;;  %v7836_v15 = vpack.c.bf16 %v7822_v22, %v7821_v36  ;;  %v7824_v45 = vld [vmem:[#allocation3 + $0x54] sm:$0xff]  ;;  %v7823_v4 = vld [vmem:[#allocation3 + $0x4c] sm:$0xff] }
 0x602   : > { %7151 = vst.msk [vmem:[#allocation3 + $0xa7] sm:$0xff] %vm7130_vm10, %v7096_v8  ;;  %v7837_v8 = vpack.c.bf16 %v7824_v45, %v7823_v4 }
 0x604   : > { %12341 = vmatmul.mubr.msk.bf16.vlgmr.msra.gmra.mrb[104].mxu1 %vm7537_vm14, %v7482_v24  ;;  %v7199_v54 = vpop.permute.xlu1 %7198  ;;  %v7302_v57 = vpop.permute.xlu0 %7301  ;;  %v7826_v24 = vld [vmem:[#allocation3 + $0x64] sm:$0xff] }
 0x605   : > { %7254 = vst.msk [vmem:[#allocation3 + $0xa6] sm:$0xff] %vm7233_vm11, %v7199_v54  ;;  %12344 = vmatprep.mubr.msk.bf16.mxu1 %vm13303_vm4, %v13302_v46  ;;  %12377 = vmatpush3.bf16.msra.mxu1 %v13082_v60  ;;  %v7825_v60 = vld [vmem:[#allocation3 + $0x5c] sm:$0xff]  ;;  %v7828_v54 = vld [vmem:[#allocation3 + $0x74] sm:$0xff] }
 0x606   : > { %7357 = vst.msk [vmem:[#allocation3 + $0xa5] sm:$0xff] %vm7336_vm12, %v7302_v57  ;;  %12378 = vmatprep.subr.bf16.mxu1 %v13302_v46  ;;  %v7838_v27 = vpack.c.bf16 %v7826_v24, %v7825_v60  ;;  %v7827_v57 = vld [vmem:[#allocation3 + $0x6c] sm:$0xff] }
 0x608   : > { %v7405_v7 = vpop.permute.xlu1 %7404  ;;  %v7098_v47 = vpop.permute.xlu0 %7097  ;;  %v8024_v30 = vld [vmem:[#allocation3 + $0x9a] sm:$0xff] }
 0x609   : > { %7460 = vst.msk [vmem:[#allocation3 + $0xa4] sm:$0xff] %vm7439_vm13, %v7405_v7  ;;  %12379 = vmatpush3.bf16.msra.mxu1 %v7887_v34  ;;  %v7839_v34 = vpack.c.bf16 %v7828_v54, %v7827_v57  ;;  %v7829_v7 = vld [vmem:[#allocation3 + $0x7c] sm:$0xff] }
 0x60a   : > { %7152 = vst.msk [vmem:[#allocation3 + $0xaf] sm:$0xff] %vm7130_vm10, %v7098_v47  ;;  %12416 = vmatprep.subr.bf16.mxu1 %v13302_v46  ;;  %v7840_v47 = vpack.c.bf16 %v7830_v33, %v7829_v7  ;;  %v8215_v26 = vld [vmem:[#allocation3 + $0x98] sm:$0xff] }
 0x60c   : > { %12345 = vmatmul.mubr.msk.bf16.gmra.mrb[108].mxu1 %vm7537_vm14, %v7483_v5  ;;  %v7201_v25 = vpop.permute.xlu1 %7200  ;;  %v7304_v21 = vpop.permute.xlu0 %7303  ;;  %v7831_v5 = vld [vmem:[#allocation3 + $0x8c] sm:$0xff] }
 0x60d   : > { %7255 = vst.msk [vmem:[#allocation3 + $0xae] sm:$0xff] %vm7233_vm11, %v7201_v25  ;;  %12348 = vmatprep.mubr.msk.bf16.mxu1 %vm13303_vm4, %v13302_v46  ;;  %v7841_v25 = vpack.c.bf16 %v7832_v56, %v7831_v5 }
 0x60e   : > { %7358 = vst.msk [vmem:[#allocation3 + $0xad] sm:$0xff] %vm7336_vm12, %v7304_v21  ;;  %v7833_v21 = vld [vmem:[#allocation3 + $0x9c] sm:$0xff] }
 0x60f   : > { %v7842_v48 = vpack.c.bf16 %v7833_v21, %v7833_v21 }
 0x610   : > { %v7407_v63 = vpop.permute.xlu1 %7406  ;;  %v7100_v49 = vpop.permute.xlu0 %7099  ;;  %v8025_v42 = vld [vmem:[#allocation3 + $0xa2] sm:$0xff] }
 0x611   : > { %7461 = vst.msk [vmem:[#allocation3 + $0xac] sm:$0xff] %vm7439_vm13, %v7407_v63  ;;  %v8010_v63 = vld [vmem:[#allocation3 + $0x2a] sm:$0xff]  ;;  %v8216_v50 = vld [vmem:[#allocation3 + $0xa0] sm:$0xff] }
 0x612   : > { %7153 = vst.msk [vmem:[#allocation3 + $0xb7] sm:$0xff] %vm7130_vm10, %v7100_v49  ;;  %v13086_v49 = vld [vmem:[%s17780_s3 + $0x40] sm:$0xff]   ;;  %vm8598_vm10 = vcmask 1043456  }
 0x614   : > { %12349 = vmatmul.mubr.msk.bf16.gmra.mrb[112].mxu1 %vm7537_vm14, %v7484_v52  ;;  %v7203_v43 = vpop.permute.xlu1 %7202  ;;  %v7306_v44 = vpop.permute.xlu0 %7305  ;;  %v8027_v52 = vpack.c.bf16 %v8011_v11, %v8010_v63 }
 0x615   : > { %7256 = vst.msk [vmem:[#allocation3 + $0xb6] sm:$0xff] %vm7233_vm11, %v7203_v43  ;;  %12352 = vmatprep.mubr.msk.bf16.mxu1 %vm13303_vm4, %v13302_v46  ;;  %v13087_v43 = vld [vmem:[%s17780_s3 + $0x48] sm:$0x7f]  }
 0x616   : > { %7359 = vst.msk [vmem:[#allocation3 + $0xb5] sm:$0xff] %vm7336_vm12, %v7306_v44  ;;  %v8273_v44 = vsel %vm1025_vm0, %v13087_v43, 0 }
 0x618   : > { %v7409_v23 = vpop.permute.xlu1 %7408  ;;  %v7102_v18 = vpop.permute.xlu0 %7101  ;;  %v8026_v22 = vld [vmem:[#allocation3 + $0xaa] sm:$0xff] }
 0x619   : > { %7462 = vst.msk [vmem:[#allocation3 + $0xb4] sm:$0xff] %vm7439_vm13, %v7409_v23  ;;  %v8012_v23 = vld [vmem:[#allocation3 + $0x3a] sm:$0xff]  ;;  %v8035_v36 = vpack.c.bf16 %v8026_v22, %v8026_v22  ;;  %v8217_v29 = vld [vmem:[#allocation3 + $0xa8] sm:$0xff] }
 0x61a   : > { %7155 = vst.msk [vmem:[#allocation3 + $0xbf] sm:$0x1] %vm7154_vm2, %v7102_v18  ;;  %v8028_v18 = vpack.c.bf16 %v8013_v38, %v8012_v23 }
 0x61c   : > { %12353 = vmatmul.mubr.msk.bf16.gmra.mrb[116].mxu1 %vm7537_vm14, %v7485_v9  ;;  %v7205_v12 = vpop.permute.xlu1 %7204  ;;  %v7308_v20 = vpop.permute.xlu0 %7307  ;;  %v8015_v9 = vld [vmem:[#allocation3 + $0x52] sm:$0xff] }
 0x61d   : > { %7258 = vst.msk [vmem:[#allocation3 + $0xbe] sm:$0x3] %vm7257_vm3, %v7205_v12  ;;  %12356 = vmatprep.mubr.msk.bf16.mxu1 %vm13303_vm4, %v13302_v46  ;;  %v8014_v12 = vld [vmem:[#allocation3 + $0x4a] sm:$0xff] }
 0x61e   : > { %7361 = vst.msk [vmem:[#allocation3 + $0xbd] sm:$0x7] %vm7360_vm6, %v7308_v20  ;;  %v8029_v20 = vpack.c.bf16 %v8015_v9, %v8014_v12 }
 0x620   : > { %v7411_v28 = vpop.permute.xlu1 %7410  ;;  %v8218_v16 = vld [vmem:[#allocation3 + $0xb0] sm:$0xff] }
 0x621   : > { %7464 = vst.msk [vmem:[#allocation3 + $0xbc] sm:$0xf] %vm7463_vm7, %v7411_v28  ;;  %v8017_v28 = vld [vmem:[#allocation3 + $0x62] sm:$0xff] }
 0x624   : > { %12357 = vmatmul.mubr.msk.bf16.gmra.mrb[120].mxu1 %vm7537_vm14, %v7486_v39  ;;  %v8016_v39 = vld [vmem:[#allocation3 + $0x5a] sm:$0xff] }
 0x625   : > { %12360 = vmatprep.mubr.msk.bf16.mxu1 %vm13303_vm4, %v13302_v46 }
 0x628   : > { %v8219_v0 = vld [vmem:[#allocation3 + $0xb8] sm:$0xff] }
 0x629   : > { %v8228_v14 = vpack.c.bf16 %v8219_v0, %v8219_v0 }
 0x62c   : > { %12361 = vmatmul.mubr.msk.bf16.gmra.mrb[124].mxu1 %vm7537_vm14, %v7487_v2  ;;  %v8030_v2 = vpack.c.bf16 %v8017_v28, %v8016_v39 }
 0x62d   : > { %12364 = vmatprep.mubr.msk.bf16.mxu1 %vm13303_vm4, %v13302_v46 }
 0x634   : > { %12365 = vmatmul.mubr.msk.bf16.gmra.mrb[128].mxu1 %vm7537_vm14, %v7488_v53  ;;  %v8019_v53 = vld [vmem:[#allocation3 + $0x72] sm:$0xff] }
 0x635   : > { %12368 = vmatprep.mubr.msk.bf16.mxu1 %vm13303_vm4, %v13302_v46 }
 0x63c   : > { %12369 = vmatmul.mubr.msk.bf16.gmra.mrb[132].mxu1 %vm7537_vm14, %v7489_v13  ;;  %v8018_v13 = vld [vmem:[#allocation3 + $0x6a] sm:$0xff] }
 0x63d   : > { %12372 = vmatprep.mubr.msk.bf16.mxu1 %vm13303_vm4, %v13302_v46 }
 0x644   : > { %12373 = vmatmul.mubr.msk.bf16.gmra.mrb[136].mxu1 %vm7537_vm14, %v7490_v32  ;;  %v8031_v32 = vpack.c.bf16 %v8019_v53, %v8018_v13 }
 0x645   : > { %12380 = vmatprep.mubr.msk.bf16.mxu1 %vm13303_vm4, %v13302_v46 }
 0x64c   : > { %12381 = vmatmul.mubr.msk.bf16.vlgmr.msra.gmra.mrb[104].mxu1 %vm7537_vm14, %v7834_v59  ;;  %v8023_v59 = vld [vmem:[#allocation3 + $0x92] sm:$0xff] }
 0x64d   : > { %12384 = vmatprep.mubr.msk.bf16.mxu1 %vm13303_vm4, %v13302_v46  ;;  %12417 = vmatpush3.bf16.msra.mxu1 %v13084_v58  ;;  %v8032_v58 = vpack.c.bf16 %v8021_v51, %v8020_v31 }
 0x64e   : > { %12418 = vmatprep.subr.bf16.mxu1 %v13302_v46 }
 0x651   : > { %12419 = vmatpush3.bf16.msra.mxu1 %v8080_v3  ;;  %v8033_v3 = vpack.c.bf16 %v8023_v59, %v8022_v41 }
 0x652   : > { %12456 = vmatprep.subr.bf16.mxu1 %v13302_v46 }
 0x654   : > { %12385 = vmatmul.mubr.msk.bf16.gmra.mrb[108].mxu1 %vm7537_vm14, %v7835_v6  ;;  %v8034_v6 = vpack.c.bf16 %v8025_v42, %v8024_v30 }
 0x655   : > { %12388 = vmatprep.mubr.msk.bf16.mxu1 %vm13303_vm4, %v13302_v46 }
 0x65c   : > { %12389 = vmatmul.mubr.msk.bf16.gmra.mrb[112].mxu1 %vm7537_vm14, %v7836_v15 }
 0x65d   : > { %12392 = vmatprep.mubr.msk.bf16.mxu1 %vm13303_vm4, %v13302_v46 }
 0x664   : > { %12393 = vmatmul.mubr.msk.bf16.gmra.mrb[116].mxu1 %vm7537_vm14, %v7837_v8 }
 0x665   : > { %12396 = vmatprep.mubr.msk.bf16.mxu1 %vm13303_vm4, %v13302_v46 }
 0x66c   : > { %12397 = vmatmul.mubr.msk.bf16.gmra.mrb[120].mxu1 %vm7537_vm14, %v7838_v27 }
 0x66d   : > { %12400 = vmatprep.mubr.msk.bf16.mxu1 %vm13303_vm4, %v13302_v46 }
 0x674   : > { %12401 = vmatmul.mubr.msk.bf16.gmra.mrb[124].mxu1 %vm7537_vm14, %v7839_v34 }
 0x675   : > { %12404 = vmatprep.mubr.msk.bf16.mxu1 %vm13303_vm4, %v13302_v46 }
 0x67c   : > { %12405 = vmatmul.mubr.msk.bf16.gmra.mrb[128].mxu1 %vm7537_vm14, %v7840_v47 }
 0x67d   : > { %12408 = vmatprep.mubr.msk.bf16.mxu1 %vm13303_vm4, %v13302_v46 }
 0x684   : > { %12409 = vmatmul.mubr.msk.bf16.gmra.mrb[132].mxu1 %vm7537_vm14, %v7841_v25 }
 0x685   : > { %12412 = vmatprep.mubr.msk.bf16.mxu1 %vm13303_vm4, %v13302_v46 }
 0x68c   : > { %12413 = vmatmul.mubr.msk.bf16.gmra.mrb[136].mxu1 %vm7537_vm14, %v7842_v48 }
 0x68d   : > { %12420 = vmatprep.mubr.msk.bf16.mxu1 %vm13303_vm4, %v13302_v46 }
 0x694   : > { %12421 = vmatmul.mubr.msk.bf16.vlgmr.msra.gmra.mrb[104].mxu1 %vm7537_vm14, %v8027_v52 }
 0x695   : > { %12424 = vmatprep.mubr.msk.bf16.mxu1 %vm13303_vm4, %v13302_v46  ;;  %12457 = vmatpush3.bf16.msra.mxu1 %v13086_v49 }
 0x696   : > { %12458 = vmatprep.subr.bf16.mxu1 %v13302_v46 }
 0x699   : > { %12459 = vmatpush3.bf16.msra.mxu1 %v8273_v44 }
 0x69c   : > { %12425 = vmatmul.mubr.msk.bf16.gmra.mrb[108].mxu1 %vm7537_vm14, %v8028_v18 }
 0x69d   : > { %12428 = vmatprep.mubr.msk.bf16.mxu1 %vm13303_vm4, %v13302_v46 }
 0x6a4   : > { %12429 = vmatmul.mubr.msk.bf16.gmra.mrb[112].mxu1 %vm7537_vm14, %v8029_v20 }
 0x6a5   : > { %12432 = vmatprep.mubr.msk.bf16.mxu1 %vm13303_vm4, %v13302_v46 }
 0x6ac   : > { %12433 = vmatmul.mubr.msk.bf16.gmra.mrb[116].mxu1 %vm7537_vm14, %v8030_v2 }
 0x6ad   : > { %12436 = vmatprep.mubr.msk.bf16.mxu1 %vm13303_vm4, %v13302_v46 }
 0x6b4   : > { %12437 = vmatmul.mubr.msk.bf16.gmra.mrb[120].mxu1 %vm7537_vm14, %v8031_v32 }
 0x6b5   : > { %12440 = vmatprep.mubr.msk.bf16.mxu1 %vm13303_vm4, %v13302_v46 }
 0x6bc   : > { %12441 = vmatmul.mubr.msk.bf16.gmra.mrb[124].mxu1 %vm7537_vm14, %v8032_v58 }
 0x6bd   : > { %12444 = vmatprep.mubr.msk.bf16.mxu1 %vm13303_vm4, %v13302_v46 }
 0x6c4   : > { %12445 = vmatmul.mubr.msk.bf16.gmra.mrb[128].mxu1 %vm7537_vm14, %v8033_v3 }
 0x6c5   : > { %12448 = vmatprep.mubr.msk.bf16.mxu1 %vm13303_vm4, %v13302_v46 }
 0x6cc   : > { %12449 = vmatmul.mubr.msk.bf16.gmra.mrb[132].mxu1 %vm7537_vm14, %v8034_v6 }
 0x6cd   : > { %12452 = vmatprep.mubr.msk.bf16.mxu1 %vm13303_vm4, %v13302_v46 }
 0x6d4   : > { %12453 = vmatmul.mubr.msk.bf16.gmra.mrb[136].mxu1 %vm7537_vm14, %v8035_v36 }
 0x6d5   : > { %12460 = vmatprep.mubr.msk.bf16.mxu1 %vm13303_vm4, %v13302_v46 }
 0x6dc   : > { %12461 = vmatmul.mubr.msk.bf16.vlgmr.msra.gmra.mrb[104].mxu1 %vm7537_vm14, %v8220_v17  ;;  %v8225_v17 = vpack.c.bf16 %v8214_v55, %v8213_v10 }
 0x6dd   : > { %12464 = vmatprep.mubr.msk.bf16.mxu1 %vm13303_vm4, %v13302_v46 }
 0x6e4   : > { %12465 = vmatmul.mubr.msk.bf16.gmra.mrb[108].mxu1 %vm7537_vm14, %v8221_v19  ;;  %v8226_v19 = vpack.c.bf16 %v8216_v50, %v8215_v26 }
 0x6e5   : > { %12468 = vmatprep.mubr.msk.bf16.mxu1 %vm13303_vm4, %v13302_v46 }
 0x6ec   : > { %12469 = vmatmul.mubr.msk.bf16.gmra.mrb[112].mxu1 %vm7537_vm14, %v8222_v62  ;;  %v8227_v62 = vpack.c.bf16 %v8218_v16, %v8217_v29 }
 0x6ed   : > { %12472 = vmatprep.mubr.msk.bf16.mxu1 %vm13303_vm4, %v13302_v46 }
 0x6f4   : > { %12473 = vmatmul.mubr.msk.bf16.gmra.mrb[116].mxu1 %vm7537_vm14, %v8223_v40  ;;  %v13088_v40 = vld [vmem:[%s17783_s6] sm:$0xff]  }
 0x6f5   : > { %12476 = vmatprep.mubr.msk.bf16.mxu1 %vm13303_vm4, %v13302_v46  ;;  %12512 = vmatprep.mubr.msk.bf16.mxu0 %vm8591_vm8, %v13088_v40 }
 0x6fc   : > { %12477 = vmatmul.mubr.msk.bf16.gmra.mrb[120].mxu1 %vm7537_vm14, %v8224_v35 }
 0x6fd   : > { %12480 = vmatprep.mubr.msk.bf16.mxu1 %vm13303_vm4, %v13302_v46 }
 0x704   : > { %12481 = vmatmul.mubr.msk.bf16.gmra.mrb[124].mxu1 %vm7537_vm14, %v8225_v17 }
 0x705   : > { %12484 = vmatprep.mubr.msk.bf16.mxu1 %vm13303_vm4, %v13302_v46 }
 0x70c   : > { %12485 = vmatmul.mubr.msk.bf16.gmra.mrb[128].mxu1 %vm7537_vm14, %v8226_v19 }
 0x70d   : > { %12488 = vmatprep.mubr.msk.bf16.mxu1 %vm13303_vm4, %v13302_v46 }
 0x714   : > { %12489 = vmatmul.mubr.msk.bf16.gmra.mrb[132].mxu1 %vm7537_vm14, %v8227_v62 }
 0x715   : > { %12492 = vmatprep.mubr.msk.bf16.mxu1 %vm13303_vm4, %v13302_v46 }
 0x71c   : > { %12493 = vmatmul.mubr.msk.bf16.gmra.mrb[136].mxu1 %vm7537_vm14, %v8228_v14 }
 0x7af   : > { %v8309_v37 = vpop.f32.mrb[104].mxu1 }
 0x7b0   : > { %v12462_v61 = vpop.f32.mrb[105].mxu1  ;;  %v8412_v15 = vrot.slane %v8309_v37, 1 }
 0x7b1   : > { %v8312_v35 = vpop.f32.mrb[106].mxu1 }
 0x7b2   : > { %v8413_v45 = vrot.slane %v8312_v35, 1  ;;  %v12463_v4 = vpop.f32.mrb[107].mxu1 }
 0x7b4   : > { %v8414_v8 = vsel %vm1025_vm0, %v8412_v15, %v8413_v45 }
 0x7b5   : > { %v8459_v24 = vmax.f32 %v8309_v37, %v8414_v8 }
 0x7b7   : > { %v8317_v60 = vpop.f32.mrb[108].mxu1 }
 0x7b8   : > { %v8415_v27 = vrot.slane %v8317_v60, 1  ;;  %v12466_v54 = vpop.f32.mrb[109].mxu1 }
 0x7b9   : > { %v8320_v57 = vpop.f32.mrb[110].mxu1 }
 0x7ba   : > { %v8416_v34 = vsel %vm1025_vm0, %v8413_v45, %v8415_v27  ;;  %v8417_v33 = vrot.slane %v8320_v57, 1  ;;  %v12467_v7 = vpop.f32.mrb[111].mxu1 }
 0x7bb   : > { %v8460_v47 = vmax.f32 %v8312_v35, %v8416_v34 }
 0x7bc   : > { %v8418_v56 = vsel %vm1025_vm0, %v8415_v27, %v8417_v33 }
 0x7bd   : > { %v8461_v5 = vmax.f32 %v8317_v60, %v8418_v56  ;;  %v8499_v25 = vrot.slane %v8460_v47, 6 }
 0x7bf   : > { %v8500_v21 = vrot.slane %v8461_v5, 6  ;;  %v8325_v48 = vpop.f32.mrb[112].mxu1 }
 0x7c0   : > { %v8419_v11 = vrot.slane %v8325_v48, 1  ;;  %v12470_v63 = vpop.f32.mrb[113].mxu1 }
 0x7c1   : > { %v8328_v49 = vpop.f32.mrb[114].mxu1  ;;  %v8501_v52 = vsel %vm8498_vm9, %v8499_v25, %v8500_v21 }
 0x7c2   : > { %v8420_v43 = vsel %vm1025_vm0, %v8417_v33, %v8419_v11  ;;  %v8421_v44 = vrot.slane %v8328_v49, 1  ;;  %v12471_v38 = vpop.f32.mrb[115].mxu1  ;;  %v8546_v23 = vmax.f32 %v8459_v24, %v8501_v52 }
 0x7c3   : > { %v8462_v18 = vmax.f32 %v8320_v57, %v8420_v43 }
 0x7c4   : > { %v8422_v9 = vsel %vm1025_vm0, %v8419_v11, %v8421_v44 }
 0x7c5   : > { %v8502_v12 = vrot.slane %v8462_v18, 6  ;;  %v8463_v20 = vmax.f32 %v8325_v48, %v8422_v9 }
 0x7c7   : > { %v8504_v28 = vrot.slane %v8463_v20, 6  ;;  %v8333_v39 = vpop.f32.mrb[116].mxu1  ;;  %v8503_v2 = vsel %vm8498_vm9, %v8500_v21, %v8502_v12 }
 0x7c8   : > { %v8423_v53 = vrot.slane %v8333_v39, 1  ;;  %v12474_v13 = vpop.f32.mrb[117].mxu1  ;;  %v8547_v32 = vmax.f32 %v8460_v47, %v8503_v2 }
 0x7c9   : > { %v8336_v51 = vpop.f32.mrb[118].mxu1  ;;  %v8505_v31 = vsel %vm8498_vm9, %v8502_v12, %v8504_v28 }
 0x7ca   : > { %v8424_v58 = vsel %vm1025_vm0, %v8421_v44, %v8423_v53  ;;  %v8425_v59 = vrot.slane %v8336_v51, 1  ;;  %v12475_v41 = vpop.f32.mrb[119].mxu1  ;;  %v8566_v3 = vpack.c.bf16 %v8547_v32, %v8546_v23  ;;  %v8548_v42 = vmax.f32 %v8461_v5, %v8505_v31 }
 0x7cb   : > { %v8464_v30 = vmax.f32 %v8328_v49, %v8424_v58 }
 0x7cc   : > { %v8426_v6 = vsel %vm1025_vm0, %v8423_v53, %v8425_v59  ;;  %12496 = vmatprep.subr.bf16.mxu0 %v8566_v3 }
 0x7cd   : > { %v8506_v22 = vrot.slane %v8464_v30, 6  ;;  %v8465_v36 = vmax.f32 %v8333_v39, %v8426_v6  ;;  %12497 = vmatpush3.bf16.msra.mxu0 %v8566_v3 }
 0x7cf   : > { %v8508_v55 = vrot.slane %v8465_v36, 6  ;;  %v8341_v10 = vpop.f32.mrb[120].mxu1  ;;  %v8507_v17 = vsel %vm8498_vm9, %v8504_v28, %v8506_v22 }
 0x7d0   : > { %v8427_v50 = vrot.slane %v8341_v10, 1  ;;  %v12478_v26 = vpop.f32.mrb[121].mxu1  ;;  %v8549_v19 = vmax.f32 %v8462_v18, %v8507_v17 }
 0x7d1   : > { %v8344_v16 = vpop.f32.mrb[122].mxu1  ;;  %v8509_v29 = vsel %vm8498_vm9, %v8506_v22, %v8508_v55 }
 0x7d2   : > { %v8428_v62 = vsel %vm1025_vm0, %v8425_v59, %v8427_v50  ;;  %v8429_v0 = vrot.slane %v8344_v16, 1  ;;  %v12479_v14 = vpop.f32.mrb[123].mxu1  ;;  %v8567_v40 = vpack.c.bf16 %v8549_v19, %v8548_v42  ;;  %v8550_v37 = vmax.f32 %v8463_v20, %v8509_v29 }
 0x7d3   : > { %v8466_v61 = vmax.f32 %v8336_v51, %v8428_v62 }
 0x7d4   : > { %v8430_v35 = vsel %vm1025_vm0, %v8427_v50, %v8429_v0  ;;  %12498 = vmatprep.subr.bf16.mxu0 %v8567_v40 }
 0x7d5   : > { %v8510_v15 = vrot.slane %v8466_v61, 6  ;;  %v8467_v45 = vmax.f32 %v8341_v10, %v8430_v35  ;;  %12499 = vmatpush3.bf16.msra.mxu0 %v8567_v40 }
 0x7d7   : > { %v8512_v4 = vrot.slane %v8467_v45, 6  ;;  %v8349_v8 = vpop.f32.mrb[124].mxu1  ;;  %v8511_v24 = vsel %vm8498_vm9, %v8508_v55, %v8510_v15 }
 0x7d8   : > { %v8431_v60 = vrot.slane %v8349_v8, 1  ;;  %v12482_v27 = vpop.f32.mrb[125].mxu1  ;;  %v8551_v54 = vmax.f32 %v8464_v30, %v8511_v24 }
 0x7d9   : > { %v8352_v57 = vpop.f32.mrb[126].mxu1  ;;  %v8513_v34 = vsel %vm8498_vm9, %v8510_v15, %v8512_v4 }
 0x7da   : > { %v8432_v33 = vsel %vm1025_vm0, %v8429_v0, %v8431_v60  ;;  %v8433_v7 = vrot.slane %v8352_v57, 1  ;;  %v12483_v47 = vpop.f32.mrb[127].mxu1  ;;  %v8568_v56 = vpack.c.bf16 %v8551_v54, %v8550_v37  ;;  %v8552_v5 = vmax.f32 %v8465_v36, %v8513_v34 }
 0x7db   : > { %v8468_v25 = vmax.f32 %v8344_v16, %v8432_v33  ;;  %v8599_v34 = vsel %vm8598_vm10, 4294967295, %v13301_v1  ;;  %v13090_v1 = vld [vmem:[%s17784_s7 + $0x8] sm:$0xff]  }
 0x7dc   : > { %v8434_v21 = vsel %vm1025_vm0, %v8431_v60, %v8433_v7  ;;  %12500 = vmatprep.subr.bf16.mxu0 %v8568_v56 }
 0x7dd   : > { %v8514_v48 = vrot.slane %v8468_v25, 6  ;;  %v8469_v11 = vmax.f32 %v8349_v8, %v8434_v21  ;;  %12501 = vmatpush3.bf16.msra.mxu0 %v8568_v56 }
 0x7df   : > { %v8516_v63 = vrot.slane %v8469_v11, 6  ;;  %v8357_v49 = vpop.f32.mrb[128].mxu1  ;;  %v8515_v52 = vsel %vm8498_vm9, %v8512_v4, %v8514_v48 }
 0x7e0   : > { %v8435_v43 = vrot.slane %v8357_v49, 1  ;;  %v12486_v44 = vpop.f32.mrb[129].mxu1  ;;  %v8553_v38 = vmax.f32 %v8466_v61, %v8515_v52 }
 0x7e1   : > { %v8360_v23 = vpop.f32.mrb[130].mxu1  ;;  %v8517_v18 = vsel %vm8498_vm9, %v8514_v48, %v8516_v63 }
 0x7e2   : > { %v8436_v9 = vsel %vm1025_vm0, %v8433_v7, %v8435_v43  ;;  %v8437_v12 = vrot.slane %v8360_v23, 1  ;;  %v12487_v20 = vpop.f32.mrb[131].mxu1  ;;  %v8569_v28 = vpack.c.bf16 %v8553_v38, %v8552_v5  ;;  %v8554_v39 = vmax.f32 %v8467_v45, %v8517_v18 }
 0x7e3   : > { %v8470_v2 = vmax.f32 %v8352_v57, %v8436_v9  ;;  %v8600_v5 = vsel %vm6428_vm5, %v8599_v34, 0  ;;  %vm10074_vm5 = vcmask 982016  }
 0x7e4   : > { %v8438_v53 = vsel %vm1025_vm0, %v8435_v43, %v8437_v12  ;;  %12502 = vmatprep.subr.bf16.mxu0 %v8569_v28 }
 0x7e5   : > { %v8518_v13 = vrot.slane %v8470_v2, 6  ;;  %v8471_v32 = vmax.f32 %v8357_v49, %v8438_v53  ;;  %12503 = vmatpush3.bf16.msra.mxu0 %v8569_v28 }
 0x7e7   : > { %v8520_v51 = vrot.slane %v8471_v32, 6  ;;  %v8365_v31 = vpop.f32.mrb[132].mxu1  ;;  %v8519_v58 = vsel %vm8498_vm9, %v8516_v63, %v8518_v13  ;;  %v10823_v63 = vld [vmem:[%s17781_s4] ss:$0 sm:$0xff] }
 0x7e8   : > { %v8439_v59 = vrot.slane %v8365_v31, 1  ;;  %v12490_v41 = vpop.f32.mrb[133].mxu1  ;;  %v8555_v3 = vmax.f32 %v8468_v25, %v8519_v58 }
 0x7e9   : > { %v8368_v42 = vpop.f32.mrb[134].mxu1  ;;  %v8521_v30 = vsel %vm8498_vm9, %v8518_v13, %v8520_v51  ;;  %v13091_v13 = vld [vmem:[%s17784_s7] sm:$0xff]  }
 0x7ea   : > { %v8440_v6 = vsel %vm1025_vm0, %v8437_v12, %v8439_v59  ;;  %v8441_v22 = vrot.slane %v8368_v42, 1  ;;  %v12491_v36 = vpop.f32.mrb[135].mxu1  ;;  %v8570_v55 = vpack.c.bf16 %v8555_v3, %v8554_v39  ;;  %v8556_v10 = vmax.f32 %v8469_v11, %v8521_v30  ;;  %v13089_v11 = vld [vmem:[%s17783_s6 + $0x8] sm:$0x1f]   ;;  %v13096_v30 = vld [vmem:[%s17784_s7 + $0x30] sm:$0xff]  }
 0x7eb   : > { %v8472_v17 = vmax.f32 %v8360_v23, %v8440_v6  ;;  %v13095_v3 = vld [vmem:[%s17784_s7 + $0x28] sm:$0xff]  }
 0x7ec   : > { %v8442_v50 = vsel %vm1025_vm0, %v8439_v59, %v8441_v22  ;;  %12504 = vmatprep.subr.bf16.mxu0 %v8570_v55  ;;  %v8474_v60 = vmax.f32 %v8368_v42, %v8441_v22  ;;  %v13094_v59 = vld [vmem:[%s17784_s7 + $0x20] sm:$0xff]  }
 0x7ed   : > { %v8522_v26 = vrot.slane %v8472_v17, 6  ;;  %v8473_v19 = vmax.f32 %v8365_v31, %v8442_v50  ;;  %12505 = vmatpush3.bf16.msra.mxu0 %v8570_v55  ;;  %v13093_v31 = vld [vmem:[%s17784_s7 + $0x18] sm:$0xff]   ;;  %v13098_v55 = vld [vmem:[%s17784_s7 + $0x40] sm:$0xff]  }
 0x7ef   : > { %v8524_v16 = vrot.slane %v8473_v19, 6  ;;  %v8373_v29 = vpop.f32.mrb[136].mxu1  ;;  %v8523_v62 = vsel %vm8498_vm9, %v8520_v51, %v8522_v26  ;;  %v13092_v51 = vld [vmem:[%s17784_s7 + $0x10] sm:$0xff]  }
 0x7f0   : > { %v8476_v0 = vrot.slane %v8373_v29, 1  ;;  %v12494_v14 = vpop.f32.mrb[137].mxu1  ;;  %v8557_v40 = vmax.f32 %v8470_v2, %v8523_v62  ;;  %v13102_v62 = vld [vmem:[%s17784_s7 + $0x60] sm:$0xff]  }
 0x7f1   : > { %v8376_v37 = vpop.f32.mrb[138].mxu1  ;;  %v8525_v61 = vsel %vm8498_vm9, %v8522_v26, %v8524_v16  ;;  %v13100_v26 = vld [vmem:[%s17784_s7 + $0x50] sm:$0xff]   ;;  %v13103_v14 = vld [vmem:[%s17784_s7 + $0x68] sm:$0xff]  }
 0x7f2   : > { %v8477_v35 = vsel %vm1025_vm0, %v8441_v22, %v8476_v0  ;;  %v8481_v15 = vmax.f32 %v8373_v29, %v8476_v0  ;;  %v12495_v45 = vpop.f32.mrb[139].mxu1  ;;  %v8571_v4 = vpack.c.bf16 %v8557_v40, %v8556_v10  ;;  %v8558_v8 = vmax.f32 %v8471_v32, %v8525_v61  ;;  %v13097_v22 = vld [vmem:[%s17784_s7 + $0x38] sm:$0xff]   ;;  %v13104_v37 = vld [vmem:[%s17784_s7 + $0x70] sm:$0xff]  }
 0x7f3   : > { %v8480_v24 = vmax.f32 %v8368_v42, %v8477_v35  ;;  %vm8673_vm0 = vcmask 130048   ;;  %v13105_v35 = vld [vmem:[%s17784_s7 + $0x78] sm:$0xff]   ;;  %v13106_v45 = vld [vmem:[%s17784_s7 + $0x80] sm:$0xff]  }
 0x7f4   : > { %v8528_v27 = vrot.slane %v8481_v15, 6  ;;  %12506 = vmatprep.subr.bf16.mxu0 %v8571_v4 }
 0x7f5   : > { %v8526_v54 = vrot.slane %v8480_v24, 6  ;;  %12507 = vmatpush3.bf16.msra.mxu0 %v8571_v4  ;;  %v13108_v24 = vld [vmem:[%s17784_s7 + $0x90] sm:$0xff]  }
 0x7f6   : > { %v8561_v57 = vmax.f32 %v8474_v60, %v8528_v27 }
 0x7f7   : > { %v8529_v33 = vsel %vm8498_vm9, %v8526_v54, %v8528_v27  ;;  %v8527_v7 = vsel %vm8498_vm9, %v8524_v16, %v8526_v54  ;;  %v13101_v16 = vld [vmem:[%s17784_s7 + $0x58] sm:$0xff]  }
 0x7f8   : > { %v8560_v47 = vmax.f32 %v8473_v19, %v8529_v33  ;;  %v8559_v56 = vmax.f32 %v8472_v17, %v8527_v7  ;;  %v13099_v17 = vld [vmem:[%s17784_s7 + $0x48] sm:$0xff]   ;;  %v13109_v27 = vld [vmem:[%s17784_s7 + $0x98] sm:$0xff]  }
 0x7f9   : > { %v13111_v33 = vld [vmem:[%s17784_s7 + $0xa8] sm:$0xff]  }
 0x7fa   : > { %v8572_v25 = vpack.c.bf16 %v8559_v56, %v8558_v8  ;;  %v8573_v21 = vpack.c.bf16 %v8561_v57, %v8560_v47  ;;  %v13107_v8 = vld [vmem:[%s17784_s7 + $0x88] sm:$0xff]   ;;  %v13110_v57 = vld [vmem:[%s17784_s7 + $0xa0] sm:$0xff]   ;;  %v13112_v47 = vld [vmem:[%s17784_s7 + $0xb0] sm:$0xff]  }
 0x7fc   : > { %12508 = vmatprep.subr.bf16.mxu0 %v8572_v25  ;;  %v8602_v48 = vand.u32 %v8600_v5, %v8573_v21  ;;  %v13113_v5 = vld [vmem:[%s17784_s7 + $0xb8] sm:$0xff]   ;;  %v13114_v21 = vld [vmem:[%s17784_s7 + $0xc0] sm:$0xff]  }
 0x7fd   : > { %12509 = vmatpush3.bf16.msra.mxu0 %v8572_v25 }
 0x7fe   : > { %12510 = vmatprep.subr.bf16.mxu0 %v8602_v48 }
 0x801   : > { %12511 = vmatpush3.bf16.msra.mxu0 %v8602_v48 }
 0x802   : > { %12516 = vmatprep.subr.bf16.mxu0 %v13302_v46 }
 0x804   : > { %12513 = vmatmul.mubr.msk.bf16.vlgmr.msra.gmra.mrb[152].mxu0 %vm8591_vm8, %v13089_v11 }
 0x805   : > { %12518 = vmatprep.mubr.msk.bf16.mxu0 %vm13303_vm4, %v13302_v46  ;;  %12517 = vmatpush3.bf16.msra.mxu0 %v13090_v1 }
 0x806   : > { %12522 = vmatprep.subr.bf16.mxu0 %v13302_v46 }
 0x8d7   : > { %v12514_v49 = vpop.f32.mrb[152].mxu0 }
 0x8d8   : > { %v8647_v52 = vadd.f32 %v12514_v49, %v10823_v63  ;;  %v8638_v43 = vpop.f32.mrb[153].mxu0 }
 0x8d9   : > { %v8639_v44 = vadd.f32 %v10823_v63, %v8638_v43  ;;  %v12515_v38 = vpop.f32.mrb[154].mxu0 }
 0x8da   : > { %v8650_v23 = vadd.f32 %v12515_v38, %v10823_v63  ;;  %v8641_v18 = vpop.f32.mrb[155].mxu0  ;;  %v8655_v12 = vmax.f32 %v8647_v52, 0.0 }
 0x8db   : > { %v8642_v9 = vadd.f32 %v10823_v63, %v8641_v18  ;;  %v8653_v28 = vmax.f32 %v8639_v44, 0.0 }
 0x8dc   : > { %v8656_v20 = vmax.f32 %v8650_v23, 0.0 }
 0x8dd   : > { %v8654_v39 = vmax.f32 %v8642_v9, 0.0 }
 0x8de   : > { %v17462_v2 = vpack.c.bf16 %v8656_v20, %v8655_v12 }
 0x8df   : > { %v17464_v53 = vpack.c.bf16 %v8654_v39, %v8653_v28 }
 0x8e0   : > { %v9578_v60 = vshrl.u32 %v17462_v2, 16  ;;  %v9634_v54 = vrot.slane %v17462_v2, 1  ;;  %v9742_v7 = vrot.slane %v17462_v2, 2  ;;  %v9850_v25 = vrot.slane %v17462_v2, 3 }
 0x8e1   : > { %v17470_v32 = vshrl.u32 %v17464_v53, 16  ;;  %v8769_v58 = vrot.slane %v17464_v53, 1  ;;  %v8877_v42 = vrot.slane %v17464_v53, 2  ;;  %v8985_v36 = vrot.slane %v17464_v53, 3 }
 0x8e2   : > { %v9093_v50 = vrot.slane %v17464_v53, 4  ;;  %v9201_v29 = vrot.slane %v17464_v53, 5  ;;  %v9309_v40 = vrot.slane %v17464_v53, 6  ;;  %v9417_v15 = vrot.slane %v17464_v53, 7 }
 0x8e3   : > { %12519 = vmatmul.mubr.msk.bf16.vlgmr.msra.gmra.mrb[156].mxu0 %vm8673_vm0, %v17470_v32  ;;  %v8823_v41 = vrot.slane %v17470_v32, 1  ;;  %v8931_v6 = vrot.slane %v17470_v32, 2  ;;  %v9039_v10 = vrot.slane %v17470_v32, 3  ;;  %v9147_v19 = vrot.slane %v17470_v32, 4 }
 0x8e4   : > { %12523 = vmatpush3.bf16.msra.mxu0 %v13091_v13  ;;  %12524 = vmatprep.mubr.msk.bf16.mxu0 %vm13303_vm4, %v13302_v46  ;;  %v9255_v0 = vrot.slane %v17470_v32, 5  ;;  %v9363_v61 = vrot.slane %v17470_v32, 6  ;;  %v9471_v4 = vrot.slane %v17470_v32, 7  ;;  %v9688_v34 = vrot.slane %v9578_v60, 1 }
 0x8e5   : > { %12528 = vmatprep.subr.bf16.mxu0 %v13302_v46  ;;  %v9796_v56 = vrot.slane %v9578_v60, 2  ;;  %v9904_v48 = vrot.slane %v9578_v60, 3  ;;  %v9958_v11 = vrot.slane %v17462_v2, 4 }
 0x8eb   : > { %12525 = vmatmul.mubr.msk.bf16.vlgmr.msra.gmra.mrb[160].mxu0 %vm8673_vm0, %v17464_v53 }
 0x8ec   : > { %12529 = vmatpush3.bf16.msra.mxu0 %v13092_v51  ;;  %12530 = vmatprep.mubr.msk.bf16.mxu0 %vm13303_vm4, %v13302_v46 }
 0x8ed   : > { %12534 = vmatprep.subr.bf16.mxu0 %v13302_v46 }
 0x8f3   : > { %12531 = vmatmul.mubr.msk.bf16.vlgmr.msra.gmra.mrb[164].mxu0 %vm8673_vm0, %v8769_v58  ;;  %v13116_v58 = vld [vmem:[%s17786_s9 + $0x8] sm:$0xff]  }
 0x8f4   : > { %12535 = vmatpush3.bf16.msra.mxu0 %v13093_v31  ;;  %12536 = vmatprep.mubr.msk.bf16.mxu0 %vm13303_vm4, %v13302_v46 }
 0x8f5   : > { %12540 = vmatprep.subr.bf16.mxu0 %v13302_v46 }
 0x8fb   : > { %12537 = vmatmul.mubr.msk.bf16.vlgmr.msra.gmra.mrb[168].mxu0 %vm8673_vm0, %v8823_v41 }
 0x8fc   : > { %12541 = vmatpush3.bf16.msra.mxu0 %v13094_v59  ;;  %12542 = vmatprep.mubr.msk.bf16.mxu0 %vm13303_vm4, %v13302_v46 }
 0x8fd   : > { %12546 = vmatprep.subr.bf16.mxu0 %v13302_v46 }
 0x903   : > { %12543 = vmatmul.mubr.msk.bf16.vlgmr.msra.gmra.mrb[172].mxu0 %vm8673_vm0, %v8877_v42 }
 0x904   : > { %12547 = vmatpush3.bf16.msra.mxu0 %v13095_v3  ;;  %12548 = vmatprep.mubr.msk.bf16.mxu0 %vm13303_vm4, %v13302_v46 }
 0x905   : > { %12552 = vmatprep.subr.bf16.mxu0 %v13302_v46 }
 0x90b   : > { %12549 = vmatmul.mubr.msk.bf16.vlgmr.msra.gmra.mrb[176].mxu0 %vm8673_vm0, %v8931_v6  ;;  %v13117_v6 = vld [vmem:[%s17786_s9 + $0x10] sm:$0xff]  }
 0x90c   : > { %12553 = vmatpush3.bf16.msra.mxu0 %v13096_v30  ;;  %12554 = vmatprep.mubr.msk.bf16.mxu0 %vm13303_vm4, %v13302_v46 }
 0x90d   : > { %12558 = vmatprep.subr.bf16.mxu0 %v13302_v46 }
 0x913   : > { %12555 = vmatmul.mubr.msk.bf16.vlgmr.msra.gmra.mrb[180].mxu0 %vm8673_vm0, %v8985_v36 }
 0x914   : > { %12559 = vmatpush3.bf16.msra.mxu0 %v13097_v22  ;;  %12560 = vmatprep.mubr.msk.bf16.mxu0 %vm13303_vm4, %v13302_v46 }
 0x915   : > { %12564 = vmatprep.subr.bf16.mxu0 %v13302_v46 }
 0x91b   : > { %12561 = vmatmul.mubr.msk.bf16.vlgmr.msra.gmra.mrb[184].mxu0 %vm8673_vm0, %v9039_v10 }
 0x91c   : > { %12565 = vmatpush3.bf16.msra.mxu0 %v13098_v55  ;;  %12566 = vmatprep.mubr.msk.bf16.mxu0 %vm13303_vm4, %v13302_v46 }
 0x91d   : > { %12570 = vmatprep.subr.bf16.mxu0 %v13302_v46 }
 0x923   : > { %12567 = vmatmul.mubr.msk.bf16.vlgmr.msra.gmra.mrb[188].mxu0 %vm8673_vm0, %v9093_v50  ;;  %v13118_v50 = vld [vmem:[%s17786_s9 + $0x18] sm:$0xff]  }
 0x924   : > { %12571 = vmatpush3.bf16.msra.mxu0 %v13099_v17  ;;  %12572 = vmatprep.mubr.msk.bf16.mxu0 %vm13303_vm4, %v13302_v46 }
 0x925   : > { %12576 = vmatprep.subr.bf16.mxu0 %v13302_v46 }
 0x92b   : > { %12573 = vmatmul.mubr.msk.bf16.vlgmr.msra.gmra.mrb[192].mxu0 %vm8673_vm0, %v9147_v19 }
 0x92c   : > { %12577 = vmatpush3.bf16.msra.mxu0 %v13100_v26  ;;  %12578 = vmatprep.mubr.msk.bf16.mxu0 %vm13303_vm4, %v13302_v46 }
 0x92d   : > { %12582 = vmatprep.subr.bf16.mxu0 %v13302_v46 }
 0x933   : > { %12579 = vmatmul.mubr.msk.bf16.vlgmr.msra.gmra.mrb[196].mxu0 %vm8673_vm0, %v9201_v29 }
 0x934   : > { %12583 = vmatpush3.bf16.msra.mxu0 %v13101_v16  ;;  %12584 = vmatprep.mubr.msk.bf16.mxu0 %vm13303_vm4, %v13302_v46 }
 0x935   : > { %12588 = vmatprep.subr.bf16.mxu0 %v13302_v46 }
 0x93b   : > { %12585 = vmatmul.mubr.msk.bf16.vlgmr.msra.gmra.mrb[200].mxu0 %vm8673_vm0, %v9255_v0  ;;  %v13119_v0 = vld [vmem:[%s17786_s9 + $0x20] sm:$0xff]  }
 0x93c   : > { %12589 = vmatpush3.bf16.msra.mxu0 %v13102_v62  ;;  %12590 = vmatprep.mubr.msk.bf16.mxu0 %vm13303_vm4, %v13302_v46 }
 0x93d   : > { %12594 = vmatprep.subr.bf16.mxu0 %v13302_v46 }
 0x943   : > { %12591 = vmatmul.mubr.msk.bf16.vlgmr.msra.gmra.mrb[204].mxu0 %vm8673_vm0, %v9309_v40 }
 0x944   : > { %12595 = vmatpush3.bf16.msra.mxu0 %v13103_v14  ;;  %12596 = vmatprep.mubr.msk.bf16.mxu0 %vm13303_vm4, %v13302_v46 }
 0x945   : > { %12600 = vmatprep.subr.bf16.mxu0 %v13302_v46 }
 0x94b   : > { %12597 = vmatmul.mubr.msk.bf16.vlgmr.msra.gmra.mrb[208].mxu0 %vm8673_vm0, %v9363_v61 }
 0x94c   : > { %12601 = vmatpush3.bf16.msra.mxu0 %v13104_v37  ;;  %12602 = vmatprep.mubr.msk.bf16.mxu0 %vm13303_vm4, %v13302_v46 }
 0x94d   : > { %12606 = vmatprep.subr.bf16.mxu0 %v13302_v46 }
 0x953   : > { %12603 = vmatmul.mubr.msk.bf16.vlgmr.msra.gmra.mrb[212].mxu0 %vm8673_vm0, %v9417_v15  ;;  %v13120_v15 = vld [vmem:[%s17786_s9 + $0x28] sm:$0xff]  }
 0x954   : > { %12607 = vmatpush3.bf16.msra.mxu0 %v13105_v35  ;;  %12608 = vmatprep.mubr.msk.bf16.mxu0 %vm13303_vm4, %v13302_v46 }
 0x955   : > { %12612 = vmatprep.subr.bf16.mxu0 %v13302_v46 }
 0x95b   : > { %12609 = vmatmul.mubr.msk.bf16.vlgmr.msra.gmra.mrb[216].mxu0 %vm8673_vm0, %v9471_v4 }
 0x95c   : > { %12613 = vmatpush3.bf16.msra.mxu0 %v13106_v45  ;;  %12614 = vmatprep.mubr.msk.bf16.mxu0 %vm13303_vm4, %v13302_v46 }
 0x95d   : > { %12618 = vmatprep.subr.bf16.mxu0 %v13302_v46 }
 0x963   : > { %12615 = vmatmul.mubr.msk.bf16.vlgmr.msra.gmra.mrb[220].mxu0 %vm8673_vm0, %v17462_v2  ;;  %v13115_v2 = vld [vmem:[%s17786_s9] sm:$0xff]  }
 0x964   : > { %12619 = vmatpush3.bf16.msra.mxu0 %v13107_v8  ;;  %12620 = vmatprep.mubr.msk.bf16.mxu0 %vm13303_vm4, %v13302_v46 }
 0x965   : > { %12624 = vmatprep.subr.bf16.mxu0 %v13302_v46 }
 0x96b   : > { %12621 = vmatmul.mubr.msk.bf16.vlgmr.msra.gmra.mrb[224].mxu0 %vm8673_vm0, %v9578_v60 }
 0x96c   : > { %12625 = vmatpush3.bf16.msra.mxu0 %v13108_v24  ;;  %12626 = vmatprep.mubr.msk.bf16.mxu0 %vm13303_vm4, %v13302_v46 }
 0x96d   : > { %12630 = vmatprep.subr.bf16.mxu0 %v13302_v46 }
 0x973   : > { %12627 = vmatmul.mubr.msk.bf16.vlgmr.msra.gmra.mrb[228].mxu0 %vm8673_vm0, %v9634_v54  ;;  %v13122_v54 = vld [vmem:[%s17786_s9 + $0x38] ss:$0 sps:$4 sm:$0xff]  }
 0x974   : > { %12631 = vmatpush3.bf16.msra.mxu0 %v13109_v27  ;;  %12632 = vmatprep.mubr.msk.bf16.mxu0 %vm13303_vm4, %v13302_v46  ;;  %v13121_v27 = vld [vmem:[%s17786_s9 + $0x30] sm:$0xff]  }
 0x975   : > { %12636 = vmatprep.subr.bf16.mxu0 %v13302_v46 }
 0x97b   : > { %12633 = vmatmul.mubr.msk.bf16.vlgmr.msra.gmra.mrb[232].mxu0 %vm8673_vm0, %v9688_v34 }
 0x97c   : > { %12637 = vmatpush3.bf16.msra.mxu0 %v13110_v57  ;;  %12638 = vmatprep.mubr.msk.bf16.mxu0 %vm13303_vm4, %v13302_v46 }
 0x97d   : > { %12642 = vmatprep.subr.bf16.mxu0 %v13302_v46 }
 0x983   : > { %12639 = vmatmul.mubr.msk.bf16.vlgmr.msra.gmra.mrb[236].mxu0 %vm8673_vm0, %v9742_v7  ;;  %v10079_v7 = vsel %vm8598_vm10, %v13122_v54, 0 }
 0x984   : > { %12643 = vmatpush3.bf16.msra.mxu0 %v13111_v33  ;;  %12644 = vmatprep.mubr.msk.bf16.mxu0 %vm13303_vm4, %v13302_v46 }
 0x985   : > { %12648 = vmatprep.subr.bf16.mxu0 %v13302_v46 }
 0x98b   : > { %12645 = vmatmul.mubr.msk.bf16.vlgmr.msra.gmra.mrb[240].mxu0 %vm8673_vm0, %v9796_v56 }
 0x98c   : > { %12649 = vmatpush3.bf16.msra.mxu0 %v13112_v47  ;;  %12650 = vmatprep.mubr.msk.bf16.mxu0 %vm13303_vm4, %v13302_v46 }
 0x98d   : > { %12654 = vmatprep.subr.bf16.mxu0 %v13302_v46 }
 0x993   : > { %12651 = vmatmul.mubr.msk.bf16.vlgmr.msra.gmra.mrb[244].mxu0 %vm8673_vm0, %v9850_v25 }
 0x994   : > { %12655 = vmatpush3.bf16.msra.mxu0 %v13113_v5  ;;  %12656 = vmatprep.mubr.msk.bf16.mxu0 %vm13303_vm4, %v13302_v46 }
 0x995   : > { %12660 = vmatprep.subr.bf16.mxu0 %v13302_v46 }
 0x99b   : > { %12657 = vmatmul.mubr.msk.bf16.vlgmr.msra.gmra.mrb[248].mxu0 %vm8673_vm0, %v9904_v48 }
 0x99c   : > { %12661 = vmatpush3.bf16.msra.mxu0 %v13114_v21  ;;  %12662 = vmatprep.mubr.msk.bf16.mxu0 %vm13303_vm4, %v13302_v46 }
 0x99d   : > { %12666 = vmatprep.subr.bf16.mxu0 %v13302_v46 }
 0x9a3   : > { %12663 = vmatmul.mubr.msk.bf16.vlgmr.msra.gmra.mrb[252].mxu0 %vm8673_vm0, %v9958_v11 }
 0x9a4   : > { %12682 = vmatprep.mubr.msk.bf16.mxu0 %vm13303_vm4, %v13302_v46  ;;  %12667 = vmatpush3.bf16.msra.mxu0 %v13115_v2 }
 0x9a5   : > { %12668 = vmatprep.subr.bf16.mxu0 %v13302_v46 }
 0x9a8   : > { %12669 = vmatpush3.bf16.msra.mxu0 %v13116_v58 }
 0x9a9   : > { %12670 = vmatprep.subr.bf16.mxu0 %v13302_v46 }
 0x9ac   : > { %12671 = vmatpush3.bf16.msra.mxu0 %v13117_v6 }
 0x9ad   : > { %12672 = vmatprep.subr.bf16.mxu0 %v13302_v46 }
 0x9b0   : > { %12673 = vmatpush3.bf16.msra.mxu0 %v13118_v50 }
 0x9b1   : > { %12674 = vmatprep.subr.bf16.mxu0 %v13302_v46 }
 0x9b4   : > { %12675 = vmatpush3.bf16.msra.mxu0 %v13119_v0 }
 0x9b5   : > { %12676 = vmatprep.subr.bf16.mxu0 %v13302_v46 }
 0x9b6   : > { %v8711_v1 = vpop.f32.mrb[156].mxu0 }
 0x9b7   : > { %v12520_v63 = vpop.f32.mrb[157].mxu0 }
 0x9b8   : > { %v8714_v49 = vpop.f32.mrb[158].mxu0  ;;  %12677 = vmatpush3.bf16.msra.mxu0 %v13120_v15 }
 0x9b9   : > { %v12521_v52 = vpop.f32.mrb[159].mxu0  ;;  %12678 = vmatprep.subr.bf16.mxu0 %v13302_v46 }
 0x9bc   : > { %12679 = vmatpush3.bf16.msra.mxu0 %v13121_v27 }
 0x9bd   : > { %12680 = vmatprep.subr.bf16.mxu0 %v13302_v46 }
 0x9be   : > { %v8759_v43 = vpop.f32.mrb[160].mxu0 }
 0x9bf   : > { %v8760_v44 = vadd.f32 %v8759_v43, %v8711_v1  ;;  %v12526_v38 = vpop.f32.mrb[161].mxu0 }
 0x9c0   : > { %v8762_v23 = vpop.f32.mrb[162].mxu0  ;;  %12681 = vmatpush3.bf16.msra.mxu0 %v10079_v7 }
 0x9c1   : > { %v12527_v18 = vpop.f32.mrb[163].mxu0  ;;  %12686 = vmatprep.subr.bf16.mxu0 %v13302_v46 }
 0x9c6   : > { %v8813_v9 = vpop.f32.mrb[164].mxu0 }
 0x9c7   : > { %v8819_v12 = vadd.f32 %v8813_v9, %v8760_v44  ;;  %v12532_v20 = vpop.f32.mrb[165].mxu0 }
 0x9c8   : > { %v8816_v28 = vpop.f32.mrb[166].mxu0 }
 0x9c9   : > { %v12533_v39 = vpop.f32.mrb[167].mxu0 }
 0x9ce   : > { %v8867_v53 = vpop.f32.mrb[168].mxu0 }
 0x9cf   : > { %v8873_v13 = vadd.f32 %v8867_v53, %v8819_v12  ;;  %v12538_v32 = vpop.f32.mrb[169].mxu0 }
 0x9d0   : > { %v8870_v51 = vpop.f32.mrb[170].mxu0 }
 0x9d1   : > { %v12539_v31 = vpop.f32.mrb[171].mxu0 }
 0x9d6   : > { %v8921_v59 = vpop.f32.mrb[172].mxu0 }
 0x9d7   : > { %v8927_v41 = vadd.f32 %v8921_v59, %v8873_v13  ;;  %v12544_v3 = vpop.f32.mrb[173].mxu0 }
 0x9d8   : > { %v8924_v42 = vpop.f32.mrb[174].mxu0 }
 0x9d9   : > { %v12545_v30 = vpop.f32.mrb[175].mxu0 }
 0x9de   : > { %v8975_v22 = vpop.f32.mrb[176].mxu0 }
 0x9df   : > { %v8981_v36 = vadd.f32 %v8975_v22, %v8927_v41  ;;  %v12550_v55 = vpop.f32.mrb[177].mxu0 }
 0x9e0   : > { %v8978_v10 = vpop.f32.mrb[178].mxu0 }
 0x9e1   : > { %v12551_v17 = vpop.f32.mrb[179].mxu0 }
 0x9e6   : > { %v9029_v26 = vpop.f32.mrb[180].mxu0 }
 0x9e7   : > { %v9035_v19 = vadd.f32 %v9029_v26, %v8981_v36  ;;  %v12556_v16 = vpop.f32.mrb[181].mxu0 }
 0x9e8   : > { %v9032_v29 = vpop.f32.mrb[182].mxu0 }
 0x9e9   : > { %v12557_v62 = vpop.f32.mrb[183].mxu0 }
 0x9ee   : > { %v9083_v14 = vpop.f32.mrb[184].mxu0 }
 0x9ef   : > { %v9089_v40 = vadd.f32 %v9083_v14, %v9035_v19  ;;  %v12562_v37 = vpop.f32.mrb[185].mxu0 }
 0x9f0   : > { %v9086_v61 = vpop.f32.mrb[186].mxu0 }
 0x9f1   : > { %v12563_v35 = vpop.f32.mrb[187].mxu0 }
 0x9f6   : > { %v9137_v45 = vpop.f32.mrb[188].mxu0 }
 0x9f7   : > { %v9143_v4 = vadd.f32 %v9137_v45, %v9089_v40  ;;  %v12568_v8 = vpop.f32.mrb[189].mxu0 }
 0x9f8   : > { %v9140_v24 = vpop.f32.mrb[190].mxu0 }
 0x9f9   : > { %v12569_v60 = vpop.f32.mrb[191].mxu0 }
 0x9fe   : > { %v9191_v57 = vpop.f32.mrb[192].mxu0 }
 0x9ff   : > { %v9197_v34 = vadd.f32 %v9191_v57, %v9143_v4  ;;  %v12574_v33 = vpop.f32.mrb[193].mxu0 }
 0xa00   : > { %v9194_v47 = vpop.f32.mrb[194].mxu0 }
 0xa01   : > { %v12575_v56 = vpop.f32.mrb[195].mxu0 }
 0xa06   : > { %v9245_v5 = vpop.f32.mrb[196].mxu0 }
 0xa07   : > { %v9251_v25 = vadd.f32 %v9245_v5, %v9197_v34  ;;  %v12580_v21 = vpop.f32.mrb[197].mxu0 }
 0xa08   : > { %v9248_v48 = vpop.f32.mrb[198].mxu0 }
 0xa09   : > { %v12581_v11 = vpop.f32.mrb[199].mxu0 }
 0xa0e   : > { %v9299_v1 = vpop.f32.mrb[200].mxu0 }
 0xa0f   : > { %v9305_v63 = vadd.f32 %v9299_v1, %v9251_v25  ;;  %v12586_v49 = vpop.f32.mrb[201].mxu0 }
 0xa10   : > { %v9302_v52 = vpop.f32.mrb[202].mxu0 }
 0xa11   : > { %v12587_v43 = vpop.f32.mrb[203].mxu0  ;;  %v10009_v52 = vld [vmem:[%s17785_s8] sm:$0x1] }
 0xa16   : > { %v9353_v44 = vpop.f32.mrb[204].mxu0 }
 0xa17   : > { %v9359_v38 = vadd.f32 %v9353_v44, %v9305_v63  ;;  %v12592_v23 = vpop.f32.mrb[205].mxu0 }
 0xa18   : > { %v9356_v18 = vpop.f32.mrb[206].mxu0 }
 0xa19   : > { %v12593_v9 = vpop.f32.mrb[207].mxu0 }
 0xa1e   : > { %v9407_v12 = vpop.f32.mrb[208].mxu0 }
 0xa1f   : > { %v9413_v20 = vadd.f32 %v9407_v12, %v9359_v38  ;;  %v12598_v28 = vpop.f32.mrb[209].mxu0  ;;  %v13123_v12 = vld [vmem:[%s17788_s11] sm:$0xff]  }
 0xa20   : > { %v9410_v39 = vpop.f32.mrb[210].mxu0  ;;  %v13124_v28 = vld [vmem:[%s17788_s11 + $0x8] sm:$0xff]  }
 0xa21   : > { %v12599_v2 = vpop.f32.mrb[211].mxu0  ;;  %v13125_v39 = vld [vmem:[%s17788_s11 + $0x10] sm:$0xff]  }
 0xa22   : > { %v13126_v2 = vld [vmem:[%s17788_s11 + $0x18] sm:$0xff]  }
 0xa26   : > { %v9461_v53 = vpop.f32.mrb[212].mxu0 }
 0xa27   : > { %v9467_v13 = vadd.f32 %v9461_v53, %v9413_v20  ;;  %v12604_v32 = vpop.f32.mrb[213].mxu0  ;;  %v13127_v53 = vld [vmem:[%s17788_s11 + $0x20] sm:$0xff]  }
 0xa28   : > { %v9464_v51 = vpop.f32.mrb[214].mxu0 }
 0xa29   : > { %v12605_v31 = vpop.f32.mrb[215].mxu0  ;;  %v10028_v51 = vld [vmem:[%s17787_s10] sm:$0x1] }
 0xa2e   : > { %v9515_v58 = vpop.f32.mrb[216].mxu0 }
 0xa2f   : > { %v9521_v59 = vadd.f32 %v9515_v58, %v9467_v13  ;;  %v12610_v41 = vpop.f32.mrb[217].mxu0  ;;  %v13128_v13 = vld [vmem:[%s17788_s11 + $0x28] ss:$0 sps:$4 sm:$0x33]  }
 0xa30   : > { %v9518_v3 = vpop.f32.mrb[218].mxu0  ;;  %v10173_v32 = vsel %vm8498_vm9, %v13128_v13, 0 }
 0xa31   : > { %v12611_v42 = vpop.f32.mrb[219].mxu0 }
 0xa36   : > { %v9568_v30 = vpop.f32.mrb[220].mxu0 }
 0xa37   : > { %v9574_v6 = vadd.f32 %v9568_v30, %v9521_v59  ;;  %v12616_v22 = vpop.f32.mrb[221].mxu0  ;;  %v10134_v30 = vld [vmem:[%s17789_s12] sm:$0x1] }
 0xa38   : > { %v9571_v36 = vpop.f32.mrb[222].mxu0 }
 0xa39   : > { %v12617_v55 = vpop.f32.mrb[223].mxu0 }
 0xa3e   : > { %v9623_v10 = vpop.f32.mrb[224].mxu0 }
 0xa3f   : > { %v9629_v17 = vadd.f32 %v9623_v10, %v9574_v6  ;;  %v12622_v50 = vpop.f32.mrb[225].mxu0 }
 0xa40   : > { %v9626_v26 = vpop.f32.mrb[226].mxu0 }
 0xa41   : > { %v12623_v19 = vpop.f32.mrb[227].mxu0 }
 0xa46   : > { %v9678_v16 = vpop.f32.mrb[228].mxu0 }
 0xa47   : > { %v9684_v29 = vadd.f32 %v9678_v16, %v9629_v17  ;;  %v12628_v62 = vpop.f32.mrb[229].mxu0 }
 0xa48   : > { %v9681_v0 = vpop.f32.mrb[230].mxu0 }
 0xa49   : > { %v12629_v14 = vpop.f32.mrb[231].mxu0 }
 0xa4e   : > { %v9732_v40 = vpop.f32.mrb[232].mxu0 }
 0xa4f   : > { %v9738_v37 = vadd.f32 %v9732_v40, %v9684_v29  ;;  %v12634_v61 = vpop.f32.mrb[233].mxu0 }
 0xa50   : > { %v9735_v35 = vpop.f32.mrb[234].mxu0 }
 0xa51   : > { %v12635_v15 = vpop.f32.mrb[235].mxu0 }
 0xa56   : > { %v9786_v45 = vpop.f32.mrb[236].mxu0 }
 0xa57   : > { %v9792_v4 = vadd.f32 %v9786_v45, %v9738_v37  ;;  %v12640_v8 = vpop.f32.mrb[237].mxu0 }
 0xa58   : > { %v9789_v24 = vpop.f32.mrb[238].mxu0 }
 0xa59   : > { %v12641_v60 = vpop.f32.mrb[239].mxu0 }
 0xa5e   : > { %v9840_v27 = vpop.f32.mrb[240].mxu0 }
 0xa5f   : > { %v9846_v54 = vadd.f32 %v9840_v27, %v9792_v4  ;;  %v12646_v57 = vpop.f32.mrb[241].mxu0 }
 0xa60   : > { %v9843_v34 = vpop.f32.mrb[242].mxu0 }
 0xa61   : > { %v12647_v33 = vpop.f32.mrb[243].mxu0 }
 0xa66   : > { %v9894_v7 = vpop.f32.mrb[244].mxu0 }
 0xa67   : > { %v9900_v47 = vadd.f32 %v9894_v7, %v9846_v54  ;;  %v12652_v56 = vpop.f32.mrb[245].mxu0 }
 0xa68   : > { %v9897_v5 = vpop.f32.mrb[246].mxu0 }
 0xa69   : > { %v12653_v25 = vpop.f32.mrb[247].mxu0 }
 0xa6e   : > { %v9948_v21 = vpop.f32.mrb[248].mxu0 }
 0xa6f   : > { %v9954_v48 = vadd.f32 %v9948_v21, %v9900_v47  ;;  %v12658_v11 = vpop.f32.mrb[249].mxu0 }
 0xa70   : > { %v9951_v1 = vpop.f32.mrb[250].mxu0 }
 0xa71   : > { %v12659_v63 = vpop.f32.mrb[251].mxu0 }
 0xa76   : > { %v10002_v49 = vpop.f32.mrb[252].mxu0 }
 0xa77   : > { %v10008_v43 = vadd.f32 %v10002_v49, %v9954_v48  ;;  %v12664_v44 = vpop.f32.mrb[253].mxu0 }
 0xa78   : > { %v10005_v38 = vpop.f32.mrb[254].mxu0 }
 0xa79   : > { %v10010_v23 = vadd.f32 %v10009_v52, %v10008_v43  ;;  %v12665_v18 = vpop.f32.mrb[255].mxu0 }
 0xa7b   : > { %v10011_v9 = vmax.f32 %v10010_v23, 0.0 }
 0xa7d   : > { %v10012_v20 = vpack.c.bf16 %v10011_v9, %v10011_v9 }
 0xa7f   : > { %12683 = vmatmul.mubr.msk.bf16.vlgmr.msra.gmra.mrb[0].mxu0 %vm10074_vm5, %v10012_v20 }
 0xa80   : > { %12687 = vmatpush3.bf16.msra.mxu0 %v13123_v12  ;;  %12698 = vmatprep.mubr.msk.bf16.mxu0 %vm13303_vm4, %v13302_v46  ;;  %vm10168_vm4 = vcmask 687104  }
 0xa81   : > { %12688 = vmatprep.subr.bf16.mxu0 %v13302_v46 }
 0xa84   : > { %12689 = vmatpush3.bf16.msra.mxu0 %v13124_v28 }
 0xa85   : > { %12690 = vmatprep.subr.bf16.mxu0 %v13302_v46 }
 0xa88   : > { %12691 = vmatpush3.bf16.msra.mxu0 %v13125_v39 }
 0xa89   : > { %12692 = vmatprep.subr.bf16.mxu0 %v13302_v46 }
 0xa8c   : > { %12693 = vmatpush3.bf16.msra.mxu0 %v13126_v2 }
 0xa8d   : > { %12694 = vmatprep.subr.bf16.mxu0 %v13302_v46 }
 0xa90   : > { %12695 = vmatpush3.bf16.msra.mxu0 %v13127_v53 }
 0xa91   : > { %12696 = vmatprep.subr.bf16.mxu0 %v13302_v46 }
 0xa94   : > { %12697 = vmatpush3.bf16.msra.mxu0 %v10173_v32 }
 0xb52   : > { %v10115_v31 = vpop.f32.mrb[0].mxu0 }
 0xb53   : > { %v10116_v58 = vadd.f32 %v10115_v31, %v10028_v51  ;;  %v12684_v59 = vpop.f32.mrb[1].mxu0 }
 0xb54   : > { %v10118_v41 = vpop.f32.mrb[2].mxu0 }
 0xb55   : > { %v10121_v3 = vmax.f32 %v10116_v58, 0.0  ;;  %v12685_v42 = vpop.f32.mrb[3].mxu0 }
 0xb57   : > { %v10122_v46 = vpack.c.bf16 %v10121_v3, %v10121_v3 }
 0xb59   : > { %12699 = vmatmul.mubr.msk.bf16.vlgmr.msra.gmra.mrb[4].mxu0 %vm10168_vm4, %v10122_v46 }
 0xc2c   : > { %v10209_v6 = vpop.f32.mrb[4].mxu0 }
 0xc2d   : > { %v10210_v22 = vadd.f32 %v10209_v6, %v10134_v30  ;;  %v12700_v36 = vpop.f32.mrb[5].mxu0 }
 0xc2e   : > { %v10212_v55 = vpop.f32.mrb[6].mxu0 }
 0xc2f   : > { %10215 = vst [vmem:[%s433_s16] sm:$0x1] %v10210_v22  ;;  %v12701_v10 = vpop.f32.mrb[7].mxu0 }
 0xc30   : > { %13250 = shalt.err (!%p13247_p3)
}
 0xc31   : > { %s13251_s23 = scalar_lea.hbm %s17735_s0, 16  ;;  %s13255_s22 = scalar_lea.hbm %s17790_s13, 32 }
 0xc32   : > { %p13252_p4 = scmp.ne.s32.totalorder %s17735_s0, %s13251_s23  ;;  %p13256_p9 = scmp.lt.u32.totalorder %s17735_s0, %s17790_s13 }
 0xc33   : > { %p13257_p10 = scmp.lt.u32.totalorder %s13255_s22, %s13251_s23  ;;  %p13259_p12 = scmp.lt.u32.totalorder %s13251_s23, %s17735_s0 }
 0xc34   : > { %p13253_p7 = pnand %p13252_p4, %p13417_p5 }
 0xc35   : > { %p13258_p11 = por %p13257_p10, %p13256_p9 }
 0xc36   : > { %p13254_p8 = pneg %p13253_p7 }
 0xc37   : > { %p13260_p13 = por %p13259_p12, %p13258_p11 }
 0xc39   : > { %p13261_p0 = pnand %p13260_p13, %p13254_p8 }
 0xc3b   : > { %13264 = shalt.err (!%p13261_p0)
}
 0xc3c   : > { %12848 = dma.vmem_to_hbm [thread:$0]  (%p13417_p5), %s17737_s21, 16, %s17735_s0, %s10217_s24  }
 0xc3d PF: > { %p12854_p1 = scmp.ge.s32.totalorder %s13299_s28, 2  ;;  %s10241_s29 = sand.u32 1, %s13287_s25  }
 0xc3e   : > { %s10242_s20 = scalar_lea.sflag [#allocation5], %s10241_s29 }
 0xc3f   : > { %p12851_p2 = pnand %p12854_p1, %p13421_p6 }
 0xc41   : > { %13282 = dma.done.wait (!%p12851_p2), %s10242_s20, 16  }
 0xc42   : > { %13284 = vsyncadd (!%p12851_p2), %s10242_s20, 4294967280  ;;  %p23_p3 = scmp.ge.s32.totalorder %s13404_s14, 4   ;;  %s17797_s25 = smov %s13291_s26 }
 0xc43   : > { %s17798_s26 = smov %s13295_s27  ;;  %s17799_s27 = smov %s13415_s17 }
 0xc44   : > { %s17800_s28 = smov %s13404_s14  ;;  %25 = sbr.rel (!%p23_p3) target bundleno = 6 (0x6), region = 139 }
 0xc4b   :  { %10246 = vsyncpa [#allocation5], 1 }
 0xc4c   :  { %10248 = vsyncpa [#allocation5 + $0x1], 1 }

</bundles_post_ra>
